<compile_context>
chip_gen: v7x
topology: tpu7x:2x2x1
jax: 0.10.0
libtpu: 0.0.40
codegen_flags: <defaults>
</compile_context>

<pallas_src>
import functools
import math

import numpy as np

import jax
import jax.numpy as jnp
from jax import lax
from jax.experimental import pallas as pl
from jax.experimental.pallas import tpu as pltpu


# ---------------------------------------------------------------------------
# Fused kernel: one grid step == `bt` images, everything stays in VMEM.
# ---------------------------------------------------------------------------
def _fused_decoder_kernel(*refs, num_layers, bt, H, W):
    f32, bf16 = jnp.float32, jnp.bfloat16

    x_ref, w0_ref, b0_ref = refs[0], refs[1], refs[2]
    layer_refs = [refs[3 + 7 * l: 3 + 7 * (l + 1)] for l in range(num_layers)]
    o_ref = refs[3 + 7 * num_layers]
    scratch = refs[4 + 7 * num_layers:]
    ras = list(scratch[:num_layers])       # conv outputs feeding the downsamples
    pads = list(scratch[num_layers:])      # zero-padded, row-flattened conv inputs

    for b in range(bt):                    # images stacked in this grid step
        # ---- stage 0: 3x3 'same' conv == ONE K-folded bf16 matmul (im2col'd x)
        ras[0][...] = (jnp.dot(x_ref[b], w0_ref[...],
                               preferred_element_type=f32) + b0_ref[...])

        Hc, Wc = H, W
        Wrow = W                           # row width of the current activation layout
        for l in range(num_layers):
            (dw_ref, db_ref, sc_ref, sh_ref,
             sel_ref, cw_ref, cb_ref) = layer_refs[l]
            Ho, Wo = Hc // 2, Wc // 2
            Wpn = Wo + 2
            a_ref = ras[l]

            # -- Conv2d(k=2, s=2) at full res: 4 shifted-slab bf16 matmuls
            My = (Hc - 2) * Wrow + Wc - 1
            y = jnp.dot(a_ref[pl.ds(0, My), :].astype(bf16), dw_ref[0],
                        preferred_element_type=f32)
            for t in range(1, 4):
                dy, dx = divmod(t, 2)
                y = y + jnp.dot(a_ref[pl.ds(dy * Wrow + dx, My), :].astype(bf16),
                                dw_ref[t], preferred_element_type=f32)
            y = jnp.maximum(y + db_ref[...], 0.0)    # Dropout(eval)=id, ReLU
            y = y * sc_ref[...] + sh_ref[...]        # BatchNorm2d (running stats)

            # -- constant 0/1 matmul: picks the stride-2 rows AND writes the
            #    fully zero-padded input of the next 3x3 conv in one shot
            pads[l][...] = jnp.dot(sel_ref[...], y.astype(bf16),
                                   preferred_element_type=f32)

            # -- 3x3 'same' conv: 9 shifted-slab bf16 matmuls accumulated
            #    straight into the destination ref / output block
            M = Ho * Wpn
            pad_ref = pads[l]

            def tap(t):
                dy, dx = divmod(t, 3)
                return jnp.dot(pad_ref[pl.ds(dy * Wpn + dx, M), :].astype(bf16),
                               cw_ref[t], preferred_element_type=f32)

            if l == num_layers - 1:
                acc = tap(0) + cb_ref[...]           # tiny (Hf*(Wf+2), Cf) slab
                for t in range(1, 9):
                    acc = acc + tap(t)
                o_ref[b] = jnp.maximum(acc, 0.0).astype(o_ref.dtype)  # one bulk store
            else:
                dst = ras[l + 1]
                dst[...] = tap(0) + cb_ref[...]
                for t in range(1, 9):
                    dst[...] += tap(t)
                dst[...] = jnp.maximum(dst[...], 0.0)  # Dropout(eval)=id, ReLU

            Hc, Wc, Wrow = Ho, Wo, Wpn


def _sel_pad_matrix(Hc, Wc, Wrow):
    """(P_rows, My) 0/1 matrix mapping full-res down-sample rows (row width
    `Wrow`) to the zero-padded flattened layout of the next 3x3 conv."""
    Ho, Wo = Hc // 2, Wc // 2
    Wpn = Wo + 2
    My = (Hc - 2) * Wrow + Wc - 1
    P_rows = (Ho + 2) * Wpn + 2
    S = np.zeros((P_rows, My), np.float32)
    for ho in range(Ho):
        for wo in range(Wo):
            S[(ho + 1) * Wpn + 1 + wo, 2 * ho * Wrow + 2 * wo] = 1.0
    return S


# ---------------------------------------------------------------------------
# Wrapper: weight prep / im2col (tiny, trace-time) + single pallas_call.
# ---------------------------------------------------------------------------
def image_decoder_forward(params, x_nchw, *, num_layers, d_model, eps=1e-5,
                          images_per_step=1):
    B, Cimg, H, W = x_nchw.shape
    assert num_layers >= 1 and d_model % 2 ** num_layers == 0
    bt = images_per_step
    assert B % bt == 0
    init_dim = d_model // 2 ** num_layers
    dims = tuple(init_dim * 2 ** l for l in range(num_layers + 1))
    Hs = [H // 2 ** l for l in range(num_layers + 1)]
    Ws = [W // 2 ** l for l in range(num_layers + 1)]
    bf16 = jnp.bfloat16

    # Stage-0 im2col in the wrapper: fold the 9 taps into K = 9*Cimg.
    x_nhwc = jnp.transpose(x_nchw, (0, 2, 3, 1))
    xp = jnp.pad(x_nhwc, ((0, 0), (1, 1), (1, 1), (0, 0)))
    x_col = jnp.concatenate(
        [xp[:, dy:dy + H, dx:dx + W, :] for dy in range(3) for dx in range(3)],
        axis=-1).reshape(B, H * W, 9 * Cimg).astype(bf16)

    def taps(w, k):   # (Cout, Cin, k, k) -> (k*k, Cin, Cout) bf16, tap order dy*k+dx
        return jnp.transpose(w, (2, 3, 1, 0)).reshape(
            k * k, w.shape[1], w.shape[0]).astype(bf16)

    w0_col = jnp.transpose(params["w0"], (2, 3, 1, 0)).reshape(
        9 * Cimg, dims[0]).astype(bf16)

    args = [x_col, w0_col, params["b0"].reshape(1, -1)]
    in_specs = [
        pl.BlockSpec((bt, H * W, 9 * Cimg), lambda i: (i, 0, 0)),
        pl.BlockSpec((9 * Cimg, dims[0]), lambda i: (0, 0)),
        pl.BlockSpec((1, dims[0]), lambda i: (0, 0)),
    ]
    for l in range(num_layers):
        p = params["layers"][l]
        cin, cout = dims[l], dims[l + 1]
        scale = p["gamma"] / jnp.sqrt(p["rvar"] + eps)
        shift = p["beta"] - p["rmean"] * scale
        Wrow = W if l == 0 else Ws[l] + 2
        sel = jnp.asarray(_sel_pad_matrix(Hs[l], Ws[l], Wrow)).astype(bf16)
        args += [taps(p["dw"], 2), p["db"].reshape(1, -1),
                 scale.reshape(1, -1), shift.reshape(1, -1),
                 sel, taps(p["cw"], 3), p["cb"].reshape(1, -1)]
        in_specs += [
            pl.BlockSpec((4, cin, cout), lambda i: (0, 0, 0)),
            pl.BlockSpec((1, cout), lambda i: (0, 0)),
            pl.BlockSpec((1, cout), lambda i: (0, 0)),
            pl.BlockSpec((1, cout), lambda i: (0, 0)),
            pl.BlockSpec(sel.shape, lambda i: (0, 0)),
            pl.BlockSpec((9, cout, cout), lambda i: (0, 0, 0)),
            pl.BlockSpec((1, cout), lambda i: (0, 0)),
        ]

    Hf, Wf, Cf = Hs[-1], Ws[-1], dims[-1]

    # VMEM scratch: downsample inputs (conv outputs) + zero-padded conv inputs.
    scratch = [pltpu.VMEM((H * W, dims[0]), jnp.float32)]
    scratch += [pltpu.VMEM((Hs[l] * (Ws[l] + 2), dims[l]), jnp.float32)
                for l in range(1, num_layers)]
    scratch += [pltpu.VMEM(((Hs[l + 1] + 2) * (Ws[l + 1] + 2) + 2, dims[l + 1]),
                           jnp.float32)
                for l in range(num_layers)]

    kernel = functools.partial(_fused_decoder_kernel, num_layers=num_layers,
                               bt=bt, H=H, W=W)
    out = pl.pallas_call(
        kernel,
        out_shape=jax.ShapeDtypeStruct((B, Hf * (Wf + 2), Cf), x_nchw.dtype),
        grid_spec=pltpu.PrefetchScalarGridSpec(
            num_scalar_prefetch=0,
            grid=(B // bt,),
            in_specs=in_specs,
            out_specs=pl.BlockSpec((bt, Hf * (Wf + 2), Cf), lambda i: (i, 0, 0)),
            scratch_shapes=scratch),
        compiler_params=pltpu.CompilerParams(
            dimension_semantics=("parallel",),
            vmem_limit_bytes=32 * 1024 * 1024),
    )(*args)

    # Drop the 2 junk columns per row block, then torch `x.view(B, -1, d_model)`
    # on the NCHW-contiguous tensor (both are tiny, free wrapper reshapes).
    out = out.reshape(B, Hf, Wf + 2, Cf)[:, :, :Wf, :]
    return jnp.transpose(out, (0, 3, 1, 2)).reshape(B, -1, d_model)


# ---------------------------------------------------------------------------
# Deterministic PyTorch-like parameters and a pure-JAX (f32) reference.
# ---------------------------------------------------------------------------
def init_params(key, d_model, num_layers):
    init_dim = d_model // 2 ** num_layers

    def conv_init(k, cout, cin, ksz):
        kw, kb = jax.random.split(k)
        bound = 1.0 / math.sqrt(cin * ksz * ksz)
        w = jax.random.uniform(kw, (cout, cin, ksz, ksz), jnp.float32, -bound, bound)
        b = jax.random.uniform(kb, (cout,), jnp.float32, -bound, bound)
        return w, b

    keys = jax.random.split(key, 1 + 2 * num_layers)
    w0, b0 = conv_init(keys[0], init_dim, 3, 3)
    layers = []
    for i in range(num_layers):
        cin = init_dim * 2 ** i
        cout = init_dim * 2 ** (i + 1)
        dw, db = conv_init(keys[1 + 2 * i], cout, cin, 2)
        cw, cb = conv_init(keys[2 + 2 * i], cout, cout, 3)
        kg, kb2, km, kv = jax.random.split(jax.random.fold_in(key, 1000 + i), 4)
        layers.append(dict(
            dw=dw, db=db, cw=cw, cb=cb,
            gamma=jax.random.uniform(kg, (cout,), jnp.float32, 0.5, 1.5),
            beta=0.1 * jax.random.normal(kb2, (cout,), jnp.float32),
            rmean=0.1 * jax.random.normal(km, (cout,), jnp.float32),
            rvar=jax.random.uniform(kv, (cout,), jnp.float32, 0.5, 1.5),
        ))
    return dict(w0=w0, b0=b0, layers=layers)


def reference_forward(params, x_nchw, num_layers, d_model, eps=1e-5):
    dn = ("NCHW", "OIHW", "NCHW")

    def bcast(v):
        return v[None, :, None, None]

    x = lax.conv_general_dilated(x_nchw, params["w0"], (1, 1),
                                 ((1, 1), (1, 1)), dimension_numbers=dn)
    x = x + bcast(params["b0"])
    for i in range(num_layers):
        p = params["layers"][i]
        x = lax.conv_general_dilated(x, p["dw"], (2, 2), "VALID",
                                     dimension_numbers=dn) + bcast(p["db"])
        x = jnp.maximum(x, 0.0)
        x = (x - bcast(p["rmean"])) / jnp.sqrt(bcast(p["rvar"]) + eps)
        x = x * bcast(p["gamma"]) + bcast(p["beta"])
        x = lax.conv_general_dilated(x, p["cw"], (1, 1), ((1, 1), (1, 1)),
                                     dimension_numbers=dn) + bcast(p["cb"])
        x = jnp.maximum(x, 0.0)
    return x.reshape(x.shape[0], -1, d_model)


if __name__ == "__main__":
    d_model, num_layers = 32, 2          # init_dim = 32 // 4 = 8
    B, H, W = 2, 16, 16

    key = jax.random.PRNGKey(0)
    kp, kx = jax.random.split(key)
    params = init_params(kp, d_model, num_layers)
    x = jax.random.normal(kx, (B, 3, H, W), jnp.float32)

    run = jax.jit(functools.partial(image_decoder_forward,
                                    num_layers=num_layers, d_model=d_model,
                                    images_per_step=2))
    out = jax.block_until_ready(run(params, x))

    ref = jax.block_until_ready(
        reference_forward(params, x, num_layers, d_model))

    n_tokens = (H // 2 ** num_layers) * (W // 2 ** num_layers)
    assert out.shape == (B, n_tokens, d_model), out.shape
    err = float(jnp.max(jnp.abs(out - ref)))
    ref_scale = float(jnp.max(jnp.abs(ref)))
    # bf16 matmul operands (f32 accumulation) -> bf16-level tolerance vs f32 ref.
    assert err <= 5e-2 * max(1.0, ref_scale), (
        f"max abs error vs reference: {err} (ref max {ref_scale})")
    print("KERNEL_OK")
</pallas_src>

<mosaic_0001>
module attributes {stable_mosaic.version = 11 : i64} {
  func.func @_fused_decoder_kernel(%arg0: i32, %arg1: memref<2x256x27xbf16, #tpu.memory_space<vmem>>, %arg2: memref<27x8xbf16, #tpu.memory_space<vmem>>, %arg3: memref<1x8xf32, #tpu.memory_space<vmem>>, %arg4: memref<4x8x16xbf16, #tpu.memory_space<vmem>>, %arg5: memref<1x16xf32, #tpu.memory_space<vmem>>, %arg6: memref<1x16xf32, #tpu.memory_space<vmem>>, %arg7: memref<1x16xf32, #tpu.memory_space<vmem>>, %arg8: memref<102x239xbf16, #tpu.memory_space<vmem>>, %arg9: memref<9x16x16xbf16, #tpu.memory_space<vmem>>, %arg10: memref<1x16xf32, #tpu.memory_space<vmem>>, %arg11: memref<4x16x32xbf16, #tpu.memory_space<vmem>>, %arg12: memref<1x32xf32, #tpu.memory_space<vmem>>, %arg13: memref<1x32xf32, #tpu.memory_space<vmem>>, %arg14: memref<1x32xf32, #tpu.memory_space<vmem>>, %arg15: memref<38x67xbf16, #tpu.memory_space<vmem>>, %arg16: memref<9x32x32xbf16, #tpu.memory_space<vmem>>, %arg17: memref<1x32xf32, #tpu.memory_space<vmem>>, %arg18: memref<2x24x32xf32, #tpu.memory_space<vmem>>, %arg19: memref<256x8xf32, #tpu.memory_space<vmem>>, %arg20: memref<80x16xf32, #tpu.memory_space<vmem>>, %arg21: memref<102x16xf32, #tpu.memory_space<vmem>>, %arg22: memref<38x32xf32, #tpu.memory_space<vmem>>) attributes {dimension_semantics = [#tpu.dimension_semantics<parallel>], iteration_bounds = array<i64: 1>, scalar_prefetch = 0 : i64, scratch_operands = 4 : i64, tpu.core_type = #tpu.core_type<tc>, window_params = [{transform_indices = @transform_0, window_bounds = array<i64: 2, 256, 27>}, {pipeline_mode = #tpu.pipeline_mode<synchronous>, transform_indices = @transform_1, window_bounds = array<i64: 27, 8>}, {pipeline_mode = #tpu.pipeline_mode<synchronous>, transform_indices = @transform_2, window_bounds = array<i64: 1, 8>}, {pipeline_mode = #tpu.pipeline_mode<synchronous>, transform_indices = @transform_3, window_bounds = array<i64: 4, 8, 16>}, {pipeline_mode = #tpu.pipeline_mode<synchronous>, transform_indices = @transform_4, window_bounds = array<i64: 1, 16>}, {pipeline_mode = #tpu.pipeline_mode<synchronous>, transform_indices = @transform_5, window_bounds = array<i64: 1, 16>}, {pipeline_mode = #tpu.pipeline_mode<synchronous>, transform_indices = @transform_6, window_bounds = array<i64: 1, 16>}, {pipeline_mode = #tpu.pipeline_mode<synchronous>, transform_indices = @transform_7, window_bounds = array<i64: 102, 239>}, {pipeline_mode = #tpu.pipeline_mode<synchronous>, transform_indices = @transform_8, window_bounds = array<i64: 9, 16, 16>}, {pipeline_mode = #tpu.pipeline_mode<synchronous>, transform_indices = @transform_9, window_bounds = array<i64: 1, 16>}, {pipeline_mode = #tpu.pipeline_mode<synchronous>, transform_indices = @transform_10, window_bounds = array<i64: 4, 16, 32>}, {pipeline_mode = #tpu.pipeline_mode<synchronous>, transform_indices = @transform_11, window_bounds = array<i64: 1, 32>}, {pipeline_mode = #tpu.pipeline_mode<synchronous>, transform_indices = @transform_12, window_bounds = array<i64: 1, 32>}, {pipeline_mode = #tpu.pipeline_mode<synchronous>, transform_indices = @transform_13, window_bounds = array<i64: 1, 32>}, {pipeline_mode = #tpu.pipeline_mode<synchronous>, transform_indices = @transform_14, window_bounds = array<i64: 38, 67>}, {pipeline_mode = #tpu.pipeline_mode<synchronous>, transform_indices = @transform_15, window_bounds = array<i64: 9, 32, 32>}, {pipeline_mode = #tpu.pipeline_mode<synchronous>, transform_indices = @transform_16, window_bounds = array<i64: 1, 32>}, {transform_indices = @transform_17, window_bounds = array<i64: 2, 24, 32>}]} {
    %c0 = arith.constant 0 : index
    %c0_0 = arith.constant 0 : index
    %c0_1 = arith.constant 0 : index
    %0 = vector.load %arg1[%c0, %c0_0, %c0_1] : memref<2x256x27xbf16, #tpu.memory_space<vmem>>, vector<1x256x27xbf16>
    %1 = vector.shape_cast %0 : vector<1x256x27xbf16> to vector<256x27xbf16>
    %c0_2 = arith.constant 0 : index
    %c0_3 = arith.constant 0 : index
    %2 = vector.load %arg2[%c0_2, %c0_3] : memref<27x8xbf16, #tpu.memory_space<vmem>>, vector<27x8xbf16>
    %cst = arith.constant dense<0.000000e+00> : vector<256x8xf32>
    %3 = tpu.matmul %1, %2, %cst {dimension_numbers = #tpu.dot_dimension_numbers<[1], [0], [0], [1], [0, 0, 1, 1], [], []>} : vector<256x27xbf16>, vector<27x8xbf16>, vector<256x8xf32> -> vector<256x8xf32>
    %c0_4 = arith.constant 0 : index
    %c0_5 = arith.constant 0 : index
    %4 = vector.load %arg3[%c0_4, %c0_5] : memref<1x8xf32, #tpu.memory_space<vmem>>, vector<1x8xf32>
    %5 = vector.broadcast %4 : vector<1x8xf32> to vector<256x8xf32>
    %6 = arith.addf %3, %5 : vector<256x8xf32>
    %c0_6 = arith.constant 0 : index
    %c0_7 = arith.constant 0 : index
    %7 = vector.load %arg19[%c0_6, %c0_7] : memref<256x8xf32, #tpu.memory_space<vmem>>, vector<256x8xf32>
    tpu.vector_store %arg19[%c0_6, %c0_7], %6 {strides = array<i32>} : memref<256x8xf32, #tpu.memory_space<vmem>>, vector<256x8xf32>,
    %c0_8 = arith.constant 0 : index
    %c0_9 = arith.constant 0 : index
    %8 = vector.load %arg19[%c0_8, %c0_9] : memref<256x8xf32, #tpu.memory_space<vmem>>, vector<239x8xf32>
    %9 = arith.truncf %8 : vector<239x8xf32> to vector<239x8xbf16>
    %c0_10 = arith.constant 0 : index
    %c0_11 = arith.constant 0 : index
    %c0_12 = arith.constant 0 : index
    %10 = vector.load %arg4[%c0_10, %c0_11, %c0_12] : memref<4x8x16xbf16, #tpu.memory_space<vmem>>, vector<1x8x16xbf16>
    %11 = vector.shape_cast %10 : vector<1x8x16xbf16> to vector<8x16xbf16>
    %cst_13 = arith.constant dense<0.000000e+00> : vector<239x16xf32>
    %12 = tpu.matmul %9, %11, %cst_13 {dimension_numbers = #tpu.dot_dimension_numbers<[1], [0], [0], [1], [0, 0, 1, 1], [], []>} : vector<239x8xbf16>, vector<8x16xbf16>, vector<239x16xf32> -> vector<239x16xf32>
    %c1 = arith.constant 1 : index
    %c0_14 = arith.constant 0 : index
    %13 = vector.load %arg19[%c1, %c0_14] : memref<256x8xf32, #tpu.memory_space<vmem>>, vector<239x8xf32>
    %14 = arith.truncf %13 : vector<239x8xf32> to vector<239x8xbf16>
    %c1_15 = arith.constant 1 : index
    %c0_16 = arith.constant 0 : index
    %c0_17 = arith.constant 0 : index
    %15 = vector.load %arg4[%c1_15, %c0_16, %c0_17] : memref<4x8x16xbf16, #tpu.memory_space<vmem>>, vector<1x8x16xbf16>
    %16 = vector.shape_cast %15 : vector<1x8x16xbf16> to vector<8x16xbf16>
    %cst_18 = arith.constant dense<0.000000e+00> : vector<239x16xf32>
    %17 = tpu.matmul %14, %16, %cst_18 {dimension_numbers = #tpu.dot_dimension_numbers<[1], [0], [0], [1], [0, 0, 1, 1], [], []>} : vector<239x8xbf16>, vector<8x16xbf16>, vector<239x16xf32> -> vector<239x16xf32>
    %18 = arith.addf %12, %17 : vector<239x16xf32>
    %c16 = arith.constant 16 : index
    %c0_19 = arith.constant 0 : index
    %19 = vector.load %arg19[%c16, %c0_19] : memref<256x8xf32, #tpu.memory_space<vmem>>, vector<239x8xf32>
    %20 = arith.truncf %19 : vector<239x8xf32> to vector<239x8xbf16>
    %c2 = arith.constant 2 : index
    %c0_20 = arith.constant 0 : index
    %c0_21 = arith.constant 0 : index
    %21 = vector.load %arg4[%c2, %c0_20, %c0_21] : memref<4x8x16xbf16, #tpu.memory_space<vmem>>, vector<1x8x16xbf16>
    %22 = vector.shape_cast %21 : vector<1x8x16xbf16> to vector<8x16xbf16>
    %cst_22 = arith.constant dense<0.000000e+00> : vector<239x16xf32>
    %23 = tpu.matmul %20, %22, %cst_22 {dimension_numbers = #tpu.dot_dimension_numbers<[1], [0], [0], [1], [0, 0, 1, 1], [], []>} : vector<239x8xbf16>, vector<8x16xbf16>, vector<239x16xf32> -> vector<239x16xf32>
    %24 = arith.addf %18, %23 : vector<239x16xf32>
    %c17 = arith.constant 17 : index
    %c0_23 = arith.constant 0 : index
    %25 = vector.load %arg19[%c17, %c0_23] : memref<256x8xf32, #tpu.memory_space<vmem>>, vector<239x8xf32>
    %26 = arith.truncf %25 : vector<239x8xf32> to vector<239x8xbf16>
    %c3 = arith.constant 3 : index
    %c0_24 = arith.constant 0 : index
    %c0_25 = arith.constant 0 : index
    %27 = vector.load %arg4[%c3, %c0_24, %c0_25] : memref<4x8x16xbf16, #tpu.memory_space<vmem>>, vector<1x8x16xbf16>
    %28 = vector.shape_cast %27 : vector<1x8x16xbf16> to vector<8x16xbf16>
    %cst_26 = arith.constant dense<0.000000e+00> : vector<239x16xf32>
    %29 = tpu.matmul %26, %28, %cst_26 {dimension_numbers = #tpu.dot_dimension_numbers<[1], [0], [0], [1], [0, 0, 1, 1], [], []>} : vector<239x8xbf16>, vector<8x16xbf16>, vector<239x16xf32> -> vector<239x16xf32>
    %30 = arith.addf %24, %29 : vector<239x16xf32>
    %c0_27 = arith.constant 0 : index
    %c0_28 = arith.constant 0 : index
    %31 = vector.load %arg5[%c0_27, %c0_28] : memref<1x16xf32, #tpu.memory_space<vmem>>, vector<1x16xf32>
    %32 = vector.broadcast %31 : vector<1x16xf32> to vector<239x16xf32>
    %33 = arith.addf %30, %32 : vector<239x16xf32>
    %cst_29 = arith.constant 0.000000e+00 : f32
    %34 = vector.broadcast %cst_29 : f32 to vector<239x16xf32>
    %35 = arith.maximumf %33, %34 : vector<239x16xf32>
    %c0_30 = arith.constant 0 : index
    %c0_31 = arith.constant 0 : index
    %36 = vector.load %arg6[%c0_30, %c0_31] : memref<1x16xf32, #tpu.memory_space<vmem>>, vector<1x16xf32>
    %37 = vector.broadcast %36 : vector<1x16xf32> to vector<239x16xf32>
    %38 = arith.mulf %35, %37 : vector<239x16xf32>
    %c0_32 = arith.constant 0 : index
    %c0_33 = arith.constant 0 : index
    %39 = vector.load %arg7[%c0_32, %c0_33] : memref<1x16xf32, #tpu.memory_space<vmem>>, vector<1x16xf32>
    %40 = vector.broadcast %39 : vector<1x16xf32> to vector<239x16xf32>
    %41 = arith.addf %38, %40 : vector<239x16xf32>
    %c0_34 = arith.constant 0 : index
    %c0_35 = arith.constant 0 : index
    %42 = vector.load %arg8[%c0_34, %c0_35] : memref<102x239xbf16, #tpu.memory_space<vmem>>, vector<102x239xbf16>
    %43 = arith.truncf %41 : vector<239x16xf32> to vector<239x16xbf16>
    %cst_36 = arith.constant dense<0.000000e+00> : vector<102x16xf32>
    %44 = tpu.matmul %42, %43, %cst_36 {dimension_numbers = #tpu.dot_dimension_numbers<[1], [0], [0], [1], [0, 0, 1, 1], [], []>} : vector<102x239xbf16>, vector<239x16xbf16>, vector<102x16xf32> -> vector<102x16xf32>
    %c0_37 = arith.constant 0 : index
    %c0_38 = arith.constant 0 : index
    %45 = vector.load %arg21[%c0_37, %c0_38] : memref<102x16xf32, #tpu.memory_space<vmem>>, vector<102x16xf32>
    tpu.vector_store %arg21[%c0_37, %c0_38], %44 {strides = array<i32>} : memref<102x16xf32, #tpu.memory_space<vmem>>, vector<102x16xf32>,
    %c0_39 = arith.constant 0 : index
    %c0_40 = arith.constant 0 : index
    %46 = vector.load %arg21[%c0_39, %c0_40] : memref<102x16xf32, #tpu.memory_space<vmem>>, vector<80x16xf32>
    %47 = arith.truncf %46 : vector<80x16xf32> to vector<80x16xbf16>
    %c0_41 = arith.constant 0 : index
    %c0_42 = arith.constant 0 : index
    %c0_43 = arith.constant 0 : index
    %48 = vector.load %arg9[%c0_41, %c0_42, %c0_43] : memref<9x16x16xbf16, #tpu.memory_space<vmem>>, vector<1x16x16xbf16>
    %49 = vector.shape_cast %48 : vector<1x16x16xbf16> to vector<16x16xbf16>
    %cst_44 = arith.constant dense<0.000000e+00> : vector<80x16xf32>
    %50 = tpu.matmul %47, %49, %cst_44 {dimension_numbers = #tpu.dot_dimension_numbers<[1], [0], [0], [1], [0, 0, 1, 1], [], []>} : vector<80x16xbf16>, vector<16x16xbf16>, vector<80x16xf32> -> vector<80x16xf32>
    %c0_45 = arith.constant 0 : index
    %c0_46 = arith.constant 0 : index
    %51 = vector.load %arg10[%c0_45, %c0_46] : memref<1x16xf32, #tpu.memory_space<vmem>>, vector<1x16xf32>
    %52 = vector.broadcast %51 : vector<1x16xf32> to vector<80x16xf32>
    %53 = arith.addf %50, %52 : vector<80x16xf32>
    %c0_47 = arith.constant 0 : index
    %c0_48 = arith.constant 0 : index
    %54 = vector.load %arg20[%c0_47, %c0_48] : memref<80x16xf32, #tpu.memory_space<vmem>>, vector<80x16xf32>
    tpu.vector_store %arg20[%c0_47, %c0_48], %53 {strides = array<i32>} : memref<80x16xf32, #tpu.memory_space<vmem>>, vector<80x16xf32>,
    %c0_49 = arith.constant 0 : index
    %c0_50 = arith.constant 0 : index
    %55 = vector.load %arg20[%c0_49, %c0_50] : memref<80x16xf32, #tpu.memory_space<vmem>>, vector<80x16xf32>
    %c1_51 = arith.constant 1 : index
    %c0_52 = arith.constant 0 : index
    %56 = vector.load %arg21[%c1_51, %c0_52] : memref<102x16xf32, #tpu.memory_space<vmem>>, vector<80x16xf32>
    %57 = arith.truncf %56 : vector<80x16xf32> to vector<80x16xbf16>
    %c1_53 = arith.constant 1 : index
    %c0_54 = arith.constant 0 : index
    %c0_55 = arith.constant 0 : index
    %58 = vector.load %arg9[%c1_53, %c0_54, %c0_55] : memref<9x16x16xbf16, #tpu.memory_space<vmem>>, vector<1x16x16xbf16>
    %59 = vector.shape_cast %58 : vector<1x16x16xbf16> to vector<16x16xbf16>
    %cst_56 = arith.constant dense<0.000000e+00> : vector<80x16xf32>
    %60 = tpu.matmul %57, %59, %cst_56 {dimension_numbers = #tpu.dot_dimension_numbers<[1], [0], [0], [1], [0, 0, 1, 1], [], []>} : vector<80x16xbf16>, vector<16x16xbf16>, vector<80x16xf32> -> vector<80x16xf32>
    %61 = arith.addf %55, %60 : vector<80x16xf32>
    %c0_57 = arith.constant 0 : index
    %c0_58 = arith.constant 0 : index
    %62 = vector.load %arg20[%c0_57, %c0_58] : memref<80x16xf32, #tpu.memory_space<vmem>>, vector<80x16xf32>
    tpu.vector_store %arg20[%c0_57, %c0_58], %61 {strides = array<i32>} : memref<80x16xf32, #tpu.memory_space<vmem>>, vector<80x16xf32>,
    %c0_59 = arith.constant 0 : index
    %c0_60 = arith.constant 0 : index
    %63 = vector.load %arg20[%c0_59, %c0_60] : memref<80x16xf32, #tpu.memory_space<vmem>>, vector<80x16xf32>
    %c2_61 = arith.constant 2 : index
    %c0_62 = arith.constant 0 : index
    %64 = vector.load %arg21[%c2_61, %c0_62] : memref<102x16xf32, #tpu.memory_space<vmem>>, vector<80x16xf32>
    %65 = arith.truncf %64 : vector<80x16xf32> to vector<80x16xbf16>
    %c2_63 = arith.constant 2 : index
    %c0_64 = arith.constant 0 : index
    %c0_65 = arith.constant 0 : index
    %66 = vector.load %arg9[%c2_63, %c0_64, %c0_65] : memref<9x16x16xbf16, #tpu.memory_space<vmem>>, vector<1x16x16xbf16>
    %67 = vector.shape_cast %66 : vector<1x16x16xbf16> to vector<16x16xbf16>
    %cst_66 = arith.constant dense<0.000000e+00> : vector<80x16xf32>
    %68 = tpu.matmul %65, %67, %cst_66 {dimension_numbers = #tpu.dot_dimension_numbers<[1], [0], [0], [1], [0, 0, 1, 1], [], []>} : vector<80x16xbf16>, vector<16x16xbf16>, vector<80x16xf32> -> vector<80x16xf32>
    %69 = arith.addf %63, %68 : vector<80x16xf32>
    %c0_67 = arith.constant 0 : index
    %c0_68 = arith.constant 0 : index
    %70 = vector.load %arg20[%c0_67, %c0_68] : memref<80x16xf32, #tpu.memory_space<vmem>>, vector<80x16xf32>
    tpu.vector_store %arg20[%c0_67, %c0_68], %69 {strides = array<i32>} : memref<80x16xf32, #tpu.memory_space<vmem>>, vector<80x16xf32>,
    %c0_69 = arith.constant 0 : index
    %c0_70 = arith.constant 0 : index
    %71 = vector.load %arg20[%c0_69, %c0_70] : memref<80x16xf32, #tpu.memory_space<vmem>>, vector<80x16xf32>
    %c10 = arith.constant 10 : index
    %c0_71 = arith.constant 0 : index
    %72 = vector.load %arg21[%c10, %c0_71] : memref<102x16xf32, #tpu.memory_space<vmem>>, vector<80x16xf32>
    %73 = arith.truncf %72 : vector<80x16xf32> to vector<80x16xbf16>
    %c3_72 = arith.constant 3 : index
    %c0_73 = arith.constant 0 : index
    %c0_74 = arith.constant 0 : index
    %74 = vector.load %arg9[%c3_72, %c0_73, %c0_74] : memref<9x16x16xbf16, #tpu.memory_space<vmem>>, vector<1x16x16xbf16>
    %75 = vector.shape_cast %74 : vector<1x16x16xbf16> to vector<16x16xbf16>
    %cst_75 = arith.constant dense<0.000000e+00> : vector<80x16xf32>
    %76 = tpu.matmul %73, %75, %cst_75 {dimension_numbers = #tpu.dot_dimension_numbers<[1], [0], [0], [1], [0, 0, 1, 1], [], []>} : vector<80x16xbf16>, vector<16x16xbf16>, vector<80x16xf32> -> vector<80x16xf32>
    %77 = arith.addf %71, %76 : vector<80x16xf32>
    %c0_76 = arith.constant 0 : index
    %c0_77 = arith.constant 0 : index
    %78 = vector.load %arg20[%c0_76, %c0_77] : memref<80x16xf32, #tpu.memory_space<vmem>>, vector<80x16xf32>
    tpu.vector_store %arg20[%c0_76, %c0_77], %77 {strides = array<i32>} : memref<80x16xf32, #tpu.memory_space<vmem>>, vector<80x16xf32>,
    %c0_78 = arith.constant 0 : index
    %c0_79 = arith.constant 0 : index
    %79 = vector.load %arg20[%c0_78, %c0_79] : memref<80x16xf32, #tpu.memory_space<vmem>>, vector<80x16xf32>
    %c11 = arith.constant 11 : index
    %c0_80 = arith.constant 0 : index
    %80 = vector.load %arg21[%c11, %c0_80] : memref<102x16xf32, #tpu.memory_space<vmem>>, vector<80x16xf32>
    %81 = arith.truncf %80 : vector<80x16xf32> to vector<80x16xbf16>
    %c4 = arith.constant 4 : index
    %c0_81 = arith.constant 0 : index
    %c0_82 = arith.constant 0 : index
    %82 = vector.load %arg9[%c4, %c0_81, %c0_82] : memref<9x16x16xbf16, #tpu.memory_space<vmem>>, vector<1x16x16xbf16>
    %83 = vector.shape_cast %82 : vector<1x16x16xbf16> to vector<16x16xbf16>
    %cst_83 = arith.constant dense<0.000000e+00> : vector<80x16xf32>
    %84 = tpu.matmul %81, %83, %cst_83 {dimension_numbers = #tpu.dot_dimension_numbers<[1], [0], [0], [1], [0, 0, 1, 1], [], []>} : vector<80x16xbf16>, vector<16x16xbf16>, vector<80x16xf32> -> vector<80x16xf32>
    %85 = arith.addf %79, %84 : vector<80x16xf32>
    %c0_84 = arith.constant 0 : index
    %c0_85 = arith.constant 0 : index
    %86 = vector.load %arg20[%c0_84, %c0_85] : memref<80x16xf32, #tpu.memory_space<vmem>>, vector<80x16xf32>
    tpu.vector_store %arg20[%c0_84, %c0_85], %85 {strides = array<i32>} : memref<80x16xf32, #tpu.memory_space<vmem>>, vector<80x16xf32>,
    %c0_86 = arith.constant 0 : index
    %c0_87 = arith.constant 0 : index
    %87 = vector.load %arg20[%c0_86, %c0_87] : memref<80x16xf32, #tpu.memory_space<vmem>>, vector<80x16xf32>
    %c12 = arith.constant 12 : index
    %c0_88 = arith.constant 0 : index
    %88 = vector.load %arg21[%c12, %c0_88] : memref<102x16xf32, #tpu.memory_space<vmem>>, vector<80x16xf32>
    %89 = arith.truncf %88 : vector<80x16xf32> to vector<80x16xbf16>
    %c5 = arith.constant 5 : index
    %c0_89 = arith.constant 0 : index
    %c0_90 = arith.constant 0 : index
    %90 = vector.load %arg9[%c5, %c0_89, %c0_90] : memref<9x16x16xbf16, #tpu.memory_space<vmem>>, vector<1x16x16xbf16>
    %91 = vector.shape_cast %90 : vector<1x16x16xbf16> to vector<16x16xbf16>
    %cst_91 = arith.constant dense<0.000000e+00> : vector<80x16xf32>
    %92 = tpu.matmul %89, %91, %cst_91 {dimension_numbers = #tpu.dot_dimension_numbers<[1], [0], [0], [1], [0, 0, 1, 1], [], []>} : vector<80x16xbf16>, vector<16x16xbf16>, vector<80x16xf32> -> vector<80x16xf32>
    %93 = arith.addf %87, %92 : vector<80x16xf32>
    %c0_92 = arith.constant 0 : index
    %c0_93 = arith.constant 0 : index
    %94 = vector.load %arg20[%c0_92, %c0_93] : memref<80x16xf32, #tpu.memory_space<vmem>>, vector<80x16xf32>
    tpu.vector_store %arg20[%c0_92, %c0_93], %93 {strides = array<i32>} : memref<80x16xf32, #tpu.memory_space<vmem>>, vector<80x16xf32>,
    %c0_94 = arith.constant 0 : index
    %c0_95 = arith.constant 0 : index
    %95 = vector.load %arg20[%c0_94, %c0_95] : memref<80x16xf32, #tpu.memory_space<vmem>>, vector<80x16xf32>
    %c20 = arith.constant 20 : index
    %c0_96 = arith.constant 0 : index
    %96 = vector.load %arg21[%c20, %c0_96] : memref<102x16xf32, #tpu.memory_space<vmem>>, vector<80x16xf32>
    %97 = arith.truncf %96 : vector<80x16xf32> to vector<80x16xbf16>
    %c6 = arith.constant 6 : index
    %c0_97 = arith.constant 0 : index
    %c0_98 = arith.constant 0 : index
    %98 = vector.load %arg9[%c6, %c0_97, %c0_98] : memref<9x16x16xbf16, #tpu.memory_space<vmem>>, vector<1x16x16xbf16>
    %99 = vector.shape_cast %98 : vector<1x16x16xbf16> to vector<16x16xbf16>
    %cst_99 = arith.constant dense<0.000000e+00> : vector<80x16xf32>
    %100 = tpu.matmul %97, %99, %cst_99 {dimension_numbers = #tpu.dot_dimension_numbers<[1], [0], [0], [1], [0, 0, 1, 1], [], []>} : vector<80x16xbf16>, vector<16x16xbf16>, vector<80x16xf32> -> vector<80x16xf32>
    %101 = arith.addf %95, %100 : vector<80x16xf32>
    %c0_100 = arith.constant 0 : index
    %c0_101 = arith.constant 0 : index
    %102 = vector.load %arg20[%c0_100, %c0_101] : memref<80x16xf32, #tpu.memory_space<vmem>>, vector<80x16xf32>
    tpu.vector_store %arg20[%c0_100, %c0_101], %101 {strides = array<i32>} : memref<80x16xf32, #tpu.memory_space<vmem>>, vector<80x16xf32>,
    %c0_102 = arith.constant 0 : index
    %c0_103 = arith.constant 0 : index
    %103 = vector.load %arg20[%c0_102, %c0_103] : memref<80x16xf32, #tpu.memory_space<vmem>>, vector<80x16xf32>
    %c21 = arith.constant 21 : index
    %c0_104 = arith.constant 0 : index
    %104 = vector.load %arg21[%c21, %c0_104] : memref<102x16xf32, #tpu.memory_space<vmem>>, vector<80x16xf32>
    %105 = arith.truncf %104 : vector<80x16xf32> to vector<80x16xbf16>
    %c7 = arith.constant 7 : index
    %c0_105 = arith.constant 0 : index
    %c0_106 = arith.constant 0 : index
    %106 = vector.load %arg9[%c7, %c0_105, %c0_106] : memref<9x16x16xbf16, #tpu.memory_space<vmem>>, vector<1x16x16xbf16>
    %107 = vector.shape_cast %106 : vector<1x16x16xbf16> to vector<16x16xbf16>
    %cst_107 = arith.constant dense<0.000000e+00> : vector<80x16xf32>
    %108 = tpu.matmul %105, %107, %cst_107 {dimension_numbers = #tpu.dot_dimension_numbers<[1], [0], [0], [1], [0, 0, 1, 1], [], []>} : vector<80x16xbf16>, vector<16x16xbf16>, vector<80x16xf32> -> vector<80x16xf32>
    %109 = arith.addf %103, %108 : vector<80x16xf32>
    %c0_108 = arith.constant 0 : index
    %c0_109 = arith.constant 0 : index
    %110 = vector.load %arg20[%c0_108, %c0_109] : memref<80x16xf32, #tpu.memory_space<vmem>>, vector<80x16xf32>
    tpu.vector_store %arg20[%c0_108, %c0_109], %109 {strides = array<i32>} : memref<80x16xf32, #tpu.memory_space<vmem>>, vector<80x16xf32>,
    %c0_110 = arith.constant 0 : index
    %c0_111 = arith.constant 0 : index
    %111 = vector.load %arg20[%c0_110, %c0_111] : memref<80x16xf32, #tpu.memory_space<vmem>>, vector<80x16xf32>
    %c22 = arith.constant 22 : index
    %c0_112 = arith.constant 0 : index
    %112 = vector.load %arg21[%c22, %c0_112] : memref<102x16xf32, #tpu.memory_space<vmem>>, vector<80x16xf32>
    %113 = arith.truncf %112 : vector<80x16xf32> to vector<80x16xbf16>
    %c8 = arith.constant 8 : index
    %c0_113 = arith.constant 0 : index
    %c0_114 = arith.constant 0 : index
    %114 = vector.load %arg9[%c8, %c0_113, %c0_114] : memref<9x16x16xbf16, #tpu.memory_space<vmem>>, vector<1x16x16xbf16>
    %115 = vector.shape_cast %114 : vector<1x16x16xbf16> to vector<16x16xbf16>
    %cst_115 = arith.constant dense<0.000000e+00> : vector<80x16xf32>
    %116 = tpu.matmul %113, %115, %cst_115 {dimension_numbers = #tpu.dot_dimension_numbers<[1], [0], [0], [1], [0, 0, 1, 1], [], []>} : vector<80x16xbf16>, vector<16x16xbf16>, vector<80x16xf32> -> vector<80x16xf32>
    %117 = arith.addf %111, %116 : vector<80x16xf32>
    %c0_116 = arith.constant 0 : index
    %c0_117 = arith.constant 0 : index
    %118 = vector.load %arg20[%c0_116, %c0_117] : memref<80x16xf32, #tpu.memory_space<vmem>>, vector<80x16xf32>
    tpu.vector_store %arg20[%c0_116, %c0_117], %117 {strides = array<i32>} : memref<80x16xf32, #tpu.memory_space<vmem>>, vector<80x16xf32>,
    %c0_118 = arith.constant 0 : index
    %c0_119 = arith.constant 0 : index
    %119 = vector.load %arg20[%c0_118, %c0_119] : memref<80x16xf32, #tpu.memory_space<vmem>>, vector<80x16xf32>
    %cst_120 = arith.constant 0.000000e+00 : f32
    %120 = vector.broadcast %cst_120 : f32 to vector<80x16xf32>
    %121 = arith.maximumf %119, %120 : vector<80x16xf32>
    %c0_121 = arith.constant 0 : index
    %c0_122 = arith.constant 0 : index
    %122 = vector.load %arg20[%c0_121, %c0_122] : memref<80x16xf32, #tpu.memory_space<vmem>>, vector<80x16xf32>
    tpu.vector_store %arg20[%c0_121, %c0_122], %121 {strides = array<i32>} : memref<80x16xf32, #tpu.memory_space<vmem>>, vector<80x16xf32>,
    %c0_123 = arith.constant 0 : index
    %c0_124 = arith.constant 0 : index
    %123 = vector.load %arg20[%c0_123, %c0_124] : memref<80x16xf32, #tpu.memory_space<vmem>>, vector<67x16xf32>
    %124 = arith.truncf %123 : vector<67x16xf32> to vector<67x16xbf16>
    %c0_125 = arith.constant 0 : index
    %c0_126 = arith.constant 0 : index
    %c0_127 = arith.constant 0 : index
    %125 = vector.load %arg11[%c0_125, %c0_126, %c0_127] : memref<4x16x32xbf16, #tpu.memory_space<vmem>>, vector<1x16x32xbf16>
    %126 = vector.shape_cast %125 : vector<1x16x32xbf16> to vector<16x32xbf16>
    %cst_128 = arith.constant dense<0.000000e+00> : vector<67x32xf32>
    %127 = tpu.matmul %124, %126, %cst_128 {dimension_numbers = #tpu.dot_dimension_numbers<[1], [0], [0], [1], [0, 0, 1, 1], [], []>} : vector<67x16xbf16>, vector<16x32xbf16>, vector<67x32xf32> -> vector<67x32xf32>
    %c1_129 = arith.constant 1 : index
    %c0_130 = arith.constant 0 : index
    %128 = vector.load %arg20[%c1_129, %c0_130] : memref<80x16xf32, #tpu.memory_space<vmem>>, vector<67x16xf32>
    %129 = arith.truncf %128 : vector<67x16xf32> to vector<67x16xbf16>
    %c1_131 = arith.constant 1 : index
    %c0_132 = arith.constant 0 : index
    %c0_133 = arith.constant 0 : index
    %130 = vector.load %arg11[%c1_131, %c0_132, %c0_133] : memref<4x16x32xbf16, #tpu.memory_space<vmem>>, vector<1x16x32xbf16>
    %131 = vector.shape_cast %130 : vector<1x16x32xbf16> to vector<16x32xbf16>
    %cst_134 = arith.constant dense<0.000000e+00> : vector<67x32xf32>
    %132 = tpu.matmul %129, %131, %cst_134 {dimension_numbers = #tpu.dot_dimension_numbers<[1], [0], [0], [1], [0, 0, 1, 1], [], []>} : vector<67x16xbf16>, vector<16x32xbf16>, vector<67x32xf32> -> vector<67x32xf32>
    %133 = arith.addf %127, %132 : vector<67x32xf32>
    %c10_135 = arith.constant 10 : index
    %c0_136 = arith.constant 0 : index
    %134 = vector.load %arg20[%c10_135, %c0_136] : memref<80x16xf32, #tpu.memory_space<vmem>>, vector<67x16xf32>
    %135 = arith.truncf %134 : vector<67x16xf32> to vector<67x16xbf16>
    %c2_137 = arith.constant 2 : index
    %c0_138 = arith.constant 0 : index
    %c0_139 = arith.constant 0 : index
    %136 = vector.load %arg11[%c2_137, %c0_138, %c0_139] : memref<4x16x32xbf16, #tpu.memory_space<vmem>>, vector<1x16x32xbf16>
    %137 = vector.shape_cast %136 : vector<1x16x32xbf16> to vector<16x32xbf16>
    %cst_140 = arith.constant dense<0.000000e+00> : vector<67x32xf32>
    %138 = tpu.matmul %135, %137, %cst_140 {dimension_numbers = #tpu.dot_dimension_numbers<[1], [0], [0], [1], [0, 0, 1, 1], [], []>} : vector<67x16xbf16>, vector<16x32xbf16>, vector<67x32xf32> -> vector<67x32xf32>
    %139 = arith.addf %133, %138 : vector<67x32xf32>
    %c11_141 = arith.constant 11 : index
    %c0_142 = arith.constant 0 : index
    %140 = vector.load %arg20[%c11_141, %c0_142] : memref<80x16xf32, #tpu.memory_space<vmem>>, vector<67x16xf32>
    %141 = arith.truncf %140 : vector<67x16xf32> to vector<67x16xbf16>
    %c3_143 = arith.constant 3 : index
    %c0_144 = arith.constant 0 : index
    %c0_145 = arith.constant 0 : index
    %142 = vector.load %arg11[%c3_143, %c0_144, %c0_145] : memref<4x16x32xbf16, #tpu.memory_space<vmem>>, vector<1x16x32xbf16>
    %143 = vector.shape_cast %142 : vector<1x16x32xbf16> to vector<16x32xbf16>
    %cst_146 = arith.constant dense<0.000000e+00> : vector<67x32xf32>
    %144 = tpu.matmul %141, %143, %cst_146 {dimension_numbers = #tpu.dot_dimension_numbers<[1], [0], [0], [1], [0, 0, 1, 1], [], []>} : vector<67x16xbf16>, vector<16x32xbf16>, vector<67x32xf32> -> vector<67x32xf32>
    %145 = arith.addf %139, %144 : vector<67x32xf32>
    %c0_147 = arith.constant 0 : index
    %c0_148 = arith.constant 0 : index
    %146 = vector.load %arg12[%c0_147, %c0_148] : memref<1x32xf32, #tpu.memory_space<vmem>>, vector<1x32xf32>
    %147 = vector.broadcast %146 : vector<1x32xf32> to vector<67x32xf32>
    %148 = arith.addf %145, %147 : vector<67x32xf32>
    %cst_149 = arith.constant 0.000000e+00 : f32
    %149 = vector.broadcast %cst_149 : f32 to vector<67x32xf32>
    %150 = arith.maximumf %148, %149 : vector<67x32xf32>
    %c0_150 = arith.constant 0 : index
    %c0_151 = arith.constant 0 : index
    %151 = vector.load %arg13[%c0_150, %c0_151] : memref<1x32xf32, #tpu.memory_space<vmem>>, vector<1x32xf32>
    %152 = vector.broadcast %151 : vector<1x32xf32> to vector<67x32xf32>
    %153 = arith.mulf %150, %152 : vector<67x32xf32>
    %c0_152 = arith.constant 0 : index
    %c0_153 = arith.constant 0 : index
    %154 = vector.load %arg14[%c0_152, %c0_153] : memref<1x32xf32, #tpu.memory_space<vmem>>, vector<1x32xf32>
    %155 = vector.broadcast %154 : vector<1x32xf32> to vector<67x32xf32>
    %156 = arith.addf %153, %155 : vector<67x32xf32>
    %c0_154 = arith.constant 0 : index
    %c0_155 = arith.constant 0 : index
    %157 = vector.load %arg15[%c0_154, %c0_155] : memref<38x67xbf16, #tpu.memory_space<vmem>>, vector<38x67xbf16>
    %158 = arith.truncf %156 : vector<67x32xf32> to vector<67x32xbf16>
    %cst_156 = arith.constant dense<0.000000e+00> : vector<38x32xf32>
    %159 = tpu.matmul %157, %158, %cst_156 {dimension_numbers = #tpu.dot_dimension_numbers<[1], [0], [0], [1], [0, 0, 1, 1], [], []>} : vector<38x67xbf16>, vector<67x32xbf16>, vector<38x32xf32> -> vector<38x32xf32>
    %c0_157 = arith.constant 0 : index
    %c0_158 = arith.constant 0 : index
    %160 = vector.load %arg22[%c0_157, %c0_158] : memref<38x32xf32, #tpu.memory_space<vmem>>, vector<38x32xf32>
    tpu.vector_store %arg22[%c0_157, %c0_158], %159 {strides = array<i32>} : memref<38x32xf32, #tpu.memory_space<vmem>>, vector<38x32xf32>,
    %c0_159 = arith.constant 0 : index
    %c0_160 = arith.constant 0 : index
    %161 = vector.load %arg22[%c0_159, %c0_160] : memref<38x32xf32, #tpu.memory_space<vmem>>, vector<24x32xf32>
    %162 = arith.truncf %161 : vector<24x32xf32> to vector<24x32xbf16>
    %c0_161 = arith.constant 0 : index
    %c0_162 = arith.constant 0 : index
    %c0_163 = arith.constant 0 : index
    %163 = vector.load %arg16[%c0_161, %c0_162, %c0_163] : memref<9x32x32xbf16, #tpu.memory_space<vmem>>, vector<1x32x32xbf16>
    %164 = vector.shape_cast %163 : vector<1x32x32xbf16> to vector<32x32xbf16>
    %cst_164 = arith.constant dense<0.000000e+00> : vector<24x32xf32>
    %165 = tpu.matmul %162, %164, %cst_164 {dimension_numbers = #tpu.dot_dimension_numbers<[1], [0], [0], [1], [0, 0, 1, 1], [], []>} : vector<24x32xbf16>, vector<32x32xbf16>, vector<24x32xf32> -> vector<24x32xf32>
    %c0_165 = arith.constant 0 : index
    %c0_166 = arith.constant 0 : index
    %166 = vector.load %arg17[%c0_165, %c0_166] : memref<1x32xf32, #tpu.memory_space<vmem>>, vector<1x32xf32>
    %167 = vector.broadcast %166 : vector<1x32xf32> to vector<24x32xf32>
    %168 = arith.addf %165, %167 : vector<24x32xf32>
    %c1_167 = arith.constant 1 : index
    %c0_168 = arith.constant 0 : index
    %169 = vector.load %arg22[%c1_167, %c0_168] : memref<38x32xf32, #tpu.memory_space<vmem>>, vector<24x32xf32>
    %170 = arith.truncf %169 : vector<24x32xf32> to vector<24x32xbf16>
    %c1_169 = arith.constant 1 : index
    %c0_170 = arith.constant 0 : index
    %c0_171 = arith.constant 0 : index
    %171 = vector.load %arg16[%c1_169, %c0_170, %c0_171] : memref<9x32x32xbf16, #tpu.memory_space<vmem>>, vector<1x32x32xbf16>
    %172 = vector.shape_cast %171 : vector<1x32x32xbf16> to vector<32x32xbf16>
    %cst_172 = arith.constant dense<0.000000e+00> : vector<24x32xf32>
    %173 = tpu.matmul %170, %172, %cst_172 {dimension_numbers = #tpu.dot_dimension_numbers<[1], [0], [0], [1], [0, 0, 1, 1], [], []>} : vector<24x32xbf16>, vector<32x32xbf16>, vector<24x32xf32> -> vector<24x32xf32>
    %174 = arith.addf %168, %173 : vector<24x32xf32>
    %c2_173 = arith.constant 2 : index
    %c0_174 = arith.constant 0 : index
    %175 = vector.load %arg22[%c2_173, %c0_174] : memref<38x32xf32, #tpu.memory_space<vmem>>, vector<24x32xf32>
    %176 = arith.truncf %175 : vector<24x32xf32> to vector<24x32xbf16>
    %c2_175 = arith.constant 2 : index
    %c0_176 = arith.constant 0 : index
    %c0_177 = arith.constant 0 : index
    %177 = vector.load %arg16[%c2_175, %c0_176, %c0_177] : memref<9x32x32xbf16, #tpu.memory_space<vmem>>, vector<1x32x32xbf16>
    %178 = vector.shape_cast %177 : vector<1x32x32xbf16> to vector<32x32xbf16>
    %cst_178 = arith.constant dense<0.000000e+00> : vector<24x32xf32>
    %179 = tpu.matmul %176, %178, %cst_178 {dimension_numbers = #tpu.dot_dimension_numbers<[1], [0], [0], [1], [0, 0, 1, 1], [], []>} : vector<24x32xbf16>, vector<32x32xbf16>, vector<24x32xf32> -> vector<24x32xf32>
    %180 = arith.addf %174, %179 : vector<24x32xf32>
    %c6_179 = arith.constant 6 : index
    %c0_180 = arith.constant 0 : index
    %181 = vector.load %arg22[%c6_179, %c0_180] : memref<38x32xf32, #tpu.memory_space<vmem>>, vector<24x32xf32>
    %182 = arith.truncf %181 : vector<24x32xf32> to vector<24x32xbf16>
    %c3_181 = arith.constant 3 : index
    %c0_182 = arith.constant 0 : index
    %c0_183 = arith.constant 0 : index
    %183 = vector.load %arg16[%c3_181, %c0_182, %c0_183] : memref<9x32x32xbf16, #tpu.memory_space<vmem>>, vector<1x32x32xbf16>
    %184 = vector.shape_cast %183 : vector<1x32x32xbf16> to vector<32x32xbf16>
    %cst_184 = arith.constant dense<0.000000e+00> : vector<24x32xf32>
    %185 = tpu.matmul %182, %184, %cst_184 {dimension_numbers = #tpu.dot_dimension_numbers<[1], [0], [0], [1], [0, 0, 1, 1], [], []>} : vector<24x32xbf16>, vector<32x32xbf16>, vector<24x32xf32> -> vector<24x32xf32>
    %186 = arith.addf %180, %185 : vector<24x32xf32>
    %c7_185 = arith.constant 7 : index
    %c0_186 = arith.constant 0 : index
    %187 = vector.load %arg22[%c7_185, %c0_186] : memref<38x32xf32, #tpu.memory_space<vmem>>, vector<24x32xf32>
    %188 = arith.truncf %187 : vector<24x32xf32> to vector<24x32xbf16>
    %c4_187 = arith.constant 4 : index
    %c0_188 = arith.constant 0 : index
    %c0_189 = arith.constant 0 : index
    %189 = vector.load %arg16[%c4_187, %c0_188, %c0_189] : memref<9x32x32xbf16, #tpu.memory_space<vmem>>, vector<1x32x32xbf16>
    %190 = vector.shape_cast %189 : vector<1x32x32xbf16> to vector<32x32xbf16>
    %cst_190 = arith.constant dense<0.000000e+00> : vector<24x32xf32>
    %191 = tpu.matmul %188, %190, %cst_190 {dimension_numbers = #tpu.dot_dimension_numbers<[1], [0], [0], [1], [0, 0, 1, 1], [], []>} : vector<24x32xbf16>, vector<32x32xbf16>, vector<24x32xf32> -> vector<24x32xf32>
    %192 = arith.addf %186, %191 : vector<24x32xf32>
    %c8_191 = arith.constant 8 : index
    %c0_192 = arith.constant 0 : index
    %193 = vector.load %arg22[%c8_191, %c0_192] : memref<38x32xf32, #tpu.memory_space<vmem>>, vector<24x32xf32>
    %194 = arith.truncf %193 : vector<24x32xf32> to vector<24x32xbf16>
    %c5_193 = arith.constant 5 : index
    %c0_194 = arith.constant 0 : index
    %c0_195 = arith.constant 0 : index
    %195 = vector.load %arg16[%c5_193, %c0_194, %c0_195] : memref<9x32x32xbf16, #tpu.memory_space<vmem>>, vector<1x32x32xbf16>
    %196 = vector.shape_cast %195 : vector<1x32x32xbf16> to vector<32x32xbf16>
    %cst_196 = arith.constant dense<0.000000e+00> : vector<24x32xf32>
    %197 = tpu.matmul %194, %196, %cst_196 {dimension_numbers = #tpu.dot_dimension_numbers<[1], [0], [0], [1], [0, 0, 1, 1], [], []>} : vector<24x32xbf16>, vector<32x32xbf16>, vector<24x32xf32> -> vector<24x32xf32>
    %198 = arith.addf %192, %197 : vector<24x32xf32>
    %c12_197 = arith.constant 12 : index
    %c0_198 = arith.constant 0 : index
    %199 = vector.load %arg22[%c12_197, %c0_198] : memref<38x32xf32, #tpu.memory_space<vmem>>, vector<24x32xf32>
    %200 = arith.truncf %199 : vector<24x32xf32> to vector<24x32xbf16>
    %c6_199 = arith.constant 6 : index
    %c0_200 = arith.constant 0 : index
    %c0_201 = arith.constant 0 : index
    %201 = vector.load %arg16[%c6_199, %c0_200, %c0_201] : memref<9x32x32xbf16, #tpu.memory_space<vmem>>, vector<1x32x32xbf16>
    %202 = vector.shape_cast %201 : vector<1x32x32xbf16> to vector<32x32xbf16>
    %cst_202 = arith.constant dense<0.000000e+00> : vector<24x32xf32>
    %203 = tpu.matmul %200, %202, %cst_202 {dimension_numbers = #tpu.dot_dimension_numbers<[1], [0], [0], [1], [0, 0, 1, 1], [], []>} : vector<24x32xbf16>, vector<32x32xbf16>, vector<24x32xf32> -> vector<24x32xf32>
    %204 = arith.addf %198, %203 : vector<24x32xf32>
    %c13 = arith.constant 13 : index
    %c0_203 = arith.constant 0 : index
    %205 = vector.load %arg22[%c13, %c0_203] : memref<38x32xf32, #tpu.memory_space<vmem>>, vector<24x32xf32>
    %206 = arith.truncf %205 : vector<24x32xf32> to vector<24x32xbf16>
    %c7_204 = arith.constant 7 : index
    %c0_205 = arith.constant 0 : index
    %c0_206 = arith.constant 0 : index
    %207 = vector.load %arg16[%c7_204, %c0_205, %c0_206] : memref<9x32x32xbf16, #tpu.memory_space<vmem>>, vector<1x32x32xbf16>
    %208 = vector.shape_cast %207 : vector<1x32x32xbf16> to vector<32x32xbf16>
    %cst_207 = arith.constant dense<0.000000e+00> : vector<24x32xf32>
    %209 = tpu.matmul %206, %208, %cst_207 {dimension_numbers = #tpu.dot_dimension_numbers<[1], [0], [0], [1], [0, 0, 1, 1], [], []>} : vector<24x32xbf16>, vector<32x32xbf16>, vector<24x32xf32> -> vector<24x32xf32>
    %210 = arith.addf %204, %209 : vector<24x32xf32>
    %c14 = arith.constant 14 : index
    %c0_208 = arith.constant 0 : index
    %211 = vector.load %arg22[%c14, %c0_208] : memref<38x32xf32, #tpu.memory_space<vmem>>, vector<24x32xf32>
    %212 = arith.truncf %211 : vector<24x32xf32> to vector<24x32xbf16>
    %c8_209 = arith.constant 8 : index
    %c0_210 = arith.constant 0 : index
    %c0_211 = arith.constant 0 : index
    %213 = vector.load %arg16[%c8_209, %c0_210, %c0_211] : memref<9x32x32xbf16, #tpu.memory_space<vmem>>, vector<1x32x32xbf16>
    %214 = vector.shape_cast %213 : vector<1x32x32xbf16> to vector<32x32xbf16>
    %cst_212 = arith.constant dense<0.000000e+00> : vector<24x32xf32>
    %215 = tpu.matmul %212, %214, %cst_212 {dimension_numbers = #tpu.dot_dimension_numbers<[1], [0], [0], [1], [0, 0, 1, 1], [], []>} : vector<24x32xbf16>, vector<32x32xbf16>, vector<24x32xf32> -> vector<24x32xf32>
    %216 = arith.addf %210, %215 : vector<24x32xf32>
    %cst_213 = arith.constant 0.000000e+00 : f32
    %217 = vector.broadcast %cst_213 : f32 to vector<24x32xf32>
    %218 = arith.maximumf %216, %217 : vector<24x32xf32>
    %c0_214 = arith.constant 0 : index
    %c0_215 = arith.constant 0 : index
    %c0_216 = arith.constant 0 : index
    %219 = vector.load %arg18[%c0_214, %c0_215, %c0_216] : memref<2x24x32xf32, #tpu.memory_space<vmem>>, vector<1x24x32xf32>
    %220 = vector.shape_cast %219 : vector<1x24x32xf32> to vector<24x32xf32>
    %221 = vector.shape_cast %218 : vector<24x32xf32> to vector<1x24x32xf32>
    tpu.vector_store %arg18[%c0_214, %c0_215, %c0_216], %221 {strides = array<i32>} : memref<2x24x32xf32, #tpu.memory_space<vmem>>, vector<1x24x32xf32>,
    %c1_217 = arith.constant 1 : index
    %c0_218 = arith.constant 0 : index
    %c0_219 = arith.constant 0 : index
    %222 = vector.load %arg1[%c1_217, %c0_218, %c0_219] : memref<2x256x27xbf16, #tpu.memory_space<vmem>>, vector<1x256x27xbf16>
    %223 = vector.shape_cast %222 : vector<1x256x27xbf16> to vector<256x27xbf16>
    %c0_220 = arith.constant 0 : index
    %c0_221 = arith.constant 0 : index
    %224 = vector.load %arg2[%c0_220, %c0_221] : memref<27x8xbf16, #tpu.memory_space<vmem>>, vector<27x8xbf16>
    %cst_222 = arith.constant dense<0.000000e+00> : vector<256x8xf32>
    %225 = tpu.matmul %223, %224, %cst_222 {dimension_numbers = #tpu.dot_dimension_numbers<[1], [0], [0], [1], [0, 0, 1, 1], [], []>} : vector<256x27xbf16>, vector<27x8xbf16>, vector<256x8xf32> -> vector<256x8xf32>
    %c0_223 = arith.constant 0 : index
    %c0_224 = arith.constant 0 : index
    %226 = vector.load %arg3[%c0_223, %c0_224] : memref<1x8xf32, #tpu.memory_space<vmem>>, vector<1x8xf32>
    %227 = vector.broadcast %226 : vector<1x8xf32> to vector<256x8xf32>
    %228 = arith.addf %225, %227 : vector<256x8xf32>
    %c0_225 = arith.constant 0 : index
    %c0_226 = arith.constant 0 : index
    %229 = vector.load %arg19[%c0_225, %c0_226] : memref<256x8xf32, #tpu.memory_space<vmem>>, vector<256x8xf32>
    tpu.vector_store %arg19[%c0_225, %c0_226], %228 {strides = array<i32>} : memref<256x8xf32, #tpu.memory_space<vmem>>, vector<256x8xf32>,
    %c0_227 = arith.constant 0 : index
    %c0_228 = arith.constant 0 : index
    %230 = vector.load %arg19[%c0_227, %c0_228] : memref<256x8xf32, #tpu.memory_space<vmem>>, vector<239x8xf32>
    %231 = arith.truncf %230 : vector<239x8xf32> to vector<239x8xbf16>
    %c0_229 = arith.constant 0 : index
    %c0_230 = arith.constant 0 : index
    %c0_231 = arith.constant 0 : index
    %232 = vector.load %arg4[%c0_229, %c0_230, %c0_231] : memref<4x8x16xbf16, #tpu.memory_space<vmem>>, vector<1x8x16xbf16>
    %233 = vector.shape_cast %232 : vector<1x8x16xbf16> to vector<8x16xbf16>
    %cst_232 = arith.constant dense<0.000000e+00> : vector<239x16xf32>
    %234 = tpu.matmul %231, %233, %cst_232 {dimension_numbers = #tpu.dot_dimension_numbers<[1], [0], [0], [1], [0, 0, 1, 1], [], []>} : vector<239x8xbf16>, vector<8x16xbf16>, vector<239x16xf32> -> vector<239x16xf32>
    %c1_233 = arith.constant 1 : index
    %c0_234 = arith.constant 0 : index
    %235 = vector.load %arg19[%c1_233, %c0_234] : memref<256x8xf32, #tpu.memory_space<vmem>>, vector<239x8xf32>
    %236 = arith.truncf %235 : vector<239x8xf32> to vector<239x8xbf16>
    %c1_235 = arith.constant 1 : index
    %c0_236 = arith.constant 0 : index
    %c0_237 = arith.constant 0 : index
    %237 = vector.load %arg4[%c1_235, %c0_236, %c0_237] : memref<4x8x16xbf16, #tpu.memory_space<vmem>>, vector<1x8x16xbf16>
    %238 = vector.shape_cast %237 : vector<1x8x16xbf16> to vector<8x16xbf16>
    %cst_238 = arith.constant dense<0.000000e+00> : vector<239x16xf32>
    %239 = tpu.matmul %236, %238, %cst_238 {dimension_numbers = #tpu.dot_dimension_numbers<[1], [0], [0], [1], [0, 0, 1, 1], [], []>} : vector<239x8xbf16>, vector<8x16xbf16>, vector<239x16xf32> -> vector<239x16xf32>
    %240 = arith.addf %234, %239 : vector<239x16xf32>
    %c16_239 = arith.constant 16 : index
    %c0_240 = arith.constant 0 : index
    %241 = vector.load %arg19[%c16_239, %c0_240] : memref<256x8xf32, #tpu.memory_space<vmem>>, vector<239x8xf32>
    %242 = arith.truncf %241 : vector<239x8xf32> to vector<239x8xbf16>
    %c2_241 = arith.constant 2 : index
    %c0_242 = arith.constant 0 : index
    %c0_243 = arith.constant 0 : index
    %243 = vector.load %arg4[%c2_241, %c0_242, %c0_243] : memref<4x8x16xbf16, #tpu.memory_space<vmem>>, vector<1x8x16xbf16>
    %244 = vector.shape_cast %243 : vector<1x8x16xbf16> to vector<8x16xbf16>
    %cst_244 = arith.constant dense<0.000000e+00> : vector<239x16xf32>
    %245 = tpu.matmul %242, %244, %cst_244 {dimension_numbers = #tpu.dot_dimension_numbers<[1], [0], [0], [1], [0, 0, 1, 1], [], []>} : vector<239x8xbf16>, vector<8x16xbf16>, vector<239x16xf32> -> vector<239x16xf32>
    %246 = arith.addf %240, %245 : vector<239x16xf32>
    %c17_245 = arith.constant 17 : index
    %c0_246 = arith.constant 0 : index
    %247 = vector.load %arg19[%c17_245, %c0_246] : memref<256x8xf32, #tpu.memory_space<vmem>>, vector<239x8xf32>
    %248 = arith.truncf %247 : vector<239x8xf32> to vector<239x8xbf16>
    %c3_247 = arith.constant 3 : index
    %c0_248 = arith.constant 0 : index
    %c0_249 = arith.constant 0 : index
    %249 = vector.load %arg4[%c3_247, %c0_248, %c0_249] : memref<4x8x16xbf16, #tpu.memory_space<vmem>>, vector<1x8x16xbf16>
    %250 = vector.shape_cast %249 : vector<1x8x16xbf16> to vector<8x16xbf16>
    %cst_250 = arith.constant dense<0.000000e+00> : vector<239x16xf32>
    %251 = tpu.matmul %248, %250, %cst_250 {dimension_numbers = #tpu.dot_dimension_numbers<[1], [0], [0], [1], [0, 0, 1, 1], [], []>} : vector<239x8xbf16>, vector<8x16xbf16>, vector<239x16xf32> -> vector<239x16xf32>
    %252 = arith.addf %246, %251 : vector<239x16xf32>
    %c0_251 = arith.constant 0 : index
    %c0_252 = arith.constant 0 : index
    %253 = vector.load %arg5[%c0_251, %c0_252] : memref<1x16xf32, #tpu.memory_space<vmem>>, vector<1x16xf32>
    %254 = vector.broadcast %253 : vector<1x16xf32> to vector<239x16xf32>
    %255 = arith.addf %252, %254 : vector<239x16xf32>
    %cst_253 = arith.constant 0.000000e+00 : f32
    %256 = vector.broadcast %cst_253 : f32 to vector<239x16xf32>
    %257 = arith.maximumf %255, %256 : vector<239x16xf32>
    %c0_254 = arith.constant 0 : index
    %c0_255 = arith.constant 0 : index
    %258 = vector.load %arg6[%c0_254, %c0_255] : memref<1x16xf32, #tpu.memory_space<vmem>>, vector<1x16xf32>
    %259 = vector.broadcast %258 : vector<1x16xf32> to vector<239x16xf32>
    %260 = arith.mulf %257, %259 : vector<239x16xf32>
    %c0_256 = arith.constant 0 : index
    %c0_257 = arith.constant 0 : index
    %261 = vector.load %arg7[%c0_256, %c0_257] : memref<1x16xf32, #tpu.memory_space<vmem>>, vector<1x16xf32>
    %262 = vector.broadcast %261 : vector<1x16xf32> to vector<239x16xf32>
    %263 = arith.addf %260, %262 : vector<239x16xf32>
    %c0_258 = arith.constant 0 : index
    %c0_259 = arith.constant 0 : index
    %264 = vector.load %arg8[%c0_258, %c0_259] : memref<102x239xbf16, #tpu.memory_space<vmem>>, vector<102x239xbf16>
    %265 = arith.truncf %263 : vector<239x16xf32> to vector<239x16xbf16>
    %cst_260 = arith.constant dense<0.000000e+00> : vector<102x16xf32>
    %266 = tpu.matmul %264, %265, %cst_260 {dimension_numbers = #tpu.dot_dimension_numbers<[1], [0], [0], [1], [0, 0, 1, 1], [], []>} : vector<102x239xbf16>, vector<239x16xbf16>, vector<102x16xf32> -> vector<102x16xf32>
    %c0_261 = arith.constant 0 : index
    %c0_262 = arith.constant 0 : index
    %267 = vector.load %arg21[%c0_261, %c0_262] : memref<102x16xf32, #tpu.memory_space<vmem>>, vector<102x16xf32>
    tpu.vector_store %arg21[%c0_261, %c0_262], %266 {strides = array<i32>} : memref<102x16xf32, #tpu.memory_space<vmem>>, vector<102x16xf32>,
    %c0_263 = arith.constant 0 : index
    %c0_264 = arith.constant 0 : index
    %268 = vector.load %arg21[%c0_263, %c0_264] : memref<102x16xf32, #tpu.memory_space<vmem>>, vector<80x16xf32>
    %269 = arith.truncf %268 : vector<80x16xf32> to vector<80x16xbf16>
    %c0_265 = arith.constant 0 : index
    %c0_266 = arith.constant 0 : index
    %c0_267 = arith.constant 0 : index
    %270 = vector.load %arg9[%c0_265, %c0_266, %c0_267] : memref<9x16x16xbf16, #tpu.memory_space<vmem>>, vector<1x16x16xbf16>
    %271 = vector.shape_cast %270 : vector<1x16x16xbf16> to vector<16x16xbf16>
    %cst_268 = arith.constant dense<0.000000e+00> : vector<80x16xf32>
    %272 = tpu.matmul %269, %271, %cst_268 {dimension_numbers = #tpu.dot_dimension_numbers<[1], [0], [0], [1], [0, 0, 1, 1], [], []>} : vector<80x16xbf16>, vector<16x16xbf16>, vector<80x16xf32> -> vector<80x16xf32>
    %c0_269 = arith.constant 0 : index
    %c0_270 = arith.constant 0 : index
    %273 = vector.load %arg10[%c0_269, %c0_270] : memref<1x16xf32, #tpu.memory_space<vmem>>, vector<1x16xf32>
    %274 = vector.broadcast %273 : vector<1x16xf32> to vector<80x16xf32>
    %275 = arith.addf %272, %274 : vector<80x16xf32>
    %c0_271 = arith.constant 0 : index
    %c0_272 = arith.constant 0 : index
    %276 = vector.load %arg20[%c0_271, %c0_272] : memref<80x16xf32, #tpu.memory_space<vmem>>, vector<80x16xf32>
    tpu.vector_store %arg20[%c0_271, %c0_272], %275 {strides = array<i32>} : memref<80x16xf32, #tpu.memory_space<vmem>>, vector<80x16xf32>,
    %c0_273 = arith.constant 0 : index
    %c0_274 = arith.constant 0 : index
    %277 = vector.load %arg20[%c0_273, %c0_274] : memref<80x16xf32, #tpu.memory_space<vmem>>, vector<80x16xf32>
    %c1_275 = arith.constant 1 : index
    %c0_276 = arith.constant 0 : index
    %278 = vector.load %arg21[%c1_275, %c0_276] : memref<102x16xf32, #tpu.memory_space<vmem>>, vector<80x16xf32>
    %279 = arith.truncf %278 : vector<80x16xf32> to vector<80x16xbf16>
    %c1_277 = arith.constant 1 : index
    %c0_278 = arith.constant 0 : index
    %c0_279 = arith.constant 0 : index
    %280 = vector.load %arg9[%c1_277, %c0_278, %c0_279] : memref<9x16x16xbf16, #tpu.memory_space<vmem>>, vector<1x16x16xbf16>
    %281 = vector.shape_cast %280 : vector<1x16x16xbf16> to vector<16x16xbf16>
    %cst_280 = arith.constant dense<0.000000e+00> : vector<80x16xf32>
    %282 = tpu.matmul %279, %281, %cst_280 {dimension_numbers = #tpu.dot_dimension_numbers<[1], [0], [0], [1], [0, 0, 1, 1], [], []>} : vector<80x16xbf16>, vector<16x16xbf16>, vector<80x16xf32> -> vector<80x16xf32>
    %283 = arith.addf %277, %282 : vector<80x16xf32>
    %c0_281 = arith.constant 0 : index
    %c0_282 = arith.constant 0 : index
    %284 = vector.load %arg20[%c0_281, %c0_282] : memref<80x16xf32, #tpu.memory_space<vmem>>, vector<80x16xf32>
    tpu.vector_store %arg20[%c0_281, %c0_282], %283 {strides = array<i32>} : memref<80x16xf32, #tpu.memory_space<vmem>>, vector<80x16xf32>,
    %c0_283 = arith.constant 0 : index
    %c0_284 = arith.constant 0 : index
    %285 = vector.load %arg20[%c0_283, %c0_284] : memref<80x16xf32, #tpu.memory_space<vmem>>, vector<80x16xf32>
    %c2_285 = arith.constant 2 : index
    %c0_286 = arith.constant 0 : index
    %286 = vector.load %arg21[%c2_285, %c0_286] : memref<102x16xf32, #tpu.memory_space<vmem>>, vector<80x16xf32>
    %287 = arith.truncf %286 : vector<80x16xf32> to vector<80x16xbf16>
    %c2_287 = arith.constant 2 : index
    %c0_288 = arith.constant 0 : index
    %c0_289 = arith.constant 0 : index
    %288 = vector.load %arg9[%c2_287, %c0_288, %c0_289] : memref<9x16x16xbf16, #tpu.memory_space<vmem>>, vector<1x16x16xbf16>
    %289 = vector.shape_cast %288 : vector<1x16x16xbf16> to vector<16x16xbf16>
    %cst_290 = arith.constant dense<0.000000e+00> : vector<80x16xf32>
    %290 = tpu.matmul %287, %289, %cst_290 {dimension_numbers = #tpu.dot_dimension_numbers<[1], [0], [0], [1], [0, 0, 1, 1], [], []>} : vector<80x16xbf16>, vector<16x16xbf16>, vector<80x16xf32> -> vector<80x16xf32>
    %291 = arith.addf %285, %290 : vector<80x16xf32>
    %c0_291 = arith.constant 0 : index
    %c0_292 = arith.constant 0 : index
    %292 = vector.load %arg20[%c0_291, %c0_292] : memref<80x16xf32, #tpu.memory_space<vmem>>, vector<80x16xf32>
    tpu.vector_store %arg20[%c0_291, %c0_292], %291 {strides = array<i32>} : memref<80x16xf32, #tpu.memory_space<vmem>>, vector<80x16xf32>,
    %c0_293 = arith.constant 0 : index
    %c0_294 = arith.constant 0 : index
    %293 = vector.load %arg20[%c0_293, %c0_294] : memref<80x16xf32, #tpu.memory_space<vmem>>, vector<80x16xf32>
    %c10_295 = arith.constant 10 : index
    %c0_296 = arith.constant 0 : index
    %294 = vector.load %arg21[%c10_295, %c0_296] : memref<102x16xf32, #tpu.memory_space<vmem>>, vector<80x16xf32>
    %295 = arith.truncf %294 : vector<80x16xf32> to vector<80x16xbf16>
    %c3_297 = arith.constant 3 : index
    %c0_298 = arith.constant 0 : index
    %c0_299 = arith.constant 0 : index
    %296 = vector.load %arg9[%c3_297, %c0_298, %c0_299] : memref<9x16x16xbf16, #tpu.memory_space<vmem>>, vector<1x16x16xbf16>
    %297 = vector.shape_cast %296 : vector<1x16x16xbf16> to vector<16x16xbf16>
    %cst_300 = arith.constant dense<0.000000e+00> : vector<80x16xf32>
    %298 = tpu.matmul %295, %297, %cst_300 {dimension_numbers = #tpu.dot_dimension_numbers<[1], [0], [0], [1], [0, 0, 1, 1], [], []>} : vector<80x16xbf16>, vector<16x16xbf16>, vector<80x16xf32> -> vector<80x16xf32>
    %299 = arith.addf %293, %298 : vector<80x16xf32>
    %c0_301 = arith.constant 0 : index
    %c0_302 = arith.constant 0 : index
    %300 = vector.load %arg20[%c0_301, %c0_302] : memref<80x16xf32, #tpu.memory_space<vmem>>, vector<80x16xf32>
    tpu.vector_store %arg20[%c0_301, %c0_302], %299 {strides = array<i32>} : memref<80x16xf32, #tpu.memory_space<vmem>>, vector<80x16xf32>,
    %c0_303 = arith.constant 0 : index
    %c0_304 = arith.constant 0 : index
    %301 = vector.load %arg20[%c0_303, %c0_304] : memref<80x16xf32, #tpu.memory_space<vmem>>, vector<80x16xf32>
    %c11_305 = arith.constant 11 : index
    %c0_306 = arith.constant 0 : index
    %302 = vector.load %arg21[%c11_305, %c0_306] : memref<102x16xf32, #tpu.memory_space<vmem>>, vector<80x16xf32>
    %303 = arith.truncf %302 : vector<80x16xf32> to vector<80x16xbf16>
    %c4_307 = arith.constant 4 : index
    %c0_308 = arith.constant 0 : index
    %c0_309 = arith.constant 0 : index
    %304 = vector.load %arg9[%c4_307, %c0_308, %c0_309] : memref<9x16x16xbf16, #tpu.memory_space<vmem>>, vector<1x16x16xbf16>
    %305 = vector.shape_cast %304 : vector<1x16x16xbf16> to vector<16x16xbf16>
    %cst_310 = arith.constant dense<0.000000e+00> : vector<80x16xf32>
    %306 = tpu.matmul %303, %305, %cst_310 {dimension_numbers = #tpu.dot_dimension_numbers<[1], [0], [0], [1], [0, 0, 1, 1], [], []>} : vector<80x16xbf16>, vector<16x16xbf16>, vector<80x16xf32> -> vector<80x16xf32>
    %307 = arith.addf %301, %306 : vector<80x16xf32>
    %c0_311 = arith.constant 0 : index
    %c0_312 = arith.constant 0 : index
    %308 = vector.load %arg20[%c0_311, %c0_312] : memref<80x16xf32, #tpu.memory_space<vmem>>, vector<80x16xf32>
    tpu.vector_store %arg20[%c0_311, %c0_312], %307 {strides = array<i32>} : memref<80x16xf32, #tpu.memory_space<vmem>>, vector<80x16xf32>,
    %c0_313 = arith.constant 0 : index
    %c0_314 = arith.constant 0 : index
    %309 = vector.load %arg20[%c0_313, %c0_314] : memref<80x16xf32, #tpu.memory_space<vmem>>, vector<80x16xf32>
    %c12_315 = arith.constant 12 : index
    %c0_316 = arith.constant 0 : index
    %310 = vector.load %arg21[%c12_315, %c0_316] : memref<102x16xf32, #tpu.memory_space<vmem>>, vector<80x16xf32>
    %311 = arith.truncf %310 : vector<80x16xf32> to vector<80x16xbf16>
    %c5_317 = arith.constant 5 : index
    %c0_318 = arith.constant 0 : index
    %c0_319 = arith.constant 0 : index
    %312 = vector.load %arg9[%c5_317, %c0_318, %c0_319] : memref<9x16x16xbf16, #tpu.memory_space<vmem>>, vector<1x16x16xbf16>
    %313 = vector.shape_cast %312 : vector<1x16x16xbf16> to vector<16x16xbf16>
    %cst_320 = arith.constant dense<0.000000e+00> : vector<80x16xf32>
    %314 = tpu.matmul %311, %313, %cst_320 {dimension_numbers = #tpu.dot_dimension_numbers<[1], [0], [0], [1], [0, 0, 1, 1], [], []>} : vector<80x16xbf16>, vector<16x16xbf16>, vector<80x16xf32> -> vector<80x16xf32>
    %315 = arith.addf %309, %314 : vector<80x16xf32>
    %c0_321 = arith.constant 0 : index
    %c0_322 = arith.constant 0 : index
    %316 = vector.load %arg20[%c0_321, %c0_322] : memref<80x16xf32, #tpu.memory_space<vmem>>, vector<80x16xf32>
    tpu.vector_store %arg20[%c0_321, %c0_322], %315 {strides = array<i32>} : memref<80x16xf32, #tpu.memory_space<vmem>>, vector<80x16xf32>,
    %c0_323 = arith.constant 0 : index
    %c0_324 = arith.constant 0 : index
    %317 = vector.load %arg20[%c0_323, %c0_324] : memref<80x16xf32, #tpu.memory_space<vmem>>, vector<80x16xf32>
    %c20_325 = arith.constant 20 : index
    %c0_326 = arith.constant 0 : index
    %318 = vector.load %arg21[%c20_325, %c0_326] : memref<102x16xf32, #tpu.memory_space<vmem>>, vector<80x16xf32>
    %319 = arith.truncf %318 : vector<80x16xf32> to vector<80x16xbf16>
    %c6_327 = arith.constant 6 : index
    %c0_328 = arith.constant 0 : index
    %c0_329 = arith.constant 0 : index
    %320 = vector.load %arg9[%c6_327, %c0_328, %c0_329] : memref<9x16x16xbf16, #tpu.memory_space<vmem>>, vector<1x16x16xbf16>
    %321 = vector.shape_cast %320 : vector<1x16x16xbf16> to vector<16x16xbf16>
    %cst_330 = arith.constant dense<0.000000e+00> : vector<80x16xf32>
    %322 = tpu.matmul %319, %321, %cst_330 {dimension_numbers = #tpu.dot_dimension_numbers<[1], [0], [0], [1], [0, 0, 1, 1], [], []>} : vector<80x16xbf16>, vector<16x16xbf16>, vector<80x16xf32> -> vector<80x16xf32>
    %323 = arith.addf %317, %322 : vector<80x16xf32>
    %c0_331 = arith.constant 0 : index
    %c0_332 = arith.constant 0 : index
    %324 = vector.load %arg20[%c0_331, %c0_332] : memref<80x16xf32, #tpu.memory_space<vmem>>, vector<80x16xf32>
    tpu.vector_store %arg20[%c0_331, %c0_332], %323 {strides = array<i32>} : memref<80x16xf32, #tpu.memory_space<vmem>>, vector<80x16xf32>,
    %c0_333 = arith.constant 0 : index
    %c0_334 = arith.constant 0 : index
    %325 = vector.load %arg20[%c0_333, %c0_334] : memref<80x16xf32, #tpu.memory_space<vmem>>, vector<80x16xf32>
    %c21_335 = arith.constant 21 : index
    %c0_336 = arith.constant 0 : index
    %326 = vector.load %arg21[%c21_335, %c0_336] : memref<102x16xf32, #tpu.memory_space<vmem>>, vector<80x16xf32>
    %327 = arith.truncf %326 : vector<80x16xf32> to vector<80x16xbf16>
    %c7_337 = arith.constant 7 : index
    %c0_338 = arith.constant 0 : index
    %c0_339 = arith.constant 0 : index
    %328 = vector.load %arg9[%c7_337, %c0_338, %c0_339] : memref<9x16x16xbf16, #tpu.memory_space<vmem>>, vector<1x16x16xbf16>
    %329 = vector.shape_cast %328 : vector<1x16x16xbf16> to vector<16x16xbf16>
    %cst_340 = arith.constant dense<0.000000e+00> : vector<80x16xf32>
    %330 = tpu.matmul %327, %329, %cst_340 {dimension_numbers = #tpu.dot_dimension_numbers<[1], [0], [0], [1], [0, 0, 1, 1], [], []>} : vector<80x16xbf16>, vector<16x16xbf16>, vector<80x16xf32> -> vector<80x16xf32>
    %331 = arith.addf %325, %330 : vector<80x16xf32>
    %c0_341 = arith.constant 0 : index
    %c0_342 = arith.constant 0 : index
    %332 = vector.load %arg20[%c0_341, %c0_342] : memref<80x16xf32, #tpu.memory_space<vmem>>, vector<80x16xf32>
    tpu.vector_store %arg20[%c0_341, %c0_342], %331 {strides = array<i32>} : memref<80x16xf32, #tpu.memory_space<vmem>>, vector<80x16xf32>,
    %c0_343 = arith.constant 0 : index
    %c0_344 = arith.constant 0 : index
    %333 = vector.load %arg20[%c0_343, %c0_344] : memref<80x16xf32, #tpu.memory_space<vmem>>, vector<80x16xf32>
    %c22_345 = arith.constant 22 : index
    %c0_346 = arith.constant 0 : index
    %334 = vector.load %arg21[%c22_345, %c0_346] : memref<102x16xf32, #tpu.memory_space<vmem>>, vector<80x16xf32>
    %335 = arith.truncf %334 : vector<80x16xf32> to vector<80x16xbf16>
    %c8_347 = arith.constant 8 : index
    %c0_348 = arith.constant 0 : index
    %c0_349 = arith.constant 0 : index
    %336 = vector.load %arg9[%c8_347, %c0_348, %c0_349] : memref<9x16x16xbf16, #tpu.memory_space<vmem>>, vector<1x16x16xbf16>
    %337 = vector.shape_cast %336 : vector<1x16x16xbf16> to vector<16x16xbf16>
    %cst_350 = arith.constant dense<0.000000e+00> : vector<80x16xf32>
    %338 = tpu.matmul %335, %337, %cst_350 {dimension_numbers = #tpu.dot_dimension_numbers<[1], [0], [0], [1], [0, 0, 1, 1], [], []>} : vector<80x16xbf16>, vector<16x16xbf16>, vector<80x16xf32> -> vector<80x16xf32>
    %339 = arith.addf %333, %338 : vector<80x16xf32>
    %c0_351 = arith.constant 0 : index
    %c0_352 = arith.constant 0 : index
    %340 = vector.load %arg20[%c0_351, %c0_352] : memref<80x16xf32, #tpu.memory_space<vmem>>, vector<80x16xf32>
    tpu.vector_store %arg20[%c0_351, %c0_352], %339 {strides = array<i32>} : memref<80x16xf32, #tpu.memory_space<vmem>>, vector<80x16xf32>,
    %c0_353 = arith.constant 0 : index
    %c0_354 = arith.constant 0 : index
    %341 = vector.load %arg20[%c0_353, %c0_354] : memref<80x16xf32, #tpu.memory_space<vmem>>, vector<80x16xf32>
    %cst_355 = arith.constant 0.000000e+00 : f32
    %342 = vector.broadcast %cst_355 : f32 to vector<80x16xf32>
    %343 = arith.maximumf %341, %342 : vector<80x16xf32>
    %c0_356 = arith.constant 0 : index
    %c0_357 = arith.constant 0 : index
    %344 = vector.load %arg20[%c0_356, %c0_357] : memref<80x16xf32, #tpu.memory_space<vmem>>, vector<80x16xf32>
    tpu.vector_store %arg20[%c0_356, %c0_357], %343 {strides = array<i32>} : memref<80x16xf32, #tpu.memory_space<vmem>>, vector<80x16xf32>,
    %c0_358 = arith.constant 0 : index
    %c0_359 = arith.constant 0 : index
    %345 = vector.load %arg20[%c0_358, %c0_359] : memref<80x16xf32, #tpu.memory_space<vmem>>, vector<67x16xf32>
    %346 = arith.truncf %345 : vector<67x16xf32> to vector<67x16xbf16>
    %c0_360 = arith.constant 0 : index
    %c0_361 = arith.constant 0 : index
    %c0_362 = arith.constant 0 : index
    %347 = vector.load %arg11[%c0_360, %c0_361, %c0_362] : memref<4x16x32xbf16, #tpu.memory_space<vmem>>, vector<1x16x32xbf16>
    %348 = vector.shape_cast %347 : vector<1x16x32xbf16> to vector<16x32xbf16>
    %cst_363 = arith.constant dense<0.000000e+00> : vector<67x32xf32>
    %349 = tpu.matmul %346, %348, %cst_363 {dimension_numbers = #tpu.dot_dimension_numbers<[1], [0], [0], [1], [0, 0, 1, 1], [], []>} : vector<67x16xbf16>, vector<16x32xbf16>, vector<67x32xf32> -> vector<67x32xf32>
    %c1_364 = arith.constant 1 : index
    %c0_365 = arith.constant 0 : index
    %350 = vector.load %arg20[%c1_364, %c0_365] : memref<80x16xf32, #tpu.memory_space<vmem>>, vector<67x16xf32>
    %351 = arith.truncf %350 : vector<67x16xf32> to vector<67x16xbf16>
    %c1_366 = arith.constant 1 : index
    %c0_367 = arith.constant 0 : index
    %c0_368 = arith.constant 0 : index
    %352 = vector.load %arg11[%c1_366, %c0_367, %c0_368] : memref<4x16x32xbf16, #tpu.memory_space<vmem>>, vector<1x16x32xbf16>
    %353 = vector.shape_cast %352 : vector<1x16x32xbf16> to vector<16x32xbf16>
    %cst_369 = arith.constant dense<0.000000e+00> : vector<67x32xf32>
    %354 = tpu.matmul %351, %353, %cst_369 {dimension_numbers = #tpu.dot_dimension_numbers<[1], [0], [0], [1], [0, 0, 1, 1], [], []>} : vector<67x16xbf16>, vector<16x32xbf16>, vector<67x32xf32> -> vector<67x32xf32>
    %355 = arith.addf %349, %354 : vector<67x32xf32>
    %c10_370 = arith.constant 10 : index
    %c0_371 = arith.constant 0 : index
    %356 = vector.load %arg20[%c10_370, %c0_371] : memref<80x16xf32, #tpu.memory_space<vmem>>, vector<67x16xf32>
    %357 = arith.truncf %356 : vector<67x16xf32> to vector<67x16xbf16>
    %c2_372 = arith.constant 2 : index
    %c0_373 = arith.constant 0 : index
    %c0_374 = arith.constant 0 : index
    %358 = vector.load %arg11[%c2_372, %c0_373, %c0_374] : memref<4x16x32xbf16, #tpu.memory_space<vmem>>, vector<1x16x32xbf16>
    %359 = vector.shape_cast %358 : vector<1x16x32xbf16> to vector<16x32xbf16>
    %cst_375 = arith.constant dense<0.000000e+00> : vector<67x32xf32>
    %360 = tpu.matmul %357, %359, %cst_375 {dimension_numbers = #tpu.dot_dimension_numbers<[1], [0], [0], [1], [0, 0, 1, 1], [], []>} : vector<67x16xbf16>, vector<16x32xbf16>, vector<67x32xf32> -> vector<67x32xf32>
    %361 = arith.addf %355, %360 : vector<67x32xf32>
    %c11_376 = arith.constant 11 : index
    %c0_377 = arith.constant 0 : index
    %362 = vector.load %arg20[%c11_376, %c0_377] : memref<80x16xf32, #tpu.memory_space<vmem>>, vector<67x16xf32>
    %363 = arith.truncf %362 : vector<67x16xf32> to vector<67x16xbf16>
    %c3_378 = arith.constant 3 : index
    %c0_379 = arith.constant 0 : index
    %c0_380 = arith.constant 0 : index
    %364 = vector.load %arg11[%c3_378, %c0_379, %c0_380] : memref<4x16x32xbf16, #tpu.memory_space<vmem>>, vector<1x16x32xbf16>
    %365 = vector.shape_cast %364 : vector<1x16x32xbf16> to vector<16x32xbf16>
    %cst_381 = arith.constant dense<0.000000e+00> : vector<67x32xf32>
    %366 = tpu.matmul %363, %365, %cst_381 {dimension_numbers = #tpu.dot_dimension_numbers<[1], [0], [0], [1], [0, 0, 1, 1], [], []>} : vector<67x16xbf16>, vector<16x32xbf16>, vector<67x32xf32> -> vector<67x32xf32>
    %367 = arith.addf %361, %366 : vector<67x32xf32>
    %c0_382 = arith.constant 0 : index
    %c0_383 = arith.constant 0 : index
    %368 = vector.load %arg12[%c0_382, %c0_383] : memref<1x32xf32, #tpu.memory_space<vmem>>, vector<1x32xf32>
    %369 = vector.broadcast %368 : vector<1x32xf32> to vector<67x32xf32>
    %370 = arith.addf %367, %369 : vector<67x32xf32>
    %cst_384 = arith.constant 0.000000e+00 : f32
    %371 = vector.broadcast %cst_384 : f32 to vector<67x32xf32>
    %372 = arith.maximumf %370, %371 : vector<67x32xf32>
    %c0_385 = arith.constant 0 : index
    %c0_386 = arith.constant 0 : index
    %373 = vector.load %arg13[%c0_385, %c0_386] : memref<1x32xf32, #tpu.memory_space<vmem>>, vector<1x32xf32>
    %374 = vector.broadcast %373 : vector<1x32xf32> to vector<67x32xf32>
    %375 = arith.mulf %372, %374 : vector<67x32xf32>
    %c0_387 = arith.constant 0 : index
    %c0_388 = arith.constant 0 : index
    %376 = vector.load %arg14[%c0_387, %c0_388] : memref<1x32xf32, #tpu.memory_space<vmem>>, vector<1x32xf32>
    %377 = vector.broadcast %376 : vector<1x32xf32> to vector<67x32xf32>
    %378 = arith.addf %375, %377 : vector<67x32xf32>
    %c0_389 = arith.constant 0 : index
    %c0_390 = arith.constant 0 : index
    %379 = vector.load %arg15[%c0_389, %c0_390] : memref<38x67xbf16, #tpu.memory_space<vmem>>, vector<38x67xbf16>
    %380 = arith.truncf %378 : vector<67x32xf32> to vector<67x32xbf16>
    %cst_391 = arith.constant dense<0.000000e+00> : vector<38x32xf32>
    %381 = tpu.matmul %379, %380, %cst_391 {dimension_numbers = #tpu.dot_dimension_numbers<[1], [0], [0], [1], [0, 0, 1, 1], [], []>} : vector<38x67xbf16>, vector<67x32xbf16>, vector<38x32xf32> -> vector<38x32xf32>
    %c0_392 = arith.constant 0 : index
    %c0_393 = arith.constant 0 : index
    %382 = vector.load %arg22[%c0_392, %c0_393] : memref<38x32xf32, #tpu.memory_space<vmem>>, vector<38x32xf32>
    tpu.vector_store %arg22[%c0_392, %c0_393], %381 {strides = array<i32>} : memref<38x32xf32, #tpu.memory_space<vmem>>, vector<38x32xf32>,
    %c0_394 = arith.constant 0 : index
    %c0_395 = arith.constant 0 : index
    %383 = vector.load %arg22[%c0_394, %c0_395] : memref<38x32xf32, #tpu.memory_space<vmem>>, vector<24x32xf32>
    %384 = arith.truncf %383 : vector<24x32xf32> to vector<24x32xbf16>
    %c0_396 = arith.constant 0 : index
    %c0_397 = arith.constant 0 : index
    %c0_398 = arith.constant 0 : index
    %385 = vector.load %arg16[%c0_396, %c0_397, %c0_398] : memref<9x32x32xbf16, #tpu.memory_space<vmem>>, vector<1x32x32xbf16>
    %386 = vector.shape_cast %385 : vector<1x32x32xbf16> to vector<32x32xbf16>
    %cst_399 = arith.constant dense<0.000000e+00> : vector<24x32xf32>
    %387 = tpu.matmul %384, %386, %cst_399 {dimension_numbers = #tpu.dot_dimension_numbers<[1], [0], [0], [1], [0, 0, 1, 1], [], []>} : vector<24x32xbf16>, vector<32x32xbf16>, vector<24x32xf32> -> vector<24x32xf32>
    %c0_400 = arith.constant 0 : index
    %c0_401 = arith.constant 0 : index
    %388 = vector.load %arg17[%c0_400, %c0_401] : memref<1x32xf32, #tpu.memory_space<vmem>>, vector<1x32xf32>
    %389 = vector.broadcast %388 : vector<1x32xf32> to vector<24x32xf32>
    %390 = arith.addf %387, %389 : vector<24x32xf32>
    %c1_402 = arith.constant 1 : index
    %c0_403 = arith.constant 0 : index
    %391 = vector.load %arg22[%c1_402, %c0_403] : memref<38x32xf32, #tpu.memory_space<vmem>>, vector<24x32xf32>
    %392 = arith.truncf %391 : vector<24x32xf32> to vector<24x32xbf16>
    %c1_404 = arith.constant 1 : index
    %c0_405 = arith.constant 0 : index
    %c0_406 = arith.constant 0 : index
    %393 = vector.load %arg16[%c1_404, %c0_405, %c0_406] : memref<9x32x32xbf16, #tpu.memory_space<vmem>>, vector<1x32x32xbf16>
    %394 = vector.shape_cast %393 : vector<1x32x32xbf16> to vector<32x32xbf16>
    %cst_407 = arith.constant dense<0.000000e+00> : vector<24x32xf32>
    %395 = tpu.matmul %392, %394, %cst_407 {dimension_numbers = #tpu.dot_dimension_numbers<[1], [0], [0], [1], [0, 0, 1, 1], [], []>} : vector<24x32xbf16>, vector<32x32xbf16>, vector<24x32xf32> -> vector<24x32xf32>
    %396 = arith.addf %390, %395 : vector<24x32xf32>
    %c2_408 = arith.constant 2 : index
    %c0_409 = arith.constant 0 : index
    %397 = vector.load %arg22[%c2_408, %c0_409] : memref<38x32xf32, #tpu.memory_space<vmem>>, vector<24x32xf32>
    %398 = arith.truncf %397 : vector<24x32xf32> to vector<24x32xbf16>
    %c2_410 = arith.constant 2 : index
    %c0_411 = arith.constant 0 : index
    %c0_412 = arith.constant 0 : index
    %399 = vector.load %arg16[%c2_410, %c0_411, %c0_412] : memref<9x32x32xbf16, #tpu.memory_space<vmem>>, vector<1x32x32xbf16>
    %400 = vector.shape_cast %399 : vector<1x32x32xbf16> to vector<32x32xbf16>
    %cst_413 = arith.constant dense<0.000000e+00> : vector<24x32xf32>
    %401 = tpu.matmul %398, %400, %cst_413 {dimension_numbers = #tpu.dot_dimension_numbers<[1], [0], [0], [1], [0, 0, 1, 1], [], []>} : vector<24x32xbf16>, vector<32x32xbf16>, vector<24x32xf32> -> vector<24x32xf32>
    %402 = arith.addf %396, %401 : vector<24x32xf32>
    %c6_414 = arith.constant 6 : index
    %c0_415 = arith.constant 0 : index
    %403 = vector.load %arg22[%c6_414, %c0_415] : memref<38x32xf32, #tpu.memory_space<vmem>>, vector<24x32xf32>
    %404 = arith.truncf %403 : vector<24x32xf32> to vector<24x32xbf16>
    %c3_416 = arith.constant 3 : index
    %c0_417 = arith.constant 0 : index
    %c0_418 = arith.constant 0 : index
    %405 = vector.load %arg16[%c3_416, %c0_417, %c0_418] : memref<9x32x32xbf16, #tpu.memory_space<vmem>>, vector<1x32x32xbf16>
    %406 = vector.shape_cast %405 : vector<1x32x32xbf16> to vector<32x32xbf16>
    %cst_419 = arith.constant dense<0.000000e+00> : vector<24x32xf32>
    %407 = tpu.matmul %404, %406, %cst_419 {dimension_numbers = #tpu.dot_dimension_numbers<[1], [0], [0], [1], [0, 0, 1, 1], [], []>} : vector<24x32xbf16>, vector<32x32xbf16>, vector<24x32xf32> -> vector<24x32xf32>
    %408 = arith.addf %402, %407 : vector<24x32xf32>
    %c7_420 = arith.constant 7 : index
    %c0_421 = arith.constant 0 : index
    %409 = vector.load %arg22[%c7_420, %c0_421] : memref<38x32xf32, #tpu.memory_space<vmem>>, vector<24x32xf32>
    %410 = arith.truncf %409 : vector<24x32xf32> to vector<24x32xbf16>
    %c4_422 = arith.constant 4 : index
    %c0_423 = arith.constant 0 : index
    %c0_424 = arith.constant 0 : index
    %411 = vector.load %arg16[%c4_422, %c0_423, %c0_424] : memref<9x32x32xbf16, #tpu.memory_space<vmem>>, vector<1x32x32xbf16>
    %412 = vector.shape_cast %411 : vector<1x32x32xbf16> to vector<32x32xbf16>
    %cst_425 = arith.constant dense<0.000000e+00> : vector<24x32xf32>
    %413 = tpu.matmul %410, %412, %cst_425 {dimension_numbers = #tpu.dot_dimension_numbers<[1], [0], [0], [1], [0, 0, 1, 1], [], []>} : vector<24x32xbf16>, vector<32x32xbf16>, vector<24x32xf32> -> vector<24x32xf32>
    %414 = arith.addf %408, %413 : vector<24x32xf32>
    %c8_426 = arith.constant 8 : index
    %c0_427 = arith.constant 0 : index
    %415 = vector.load %arg22[%c8_426, %c0_427] : memref<38x32xf32, #tpu.memory_space<vmem>>, vector<24x32xf32>
    %416 = arith.truncf %415 : vector<24x32xf32> to vector<24x32xbf16>
    %c5_428 = arith.constant 5 : index
    %c0_429 = arith.constant 0 : index
    %c0_430 = arith.constant 0 : index
    %417 = vector.load %arg16[%c5_428, %c0_429, %c0_430] : memref<9x32x32xbf16, #tpu.memory_space<vmem>>, vector<1x32x32xbf16>
    %418 = vector.shape_cast %417 : vector<1x32x32xbf16> to vector<32x32xbf16>
    %cst_431 = arith.constant dense<0.000000e+00> : vector<24x32xf32>
    %419 = tpu.matmul %416, %418, %cst_431 {dimension_numbers = #tpu.dot_dimension_numbers<[1], [0], [0], [1], [0, 0, 1, 1], [], []>} : vector<24x32xbf16>, vector<32x32xbf16>, vector<24x32xf32> -> vector<24x32xf32>
    %420 = arith.addf %414, %419 : vector<24x32xf32>
    %c12_432 = arith.constant 12 : index
    %c0_433 = arith.constant 0 : index
    %421 = vector.load %arg22[%c12_432, %c0_433] : memref<38x32xf32, #tpu.memory_space<vmem>>, vector<24x32xf32>
    %422 = arith.truncf %421 : vector<24x32xf32> to vector<24x32xbf16>
    %c6_434 = arith.constant 6 : index
    %c0_435 = arith.constant 0 : index
    %c0_436 = arith.constant 0 : index
    %423 = vector.load %arg16[%c6_434, %c0_435, %c0_436] : memref<9x32x32xbf16, #tpu.memory_space<vmem>>, vector<1x32x32xbf16>
    %424 = vector.shape_cast %423 : vector<1x32x32xbf16> to vector<32x32xbf16>
    %cst_437 = arith.constant dense<0.000000e+00> : vector<24x32xf32>
    %425 = tpu.matmul %422, %424, %cst_437 {dimension_numbers = #tpu.dot_dimension_numbers<[1], [0], [0], [1], [0, 0, 1, 1], [], []>} : vector<24x32xbf16>, vector<32x32xbf16>, vector<24x32xf32> -> vector<24x32xf32>
    %426 = arith.addf %420, %425 : vector<24x32xf32>
    %c13_438 = arith.constant 13 : index
    %c0_439 = arith.constant 0 : index
    %427 = vector.load %arg22[%c13_438, %c0_439] : memref<38x32xf32, #tpu.memory_space<vmem>>, vector<24x32xf32>
    %428 = arith.truncf %427 : vector<24x32xf32> to vector<24x32xbf16>
    %c7_440 = arith.constant 7 : index
    %c0_441 = arith.constant 0 : index
    %c0_442 = arith.constant 0 : index
    %429 = vector.load %arg16[%c7_440, %c0_441, %c0_442] : memref<9x32x32xbf16, #tpu.memory_space<vmem>>, vector<1x32x32xbf16>
    %430 = vector.shape_cast %429 : vector<1x32x32xbf16> to vector<32x32xbf16>
    %cst_443 = arith.constant dense<0.000000e+00> : vector<24x32xf32>
    %431 = tpu.matmul %428, %430, %cst_443 {dimension_numbers = #tpu.dot_dimension_numbers<[1], [0], [0], [1], [0, 0, 1, 1], [], []>} : vector<24x32xbf16>, vector<32x32xbf16>, vector<24x32xf32> -> vector<24x32xf32>
    %432 = arith.addf %426, %431 : vector<24x32xf32>
    %c14_444 = arith.constant 14 : index
    %c0_445 = arith.constant 0 : index
    %433 = vector.load %arg22[%c14_444, %c0_445] : memref<38x32xf32, #tpu.memory_space<vmem>>, vector<24x32xf32>
    %434 = arith.truncf %433 : vector<24x32xf32> to vector<24x32xbf16>
    %c8_446 = arith.constant 8 : index
    %c0_447 = arith.constant 0 : index
    %c0_448 = arith.constant 0 : index
    %435 = vector.load %arg16[%c8_446, %c0_447, %c0_448] : memref<9x32x32xbf16, #tpu.memory_space<vmem>>, vector<1x32x32xbf16>
    %436 = vector.shape_cast %435 : vector<1x32x32xbf16> to vector<32x32xbf16>
    %cst_449 = arith.constant dense<0.000000e+00> : vector<24x32xf32>
    %437 = tpu.matmul %434, %436, %cst_449 {dimension_numbers = #tpu.dot_dimension_numbers<[1], [0], [0], [1], [0, 0, 1, 1], [], []>} : vector<24x32xbf16>, vector<32x32xbf16>, vector<24x32xf32> -> vector<24x32xf32>
    %438 = arith.addf %432, %437 : vector<24x32xf32>
    %cst_450 = arith.constant 0.000000e+00 : f32
    %439 = vector.broadcast %cst_450 : f32 to vector<24x32xf32>
    %440 = arith.maximumf %438, %439 : vector<24x32xf32>
    %c1_451 = arith.constant 1 : index
    %c0_452 = arith.constant 0 : index
    %c0_453 = arith.constant 0 : index
    %441 = vector.load %arg18[%c1_451, %c0_452, %c0_453] : memref<2x24x32xf32, #tpu.memory_space<vmem>>, vector<1x24x32xf32>
    %442 = vector.shape_cast %441 : vector<1x24x32xf32> to vector<24x32xf32>
    %443 = vector.shape_cast %440 : vector<24x32xf32> to vector<1x24x32xf32>
    tpu.vector_store %arg18[%c1_451, %c0_452, %c0_453], %443 {strides = array<i32>} : memref<2x24x32xf32, #tpu.memory_space<vmem>>, vector<1x24x32xf32>,
    return
  }
  func.func @transform_0(%arg0: i32) -> (i32, i32, i32) {
    %c0_i32 = arith.constant 0 : i32
    %c0_i32_0 = arith.constant 0 : i32
    %c0_i32_1 = arith.constant 0 : i32
    return %arg0, %c0_i32, %c0_i32_0 : i32, i32, i32
  }
  func.func @transform_1(%arg0: i32) -> (i32, i32) {
    %c0_i32 = arith.constant 0 : i32
    %c0_i32_0 = arith.constant 0 : i32
    %c0_i32_1 = arith.constant 0 : i32
    return %c0_i32, %c0_i32_0 : i32, i32
  }
  func.func @transform_2(%arg0: i32) -> (i32, i32) {
    %c0_i32 = arith.constant 0 : i32
    %c0_i32_0 = arith.constant 0 : i32
    %c0_i32_1 = arith.constant 0 : i32
    return %c0_i32, %c0_i32_0 : i32, i32
  }
  func.func @transform_3(%arg0: i32) -> (i32, i32, i32) {
    %c0_i32 = arith.constant 0 : i32
    %c0_i32_0 = arith.constant 0 : i32
    %c0_i32_1 = arith.constant 0 : i32
    %c0_i32_2 = arith.constant 0 : i32
    return %c0_i32, %c0_i32_0, %c0_i32_1 : i32, i32, i32
  }
  func.func @transform_4(%arg0: i32) -> (i32, i32) {
    %c0_i32 = arith.constant 0 : i32
    %c0_i32_0 = arith.constant 0 : i32
    %c0_i32_1 = arith.constant 0 : i32
    return %c0_i32, %c0_i32_0 : i32, i32
  }
  func.func @transform_5(%arg0: i32) -> (i32, i32) {
    %c0_i32 = arith.constant 0 : i32
    %c0_i32_0 = arith.constant 0 : i32
    %c0_i32_1 = arith.constant 0 : i32
    return %c0_i32, %c0_i32_0 : i32, i32
  }
  func.func @transform_6(%arg0: i32) -> (i32, i32) {
    %c0_i32 = arith.constant 0 : i32
    %c0_i32_0 = arith.constant 0 : i32
    %c0_i32_1 = arith.constant 0 : i32
    return %c0_i32, %c0_i32_0 : i32, i32
  }
  func.func @transform_7(%arg0: i32) -> (i32, i32) {
    %c0_i32 = arith.constant 0 : i32
    %c0_i32_0 = arith.constant 0 : i32
    %c0_i32_1 = arith.constant 0 : i32
    return %c0_i32, %c0_i32_0 : i32, i32
  }
  func.func @transform_8(%arg0: i32) -> (i32, i32, i32) {
    %c0_i32 = arith.constant 0 : i32
    %c0_i32_0 = arith.constant 0 : i32
    %c0_i32_1 = arith.constant 0 : i32
    %c0_i32_2 = arith.constant 0 : i32
    return %c0_i32, %c0_i32_0, %c0_i32_1 : i32, i32, i32
  }
  func.func @transform_9(%arg0: i32) -> (i32, i32) {
    %c0_i32 = arith.constant 0 : i32
    %c0_i32_0 = arith.constant 0 : i32
    %c0_i32_1 = arith.constant 0 : i32
    return %c0_i32, %c0_i32_0 : i32, i32
  }
  func.func @transform_10(%arg0: i32) -> (i32, i32, i32) {
    %c0_i32 = arith.constant 0 : i32
    %c0_i32_0 = arith.constant 0 : i32
    %c0_i32_1 = arith.constant 0 : i32
    %c0_i32_2 = arith.constant 0 : i32
    return %c0_i32, %c0_i32_0, %c0_i32_1 : i32, i32, i32
  }
  func.func @transform_11(%arg0: i32) -> (i32, i32) {
    %c0_i32 = arith.constant 0 : i32
    %c0_i32_0 = arith.constant 0 : i32
    %c0_i32_1 = arith.constant 0 : i32
    return %c0_i32, %c0_i32_0 : i32, i32
  }
  func.func @transform_12(%arg0: i32) -> (i32, i32) {
    %c0_i32 = arith.constant 0 : i32
    %c0_i32_0 = arith.constant 0 : i32
    %c0_i32_1 = arith.constant 0 : i32
    return %c0_i32, %c0_i32_0 : i32, i32
  }
  func.func @transform_13(%arg0: i32) -> (i32, i32) {
    %c0_i32 = arith.constant 0 : i32
    %c0_i32_0 = arith.constant 0 : i32
    %c0_i32_1 = arith.constant 0 : i32
    return %c0_i32, %c0_i32_0 : i32, i32
  }
  func.func @transform_14(%arg0: i32) -> (i32, i32) {
    %c0_i32 = arith.constant 0 : i32
    %c0_i32_0 = arith.constant 0 : i32
    %c0_i32_1 = arith.constant 0 : i32
    return %c0_i32, %c0_i32_0 : i32, i32
  }
  func.func @transform_15(%arg0: i32) -> (i32, i32, i32) {
    %c0_i32 = arith.constant 0 : i32
    %c0_i32_0 = arith.constant 0 : i32
    %c0_i32_1 = arith.constant 0 : i32
    %c0_i32_2 = arith.constant 0 : i32
    return %c0_i32, %c0_i32_0, %c0_i32_1 : i32, i32, i32
  }
  func.func @transform_16(%arg0: i32) -> (i32, i32) {
    %c0_i32 = arith.constant 0 : i32
    %c0_i32_0 = arith.constant 0 : i32
    %c0_i32_1 = arith.constant 0 : i32
    return %c0_i32, %c0_i32_0 : i32, i32
  }
  func.func @transform_17(%arg0: i32) -> (i32, i32, i32) {
    %c0_i32 = arith.constant 0 : i32
    %c0_i32_0 = arith.constant 0 : i32
    %c0_i32_1 = arith.constant 0 : i32
    return %arg0, %c0_i32, %c0_i32_0 : i32, i32, i32
  }
}

</mosaic_0001>

<bundles_post_ra>
// kernel: image_decoder_forward.1
= control target key start
LH: loop header
LB: loop body
LE: loop exit
PB: predicated region body
PF: predicated region fallthrough
CT: control target
= control target key end

     0   :  { %vm240_vm0 = vcmask 1044480   ;;  %vm241_vm1 = vcmask 1045504   ;;  %vm191_vm2 = vcmask 220160   ;;  %v11469_v1 = vmov 65535   ;;  %s14451_s1 = inlined_call_operand.vmem [shape: bf16[27,8], index: 1, kind: input, shape index: {}]   ;;  %s14452_s0 = inlined_call_operand.vmem [shape: bf16[2,256,27], index: 0, kind: input, shape index: {}]   ;;  %s14453_s3 = inlined_call_operand.vmem [shape: bf16[4,8,16], index: 3, kind: input, shape index: {}]   ;;  %s14454_s2 = inlined_call_operand.vmem [shape: f32[1,8], index: 2, kind: input, shape index: {}]   ;;  %s14455_s4 = inlined_call_operand.vmem [shape: f32[1,16], index: 4, kind: input, shape index: {}]   ;;  %s14456_s7 = inlined_call_operand.vmem [shape: bf16[102,239], index: 7, kind: input, shape index: {}]   ;;  %s14457_s5 = inlined_call_operand.vmem [shape: f32[1,16], index: 5, kind: input, shape index: {}]   ;;  %s14458_s6 = inlined_call_operand.vmem [shape: f32[1,16], index: 6, kind: input, shape index: {}]   ;;  %s14459_s8 = inlined_call_operand.vmem [shape: bf16[9,16,16], index: 8, kind: input, shape index: {}]   ;;  %s14460_s9 = inlined_call_operand.vmem [shape: f32[1,16], index: 9, kind: input, shape index: {}]   ;;  %s14461_s10 = inlined_call_operand.vmem [shape: bf16[4,16,32], index: 10, kind: input, shape index: {}]   ;;  %s14462_s14 = inlined_call_operand.vmem [shape: bf16[38,67], index: 14, kind: input, shape index: {}]   ;;  %s14463_s11 = inlined_call_operand.vmem [shape: f32[1,32], index: 11, kind: input, shape index: {}]   ;;  %s14464_s12 = inlined_call_operand.vmem [shape: f32[1,32], index: 12, kind: input, shape index: {}]   ;;  %s14465_s13 = inlined_call_operand.vmem [shape: f32[1,32], index: 13, kind: input, shape index: {}]   ;;  %s14466_s15 = inlined_call_operand.vmem [shape: bf16[9,32,32], index: 15, kind: input, shape index: {}]   ;;  %s14467_s16 = inlined_call_operand.vmem [shape: f32[1,32], index: 16, kind: input, shape index: {}]   ;;  %s14468_s17 = inlined_call_operand.vmem [shape: f32[2,24,32], index: 17, kind: output, shape index: {}]  }
   0x1   :  { %14475 = sst [smem:[#allocation19_spill]] %s14451_s1  ;;  %v242_v2 = vsel %vm240_vm0, 4294967295, %v11469_v1  ;;  %v11470_v7 = vmov 0.0   ;;  %vm579_vm3 = vcmask 1043456   ;;  %v486_v12 = vld [vmem:[%s14453_s3] sm:$0xf] }
   0x2   :  { %14476 = sst [smem:[#allocation20_spill]] %s14452_s0  ;;  %s14477_s26 = sld [smem:[#allocation19_spill]]  ;;  %v11570_v4 = vsel %vm241_vm1, %v242_v2, 0  ;;  %9957 = vmatprep.subr.bf16.mxu1 %v11470_v7  ;;  %v782_v13 = vsel %vm579_vm3, %v486_v12, 0  ;;  %v8911_v25 = vld [vmem:[%s14453_s3 + $0x4] sm:$0xf] }
   0x3   :  { %s14478_s30 = sld [smem:[#allocation20_spill]]  ;;  %v581_v26 = vsel %vm579_vm3, %v8911_v25, 0  ;;  %vm11471_vm4 = vmmov 0   ;;  %v11656_v27 = vld [vmem:[%s14454_s2] ss:$0 sm:$0xff]  ;;  %vm408_vm5 = vcmask 64512  }
   0x4   :  { %9958 = vmatpush3.bf16.msra.mxu1 %v581_v26  ;;  %9959 = vmatprep.mubr.msk.bf16.mxu1 %vm11471_vm4, %v11470_v7  ;;  %v8942_v43 = vld [vmem:[%s14453_s3 + $0x8] sm:$0xf]  ;;  %v8958_v46 = vld [vmem:[%s14453_s3 + $0xc] sm:$0xf]  ;;  %vm1722_vm6 = vcmask 908288   ;;  %vm1744_vm7 = vcmask 1046528  }
   0x5   :  { %10081 = vmatprep.subr.bf16.mxu1 %v11470_v7  ;;  %v1030_v52 = vsel %vm579_vm3, %v8942_v43, 0  ;;  %v1308_v53 = vsel %vm579_vm3, %v8958_v46, 0  ;;  %vm1745_vm8 = vcmask 1047552   ;;  %vm1839_vm9 = vcmask 130048  }
   0x6   :  { %vm1852_vm10 = vcmask 128000   ;;  %vm3695_vm11 = vcmask 1040384   ;;  %vm3696_vm12 = vcmask 1041408   ;;  %vm3685_vm13 = vcmask 547840  }
   0x7   :  { %vm3758_vm14 = vcmask 261120   ;;  %vm3763_vm15 = vcmask 259072  }
   0x8   :  { %v11325_v0 = vld [vmem:[%s14477_s26] sm:$0xff]   ;;  %v11326_v3 = vld [vmem:[%s14477_s26 + $0x8] sm:$0x3f]  }
   0x9   :  { %9921 = vmatprep.subr.bf16.mxu0 %v11325_v0  ;;  %v11327_v5 = vld [vmem:[%s14478_s30] sm:$0xff]   ;;  %v245_v6 = vand.u32 %v11326_v3, %v11570_v4  ;;  %v11328_v8 = vld [vmem:[%s14478_s30 + $0x8] sm:$0xff]   ;;  %v11329_v9 = vld [vmem:[%s14478_s30 + $0x10] sm:$0xff]  }
   0xa   :  { %9922 = vmatpush3.bf16.msra.mxu0 %v11325_v0  ;;  %9925 = vmatprep.mubr.msk.bf16.mxu0 %vm191_vm2, %v11327_v5  ;;  %v11330_v10 = vld [vmem:[%s14478_s30 + $0x18] sm:$0xff]   ;;  %v11331_v11 = vld [vmem:[%s14478_s30 + $0x20] sm:$0xff]   ;;  %v11332_v14 = vld [vmem:[%s14478_s30 + $0x28] sm:$0xff]  }
   0xb   :  { %9923 = vmatprep.subr.bf16.mxu0 %v245_v6  ;;  %v11333_v15 = vld [vmem:[%s14478_s30 + $0x30] sm:$0xff]   ;;  %v11334_v16 = vld [vmem:[%s14478_s30 + $0x38] sm:$0xff]   ;;  %v11335_v17 = vld [vmem:[%s14478_s30 + $0x40] sm:$0xff]  }
   0xc   :  { %v11336_v18 = vld [vmem:[%s14478_s30 + $0x48] sm:$0xff]   ;;  %v11337_v19 = vld [vmem:[%s14478_s30 + $0x50] sm:$0xff]   ;;  %v11338_v20 = vld [vmem:[%s14478_s30 + $0x58] sm:$0xff]  }
   0xd   :  { %v11339_v21 = vld [vmem:[%s14478_s30 + $0x60] sm:$0xff]   ;;  %v11340_v22 = vld [vmem:[%s14478_s30 + $0x68] sm:$0xff]   ;;  %v11341_v23 = vld [vmem:[%s14478_s30 + $0x70] sm:$0xff]  }
   0xe   :  { %9924 = vmatpush3.bf16.msra.mxu0 %v245_v6  ;;  %v11342_v24 = vld [vmem:[%s14478_s30 + $0x78] sm:$0xff]  }
   0xf   :  { %10019 = vmatprep.subr.bf16.mxu0 %v11470_v7 }
  0x11   :  { %9926 = vmatmul.mubr.msk.bf16.vlgmr.msra.gmra.mrb[0].mxu0 %vm191_vm2, %v11328_v8 }
  0x12   :  { %9929 = vmatprep.mubr.msk.bf16.mxu0 %vm191_vm2, %v11329_v9  ;;  %10020 = vmatpush3.bf16.msra.mxu0 %v782_v13 }
  0x13   :  { %10143 = vmatprep.subr.bf16.mxu0 %v11470_v7 }
  0x19   :  { %9930 = vmatmul.mubr.msk.bf16.gmra.mrb[4].mxu0 %vm191_vm2, %v11330_v10 }
  0x1a   :  { %9933 = vmatprep.mubr.msk.bf16.mxu0 %vm191_vm2, %v11331_v11 }
  0x21   :  { %9934 = vmatmul.mubr.msk.bf16.gmra.mrb[8].mxu0 %vm191_vm2, %v11332_v14 }
  0x22   :  { %9937 = vmatprep.mubr.msk.bf16.mxu0 %vm191_vm2, %v11333_v15 }
  0x29   :  { %9938 = vmatmul.mubr.msk.bf16.gmra.mrb[12].mxu0 %vm191_vm2, %v11334_v16 }
  0x2a   :  { %9941 = vmatprep.mubr.msk.bf16.mxu0 %vm191_vm2, %v11335_v17 }
  0x31   :  { %9942 = vmatmul.mubr.msk.bf16.gmra.mrb[16].mxu0 %vm191_vm2, %v11336_v18 }
  0x32   :  { %9945 = vmatprep.mubr.msk.bf16.mxu0 %vm191_vm2, %v11337_v19 }
  0x39   :  { %9946 = vmatmul.mubr.msk.bf16.gmra.mrb[20].mxu0 %vm191_vm2, %v11338_v20 }
  0x3a   :  { %9949 = vmatprep.mubr.msk.bf16.mxu0 %vm191_vm2, %v11339_v21 }
  0x41   :  { %9950 = vmatmul.mubr.msk.bf16.gmra.mrb[24].mxu0 %vm191_vm2, %v11340_v22 }
  0x42   :  { %9953 = vmatprep.mubr.msk.bf16.mxu0 %vm191_vm2, %v11341_v23 }
  0x49   :  { %9954 = vmatmul.mubr.msk.bf16.gmra.mrb[28].mxu0 %vm191_vm2, %v11342_v24 }
  0x4a   :  { %10021 = vmatprep.mubr.msk.bf16.mxu0 %vm11471_vm4, %v11470_v7 }
  0xe4   :  { %v9927_v28 = vpop.f32.mrb[0].mxu0 }
  0xe5   :  { %v290_v29 = vadd.f32 %v9927_v28, %v11656_v27  ;;  %v281_v30 = vpop.f32.mrb[1].mxu0 }
  0xe6   :  { %v282_v31 = vadd.f32 %v11656_v27, %v281_v30  ;;  %v9928_v32 = vpop.f32.mrb[2].mxu0 }
  0xe7   :  { %411 = vst.msk [vmem:[#allocation2 + $0x10] sm:$0xff] %vm408_vm5, %v290_v29  ;;  %v293_v33 = vadd.f32 %v9928_v32, %v11656_v27  ;;  %v284_v34 = vpop.f32.mrb[3].mxu0 }
  0xe8   :  { %409 = vst.msk [vmem:[#allocation2] sm:$0xff] %vm408_vm5, %v282_v31  ;;  %v285_v35 = vadd.f32 %v11656_v27, %v284_v34 }
  0xe9   :  { %412 = vst.msk [vmem:[#allocation2 + $0x18] sm:$0xff] %vm408_vm5, %v293_v33 }
  0xea   :  { %410 = vst.msk [vmem:[#allocation2 + $0x8] sm:$0xff] %vm408_vm5, %v285_v35 }
  0xec   :  { %v9931_v36 = vpop.f32.mrb[4].mxu0 }
  0xed   :  { %v306_v37 = vadd.f32 %v9931_v36, %v11656_v27  ;;  %v297_v38 = vpop.f32.mrb[5].mxu0 }
  0xee   :  { %v298_v39 = vadd.f32 %v11656_v27, %v297_v38  ;;  %v9932_v40 = vpop.f32.mrb[6].mxu0  ;;  %v443_v2 = vld [vmem:[#allocation2 + $0x10] sm:$0xff] }
  0xef   :  { %415 = vst.msk [vmem:[#allocation2 + $0x30] sm:$0xff] %vm408_vm5, %v306_v37  ;;  %v309_v41 = vadd.f32 %v9932_v40, %v11656_v27  ;;  %v300_v42 = vpop.f32.mrb[7].mxu0  ;;  %v441_v45 = vld [vmem:[#allocation2] sm:$0xff] }
  0xf0   :  { %413 = vst.msk [vmem:[#allocation2 + $0x20] sm:$0xff] %vm408_vm5, %v298_v39  ;;  %v301_v44 = vadd.f32 %v11656_v27, %v300_v42  ;;  %v444_v62 = vld [vmem:[#allocation2 + $0x18] sm:$0xff] }
  0xf1   :  { %416 = vst.msk [vmem:[#allocation2 + $0x38] sm:$0xff] %vm408_vm5, %v309_v41  ;;  %v487_v47 = vld [vmem:[#allocation2 + $0x1] sm:$0xff]  ;;  %v488_v48 = vld [vmem:[#allocation2 + $0x9] sm:$0xff]  ;;  %v489_v0 = vld [vmem:[#allocation2 + $0x11] sm:$0xff]  ;;  %v11699_v5 = vpack.c.bf16 %v444_v62, %v443_v2 }
  0xf2   :  { %v442_v49 = vld [vmem:[#allocation2 + $0x8] sm:$0xff]  ;;  %414 = vst.msk [vmem:[#allocation2 + $0x28] sm:$0xff] %vm408_vm5, %v301_v44  ;;  %v517_v50 = vpack.c.bf16 %v488_v48, %v487_v47 }
  0xf3   :  { %v471_v51 = vpack.c.bf16 %v442_v49, %v441_v45 }
  0xf4   :  { %v9935_v54 = vpop.f32.mrb[8].mxu0  ;;  %9960 = vmatmul.mubr.msk.bf16.vlgmr.msra.gmra.mrb[0].mxu1 %vm408_vm5, %v517_v50 }
  0xf5   :  { %10022 = vmatmul.mubr.msk.bf16.vlgmr.msra.gmra.mrb[32].mxu0 %vm408_vm5, %v471_v51  ;;  %v322_v55 = vadd.f32 %v9935_v54, %v11656_v27  ;;  %v313_v56 = vpop.f32.mrb[9].mxu0  ;;  %10082 = vmatpush3.bf16.msra.mxu1 %v1030_v52 }
  0xf6   :  { %9963 = vmatprep.mubr.msk.bf16.mxu1 %vm11471_vm4, %v11470_v7  ;;  %v314_v57 = vadd.f32 %v11656_v27, %v313_v56  ;;  %v9936_v58 = vpop.f32.mrb[10].mxu0  ;;  %10025 = vmatprep.mubr.msk.bf16.mxu0 %vm11471_vm4, %v11470_v7  ;;  %v447_v28 = vld [vmem:[#allocation2 + $0x30] sm:$0xff] }
  0xf7   :  { %10144 = vmatpush3.bf16.msra.mxu0 %v1308_v53  ;;  %419 = vst.msk [vmem:[#allocation2 + $0x50] sm:$0xff] %vm408_vm5, %v322_v55  ;;  %v325_v59 = vadd.f32 %v9936_v58, %v11656_v27  ;;  %v316_v60 = vpop.f32.mrb[11].mxu0  ;;  %v490_v61 = vld [vmem:[#allocation2 + $0x19] sm:$0xff] }
  0xf8   :  { %10205 = vmatprep.subr.bf16.mxu0 %v11470_v7  ;;  %417 = vst.msk [vmem:[#allocation2 + $0x40] sm:$0xff] %vm408_vm5, %v314_v57  ;;  %v317_v63 = vadd.f32 %v11656_v27, %v316_v60  ;;  %v11697_v3 = vpack.c.bf16 %v490_v61, %v489_v0  ;;  %v445_v11 = vld [vmem:[#allocation2 + $0x20] sm:$0xff]  ;;  %v448_v29 = vld [vmem:[#allocation2 + $0x38] sm:$0xff] }
  0xf9   :  { %420 = vst.msk [vmem:[#allocation2 + $0x58] sm:$0xff] %vm408_vm5, %v325_v59  ;;  %v491_v13 = vld [vmem:[#allocation2 + $0x21] sm:$0xff]  ;;  %v492_v14 = vld [vmem:[#allocation2 + $0x29] sm:$0xff]  ;;  %v493_v33 = vld [vmem:[#allocation2 + $0x31] sm:$0xff]  ;;  %v11738_v35 = vpack.c.bf16 %v448_v29, %v447_v28 }
  0xfa   :  { %418 = vst.msk [vmem:[#allocation2 + $0x48] sm:$0xff] %vm408_vm5, %v317_v63  ;;  %v446_v15 = vld [vmem:[#allocation2 + $0x28] sm:$0xff]  ;;  %v11716_v19 = vpack.c.bf16 %v492_v14, %v491_v13 }
  0xfb   :  { %v11718_v20 = vpack.c.bf16 %v446_v15, %v445_v11 }
  0xfc   :  { %9964 = vmatmul.mubr.msk.bf16.gmra.mrb[4].mxu1 %vm408_vm5, %v11697_v3  ;;  %v9939_v6 = vpop.f32.mrb[12].mxu0 }
  0xfd   :  { %10026 = vmatmul.mubr.msk.bf16.gmra.mrb[36].mxu0 %vm408_vm5, %v11699_v5  ;;  %v338_v8 = vadd.f32 %v9939_v6, %v11656_v27  ;;  %v329_v9 = vpop.f32.mrb[13].mxu0  ;;  %9967 = vmatprep.mubr.msk.bf16.mxu1 %vm11471_vm4, %v11470_v7 }
  0xfe   :  { %10029 = vmatprep.mubr.msk.bf16.mxu0 %vm11471_vm4, %v11470_v7  ;;  %v330_v10 = vadd.f32 %v11656_v27, %v329_v9  ;;  %v9940_v12 = vpop.f32.mrb[14].mxu0  ;;  %v451_v53 = vld [vmem:[#allocation2 + $0x50] sm:$0xff] }
  0xff   :  { %423 = vst.msk [vmem:[#allocation2 + $0x70] sm:$0xff] %vm408_vm5, %v338_v8  ;;  %v341_v16 = vadd.f32 %v9940_v12, %v11656_v27  ;;  %v332_v17 = vpop.f32.mrb[15].mxu0  ;;  %v494_v26 = vld [vmem:[#allocation2 + $0x39] sm:$0xff] }
 0x100   :  { %421 = vst.msk [vmem:[#allocation2 + $0x60] sm:$0xff] %vm408_vm5, %v330_v10  ;;  %v333_v18 = vadd.f32 %v11656_v27, %v332_v17  ;;  %v11736_v34 = vpack.c.bf16 %v494_v26, %v493_v33  ;;  %v449_v39 = vld [vmem:[#allocation2 + $0x40] sm:$0xff]  ;;  %v497_v56 = vld [vmem:[#allocation2 + $0x51] sm:$0xff] }
 0x101   :  { %424 = vst.msk [vmem:[#allocation2 + $0x78] sm:$0xff] %vm408_vm5, %v341_v16  ;;  %v495_v42 = vld [vmem:[#allocation2 + $0x41] sm:$0xff]  ;;  %v496_v43 = vld [vmem:[#allocation2 + $0x49] sm:$0xff]  ;;  %v452_v58 = vld [vmem:[#allocation2 + $0x58] sm:$0xff] }
 0x102   :  { %422 = vst.msk [vmem:[#allocation2 + $0x68] sm:$0xff] %vm408_vm5, %v333_v18  ;;  %v450_v44 = vld [vmem:[#allocation2 + $0x48] sm:$0xff]  ;;  %v11756_v48 = vpack.c.bf16 %v496_v43, %v495_v42  ;;  %v11778_v63 = vpack.c.bf16 %v452_v58, %v451_v53 }
 0x103   :  { %v11758_v49 = vpack.c.bf16 %v450_v44, %v449_v39 }
 0x104   :  { %9968 = vmatmul.mubr.msk.bf16.gmra.mrb[8].mxu1 %vm408_vm5, %v11716_v19  ;;  %v9943_v21 = vpop.f32.mrb[16].mxu0 }
 0x105   :  { %10030 = vmatmul.mubr.msk.bf16.gmra.mrb[40].mxu0 %vm408_vm5, %v11718_v20  ;;  %9971 = vmatprep.mubr.msk.bf16.mxu1 %vm11471_vm4, %v11470_v7  ;;  %v354_v22 = vadd.f32 %v9943_v21, %v11656_v27  ;;  %v345_v23 = vpop.f32.mrb[17].mxu0 }
 0x106   :  { %10033 = vmatprep.mubr.msk.bf16.mxu0 %vm11471_vm4, %v11470_v7  ;;  %v346_v24 = vadd.f32 %v11656_v27, %v345_v23  ;;  %v9944_v25 = vpop.f32.mrb[18].mxu0 }
 0x107   :  { %427 = vst.msk [vmem:[#allocation2 + $0x90] sm:$0xff] %vm408_vm5, %v354_v22  ;;  %v357_v30 = vadd.f32 %v9944_v25, %v11656_v27  ;;  %v348_v31 = vpop.f32.mrb[19].mxu0  ;;  %v498_v57 = vld [vmem:[#allocation2 + $0x59] sm:$0xff] }
 0x108   :  { %425 = vst.msk [vmem:[#allocation2 + $0x80] sm:$0xff] %vm408_vm5, %v346_v24  ;;  %v349_v32 = vadd.f32 %v11656_v27, %v348_v31  ;;  %v11776_v62 = vpack.c.bf16 %v498_v57, %v497_v56  ;;  %v453_v8 = vld [vmem:[#allocation2 + $0x60] sm:$0xff]  ;;  %v501_v21 = vld [vmem:[#allocation2 + $0x71] sm:$0xff] }
 0x109   :  { %428 = vst.msk [vmem:[#allocation2 + $0x98] sm:$0xff] %vm408_vm5, %v357_v30  ;;  %v499_v11 = vld [vmem:[#allocation2 + $0x61] sm:$0xff]  ;;  %v500_v12 = vld [vmem:[#allocation2 + $0x69] sm:$0xff]  ;;  %v456_v23 = vld [vmem:[#allocation2 + $0x78] sm:$0xff] }
 0x10a   :  { %426 = vst.msk [vmem:[#allocation2 + $0x88] sm:$0xff] %vm408_vm5, %v349_v32  ;;  %v454_v13 = vld [vmem:[#allocation2 + $0x68] sm:$0xff]  ;;  %v11796_v17 = vpack.c.bf16 %v500_v12, %v499_v11 }
 0x10b   :  { %v11798_v18 = vpack.c.bf16 %v454_v13, %v453_v8 }
 0x10c   :  { %9972 = vmatmul.mubr.msk.bf16.gmra.mrb[12].mxu1 %vm408_vm5, %v11736_v34  ;;  %v9947_v36 = vpop.f32.mrb[20].mxu0 }
 0x10d   :  { %10034 = vmatmul.mubr.msk.bf16.gmra.mrb[44].mxu0 %vm408_vm5, %v11738_v35  ;;  %9975 = vmatprep.mubr.msk.bf16.mxu1 %vm11471_vm4, %v11470_v7  ;;  %v370_v37 = vadd.f32 %v9947_v36, %v11656_v27  ;;  %v361_v38 = vpop.f32.mrb[21].mxu0 }
 0x10e   :  { %10037 = vmatprep.mubr.msk.bf16.mxu0 %vm11471_vm4, %v11470_v7  ;;  %v362_v40 = vadd.f32 %v11656_v27, %v361_v38  ;;  %v9948_v41 = vpop.f32.mrb[22].mxu0  ;;  %v459_v33 = vld [vmem:[#allocation2 + $0x90] sm:$0xff] }
 0x10f   :  { %431 = vst.msk [vmem:[#allocation2 + $0xb0] sm:$0xff] %vm408_vm5, %v370_v37  ;;  %v373_v45 = vadd.f32 %v9948_v41, %v11656_v27  ;;  %v364_v46 = vpop.f32.mrb[23].mxu0  ;;  %v502_v22 = vld [vmem:[#allocation2 + $0x79] sm:$0xff] }
 0x110   :  { %429 = vst.msk [vmem:[#allocation2 + $0xa0] sm:$0xff] %vm408_vm5, %v362_v40  ;;  %v365_v47 = vadd.f32 %v11656_v27, %v364_v46  ;;  %v11809_v24 = vpack.c.bf16 %v502_v22, %v501_v21  ;;  %v457_v26 = vld [vmem:[#allocation2 + $0x80] sm:$0xff]  ;;  %v505_v36 = vld [vmem:[#allocation2 + $0x91] sm:$0xff]  ;;  %v14471_v21 = vmov 0  }
 0x111   :  { %432 = vst.msk [vmem:[#allocation2 + $0xb8] sm:$0xff] %vm408_vm5, %v373_v45  ;;  %v503_v28 = vld [vmem:[#allocation2 + $0x81] sm:$0xff]  ;;  %v504_v29 = vld [vmem:[#allocation2 + $0x89] sm:$0xff]  ;;  %v460_v38 = vld [vmem:[#allocation2 + $0x98] sm:$0xff]  ;;  %1751 = vmatprep.subr.bf16.mxu1 %v14471_v21 }
 0x112   :  { %430 = vst.msk [vmem:[#allocation2 + $0xa8] sm:$0xff] %vm408_vm5, %v365_v47  ;;  %v458_v30 = vld [vmem:[#allocation2 + $0x88] sm:$0xff]  ;;  %v11821_v31 = vpack.c.bf16 %v504_v29, %v503_v28  ;;  %v11835_v40 = vpack.c.bf16 %v460_v38, %v459_v33 }
 0x113   :  { %v11823_v32 = vpack.c.bf16 %v458_v30, %v457_v26 }
 0x114   :  { %9976 = vmatmul.mubr.msk.bf16.gmra.mrb[16].mxu1 %vm408_vm5, %v11756_v48  ;;  %v9951_v50 = vpop.f32.mrb[24].mxu0 }
 0x115   :  { %10038 = vmatmul.mubr.msk.bf16.gmra.mrb[48].mxu0 %vm408_vm5, %v11758_v49  ;;  %9979 = vmatprep.mubr.msk.bf16.mxu1 %vm11471_vm4, %v11470_v7  ;;  %v386_v51 = vadd.f32 %v9951_v50, %v11656_v27  ;;  %v377_v52 = vpop.f32.mrb[25].mxu0 }
 0x116   :  { %10041 = vmatprep.mubr.msk.bf16.mxu0 %vm11471_vm4, %v11470_v7  ;;  %v378_v54 = vadd.f32 %v11656_v27, %v377_v52  ;;  %v9952_v55 = vpop.f32.mrb[26].mxu0  ;;  %v463_v47 = vld [vmem:[#allocation2 + $0xb0] sm:$0xff] }
 0x117   :  { %435 = vst.msk [vmem:[#allocation2 + $0xd0] sm:$0xff] %vm408_vm5, %v386_v51  ;;  %v389_v59 = vadd.f32 %v9952_v55, %v11656_v27  ;;  %v380_v60 = vpop.f32.mrb[27].mxu0  ;;  %v506_v37 = vld [vmem:[#allocation2 + $0x99] sm:$0xff] }
 0x118   :  { %433 = vst.msk [vmem:[#allocation2 + $0xc0] sm:$0xff] %vm408_vm5, %v378_v54  ;;  %v381_v61 = vadd.f32 %v11656_v27, %v380_v60  ;;  %v11833_v39 = vpack.c.bf16 %v506_v37, %v505_v36  ;;  %v461_v41 = vld [vmem:[#allocation2 + $0xa0] sm:$0xff]  ;;  %v509_v50 = vld [vmem:[#allocation2 + $0xb1] sm:$0xff] }
 0x119   :  { %436 = vst.msk [vmem:[#allocation2 + $0xd8] sm:$0xff] %vm408_vm5, %v389_v59  ;;  %v507_v42 = vld [vmem:[#allocation2 + $0xa1] sm:$0xff]  ;;  %v508_v43 = vld [vmem:[#allocation2 + $0xa9] sm:$0xff]  ;;  %v464_v52 = vld [vmem:[#allocation2 + $0xb8] sm:$0xff] }
 0x11a   :  { %434 = vst.msk [vmem:[#allocation2 + $0xc8] sm:$0xff] %vm408_vm5, %v381_v61  ;;  %v462_v44 = vld [vmem:[#allocation2 + $0xa8] sm:$0xff]  ;;  %v11845_v45 = vpack.c.bf16 %v508_v43, %v507_v42  ;;  %v11859_v54 = vpack.c.bf16 %v464_v52, %v463_v47 }
 0x11b   :  { %v11847_v46 = vpack.c.bf16 %v462_v44, %v461_v41 }
 0x11c   :  { %9980 = vmatmul.mubr.msk.bf16.gmra.mrb[20].mxu1 %vm408_vm5, %v11776_v62  ;;  %v9955_v0 = vpop.f32.mrb[28].mxu0 }
 0x11d   :  { %10042 = vmatmul.mubr.msk.bf16.gmra.mrb[52].mxu0 %vm408_vm5, %v11778_v63  ;;  %9983 = vmatprep.mubr.msk.bf16.mxu1 %vm11471_vm4, %v11470_v7  ;;  %v402_v2 = vadd.f32 %v9955_v0, %v11656_v27  ;;  %v393_v6 = vpop.f32.mrb[29].mxu0 }
 0x11e   :  { %10045 = vmatprep.mubr.msk.bf16.mxu0 %vm11471_vm4, %v11470_v7  ;;  %v394_v9 = vadd.f32 %v11656_v27, %v393_v6  ;;  %v9956_v10 = vpop.f32.mrb[30].mxu0  ;;  %v467_v61 = vld [vmem:[#allocation2 + $0xd0] sm:$0xff] }
 0x11f   :  { %439 = vst.msk [vmem:[#allocation2 + $0xf0] sm:$0xff] %vm408_vm5, %v402_v2  ;;  %v405_v14 = vadd.f32 %v9956_v10, %v11656_v27  ;;  %v396_v15 = vpop.f32.mrb[31].mxu0  ;;  %v510_v51 = vld [vmem:[#allocation2 + $0xb9] sm:$0xff] }
 0x120   :  { %437 = vst.msk [vmem:[#allocation2 + $0xe0] sm:$0xff] %vm408_vm5, %v394_v9  ;;  %v397_v16 = vadd.f32 %v11656_v27, %v396_v15  ;;  %v455_v27 = vld [vmem:[#allocation2 + $0x70] sm:$0xff]  ;;  %v11857_v53 = vpack.c.bf16 %v510_v51, %v509_v50  ;;  %v465_v55 = vld [vmem:[#allocation2 + $0xc0] sm:$0xff]  ;;  %v468_v6 = vld [vmem:[#allocation2 + $0xd8] sm:$0xff] }
 0x121   :  { %440 = vst.msk [vmem:[#allocation2 + $0xf8] sm:$0xff] %vm408_vm5, %v405_v14  ;;  %v11811_v25 = vpack.c.bf16 %v456_v23, %v455_v27  ;;  %v511_v56 = vld [vmem:[#allocation2 + $0xc1] sm:$0xff]  ;;  %v512_v57 = vld [vmem:[#allocation2 + $0xc9] sm:$0xff]  ;;  %v513_v0 = vld [vmem:[#allocation2 + $0xd1] sm:$0xff]  ;;  %v11883_v9 = vpack.c.bf16 %v468_v6, %v467_v61 }
 0x122   :  { %438 = vst.msk [vmem:[#allocation2 + $0xe8] sm:$0xff] %vm408_vm5, %v397_v16  ;;  %v466_v58 = vld [vmem:[#allocation2 + $0xc8] sm:$0xff]  ;;  %v11869_v59 = vpack.c.bf16 %v512_v57, %v511_v56 }
 0x123   :  { %v11871_v60 = vpack.c.bf16 %v466_v58, %v465_v55 }
 0x124   :  { %9984 = vmatmul.mubr.msk.bf16.gmra.mrb[24].mxu1 %vm408_vm5, %v11796_v17 }
 0x125   :  { %10046 = vmatmul.mubr.msk.bf16.gmra.mrb[56].mxu0 %vm408_vm5, %v11798_v18  ;;  %9987 = vmatprep.mubr.msk.bf16.mxu1 %vm11471_vm4, %v11470_v7 }
 0x126   :  { %10049 = vmatprep.mubr.msk.bf16.mxu0 %vm11471_vm4, %v11470_v7  ;;  %v965_v38 = vld [vmem:[#allocation2 + $0xf0] sm:$0xff] }
 0x127   :  { %v514_v2 = vld [vmem:[#allocation2 + $0xd9] sm:$0xff] }
 0x128   :  { %v11881_v8 = vpack.c.bf16 %v514_v2, %v513_v0  ;;  %v11893_v10 = vld [vmem:[#allocation2 + $0xe0] sm:$0xff]  ;;  %v966_v33 = vld [vmem:[#allocation2 + $0xf8] sm:$0x7f] }
 0x129   :  { %v11895_v11 = vld [vmem:[#allocation2 + $0xe1] sm:$0xff]  ;;  %v516_v12 = vld [vmem:[#allocation2 + $0xe9] sm:$0x7f]  ;;  %v981_v51 = vpack.c.bf16 %v966_v33, %v965_v38 }
 0x12a   :  { %v470_v13 = vld [vmem:[#allocation2 + $0xe8] sm:$0x7f]  ;;  %v531_v14 = vpack.c.bf16 %v516_v12, %v11895_v11 }
 0x12b   :  { %v485_v15 = vpack.c.bf16 %v470_v13, %v11893_v10  ;;  %v1242_v27 = vld [vmem:[#allocation2 + $0xe9] sm:$0xff] }
 0x12c   :  { %9988 = vmatmul.mubr.msk.bf16.gmra.mrb[28].mxu1 %vm408_vm5, %v11809_v24 }
 0x12d   :  { %10050 = vmatmul.mubr.msk.bf16.gmra.mrb[60].mxu0 %vm408_vm5, %v11811_v25  ;;  %9991 = vmatprep.mubr.msk.bf16.mxu1 %vm11471_vm4, %v11470_v7 }
 0x12e   :  { %10053 = vmatprep.mubr.msk.bf16.mxu0 %vm11471_vm4, %v11470_v7 }
 0x134   :  { %9992 = vmatmul.mubr.msk.bf16.gmra.mrb[32].mxu1 %vm408_vm5, %v11821_v31 }
 0x135   :  { %10054 = vmatmul.mubr.msk.bf16.gmra.mrb[64].mxu0 %vm408_vm5, %v11823_v32  ;;  %9995 = vmatprep.mubr.msk.bf16.mxu1 %vm11471_vm4, %v11470_v7 }
 0x136   :  { %10057 = vmatprep.mubr.msk.bf16.mxu0 %vm11471_vm4, %v11470_v7 }
 0x13c   :  { %9996 = vmatmul.mubr.msk.bf16.gmra.mrb[36].mxu1 %vm408_vm5, %v11833_v39 }
 0x13d   :  { %10058 = vmatmul.mubr.msk.bf16.gmra.mrb[68].mxu0 %vm408_vm5, %v11835_v40  ;;  %9999 = vmatprep.mubr.msk.bf16.mxu1 %vm11471_vm4, %v11470_v7 }
 0x13e   :  { %10061 = vmatprep.mubr.msk.bf16.mxu0 %vm11471_vm4, %v11470_v7 }
 0x144   :  { %10000 = vmatmul.mubr.msk.bf16.gmra.mrb[40].mxu1 %vm408_vm5, %v11845_v45 }
 0x145   :  { %10062 = vmatmul.mubr.msk.bf16.gmra.mrb[72].mxu0 %vm408_vm5, %v11847_v46  ;;  %10003 = vmatprep.mubr.msk.bf16.mxu1 %vm11471_vm4, %v11470_v7 }
 0x146   :  { %10065 = vmatprep.mubr.msk.bf16.mxu0 %vm11471_vm4, %v11470_v7 }
 0x14c   :  { %10004 = vmatmul.mubr.msk.bf16.gmra.mrb[44].mxu1 %vm408_vm5, %v11857_v53 }
 0x14d   :  { %10066 = vmatmul.mubr.msk.bf16.gmra.mrb[76].mxu0 %vm408_vm5, %v11859_v54  ;;  %10007 = vmatprep.mubr.msk.bf16.mxu1 %vm11471_vm4, %v11470_v7 }
 0x14e   :  { %10069 = vmatprep.mubr.msk.bf16.mxu0 %vm11471_vm4, %v11470_v7 }
 0x154   :  { %10008 = vmatmul.mubr.msk.bf16.gmra.mrb[48].mxu1 %vm408_vm5, %v11869_v59 }
 0x155   :  { %10070 = vmatmul.mubr.msk.bf16.gmra.mrb[80].mxu0 %vm408_vm5, %v11871_v60  ;;  %10011 = vmatprep.mubr.msk.bf16.mxu1 %vm11471_vm4, %v11470_v7 }
 0x156   :  { %10073 = vmatprep.mubr.msk.bf16.mxu0 %vm11471_vm4, %v11470_v7 }
 0x15c   :  { %10012 = vmatmul.mubr.msk.bf16.gmra.mrb[52].mxu1 %vm408_vm5, %v11881_v8 }
 0x15d   :  { %10074 = vmatmul.mubr.msk.bf16.gmra.mrb[84].mxu0 %vm408_vm5, %v11883_v9  ;;  %10015 = vmatprep.mubr.msk.bf16.mxu1 %vm11471_vm4, %v11470_v7 }
 0x15e   :  { %10077 = vmatprep.mubr.msk.bf16.mxu0 %vm11471_vm4, %v11470_v7 }
 0x164   :  { %10016 = vmatmul.mubr.msk.bf16.gmra.mrb[56].mxu1 %vm408_vm5, %v531_v14 }
 0x165   :  { %10078 = vmatmul.mubr.msk.bf16.gmra.mrb[88].mxu0 %vm408_vm5, %v485_v15  ;;  %10083 = vmatprep.mubr.msk.bf16.mxu1 %vm11471_vm4, %v11470_v7 }
 0x166   :  { %10145 = vmatprep.mubr.msk.bf16.mxu0 %vm11471_vm4, %v11470_v7 }
 0x16c   :  { %10084 = vmatmul.mubr.msk.bf16.vlgmr.msra.gmra.mrb[60].mxu1 %vm408_vm5, %v11699_v5 }
 0x16d   :  { %10146 = vmatmul.mubr.msk.bf16.vlgmr.msra.gmra.mrb[92].mxu0 %vm408_vm5, %v11697_v3  ;;  %10087 = vmatprep.mubr.msk.bf16.mxu1 %vm11471_vm4, %v11470_v7 }
 0x16e   :  { %10149 = vmatprep.mubr.msk.bf16.mxu0 %vm11471_vm4, %v11470_v7 }
 0x174   :  { %10088 = vmatmul.mubr.msk.bf16.gmra.mrb[64].mxu1 %vm408_vm5, %v11718_v20 }
 0x175   :  { %10150 = vmatmul.mubr.msk.bf16.gmra.mrb[96].mxu0 %vm408_vm5, %v11716_v19  ;;  %10091 = vmatprep.mubr.msk.bf16.mxu1 %vm11471_vm4, %v11470_v7 }
 0x176   :  { %10153 = vmatprep.mubr.msk.bf16.mxu0 %vm11471_vm4, %v11470_v7 }
 0x17c   :  { %10092 = vmatmul.mubr.msk.bf16.gmra.mrb[68].mxu1 %vm408_vm5, %v11738_v35 }
 0x17d   :  { %10154 = vmatmul.mubr.msk.bf16.gmra.mrb[100].mxu0 %vm408_vm5, %v11736_v34  ;;  %10095 = vmatprep.mubr.msk.bf16.mxu1 %vm11471_vm4, %v11470_v7 }
 0x17e   :  { %10157 = vmatprep.mubr.msk.bf16.mxu0 %vm11471_vm4, %v11470_v7 }
 0x184   :  { %10096 = vmatmul.mubr.msk.bf16.gmra.mrb[72].mxu1 %vm408_vm5, %v11758_v49 }
 0x185   :  { %10158 = vmatmul.mubr.msk.bf16.gmra.mrb[104].mxu0 %vm408_vm5, %v11756_v48  ;;  %10099 = vmatprep.mubr.msk.bf16.mxu1 %vm11471_vm4, %v11470_v7 }
 0x186   :  { %10161 = vmatprep.mubr.msk.bf16.mxu0 %vm11471_vm4, %v11470_v7 }
 0x18c   :  { %10100 = vmatmul.mubr.msk.bf16.gmra.mrb[76].mxu1 %vm408_vm5, %v11778_v63 }
 0x18d   :  { %10162 = vmatmul.mubr.msk.bf16.gmra.mrb[108].mxu0 %vm408_vm5, %v11776_v62  ;;  %10103 = vmatprep.mubr.msk.bf16.mxu1 %vm11471_vm4, %v11470_v7 }
 0x18e   :  { %10165 = vmatprep.mubr.msk.bf16.mxu0 %vm11471_vm4, %v11470_v7 }
 0x194   :  { %10104 = vmatmul.mubr.msk.bf16.gmra.mrb[80].mxu1 %vm408_vm5, %v11798_v18  ;;  %v964_v18 = vld [vmem:[#allocation2 + $0xe8] sm:$0xff] }
 0x195   :  { %10166 = vmatmul.mubr.msk.bf16.gmra.mrb[112].mxu0 %vm408_vm5, %v11796_v17  ;;  %10107 = vmatprep.mubr.msk.bf16.mxu1 %vm11471_vm4, %v11470_v7 }
 0x196   :  { %10169 = vmatprep.mubr.msk.bf16.mxu0 %vm11471_vm4, %v11470_v7 }
 0x19c   :  { %10108 = vmatmul.mubr.msk.bf16.gmra.mrb[84].mxu1 %vm408_vm5, %v11811_v25 }
 0x19d   :  { %10170 = vmatmul.mubr.msk.bf16.gmra.mrb[116].mxu0 %vm408_vm5, %v11809_v24  ;;  %10111 = vmatprep.mubr.msk.bf16.mxu1 %vm11471_vm4, %v11470_v7 }
 0x19e   :  { %10173 = vmatprep.mubr.msk.bf16.mxu0 %vm11471_vm4, %v11470_v7 }
 0x1a4   :  { %10112 = vmatmul.mubr.msk.bf16.gmra.mrb[88].mxu1 %vm408_vm5, %v11823_v32  ;;  %v1258_v32 = vpack.c.bf16 %v1242_v27, %v11895_v11 }
 0x1a5   :  { %10174 = vmatmul.mubr.msk.bf16.gmra.mrb[120].mxu0 %vm408_vm5, %v11821_v31  ;;  %10115 = vmatprep.mubr.msk.bf16.mxu1 %vm11471_vm4, %v11470_v7  ;;  %v980_v31 = vpack.c.bf16 %v964_v18, %v11893_v10 }
 0x1a6   :  { %10177 = vmatprep.mubr.msk.bf16.mxu0 %vm11471_vm4, %v11470_v7 }
 0x1ac   :  { %10116 = vmatmul.mubr.msk.bf16.gmra.mrb[92].mxu1 %vm408_vm5, %v11835_v40  ;;  %v1244_v40 = vld [vmem:[#allocation2 + $0xf9] sm:$0x7f] }
 0x1ad   :  { %10178 = vmatmul.mubr.msk.bf16.gmra.mrb[124].mxu0 %vm408_vm5, %v11833_v39  ;;  %10119 = vmatprep.mubr.msk.bf16.mxu1 %vm11471_vm4, %v11470_v7  ;;  %v1243_v39 = vld [vmem:[#allocation2 + $0xf1] sm:$0xff] }
 0x1ae   :  { %10181 = vmatprep.mubr.msk.bf16.mxu0 %vm11471_vm4, %v11470_v7  ;;  %v1259_v52 = vpack.c.bf16 %v1244_v40, %v1243_v39 }
 0x1b4   :  { %10120 = vmatmul.mubr.msk.bf16.gmra.mrb[96].mxu1 %vm408_vm5, %v11847_v46 }
 0x1b5   :  { %10182 = vmatmul.mubr.msk.bf16.gmra.mrb[128].mxu0 %vm408_vm5, %v11845_v45  ;;  %10123 = vmatprep.mubr.msk.bf16.mxu1 %vm11471_vm4, %v11470_v7 }
 0x1b6   :  { %10185 = vmatprep.mubr.msk.bf16.mxu0 %vm11471_vm4, %v11470_v7 }
 0x1bc   :  { %10124 = vmatmul.mubr.msk.bf16.gmra.mrb[100].mxu1 %vm408_vm5, %v11859_v54 }
 0x1bd   :  { %10186 = vmatmul.mubr.msk.bf16.gmra.mrb[132].mxu0 %vm408_vm5, %v11857_v53  ;;  %10127 = vmatprep.mubr.msk.bf16.mxu1 %vm11471_vm4, %v11470_v7 }
 0x1be   :  { %10189 = vmatprep.mubr.msk.bf16.mxu0 %vm11471_vm4, %v11470_v7 }
 0x1c4   :  { %10128 = vmatmul.mubr.msk.bf16.gmra.mrb[104].mxu1 %vm408_vm5, %v11871_v60 }
 0x1c5   :  { %10190 = vmatmul.mubr.msk.bf16.gmra.mrb[136].mxu0 %vm408_vm5, %v11869_v59  ;;  %10131 = vmatprep.mubr.msk.bf16.mxu1 %vm11471_vm4, %v11470_v7 }
 0x1c6   :  { %10193 = vmatprep.mubr.msk.bf16.mxu0 %vm11471_vm4, %v11470_v7 }
 0x1c7   :  { %v617_v3 = vpop.f32.mrb[0].mxu1 }
 0x1c8   :  { %v818_v5 = vpop.f32.mrb[32].mxu0  ;;  %v9961_v20 = vpop.f32.mrb[1].mxu1 }
 0x1c9   :  { %v12001_v19 = vadd.f32 %v818_v5, %v617_v3  ;;  %v10023_v34 = vpop.f32.mrb[33].mxu0  ;;  %v620_v35 = vpop.f32.mrb[2].mxu1 }
 0x1ca   :  { %v821_v48 = vpop.f32.mrb[34].mxu0  ;;  %v9962_v62 = vpop.f32.mrb[3].mxu1 }
 0x1cb   :  { %v12003_v49 = vadd.f32 %v821_v48, %v620_v35  ;;  %v10024_v63 = vpop.f32.mrb[35].mxu0 }
 0x1cc   :  { %10132 = vmatmul.mubr.msk.bf16.gmra.mrb[108].mxu1 %vm408_vm5, %v11883_v9 }
 0x1cd   :  { %10194 = vmatmul.mubr.msk.bf16.gmra.mrb[140].mxu0 %vm408_vm5, %v11881_v8  ;;  %10135 = vmatprep.mubr.msk.bf16.mxu1 %vm11471_vm4, %v11470_v7 }
 0x1ce   :  { %10197 = vmatprep.mubr.msk.bf16.mxu0 %vm11471_vm4, %v11470_v7 }
 0x1cf   :  { %v625_v16 = vpop.f32.mrb[4].mxu1 }
 0x1d0   :  { %v826_v17 = vpop.f32.mrb[36].mxu0  ;;  %v9965_v23 = vpop.f32.mrb[5].mxu1 }
 0x1d1   :  { %v12014_v22 = vadd.f32 %v826_v17, %v625_v16  ;;  %v10027_v24 = vpop.f32.mrb[37].mxu0  ;;  %v628_v25 = vpop.f32.mrb[6].mxu1 }
 0x1d2   :  { %v829_v26 = vpop.f32.mrb[38].mxu0  ;;  %v9966_v29 = vpop.f32.mrb[7].mxu1 }
 0x1d3   :  { %v12016_v28 = vadd.f32 %v829_v26, %v628_v25  ;;  %v10028_v30 = vpop.f32.mrb[39].mxu0 }
 0x1d4   :  { %10136 = vmatmul.mubr.msk.bf16.gmra.mrb[112].mxu1 %vm408_vm5, %v980_v31 }
 0x1d5   :  { %10198 = vmatmul.mubr.msk.bf16.gmra.mrb[144].mxu0 %vm408_vm5, %v1258_v32  ;;  %10139 = vmatprep.mubr.msk.bf16.mxu1 %vm11471_vm4, %v11470_v7 }
 0x1d6   :  { %10201 = vmatprep.mubr.msk.bf16.mxu0 %vm11471_vm4, %v11470_v7 }
 0x1d7   :  { %v633_v36 = vpop.f32.mrb[8].mxu1 }
 0x1d8   :  { %v834_v37 = vpop.f32.mrb[40].mxu0  ;;  %v9969_v42 = vpop.f32.mrb[9].mxu1 }
 0x1d9   :  { %v12026_v41 = vadd.f32 %v834_v37, %v633_v36  ;;  %v10031_v43 = vpop.f32.mrb[41].mxu0  ;;  %v636_v44 = vpop.f32.mrb[10].mxu1 }
 0x1da   :  { %v837_v45 = vpop.f32.mrb[42].mxu0  ;;  %v9970_v47 = vpop.f32.mrb[11].mxu1 }
 0x1db   :  { %v12028_v46 = vadd.f32 %v837_v45, %v636_v44  ;;  %v10032_v50 = vpop.f32.mrb[43].mxu0 }
 0x1dc   :  { %10140 = vmatmul.mubr.msk.bf16.gmra.mrb[116].mxu1 %vm408_vm5, %v981_v51 }
 0x1dd   :  { %10202 = vmatmul.mubr.msk.bf16.gmra.mrb[148].mxu0 %vm408_vm5, %v1259_v52 }
 0x1de   :  { %10207 = vmatprep.mubr.msk.bf16.mxu0 %vm11471_vm4, %v11470_v7 }
 0x1df   :  { %v641_v53 = vpop.f32.mrb[12].mxu1 }
 0x1e0   :  { %v842_v54 = vpop.f32.mrb[44].mxu0  ;;  %v9973_v55 = vpop.f32.mrb[13].mxu1 }
 0x1e1   :  { %v10035_v56 = vpop.f32.mrb[45].mxu0  ;;  %v12034_v57 = vadd.f32 %v842_v54, %v641_v53  ;;  %v644_v58 = vpop.f32.mrb[14].mxu1 }
 0x1e2   :  { %v845_v59 = vpop.f32.mrb[46].mxu0  ;;  %v9974_v60 = vpop.f32.mrb[15].mxu1 }
 0x1e3   :  { %v10036_v61 = vpop.f32.mrb[47].mxu0  ;;  %v12036_v0 = vadd.f32 %v845_v59, %v644_v58 }
 0x1e7   :  { %v649_v2 = vpop.f32.mrb[16].mxu1 }
 0x1e8   :  { %v850_v6 = vpop.f32.mrb[48].mxu0  ;;  %v9977_v9 = vpop.f32.mrb[17].mxu1 }
 0x1e9   :  { %v12038_v8 = vadd.f32 %v850_v6, %v649_v2  ;;  %v10039_v10 = vpop.f32.mrb[49].mxu0  ;;  %v652_v11 = vpop.f32.mrb[18].mxu1 }
 0x1ea   :  { %v853_v12 = vpop.f32.mrb[50].mxu0  ;;  %v9978_v14 = vpop.f32.mrb[19].mxu1 }
 0x1eb   :  { %v12040_v13 = vadd.f32 %v853_v12, %v652_v11  ;;  %v10040_v15 = vpop.f32.mrb[51].mxu0 }
 0x1ef   :  { %v657_v3 = vpop.f32.mrb[20].mxu1 }
 0x1f0   :  { %v858_v5 = vpop.f32.mrb[52].mxu0  ;;  %v9981_v34 = vpop.f32.mrb[21].mxu1 }
 0x1f1   :  { %v12042_v20 = vadd.f32 %v858_v5, %v657_v3  ;;  %v10043_v35 = vpop.f32.mrb[53].mxu0  ;;  %v660_v48 = vpop.f32.mrb[22].mxu1 }
 0x1f2   :  { %v861_v62 = vpop.f32.mrb[54].mxu0  ;;  %v9982_v16 = vpop.f32.mrb[23].mxu1 }
 0x1f3   :  { %v12044_v63 = vadd.f32 %v861_v62, %v660_v48  ;;  %v10044_v17 = vpop.f32.mrb[55].mxu0 }
 0x1f7   :  { %v665_v18 = vpop.f32.mrb[24].mxu1 }
 0x1f8   :  { %v866_v27 = vpop.f32.mrb[56].mxu0  ;;  %v9985_v24 = vpop.f32.mrb[25].mxu1 }
 0x1f9   :  { %v12046_v23 = vadd.f32 %v866_v27, %v665_v18  ;;  %v10047_v25 = vpop.f32.mrb[57].mxu0  ;;  %v668_v26 = vpop.f32.mrb[26].mxu1 }
 0x1fa   :  { %v869_v29 = vpop.f32.mrb[58].mxu0  ;;  %v9986_v31 = vpop.f32.mrb[27].mxu1 }
 0x1fb   :  { %v12048_v30 = vadd.f32 %v869_v29, %v668_v26  ;;  %v10048_v32 = vpop.f32.mrb[59].mxu0 }
 0x1ff   :  { %v673_v33 = vpop.f32.mrb[28].mxu1 }
 0x200   :  { %v874_v36 = vpop.f32.mrb[60].mxu0  ;;  %v9989_v38 = vpop.f32.mrb[29].mxu1 }
 0x201   :  { %v12050_v37 = vadd.f32 %v874_v36, %v673_v33  ;;  %v10051_v39 = vpop.f32.mrb[61].mxu0  ;;  %v676_v40 = vpop.f32.mrb[30].mxu1 }
 0x202   :  { %v877_v42 = vpop.f32.mrb[62].mxu0  ;;  %v9990_v44 = vpop.f32.mrb[31].mxu1 }
 0x203   :  { %v12052_v43 = vadd.f32 %v877_v42, %v676_v40  ;;  %v10052_v45 = vpop.f32.mrb[63].mxu0 }
 0x207   :  { %v681_v47 = vpop.f32.mrb[32].mxu1 }
 0x208   :  { %v882_v50 = vpop.f32.mrb[64].mxu0  ;;  %v9993_v52 = vpop.f32.mrb[33].mxu1 }
 0x209   :  { %v12054_v51 = vadd.f32 %v882_v50, %v681_v47  ;;  %v10055_v53 = vpop.f32.mrb[65].mxu0  ;;  %v684_v54 = vpop.f32.mrb[34].mxu1 }
 0x20a   :  { %v885_v55 = vpop.f32.mrb[66].mxu0  ;;  %v9994_v58 = vpop.f32.mrb[35].mxu1 }
 0x20b   :  { %v12056_v56 = vadd.f32 %v885_v55, %v684_v54  ;;  %v10056_v59 = vpop.f32.mrb[67].mxu0 }
 0x20f   :  { %v689_v60 = vpop.f32.mrb[36].mxu1 }
 0x210   :  { %v890_v61 = vpop.f32.mrb[68].mxu0  ;;  %v9997_v6 = vpop.f32.mrb[37].mxu1 }
 0x211   :  { %v12058_v2 = vadd.f32 %v890_v61, %v689_v60  ;;  %v10059_v9 = vpop.f32.mrb[69].mxu0  ;;  %v692_v10 = vpop.f32.mrb[38].mxu1 }
 0x212   :  { %v893_v11 = vpop.f32.mrb[70].mxu0  ;;  %v9998_v14 = vpop.f32.mrb[39].mxu1 }
 0x213   :  { %v12060_v12 = vadd.f32 %v893_v11, %v692_v10  ;;  %v10060_v15 = vpop.f32.mrb[71].mxu0 }
 0x217   :  { %v697_v3 = vpop.f32.mrb[40].mxu1 }
 0x218   :  { %v898_v5 = vpop.f32.mrb[72].mxu0  ;;  %v10001_v35 = vpop.f32.mrb[41].mxu1 }
 0x219   :  { %v12062_v34 = vadd.f32 %v898_v5, %v697_v3  ;;  %v10063_v48 = vpop.f32.mrb[73].mxu0  ;;  %v700_v62 = vpop.f32.mrb[42].mxu1 }
 0x21a   :  { %v901_v16 = vpop.f32.mrb[74].mxu0  ;;  %v10002_v18 = vpop.f32.mrb[43].mxu1 }
 0x21b   :  { %v12064_v17 = vadd.f32 %v901_v16, %v700_v62  ;;  %v10064_v27 = vpop.f32.mrb[75].mxu0 }
 0x21f   :  { %v705_v24 = vpop.f32.mrb[44].mxu1 }
 0x220   :  { %v906_v25 = vpop.f32.mrb[76].mxu0  ;;  %v10005_v29 = vpop.f32.mrb[45].mxu1 }
 0x221   :  { %v12066_v26 = vadd.f32 %v906_v25, %v705_v24  ;;  %v10067_v31 = vpop.f32.mrb[77].mxu0  ;;  %v708_v32 = vpop.f32.mrb[46].mxu1 }
 0x222   :  { %v909_v33 = vpop.f32.mrb[78].mxu0  ;;  %v10006_v38 = vpop.f32.mrb[47].mxu1 }
 0x223   :  { %v12068_v36 = vadd.f32 %v909_v33, %v708_v32  ;;  %v10068_v39 = vpop.f32.mrb[79].mxu0 }
 0x224   :  { %v12086_v39 = vld [vmem:[%s14455_s4] ss:$0 sm:$0xff] }
 0x227   :  { %v713_v40 = vpop.f32.mrb[48].mxu1 }
 0x228   :  { %v914_v42 = vpop.f32.mrb[80].mxu0  ;;  %v10009_v45 = vpop.f32.mrb[49].mxu1 }
 0x229   :  { %v12070_v44 = vadd.f32 %v914_v42, %v713_v40  ;;  %v10071_v47 = vpop.f32.mrb[81].mxu0  ;;  %v716_v50 = vpop.f32.mrb[50].mxu1 }
 0x22a   :  { %v917_v52 = vpop.f32.mrb[82].mxu0  ;;  %v10010_v54 = vpop.f32.mrb[51].mxu1 }
 0x22b   :  { %v12072_v53 = vadd.f32 %v917_v52, %v716_v50  ;;  %v10072_v55 = vpop.f32.mrb[83].mxu0  ;;  %v11345_v54 = vld [vmem:[%s14456_s7 + $0x4] ss:$8 sps:$4 sm:$0xff]  }
 0x22c   :  { %8991 = vmatprep.mubr.msk.bf16.mxu1 %vm1722_vm6, %v11345_v54 }
 0x22f   :  { %v721_v58 = vpop.f32.mrb[52].mxu1 }
 0x230   :  { %v922_v59 = vpop.f32.mrb[84].mxu0  ;;  %v10013_v61 = vpop.f32.mrb[53].mxu1 }
 0x231   :  { %v12074_v60 = vadd.f32 %v922_v59, %v721_v58  ;;  %v10075_v6 = vpop.f32.mrb[85].mxu0  ;;  %v724_v9 = vpop.f32.mrb[54].mxu1  ;;  %v12096_v58 = vld [vmem:[%s14457_s5] ss:$0 sm:$0xff] }
 0x232   :  { %v925_v10 = vpop.f32.mrb[86].mxu0  ;;  %v10014_v14 = vpop.f32.mrb[55].mxu1 }
 0x233   :  { %v12076_v11 = vadd.f32 %v925_v10, %v724_v9  ;;  %v10076_v15 = vpop.f32.mrb[87].mxu0  ;;  %v12103_v9 = vld [vmem:[%s14458_s6] ss:$0 sm:$0xff] }
 0x237   :  { %v729_v3 = vpop.f32.mrb[56].mxu1 }
 0x238   :  { %v930_v5 = vpop.f32.mrb[88].mxu0  ;;  %v10017_v48 = vpop.f32.mrb[57].mxu1 }
 0x239   :  { %v12078_v35 = vadd.f32 %v930_v5, %v729_v3  ;;  %v10079_v62 = vpop.f32.mrb[89].mxu0  ;;  %v732_v16 = vpop.f32.mrb[58].mxu1 }
 0x23a   :  { %v933_v18 = vpop.f32.mrb[90].mxu0  ;;  %v10018_v24 = vpop.f32.mrb[59].mxu1 }
 0x23b   :  { %v12080_v27 = vadd.f32 %v933_v18, %v732_v16  ;;  %v10080_v25 = vpop.f32.mrb[91].mxu0 }
 0x23f   :  { %v1066_v29 = vpop.f32.mrb[60].mxu1 }
 0x240   :  { %v1344_v31 = vpop.f32.mrb[92].mxu0  ;;  %v1185_v32 = vadd.f32 %v1066_v29, %v12001_v19  ;;  %v10085_v33 = vpop.f32.mrb[61].mxu1 }
 0x241   :  { %v10147_v38 = vpop.f32.mrb[93].mxu0  ;;  %v1069_v40 = vpop.f32.mrb[62].mxu1 }
 0x242   :  { %v1347_v42 = vpop.f32.mrb[94].mxu0  ;;  %v1463_v45 = vadd.f32 %v1344_v31, %v1185_v32  ;;  %v1186_v47 = vadd.f32 %v1069_v40, %v12003_v49  ;;  %v10086_v50 = vpop.f32.mrb[63].mxu1 }
 0x243   :  { %v10148_v52 = vpop.f32.mrb[95].mxu0 }
 0x244   :  { %v1500_v19 = vadd.f32 %v12086_v39, %v1463_v45  ;;  %v1464_v55 = vadd.f32 %v1347_v42, %v1186_v47 }
 0x246   :  { %v1530_v59 = vmax.f32 %v1500_v19, 0.0  ;;  %v1501_v49 = vadd.f32 %v12086_v39, %v1464_v55 }
 0x247   :  { %v1074_v61 = vpop.f32.mrb[64].mxu1 }
 0x248   :  { %v1352_v6 = vpop.f32.mrb[96].mxu0  ;;  %v1567_v10 = vmul.f32 %v12096_v58, %v1530_v59  ;;  %v1531_v14 = vmax.f32 %v1501_v49, 0.0  ;;  %v1187_v15 = vadd.f32 %v1074_v61, %v12014_v22  ;;  %v10089_v3 = vpop.f32.mrb[65].mxu1 }
 0x249   :  { %v10151_v5 = vpop.f32.mrb[97].mxu0  ;;  %v1077_v48 = vpop.f32.mrb[66].mxu1 }
 0x24a   :  { %v1355_v62 = vpop.f32.mrb[98].mxu0  ;;  %v1568_v16 = vmul.f32 %v12096_v58, %v1531_v14  ;;  %v1465_v18 = vadd.f32 %v1352_v6, %v1187_v15  ;;  %v1188_v24 = vadd.f32 %v1077_v48, %v12016_v28  ;;  %v10090_v25 = vpop.f32.mrb[67].mxu1  ;;  %v1604_v33 = vadd.f32 %v12103_v9, %v1567_v10 }
 0x24b   :  { %v10152_v29 = vpop.f32.mrb[99].mxu0 }
 0x24c   :  { %v1502_v31 = vadd.f32 %v12086_v39, %v1465_v18  ;;  %v1466_v32 = vadd.f32 %v1355_v62, %v1188_v24  ;;  %v1605_v38 = vadd.f32 %v12103_v9, %v1568_v16 }
 0x24e   :  { %v1532_v40 = vmax.f32 %v1502_v31, 0.0  ;;  %v1503_v22 = vadd.f32 %v12086_v39, %v1466_v32  ;;  %v1647_v42 = vpack.c.bf16 %v1605_v38, %v1604_v33 }
 0x24f   :  { %v1082_v45 = vpop.f32.mrb[68].mxu1 }
 0x250   :  { %v1360_v47 = vpop.f32.mrb[100].mxu0  ;;  %v1569_v50 = vmul.f32 %v12096_v58, %v1532_v40  ;;  %v1533_v52 = vmax.f32 %v1503_v22, 0.0  ;;  %v1189_v28 = vadd.f32 %v1082_v45, %v12026_v41  ;;  %v10093_v54 = vpop.f32.mrb[69].mxu1  ;;  %1752 = vmatpush1.bf16.msra.mxu1 %v1647_v42 }
 0x251   :  { %v10155_v19 = vpop.f32.mrb[101].mxu0  ;;  %v1085_v55 = vpop.f32.mrb[70].mxu1  ;;  %1753 = vmatprep.subr.bf16.mxu1 %v14471_v21 }
 0x252   :  { %v1363_v59 = vpop.f32.mrb[102].mxu0  ;;  %v1570_v49 = vmul.f32 %v12096_v58, %v1533_v52  ;;  %v1467_v61 = vadd.f32 %v1360_v47, %v1189_v28  ;;  %v1190_v6 = vadd.f32 %v1085_v55, %v12028_v46  ;;  %v10094_v10 = vpop.f32.mrb[71].mxu1  ;;  %v1606_v5 = vadd.f32 %v12103_v9, %v1569_v50 }
 0x253   :  { %v10156_v14 = vpop.f32.mrb[103].mxu0 }
 0x254   :  { %v1504_v15 = vadd.f32 %v12086_v39, %v1467_v61  ;;  %v1468_v3 = vadd.f32 %v1363_v59, %v1190_v6  ;;  %v1607_v41 = vadd.f32 %v12103_v9, %v1570_v49 }
 0x256   :  { %v1534_v48 = vmax.f32 %v1504_v15, 0.0  ;;  %v1505_v62 = vadd.f32 %v12086_v39, %v1468_v3  ;;  %v1648_v16 = vpack.c.bf16 %v1607_v41, %v1606_v5 }
 0x257   :  { %v1090_v18 = vpop.f32.mrb[72].mxu1 }
 0x258   :  { %v1368_v24 = vpop.f32.mrb[104].mxu0  ;;  %v1571_v25 = vmul.f32 %v12096_v58, %v1534_v48  ;;  %v1535_v29 = vmax.f32 %v1505_v62, 0.0  ;;  %v1191_v46 = vadd.f32 %v1090_v18, %v12034_v57  ;;  %v10097_v31 = vpop.f32.mrb[73].mxu1  ;;  %1754 = vmatpush1.bf16.msra.mxu1 %v1648_v16 }
 0x259   :  { %v10159_v32 = vpop.f32.mrb[105].mxu0  ;;  %v1093_v33 = vpop.f32.mrb[74].mxu1  ;;  %1755 = vmatprep.subr.bf16.mxu1 %v14471_v21 }
 0x25a   :  { %v1371_v38 = vpop.f32.mrb[106].mxu0  ;;  %v1572_v40 = vmul.f32 %v12096_v58, %v1535_v29  ;;  %v1469_v22 = vadd.f32 %v1368_v24, %v1191_v46  ;;  %v1192_v42 = vadd.f32 %v1093_v33, %v12036_v0  ;;  %v10098_v45 = vpop.f32.mrb[75].mxu1  ;;  %v1608_v28 = vadd.f32 %v12103_v9, %v1571_v25 }
 0x25b   :  { %v10160_v47 = vpop.f32.mrb[107].mxu0 }
 0x25c   :  { %v1506_v50 = vadd.f32 %v12086_v39, %v1469_v22  ;;  %v1470_v52 = vadd.f32 %v1371_v38, %v1192_v42  ;;  %v1609_v57 = vadd.f32 %v12103_v9, %v1572_v40 }
 0x25e   :  { %v1536_v54 = vmax.f32 %v1506_v50, 0.0  ;;  %v1507_v19 = vadd.f32 %v12086_v39, %v1470_v52  ;;  %v1649_v55 = vpack.c.bf16 %v1609_v57, %v1608_v28 }
 0x25f   :  { %v1098_v59 = vpop.f32.mrb[76].mxu1 }
 0x260   :  { %v1376_v49 = vpop.f32.mrb[108].mxu0  ;;  %v1573_v61 = vmul.f32 %v12096_v58, %v1536_v54  ;;  %v1537_v6 = vmax.f32 %v1507_v19, 0.0  ;;  %v1193_v0 = vadd.f32 %v1098_v59, %v12038_v8  ;;  %v10101_v10 = vpop.f32.mrb[77].mxu1  ;;  %1756 = vmatpush1.bf16.msra.mxu1 %v1649_v55 }
 0x261   :  { %v10163_v14 = vpop.f32.mrb[109].mxu0  ;;  %v1101_v15 = vpop.f32.mrb[78].mxu1  ;;  %1757 = vmatprep.subr.bf16.mxu1 %v14471_v21 }
 0x262   :  { %v1379_v3 = vpop.f32.mrb[110].mxu0  ;;  %v1574_v5 = vmul.f32 %v12096_v58, %v1537_v6  ;;  %v1471_v41 = vadd.f32 %v1376_v49, %v1193_v0  ;;  %v1194_v48 = vadd.f32 %v1101_v15, %v12040_v13  ;;  %v10102_v62 = vpop.f32.mrb[79].mxu1  ;;  %v1610_v25 = vadd.f32 %v12103_v9, %v1573_v61 }
 0x263   :  { %v10164_v16 = vpop.f32.mrb[111].mxu0 }
 0x264   :  { %v1508_v18 = vadd.f32 %v12086_v39, %v1471_v41  ;;  %v1472_v24 = vadd.f32 %v1379_v3, %v1194_v48  ;;  %v1611_v8 = vadd.f32 %v12103_v9, %v1574_v5 }
 0x266   :  { %v1538_v29 = vmax.f32 %v1508_v18, 0.0  ;;  %v1509_v46 = vadd.f32 %v12086_v39, %v1472_v24  ;;  %v1650_v31 = vpack.c.bf16 %v1611_v8, %v1610_v25 }
 0x267   :  { %v1106_v32 = vpop.f32.mrb[80].mxu1 }
 0x268   :  { %v1384_v33 = vpop.f32.mrb[112].mxu0  ;;  %v1575_v38 = vmul.f32 %v12096_v58, %v1538_v29  ;;  %v1539_v40 = vmax.f32 %v1509_v46, 0.0  ;;  %v1195_v13 = vadd.f32 %v1106_v32, %v12042_v20  ;;  %v10105_v22 = vpop.f32.mrb[81].mxu1  ;;  %1758 = vmatpush1.bf16.msra.mxu1 %v1650_v31 }
 0x269   :  { %v10167_v42 = vpop.f32.mrb[113].mxu0  ;;  %v1109_v45 = vpop.f32.mrb[82].mxu1  ;;  %1759 = vmatprep.subr.bf16.mxu1 %v14471_v21 }
 0x26a   :  { %v1387_v47 = vpop.f32.mrb[114].mxu0  ;;  %v1576_v50 = vmul.f32 %v12096_v58, %v1539_v40  ;;  %v1473_v52 = vadd.f32 %v1384_v33, %v1195_v13  ;;  %v1196_v28 = vadd.f32 %v1109_v45, %v12044_v63  ;;  %v10106_v57 = vpop.f32.mrb[83].mxu1  ;;  %v1612_v59 = vadd.f32 %v12103_v9, %v1575_v38  ;;  %v12161_v38 = vld [vmem:[%s14459_s8] sm:$0xff]  }
 0x26b   :  { %v10168_v54 = vpop.f32.mrb[115].mxu0  ;;  %10206 = vmatpush3.bf16.msra.mxu0 %v12161_v38 }
 0x26c   :  { %v1510_v19 = vadd.f32 %v12086_v39, %v1473_v52  ;;  %v1474_v55 = vadd.f32 %v1387_v47, %v1196_v28  ;;  %v1613_v20 = vadd.f32 %v12103_v9, %v1576_v50  ;;  %10227 = vmatprep.subr.bf16.mxu0 %v11470_v7 }
 0x26e   :  { %v1540_v49 = vmax.f32 %v1510_v19, 0.0  ;;  %v1511_v61 = vadd.f32 %v12086_v39, %v1474_v55  ;;  %v1651_v6 = vpack.c.bf16 %v1613_v20, %v1612_v59 }
 0x26f   :  { %v1114_v0 = vpop.f32.mrb[84].mxu1 }
 0x270   :  { %v1392_v10 = vpop.f32.mrb[116].mxu0  ;;  %v1577_v14 = vmul.f32 %v12096_v58, %v1540_v49  ;;  %v1541_v15 = vmax.f32 %v1511_v61, 0.0  ;;  %v1197_v63 = vadd.f32 %v1114_v0, %v12046_v23  ;;  %v10109_v3 = vpop.f32.mrb[85].mxu1  ;;  %1760 = vmatpush1.bf16.msra.mxu1 %v1651_v6 }
 0x271   :  { %v10171_v5 = vpop.f32.mrb[117].mxu0  ;;  %v1117_v41 = vpop.f32.mrb[86].mxu1  ;;  %1761 = vmatprep.subr.bf16.mxu1 %v14471_v21 }
 0x272   :  { %v1395_v48 = vpop.f32.mrb[118].mxu0  ;;  %v1578_v62 = vmul.f32 %v12096_v58, %v1541_v15  ;;  %v1475_v16 = vadd.f32 %v1392_v10, %v1197_v63  ;;  %v1198_v18 = vadd.f32 %v1117_v41, %v12048_v30  ;;  %v10110_v24 = vpop.f32.mrb[87].mxu1  ;;  %v1614_v46 = vadd.f32 %v12103_v9, %v1577_v14 }
 0x273   :  { %v10172_v25 = vpop.f32.mrb[119].mxu0 }
 0x274   :  { %v1512_v8 = vadd.f32 %v12086_v39, %v1475_v16  ;;  %v1476_v29 = vadd.f32 %v1395_v48, %v1198_v18  ;;  %v1615_v23 = vadd.f32 %v12103_v9, %v1578_v62 }
 0x276   :  { %v1542_v31 = vmax.f32 %v1512_v8, 0.0  ;;  %v1513_v32 = vadd.f32 %v12086_v39, %v1476_v29  ;;  %v1652_v33 = vpack.c.bf16 %v1615_v23, %v1614_v46 }
 0x277   :  { %v1122_v40 = vpop.f32.mrb[88].mxu1 }
 0x278   :  { %v1400_v30 = vpop.f32.mrb[120].mxu0  ;;  %v1579_v13 = vmul.f32 %v12096_v58, %v1542_v31  ;;  %v1543_v22 = vmax.f32 %v1513_v32, 0.0  ;;  %v1199_v42 = vadd.f32 %v1122_v40, %v12050_v37  ;;  %v10113_v45 = vpop.f32.mrb[89].mxu1  ;;  %1762 = vmatpush1.bf16.msra.mxu1 %v1652_v33 }
 0x279   :  { %v10175_v47 = vpop.f32.mrb[121].mxu0  ;;  %v1125_v50 = vpop.f32.mrb[90].mxu1  ;;  %1763 = vmatprep.subr.bf16.mxu1 %v14471_v21 }
 0x27a   :  { %v1403_v52 = vpop.f32.mrb[122].mxu0  ;;  %v1580_v28 = vmul.f32 %v12096_v58, %v1543_v22  ;;  %v1477_v57 = vadd.f32 %v1400_v30, %v1199_v42  ;;  %v1200_v54 = vadd.f32 %v1125_v50, %v12052_v43  ;;  %v10114_v19 = vpop.f32.mrb[91].mxu1  ;;  %v1616_v20 = vadd.f32 %v12103_v9, %v1579_v13 }
 0x27b   :  { %v10176_v55 = vpop.f32.mrb[123].mxu0 }
 0x27c   :  { %v1514_v37 = vadd.f32 %v12086_v39, %v1477_v57  ;;  %v1478_v59 = vadd.f32 %v1403_v52, %v1200_v54  ;;  %v1617_v49 = vadd.f32 %v12103_v9, %v1580_v28 }
 0x27e   :  { %v1544_v61 = vmax.f32 %v1514_v37, 0.0  ;;  %v1515_v6 = vadd.f32 %v12086_v39, %v1478_v59  ;;  %v1653_v0 = vpack.c.bf16 %v1617_v49, %v1616_v20 }
 0x27f   :  { %v1130_v10 = vpop.f32.mrb[92].mxu1 }
 0x280   :  { %v1408_v14 = vpop.f32.mrb[124].mxu0  ;;  %v1581_v15 = vmul.f32 %v12096_v58, %v1544_v61  ;;  %v1545_v63 = vmax.f32 %v1515_v6, 0.0  ;;  %v1201_v43 = vadd.f32 %v1130_v10, %v12054_v51  ;;  %v10117_v3 = vpop.f32.mrb[93].mxu1  ;;  %1764 = vmatpush1.bf16.msra.mxu1 %v1653_v0 }
 0x281   :  { %v10179_v5 = vpop.f32.mrb[125].mxu0  ;;  %v1133_v41 = vpop.f32.mrb[94].mxu1  ;;  %1765 = vmatprep.subr.bf16.mxu1 %v14471_v21 }
 0x282   :  { %v1411_v48 = vpop.f32.mrb[126].mxu0  ;;  %v1582_v62 = vmul.f32 %v12096_v58, %v1545_v63  ;;  %v1479_v16 = vadd.f32 %v1408_v14, %v1201_v43  ;;  %v1202_v18 = vadd.f32 %v1133_v41, %v12056_v56  ;;  %v10118_v24 = vpop.f32.mrb[95].mxu1  ;;  %v1618_v46 = vadd.f32 %v12103_v9, %v1581_v15 }
 0x283   :  { %v10180_v25 = vpop.f32.mrb[127].mxu0 }
 0x284   :  { %v1516_v8 = vadd.f32 %v12086_v39, %v1479_v16  ;;  %v1480_v29 = vadd.f32 %v1411_v48, %v1202_v18  ;;  %v1619_v51 = vadd.f32 %v12103_v9, %v1582_v62 }
 0x286   :  { %v1546_v23 = vmax.f32 %v1516_v8, 0.0  ;;  %v1517_v31 = vadd.f32 %v12086_v39, %v1480_v29  ;;  %v1654_v32 = vpack.c.bf16 %v1619_v51, %v1618_v46 }
 0x287   :  { %v1138_v33 = vpop.f32.mrb[96].mxu1 }
 0x288   :  { %v1416_v40 = vpop.f32.mrb[128].mxu0  ;;  %v1583_v30 = vmul.f32 %v12096_v58, %v1546_v23  ;;  %v1547_v13 = vmax.f32 %v1517_v31, 0.0  ;;  %v1203_v56 = vadd.f32 %v1138_v33, %v12058_v2  ;;  %v10121_v22 = vpop.f32.mrb[97].mxu1  ;;  %1766 = vmatpush1.bf16.msra.mxu1 %v1654_v32 }
 0x289   :  { %v10183_v42 = vpop.f32.mrb[129].mxu0  ;;  %v1141_v45 = vpop.f32.mrb[98].mxu1  ;;  %1767 = vmatprep.subr.bf16.mxu1 %v14471_v21 }
 0x28a   :  { %v1419_v47 = vpop.f32.mrb[130].mxu0  ;;  %v1584_v50 = vmul.f32 %v12096_v58, %v1547_v13  ;;  %v1481_v52 = vadd.f32 %v1416_v40, %v1203_v56  ;;  %v1204_v28 = vadd.f32 %v1141_v45, %v12060_v12  ;;  %v10122_v57 = vpop.f32.mrb[99].mxu1  ;;  %v1620_v37 = vadd.f32 %v12103_v9, %v1583_v30 }
 0x28b   :  { %v10184_v54 = vpop.f32.mrb[131].mxu0 }
 0x28c   :  { %v1518_v19 = vadd.f32 %v12086_v39, %v1481_v52  ;;  %v1482_v55 = vadd.f32 %v1419_v47, %v1204_v28  ;;  %v1621_v2 = vadd.f32 %v12103_v9, %v1584_v50 }
 0x28e   :  { %v1548_v59 = vmax.f32 %v1518_v19, 0.0  ;;  %v1519_v20 = vadd.f32 %v12086_v39, %v1482_v55  ;;  %v1655_v49 = vpack.c.bf16 %v1621_v2, %v1620_v37 }
 0x28f   :  { %v1146_v61 = vpop.f32.mrb[100].mxu1 }
 0x290   :  { %v1424_v6 = vpop.f32.mrb[132].mxu0  ;;  %v1585_v0 = vmul.f32 %v12096_v58, %v1548_v59  ;;  %v1549_v10 = vmax.f32 %v1519_v20, 0.0  ;;  %v1205_v12 = vadd.f32 %v1146_v61, %v12062_v34  ;;  %v10125_v14 = vpop.f32.mrb[101].mxu1  ;;  %1768 = vmatpush1.bf16.msra.mxu1 %v1655_v49 }
 0x291   :  { %v10187_v15 = vpop.f32.mrb[133].mxu0  ;;  %v1149_v63 = vpop.f32.mrb[102].mxu1  ;;  %1769 = vmatprep.subr.bf16.mxu1 %v14471_v21 }
 0x292   :  { %v1427_v43 = vpop.f32.mrb[134].mxu0  ;;  %v1586_v3 = vmul.f32 %v12096_v58, %v1549_v10  ;;  %v1483_v5 = vadd.f32 %v1424_v6, %v1205_v12  ;;  %v1206_v41 = vadd.f32 %v1149_v63, %v12064_v17  ;;  %v10126_v48 = vpop.f32.mrb[103].mxu1  ;;  %v1622_v24 = vadd.f32 %v12103_v9, %v1585_v0 }
 0x293   :  { %v10188_v62 = vpop.f32.mrb[135].mxu0 }
 0x294   :  { %v1520_v16 = vadd.f32 %v12086_v39, %v1483_v5  ;;  %v1484_v18 = vadd.f32 %v1427_v43, %v1206_v41  ;;  %v1623_v34 = vadd.f32 %v12103_v9, %v1586_v3 }
 0x296   :  { %v1550_v25 = vmax.f32 %v1520_v16, 0.0  ;;  %v1521_v8 = vadd.f32 %v12086_v39, %v1484_v18  ;;  %v1656_v29 = vpack.c.bf16 %v1623_v34, %v1622_v24 }
 0x297   :  { %v1154_v46 = vpop.f32.mrb[104].mxu1 }
 0x298   :  { %v1432_v51 = vpop.f32.mrb[136].mxu0  ;;  %v1587_v23 = vmul.f32 %v12096_v58, %v1550_v25  ;;  %v1551_v31 = vmax.f32 %v1521_v8, 0.0  ;;  %v1207_v17 = vadd.f32 %v1154_v46, %v12066_v26  ;;  %v10129_v32 = vpop.f32.mrb[105].mxu1  ;;  %1770 = vmatpush1.bf16.msra.mxu1 %v1656_v29 }
 0x299   :  { %v10191_v33 = vpop.f32.mrb[137].mxu0  ;;  %v1157_v40 = vpop.f32.mrb[106].mxu1  ;;  %1771 = vmatprep.subr.bf16.mxu1 %v14471_v21 }
 0x29a   :  { %v1435_v30 = vpop.f32.mrb[138].mxu0  ;;  %v1588_v13 = vmul.f32 %v12096_v58, %v1551_v31  ;;  %v1485_v56 = vadd.f32 %v1432_v51, %v1207_v17  ;;  %v1208_v22 = vadd.f32 %v1157_v40, %v12068_v36  ;;  %v10130_v42 = vpop.f32.mrb[107].mxu1  ;;  %v1624_v52 = vadd.f32 %v12103_v9, %v1587_v23 }
 0x29b   :  { %v10192_v45 = vpop.f32.mrb[139].mxu0 }
 0x29c   :  { %v1522_v47 = vadd.f32 %v12086_v39, %v1485_v56  ;;  %v1486_v50 = vadd.f32 %v1435_v30, %v1208_v22  ;;  %v1625_v26 = vadd.f32 %v12103_v9, %v1588_v13 }
 0x29e   :  { %v1552_v28 = vmax.f32 %v1522_v47, 0.0  ;;  %v1523_v57 = vadd.f32 %v12086_v39, %v1486_v50  ;;  %v1657_v54 = vpack.c.bf16 %v1625_v26, %v1624_v52 }
 0x29f   :  { %v1162_v19 = vpop.f32.mrb[108].mxu1 }
 0x2a0   :  { %v1440_v55 = vpop.f32.mrb[140].mxu0  ;;  %v1589_v37 = vmul.f32 %v12096_v58, %v1552_v28  ;;  %v1553_v2 = vmax.f32 %v1523_v57, 0.0  ;;  %v1209_v36 = vadd.f32 %v1162_v19, %v12070_v44  ;;  %v10133_v59 = vpop.f32.mrb[109].mxu1  ;;  %1772 = vmatpush1.bf16.msra.mxu1 %v1657_v54 }
 0x2a1   :  { %v10195_v20 = vpop.f32.mrb[141].mxu0  ;;  %v1165_v49 = vpop.f32.mrb[110].mxu1  ;;  %1773 = vmatprep.subr.bf16.mxu1 %v14471_v21 }
 0x2a2   :  { %v1443_v61 = vpop.f32.mrb[142].mxu0  ;;  %v1590_v6 = vmul.f32 %v12096_v58, %v1553_v2  ;;  %v1487_v0 = vadd.f32 %v1440_v55, %v1209_v36  ;;  %v1210_v10 = vadd.f32 %v1165_v49, %v12072_v53  ;;  %v10134_v12 = vpop.f32.mrb[111].mxu1  ;;  %v1626_v43 = vadd.f32 %v12103_v9, %v1589_v37 }
 0x2a3   :  { %v10196_v14 = vpop.f32.mrb[143].mxu0 }
 0x2a4   :  { %v1524_v15 = vadd.f32 %v12086_v39, %v1487_v0  ;;  %v1488_v63 = vadd.f32 %v1443_v61, %v1210_v10  ;;  %v1627_v44 = vadd.f32 %v12103_v9, %v1590_v6  ;;  %v1746_v0 = vsel %vm1744_vm7, 4294967295, %v11469_v1 }
 0x2a5   :  { %v12243_v14 = vsel %vm1745_vm8, %v1746_v0, 0 }
 0x2a6   :  { %v1554_v3 = vmax.f32 %v1524_v15, 0.0  ;;  %v1525_v5 = vadd.f32 %v12086_v39, %v1488_v63  ;;  %v1658_v41 = vpack.c.bf16 %v1627_v44, %v1626_v43  ;;  %14479 = vst [vmem:[#allocation6_spill] sm:$0xff] %v12243_v14  ;;  %v11343_v63 = vld [vmem:[%s14456_s7] ss:$8 sps:$4 sm:$0xff]   ;;  %v11349_v43 = vld [vmem:[%s14456_s7 + $0x24] ss:$8 sps:$4 sm:$0xff]  }
 0x2a7   :  { %v1170_v48 = vpop.f32.mrb[112].mxu1  ;;  %v11351_v44 = vld [vmem:[%s14456_s7 + $0x20] ss:$8 sps:$4 sm:$0xff]  }
 0x2a8   :  { %v1448_v62 = vpop.f32.mrb[144].mxu0  ;;  %v1591_v16 = vmul.f32 %v12096_v58, %v1554_v3  ;;  %v1555_v18 = vmax.f32 %v1525_v5, 0.0  ;;  %v1211_v53 = vadd.f32 %v1170_v48, %v12074_v60  ;;  %v10137_v24 = vpop.f32.mrb[113].mxu1  ;;  %1774 = vmatpush1.bf16.msra.mxu1 %v1658_v41  ;;  %v11354_v3 = vld [vmem:[%s14456_s7 + $0x30] ss:$8 sps:$4 sm:$0xff]  }
 0x2a9   :  { %v10199_v34 = vpop.f32.mrb[145].mxu0  ;;  %v1173_v25 = vpop.f32.mrb[114].mxu1  ;;  %1775 = vmatprep.subr.bf16.mxu1 %v14471_v21  ;;  %v11355_v5 = vld [vmem:[%s14456_s7 + $0x44] ss:$8 sps:$4 sm:$0xff]   ;;  %v11357_v41 = vld [vmem:[%s14456_s7 + $0x40] ss:$8 sps:$4 sm:$0xff]  }
 0x2aa   :  { %v1451_v8 = vpop.f32.mrb[146].mxu0  ;;  %v1592_v29 = vmul.f32 %v12096_v58, %v1555_v18  ;;  %v1489_v46 = vadd.f32 %v1448_v62, %v1211_v53  ;;  %v1212_v51 = vadd.f32 %v1173_v25, %v12076_v11  ;;  %v10138_v23 = vpop.f32.mrb[115].mxu1  ;;  %v1628_v33 = vadd.f32 %v12103_v9, %v1591_v16  ;;  %v11358_v48 = vld [vmem:[%s14456_s7 + $0x54] ss:$8 sps:$4 sm:$0xff]   ;;  %v1646_v62 = vld [vmem:[%s14456_s7 + $0x60] sm:$0x77] }
 0x2ab   :  { %v10200_v31 = vpop.f32.mrb[147].mxu0  ;;  %v11360_v16 = vld [vmem:[%s14456_s7 + $0x50] ss:$8 sps:$4 sm:$0xff]   ;;  %v8990_v18 = vcombine.high %v1646_v62, %v1646_v62  ;;  %v8989_v53 = vcombine.low %v1646_v62, %v1646_v62 }
 0x2ac   :  { %v1526_v17 = vadd.f32 %v12086_v39, %v1489_v46  ;;  %v1490_v32 = vadd.f32 %v1451_v8, %v1212_v51  ;;  %v1629_v60 = vadd.f32 %v12103_v9, %v1592_v29 }
 0x2ae   :  { %v1556_v40 = vmax.f32 %v1526_v17, 0.0  ;;  %v1527_v30 = vadd.f32 %v12086_v39, %v1490_v32  ;;  %v1659_v13 = vpack.c.bf16 %v1629_v60, %v1628_v33  ;;  %v11364_v17 = vld [vmem:[%s14459_s8 + $0x8] sm:$0xff]  }
 0x2af   :  { %v1178_v56 = vpop.f32.mrb[116].mxu1 }
 0x2b0   :  { %v1456_v22 = vpop.f32.mrb[148].mxu0  ;;  %v1593_v42 = vmul.f32 %v12096_v58, %v1556_v40  ;;  %v1557_v45 = vmax.f32 %v1527_v30, 0.0  ;;  %v1213_v11 = vadd.f32 %v1178_v56, %v12078_v35  ;;  %v10141_v47 = vpop.f32.mrb[117].mxu1  ;;  %1776 = vmatpush1.bf16.msra.mxu1 %v1659_v13 }
 0x2b1   :  { %v10203_v50 = vpop.f32.mrb[149].mxu0  ;;  %v1181_v52 = vpop.f32.mrb[118].mxu1  ;;  %1777 = vmatprep.subr.bf16.mxu1 %v14471_v21 }
 0x2b2   :  { %v1459_v26 = vpop.f32.mrb[150].mxu0  ;;  %v1594_v28 = vmul.f32 %v12096_v58, %v1557_v45  ;;  %v1491_v57 = vadd.f32 %v1456_v22, %v1213_v11  ;;  %v1214_v54 = vadd.f32 %v1181_v52, %v12080_v27  ;;  %v10142_v19 = vpop.f32.mrb[119].mxu1  ;;  %v1630_v36 = vadd.f32 %v12103_v9, %v1593_v42 }
 0x2b3   :  { %v10204_v55 = vpop.f32.mrb[151].mxu0 }
 0x2b4   :  { %v1528_v37 = vadd.f32 %v12086_v39, %v1491_v57  ;;  %v1492_v2 = vadd.f32 %v1459_v26, %v1214_v54  ;;  %v1631_v35 = vadd.f32 %v12103_v9, %v1594_v28 }
 0x2b6   :  { %v1558_v59 = vmax.f32 %v1528_v37, 0.0  ;;  %v1529_v20 = vadd.f32 %v12086_v39, %v1492_v2  ;;  %v1660_v49 = vpack.c.bf16 %v1631_v35, %v1630_v36 }
 0x2b8   :  { %v1595_v61 = vmul.f32 %v12096_v58, %v1558_v59  ;;  %v1559_v6 = vmax.f32 %v1529_v20, 0.0  ;;  %1778 = vmatpush1.bf16.msra.mxu1 %v1660_v49 }
 0x2b9   :  { %1779 = vmatprep.subr.bf16.mxu1 %v14471_v21 }
 0x2ba   :  { %v1596_v27 = vmul.f32 %v12096_v58, %v1559_v6  ;;  %v1632_v10 = vadd.f32 %v12103_v9, %v1595_v61  ;;  %v11346_v58 = vld [vmem:[%s14456_s7 + $0x14] ss:$8 sps:$4 sm:$0xff]  }
 0x2bb   :  { %v11365_v61 = vld [vmem:[%s14459_s8 + $0x10] sm:$0xff]  }
 0x2bc   :  { %v1633_v12 = vadd.f32 %v12103_v9, %v1596_v27  ;;  %v11348_v9 = vld [vmem:[%s14456_s7 + $0x10] ss:$8 sps:$4 sm:$0xff]  }
 0x2be   :  { %v1661_v39 = vpack.c.bf16 %v1633_v12, %v1632_v10  ;;  %v11366_v10 = vld [vmem:[%s14459_s8 + $0x18] sm:$0xff]  }
 0x2c0   :  { %v1749_v15 = vand.u32 %v12243_v14, %v1661_v39 }
 0x2c2   :  { %1780 = vmatpush1.bf16.msra.mxu1 %v1749_v15 }
 0x2c3   :  { %11249 = vmatprep.subr.bf16.mxu1 %v11470_v7 }
 0x2c5   :  { %1784 = vmatmul.mubr.bf16.vlgmr.msra.gmra.mrb[120].mxu1 %v11343_v63 }
 0x2c6   :  { %8992 = vmatprep.mubr.msk.bf16.mxu1 %vm1722_vm6, %v11346_v58  ;;  %11250 = vmatpush3.bf16.msra.mxu1 %v12161_v38  ;;  %v11352_v38 = vld [vmem:[%s14456_s7 + $0x34] ss:$8 sps:$4 sm:$0xff]  }
 0x2c7   :  { %10249 = vmatprep.subr.bf16.mxu1 %v11470_v7 }
 0x2cd   :  { %1792 = vmatmul.mubr.bf16.gmra.mrb[124].mxu1 %v11348_v9 }
 0x2ce   :  { %8993 = vmatprep.mubr.msk.bf16.mxu1 %vm1722_vm6, %v11349_v43 }
 0x2d5   :  { %1800 = vmatmul.mubr.bf16.gmra.mrb[128].mxu1 %v11351_v44 }
 0x2d6   :  { %8994 = vmatprep.mubr.msk.bf16.mxu1 %vm1722_vm6, %v11352_v38 }
 0x2dd   :  { %1808 = vmatmul.mubr.bf16.gmra.mrb[132].mxu1 %v11354_v3 }
 0x2de   :  { %8995 = vmatprep.mubr.msk.bf16.mxu1 %vm1722_vm6, %v11355_v5 }
 0x2e5   :  { %1816 = vmatmul.mubr.bf16.gmra.mrb[136].mxu1 %v11357_v41 }
 0x2e6   :  { %8996 = vmatprep.mubr.msk.bf16.mxu1 %vm1722_vm6, %v11358_v48  ;;  %v11367_v48 = vld [vmem:[%s14459_s8 + $0x20] sm:$0xff]  }
 0x2ed   :  { %1824 = vmatmul.mubr.bf16.gmra.mrb[140].mxu1 %v11360_v16 }
 0x2ee   :  { %8997 = vmatprep.mubr.msk.bf16.mxu1 %vm1722_vm6, %v8990_v18 }
 0x2f5   :  { %1832 = vmatmul.mubr.bf16.gmra.mrb[144].mxu1 %v8989_v53 }
 0x2f6   :  { %10223 = vmatprep.mubr.msk.bf16.mxu1 %vm11471_vm4, %v11470_v7 }
 0x398   :  { %v1785_v24 = vpop.f32.mrb[120].mxu1 }
 0x399   :  { %1840 = vst.msk [vmem:[#allocation4] sm:$0xff] %vm1839_vm9, %v1785_v24  ;;  %v1787_v34 = vpop.f32.mrb[121].mxu1 }
 0x39a   :  { %v1788_v25 = vpop.f32.mrb[122].mxu1 }
 0x39b   :  { %1841 = vst.msk [vmem:[#allocation4 + $0x8] sm:$0xff] %vm1839_vm9, %v1788_v25  ;;  %v1790_v8 = vpop.f32.mrb[123].mxu1 }
 0x3a0   :  { %v1793_v29 = vpop.f32.mrb[124].mxu1  ;;  %v1854_v23 = vld [vmem:[#allocation4] sm:$0xff] }
 0x3a1   :  { %1842 = vst.msk [vmem:[#allocation4 + $0x10] sm:$0xff] %vm1839_vm9, %v1793_v29  ;;  %v1795_v46 = vpop.f32.mrb[125].mxu1 }
 0x3a2   :  { %v1796_v51 = vpop.f32.mrb[126].mxu1  ;;  %v1855_v31 = vld [vmem:[#allocation4 + $0x8] sm:$0xff] }
 0x3a3   :  { %1843 = vst.msk [vmem:[#allocation4 + $0x18] sm:$0xff] %vm1839_vm9, %v1796_v51  ;;  %v1798_v32 = vpop.f32.mrb[127].mxu1  ;;  %v1864_v33 = vpack.c.bf16 %v1855_v31, %v1854_v23  ;;  %v1992_v0 = vld [vmem:[#allocation4 + $0x1] sm:$0xff] }
 0x3a4   :  { %v2134_v38 = vld [vmem:[#allocation4 + $0x2] sm:$0xff] }
 0x3a5   :  { %10208 = vmatmul.mubr.msk.bf16.vlgmr.msra.gmra.mrb[152].mxu0 %vm1839_vm9, %v1864_v33 }
 0x3a6   :  { %10228 = vmatpush3.bf16.msra.mxu0 %v11364_v17  ;;  %10211 = vmatprep.mubr.msk.bf16.mxu0 %vm11471_vm4, %v11470_v7 }
 0x3a7   :  { %10271 = vmatprep.subr.bf16.mxu0 %v11470_v7 }
 0x3a8   :  { %v1801_v60 = vpop.f32.mrb[128].mxu1  ;;  %v1856_v13 = vld [vmem:[#allocation4 + $0x10] sm:$0xff] }
 0x3a9   :  { %1844 = vst.msk [vmem:[#allocation4 + $0x20] sm:$0xff] %vm1839_vm9, %v1801_v60  ;;  %v1803_v40 = vpop.f32.mrb[129].mxu1  ;;  %v1993_v20 = vld [vmem:[#allocation4 + $0x9] sm:$0xff] }
 0x3aa   :  { %v1804_v30 = vpop.f32.mrb[130].mxu1  ;;  %v1857_v56 = vld [vmem:[#allocation4 + $0x18] sm:$0xff]  ;;  %v2002_v39 = vpack.c.bf16 %v1993_v20, %v1992_v0  ;;  %v2135_v58 = vld [vmem:[#allocation4 + $0xa] sm:$0xff] }
 0x3ab   :  { %1845 = vst.msk [vmem:[#allocation4 + $0x28] sm:$0xff] %vm1839_vm9, %v1804_v30  ;;  %v1806_v22 = vpop.f32.mrb[131].mxu1  ;;  %v1865_v42 = vpack.c.bf16 %v1857_v56, %v1856_v13  ;;  %v1994_v44 = vld [vmem:[#allocation4 + $0x11] sm:$0xff]  ;;  %v2144_v41 = vpack.c.bf16 %v2135_v58, %v2134_v38 }
 0x3ac   :  { %v2136_v24 = vld [vmem:[#allocation4 + $0x12] sm:$0xff] }
 0x3ad   :  { %10212 = vmatmul.mubr.msk.bf16.gmra.mrb[156].mxu0 %vm1839_vm9, %v1865_v42  ;;  %v11368_v22 = vld [vmem:[%s14459_s8 + $0x28] sm:$0xff]  }
 0x3ae   :  { %10215 = vmatprep.mubr.msk.bf16.mxu0 %vm11471_vm4, %v11470_v7 }
 0x3b0   :  { %v1809_v45 = vpop.f32.mrb[132].mxu1  ;;  %v1858_v50 = vld [vmem:[#allocation4 + $0x20] sm:$0xff] }
 0x3b1   :  { %1846 = vst.msk [vmem:[#allocation4 + $0x30] sm:$0xff] %vm1839_vm9, %v1809_v45  ;;  %v1811_v11 = vpop.f32.mrb[133].mxu1  ;;  %v1995_v63 = vld [vmem:[#allocation4 + $0x19] sm:$0xff]  ;;  %v2286_v45 = vpack.c.bf16 %v2136_v24, %v2135_v58 }
 0x3b2   :  { %v1812_v47 = vpop.f32.mrb[134].mxu1  ;;  %v1859_v52 = vld [vmem:[#allocation4 + $0x28] sm:$0xff]  ;;  %v2003_v5 = vpack.c.bf16 %v1995_v63, %v1994_v44  ;;  %v2137_v18 = vld [vmem:[#allocation4 + $0x1a] sm:$0xff]  ;;  %v11371_v44 = vld [vmem:[%s14459_s8 + $0x40] sm:$0xff]  }
 0x3b3   :  { %1847 = vst.msk [vmem:[#allocation4 + $0x38] sm:$0xff] %vm1839_vm9, %v1812_v47  ;;  %v1814_v26 = vpop.f32.mrb[135].mxu1  ;;  %v1866_v28 = vpack.c.bf16 %v1859_v52, %v1858_v50  ;;  %v1996_v53 = vld [vmem:[#allocation4 + $0x21] sm:$0xff]  ;;  %v2145_v25 = vpack.c.bf16 %v2137_v18, %v2136_v24  ;;  %v2419_v11 = vld [vmem:[#allocation4 + $0x13] sm:$0xff]  ;;  %v2418_v47 = vld [vmem:[#allocation4 + $0xb] sm:$0xff] }
 0x3b4   :  { %v2138_v51 = vld [vmem:[#allocation4 + $0x22] sm:$0xff]  ;;  %v2428_v52 = vpack.c.bf16 %v2419_v11, %v2418_v47 }
 0x3b5   :  { %10216 = vmatmul.mubr.msk.bf16.gmra.mrb[160].mxu0 %vm1839_vm9, %v1866_v28  ;;  %v2287_v50 = vpack.c.bf16 %v2138_v51, %v2137_v18  ;;  %v11369_v26 = vld [vmem:[%s14459_s8 + $0x30] sm:$0xff]  }
 0x3b6   :  { %10219 = vmatprep.mubr.msk.bf16.mxu0 %vm11471_vm4, %v11470_v7  ;;  %v2421_v28 = vld [vmem:[#allocation4 + $0x23] sm:$0xff] }
 0x3b7   :  { %v2562_v63 = vld [vmem:[#allocation4 + $0x1c] sm:$0xff]  ;;  %v2563_v58 = vld [vmem:[#allocation4 + $0x24] sm:$0xff] }
 0x3b8   :  { %v1817_v57 = vpop.f32.mrb[136].mxu1  ;;  %v1860_v55 = vld [vmem:[#allocation4 + $0x30] sm:$0xff] }
 0x3b9   :  { %1848 = vst.msk [vmem:[#allocation4 + $0x40] sm:$0xff] %vm1839_vm9, %v1817_v57  ;;  %v1819_v54 = vpop.f32.mrb[137].mxu1  ;;  %v1997_v16 = vld [vmem:[#allocation4 + $0x29] sm:$0xff]  ;;  %v2420_v57 = vld [vmem:[#allocation4 + $0x1b] sm:$0xff] }
 0x3ba   :  { %v1820_v19 = vpop.f32.mrb[138].mxu1  ;;  %v1861_v37 = vld [vmem:[#allocation4 + $0x38] sm:$0xff]  ;;  %v2004_v34 = vpack.c.bf16 %v1997_v16, %v1996_v53  ;;  %v2139_v29 = vld [vmem:[#allocation4 + $0x2a] sm:$0xff] }
 0x3bb   :  { %1849 = vst.msk [vmem:[#allocation4 + $0x48] sm:$0xff] %vm1839_vm9, %v1820_v19  ;;  %v1822_v2 = vpop.f32.mrb[139].mxu1  ;;  %v1867_v36 = vpack.c.bf16 %v1861_v37, %v1860_v55  ;;  %v1998_v46 = vld [vmem:[#allocation4 + $0x31] sm:$0xff]  ;;  %v2146_v31 = vpack.c.bf16 %v2139_v29, %v2138_v51  ;;  %v2429_v19 = vpack.c.bf16 %v2421_v28, %v2420_v57 }
 0x3bc   :  { %v2140_v60 = vld [vmem:[#allocation4 + $0x32] sm:$0xff] }
 0x3bd   :  { %10220 = vmatmul.mubr.msk.bf16.gmra.mrb[164].mxu0 %vm1839_vm9, %v1867_v36  ;;  %v2288_v54 = vpack.c.bf16 %v2140_v60, %v2139_v29  ;;  %v2423_v55 = vld [vmem:[#allocation4 + $0x33] sm:$0xff]  ;;  %v2422_v37 = vld [vmem:[#allocation4 + $0x2b] sm:$0xff]  ;;  %v2845_v29 = vld [vmem:[#allocation4 + $0x1d] sm:$0xff] }
 0x3be   :  { %10229 = vmatprep.mubr.msk.bf16.mxu0 %vm11471_vm4, %v11470_v7  ;;  %v2430_v36 = vpack.c.bf16 %v2423_v55, %v2422_v37  ;;  %v2564_v38 = vld [vmem:[#allocation4 + $0x2c] sm:$0xff] }
 0x3c0   :  { %v1825_v35 = vpop.f32.mrb[140].mxu1  ;;  %v1862_v59 = vld [vmem:[#allocation4 + $0x40] sm:$0xff] }
 0x3c1   :  { %1850 = vst.msk [vmem:[#allocation4 + $0x50] sm:$0xff] %vm1839_vm9, %v1825_v35  ;;  %v1827_v49 = vpop.f32.mrb[141].mxu1  ;;  %v1999_v8 = vld [vmem:[#allocation4 + $0x39] sm:$0xff] }
 0x3c2   :  { %v1828_v6 = vpop.f32.mrb[142].mxu1  ;;  %v1863_v27 = vld [vmem:[#allocation4 + $0x48] sm:$0xff]  ;;  %v2005_v23 = vpack.c.bf16 %v1999_v8, %v1998_v46  ;;  %v2141_v32 = vld [vmem:[#allocation4 + $0x3a] sm:$0xff] }
 0x3c3   :  { %1851 = vst.msk [vmem:[#allocation4 + $0x58] sm:$0xff] %vm1839_vm9, %v1828_v6  ;;  %v1868_v12 = vpack.c.bf16 %v1863_v27, %v1862_v59  ;;  %v1830_v15 = vpop.f32.mrb[143].mxu1  ;;  %v2000_v33 = vld [vmem:[#allocation4 + $0x41] sm:$0xff]  ;;  %v2147_v30 = vpack.c.bf16 %v2141_v32, %v2140_v60  ;;  %v2561_v27 = vld [vmem:[#allocation4 + $0x14] sm:$0xff] }
 0x3c4   :  { %v2142_v56 = vld [vmem:[#allocation4 + $0x42] sm:$0xff]  ;;  %v2844_v46 = vld [vmem:[#allocation4 + $0x15] sm:$0xff] }
 0x3c5   :  { %10224 = vmatmul.mubr.msk.bf16.vlgmr.msra.gmra.mrb[148].mxu1 %vm1839_vm9, %v1868_v12  ;;  %10230 = vmatmul.mubr.msk.bf16.vlgmr.msra.gmra.mrb[168].mxu0 %vm1839_vm9, %v2002_v39  ;;  %v2289_v2 = vpack.c.bf16 %v2142_v56, %v2141_v32  ;;  %v2425_v59 = vld [vmem:[#allocation4 + $0x43] sm:$0xff]  ;;  %v2424_v20 = vld [vmem:[#allocation4 + $0x3b] sm:$0xff] }
 0x3c6   :  { %10250 = vmatpush3.bf16.msra.mxu1 %v11365_v61  ;;  %10272 = vmatpush3.bf16.msra.mxu0 %v11366_v10  ;;  %v2431_v61 = vpack.c.bf16 %v2425_v59, %v2424_v20  ;;  %v2560_v10 = vld [vmem:[#allocation4 + $0xc] sm:$0xff]  ;;  %v2991_v47 = vld [vmem:[#allocation4 + $0x3e] sm:$0xff] }
 0x3c7   :  { %10233 = vmatprep.mubr.msk.bf16.mxu0 %vm11471_vm4, %v11470_v7  ;;  %10251 = vmatprep.mubr.msk.bf16.mxu1 %vm11471_vm4, %v11470_v7  ;;  %v11370_v12 = vld [vmem:[%s14459_s8 + $0x38] sm:$0xff]   ;;  %v2570_v15 = vpack.c.bf16 %v2561_v27, %v2560_v10  ;;  %v8998_v20 = vld [vmem:[%s14460_s9] ss:$0 sm:$0xff] }
 0x3c8   :  { %10293 = vmatprep.subr.bf16.mxu1 %v11470_v7  ;;  %v1833_v9 = vpop.f32.mrb[144].mxu1  ;;  %10315 = vmatprep.subr.bf16.mxu0 %v11470_v7  ;;  %v2001_v17 = vld [vmem:[#allocation4 + $0x49] sm:$0xff] }
 0x3c9   :  { %1853 = vst.msk [vmem:[#allocation4 + $0x60] sm:$0x3f] %vm1852_vm10, %v1833_v9  ;;  %v1835_v43 = vpop.f32.mrb[145].mxu1  ;;  %v2006_v40 = vpack.c.bf16 %v2001_v17, %v2000_v33  ;;  %v2143_v13 = vld [vmem:[#allocation4 + $0x4a] sm:$0xff]  ;;  %v2571_v9 = vpack.c.bf16 %v2563_v58, %v2562_v63  ;;  %v2987_v17 = vld [vmem:[#allocation4 + $0x1e] sm:$0xff]  ;;  %v2986_v33 = vld [vmem:[#allocation4 + $0x16] sm:$0xff] }
 0x3ca   :  { %v1836_v3 = vpop.f32.mrb[146].mxu1  ;;  %v2148_v42 = vpack.c.bf16 %v2143_v13, %v2142_v56  ;;  %v2285_v35 = vld [vmem:[#allocation4 + $0x52] sm:$0xff]  ;;  %v2712_v43 = vpack.c.bf16 %v2562_v63, %v2561_v27  ;;  %v2846_v32 = vld [vmem:[#allocation4 + $0x25] sm:$0xff] }
 0x3cb   :  { %v1837_v62 = vpop.f32.mrb[147].mxu1  ;;  %v2290_v49 = vpack.c.bf16 %v2285_v35, %v2143_v13  ;;  %v2427_v6 = vld [vmem:[#allocation4 + $0x53] sm:$0xff]  ;;  %v2426_v0 = vld [vmem:[#allocation4 + $0x4b] sm:$0xff] }
 0x3cc   :  { %v2432_v39 = vpack.c.bf16 %v2427_v6, %v2426_v0  ;;  %v2565_v3 = vld [vmem:[#allocation4 + $0x34] sm:$0xff]  ;;  %v2567_v62 = vld [vmem:[#allocation4 + $0x44] sm:$0xff]  ;;  %v2568_v53 = vld [vmem:[#allocation4 + $0x4c] sm:$0xff] }
 0x3cd   :  { %10234 = vmatmul.mubr.msk.bf16.gmra.mrb[172].mxu0 %vm1839_vm9, %v2003_v5  ;;  %10252 = vmatmul.mubr.msk.bf16.vlgmr.msra.gmra.mrb[152].mxu1 %vm1839_vm9, %v2144_v41  ;;  %v2572_v5 = vpack.c.bf16 %v2565_v3, %v2564_v38  ;;  %v2713_v41 = vpack.c.bf16 %v2564_v38, %v2563_v58  ;;  %v2569_v24 = vld [vmem:[#allocation4 + $0x54] sm:$0xff]  ;;  %v2992_v55 = vld [vmem:[#allocation4 + $0x46] sm:$0xff] }
 0x3ce   :  { %10237 = vmatprep.mubr.msk.bf16.mxu0 %vm11471_vm4, %v11470_v7  ;;  %10255 = vmatprep.mubr.msk.bf16.mxu1 %vm11471_vm4, %v11470_v7  ;;  %v2989_v13 = vld [vmem:[#allocation4 + $0x2e] sm:$0xff] }
 0x3cf   :  { %10294 = vmatpush3.bf16.msra.mxu1 %v11367_v48  ;;  %v2566_v48 = vld [vmem:[#allocation4 + $0x3c] sm:$0xff]  ;;  %v2851_v11 = vld [vmem:[#allocation4 + $0x4d] sm:$0xff] }
 0x3d0   :  { %10337 = vmatprep.subr.bf16.mxu1 %v11470_v7  ;;  %v2573_v16 = vpack.c.bf16 %v2567_v62, %v2566_v48  ;;  %v2714_v18 = vpack.c.bf16 %v2566_v48, %v2565_v3  ;;  %v2711_v8 = vld [vmem:[#allocation4 + $0x5c] sm:$0xff] }
 0x3d1   :  { %v2716_v51 = vpack.c.bf16 %v2711_v8, %v2569_v24  ;;  %v2848_v56 = vld [vmem:[#allocation4 + $0x35] sm:$0xff]  ;;  %v2995_v35 = vld [vmem:[#allocation4 + $0x5e] sm:$0xff] }
 0x3d2   :  { %v2852_v57 = vld [vmem:[#allocation4 + $0x55] sm:$0xff] }
 0x3d5   :  { %10238 = vmatmul.mubr.msk.bf16.gmra.mrb[176].mxu0 %vm1839_vm9, %v2004_v34  ;;  %10256 = vmatmul.mubr.msk.bf16.gmra.mrb[156].mxu1 %vm1839_vm9, %v2145_v25  ;;  %v2574_v34 = vpack.c.bf16 %v2569_v24, %v2568_v53  ;;  %v2715_v25 = vpack.c.bf16 %v2568_v53, %v2567_v62 }
 0x3d6   :  { %10241 = vmatprep.mubr.msk.bf16.mxu0 %vm11471_vm4, %v11470_v7  ;;  %10259 = vmatprep.mubr.msk.bf16.mxu1 %vm11471_vm4, %v11470_v7 }
 0x3dd   :  { %10242 = vmatmul.mubr.msk.bf16.gmra.mrb[180].mxu0 %vm1839_vm9, %v2005_v23  ;;  %10260 = vmatmul.mubr.msk.bf16.gmra.mrb[160].mxu1 %vm1839_vm9, %v2146_v31  ;;  %v2854_v23 = vpack.c.bf16 %v2845_v29, %v2844_v46  ;;  %v2847_v31 = vld [vmem:[#allocation4 + $0x2d] sm:$0xff] }
 0x3de   :  { %10245 = vmatprep.mubr.msk.bf16.mxu0 %vm11471_vm4, %v11470_v7  ;;  %10263 = vmatprep.mubr.msk.bf16.mxu1 %vm11471_vm4, %v11470_v7  ;;  %v2855_v60 = vpack.c.bf16 %v2847_v31, %v2846_v32  ;;  %v11372_v31 = vld [vmem:[%s14461_s10 + $0x8] sm:$0xff]  }
 0x3e5   :  { %10246 = vmatmul.mubr.msk.bf16.gmra.mrb[184].mxu0 %vm1839_vm9, %v2006_v40  ;;  %10264 = vmatmul.mubr.msk.bf16.gmra.mrb[164].mxu1 %vm1839_vm9, %v2147_v30  ;;  %v2996_v40 = vpack.c.bf16 %v2987_v17, %v2986_v33  ;;  %v2849_v30 = vld [vmem:[#allocation4 + $0x3d] sm:$0xff] }
 0x3e6   :  { %10267 = vmatprep.mubr.msk.bf16.mxu1 %vm11471_vm4, %v11470_v7  ;;  %10273 = vmatprep.mubr.msk.bf16.mxu0 %vm11471_vm4, %v11470_v7 }
 0x3ed   :  { %10268 = vmatmul.mubr.msk.bf16.gmra.mrb[168].mxu1 %vm1839_vm9, %v2148_v42  ;;  %10274 = vmatmul.mubr.msk.bf16.vlgmr.msra.gmra.mrb[188].mxu0 %vm1839_vm9, %v2286_v45  ;;  %v2856_v42 = vpack.c.bf16 %v2849_v30, %v2848_v56 }
 0x3ee   :  { %10316 = vmatpush3.bf16.msra.mxu0 %v11368_v22  ;;  %10277 = vmatprep.mubr.msk.bf16.mxu0 %vm11471_vm4, %v11470_v7  ;;  %v2988_v22 = vld [vmem:[#allocation4 + $0x26] sm:$0xff] }
 0x3ef   :  { %10295 = vmatprep.mubr.msk.bf16.mxu1 %vm11471_vm4, %v11470_v7  ;;  %10359 = vmatprep.subr.bf16.mxu0 %v11470_v7  ;;  %v2997_v45 = vpack.c.bf16 %v2989_v13, %v2988_v22 }
 0x3f5   :  { %10278 = vmatmul.mubr.msk.bf16.gmra.mrb[192].mxu0 %vm1839_vm9, %v2287_v50  ;;  %10296 = vmatmul.mubr.msk.bf16.vlgmr.msra.gmra.mrb[172].mxu1 %vm1839_vm9, %v2428_v52  ;;  %v2850_v50 = vld [vmem:[#allocation4 + $0x45] sm:$0xff]  ;;  %v2990_v52 = vld [vmem:[#allocation4 + $0x36] sm:$0xff] }
 0x3f6   :  { %10281 = vmatprep.mubr.msk.bf16.mxu0 %vm11471_vm4, %v11470_v7  ;;  %10299 = vmatprep.mubr.msk.bf16.mxu1 %vm11471_vm4, %v11470_v7  ;;  %v2998_v28 = vpack.c.bf16 %v2991_v47, %v2990_v52 }
 0x3f7   :  { %10338 = vmatpush3.bf16.msra.mxu1 %v11369_v26  ;;  %v2857_v26 = vpack.c.bf16 %v2851_v11, %v2850_v50 }
 0x3f8   :  { %10381 = vmatprep.subr.bf16.mxu1 %v11470_v7 }
 0x3fd   :  { %10282 = vmatmul.mubr.msk.bf16.gmra.mrb[196].mxu0 %vm1839_vm9, %v2288_v54  ;;  %10300 = vmatmul.mubr.msk.bf16.gmra.mrb[176].mxu1 %vm1839_vm9, %v2429_v19  ;;  %v2853_v54 = vld [vmem:[#allocation4 + $0x5d] sm:$0xff]  ;;  %v2993_v19 = vld [vmem:[#allocation4 + $0x4e] sm:$0xff] }
 0x3fe   :  { %10285 = vmatprep.mubr.msk.bf16.mxu0 %vm11471_vm4, %v11470_v7  ;;  %10303 = vmatprep.mubr.msk.bf16.mxu1 %vm11471_vm4, %v11470_v7  ;;  %v2858_v37 = vpack.c.bf16 %v2853_v54, %v2852_v57 }
 0x405   :  { %10286 = vmatmul.mubr.msk.bf16.gmra.mrb[200].mxu0 %vm1839_vm9, %v2289_v2  ;;  %10304 = vmatmul.mubr.msk.bf16.gmra.mrb[180].mxu1 %vm1839_vm9, %v2430_v36  ;;  %v2999_v2 = vpack.c.bf16 %v2993_v19, %v2992_v55  ;;  %v2994_v36 = vld [vmem:[#allocation4 + $0x56] sm:$0xff] }
 0x406   :  { %10289 = vmatprep.mubr.msk.bf16.mxu0 %vm11471_vm4, %v11470_v7  ;;  %10307 = vmatprep.mubr.msk.bf16.mxu1 %vm11471_vm4, %v11470_v7  ;;  %v3000_v59 = vpack.c.bf16 %v2995_v35, %v2994_v36  ;;  %v11373_v36 = vld [vmem:[%s14461_s10] sm:$0xff]  }
 0x40d   :  { %10290 = vmatmul.mubr.msk.bf16.gmra.mrb[204].mxu0 %vm1839_vm9, %v2290_v49  ;;  %10308 = vmatmul.mubr.msk.bf16.gmra.mrb[184].mxu1 %vm1839_vm9, %v2431_v61 }
 0x40e   :  { %10311 = vmatprep.mubr.msk.bf16.mxu1 %vm11471_vm4, %v11470_v7  ;;  %10317 = vmatprep.mubr.msk.bf16.mxu0 %vm11471_vm4, %v11470_v7 }
 0x415   :  { %10312 = vmatmul.mubr.msk.bf16.gmra.mrb[188].mxu1 %vm1839_vm9, %v2432_v39  ;;  %10318 = vmatmul.mubr.msk.bf16.vlgmr.msra.gmra.mrb[208].mxu0 %vm1839_vm9, %v2570_v15 }
 0x416   :  { %10360 = vmatpush3.bf16.msra.mxu0 %v11370_v12  ;;  %10321 = vmatprep.mubr.msk.bf16.mxu0 %vm11471_vm4, %v11470_v7 }
 0x417   :  { %10339 = vmatprep.mubr.msk.bf16.mxu1 %vm11471_vm4, %v11470_v7  ;;  %10403 = vmatprep.subr.bf16.mxu0 %v11470_v7 }
 0x41d   :  { %10322 = vmatmul.mubr.msk.bf16.gmra.mrb[212].mxu0 %vm1839_vm9, %v2571_v9  ;;  %10340 = vmatmul.mubr.msk.bf16.vlgmr.msra.gmra.mrb[192].mxu1 %vm1839_vm9, %v2712_v43 }
 0x41e   :  { %10325 = vmatprep.mubr.msk.bf16.mxu0 %vm11471_vm4, %v11470_v7  ;;  %10343 = vmatprep.mubr.msk.bf16.mxu1 %vm11471_vm4, %v11470_v7 }
 0x41f   :  { %10382 = vmatpush3.bf16.msra.mxu1 %v11371_v44 }
 0x420   :  { %10425 = vmatprep.subr.bf16.mxu1 %v11470_v7 }
 0x425   :  { %10326 = vmatmul.mubr.msk.bf16.gmra.mrb[216].mxu0 %vm1839_vm9, %v2572_v5  ;;  %10344 = vmatmul.mubr.msk.bf16.gmra.mrb[196].mxu1 %vm1839_vm9, %v2713_v41 }
 0x426   :  { %10329 = vmatprep.mubr.msk.bf16.mxu0 %vm11471_vm4, %v11470_v7  ;;  %10347 = vmatprep.mubr.msk.bf16.mxu1 %vm11471_vm4, %v11470_v7 }
 0x42d   :  { %10330 = vmatmul.mubr.msk.bf16.gmra.mrb[220].mxu0 %vm1839_vm9, %v2573_v16  ;;  %10348 = vmatmul.mubr.msk.bf16.gmra.mrb[200].mxu1 %vm1839_vm9, %v2714_v18 }
 0x42e   :  { %10333 = vmatprep.mubr.msk.bf16.mxu0 %vm11471_vm4, %v11470_v7  ;;  %10351 = vmatprep.mubr.msk.bf16.mxu1 %vm11471_vm4, %v11470_v7 }
 0x435   :  { %10334 = vmatmul.mubr.msk.bf16.gmra.mrb[224].mxu0 %vm1839_vm9, %v2574_v34  ;;  %10352 = vmatmul.mubr.msk.bf16.gmra.mrb[204].mxu1 %vm1839_vm9, %v2715_v25 }
 0x436   :  { %10355 = vmatprep.mubr.msk.bf16.mxu1 %vm11471_vm4, %v11470_v7  ;;  %10361 = vmatprep.mubr.msk.bf16.mxu0 %vm11471_vm4, %v11470_v7 }
 0x43d   :  { %10356 = vmatmul.mubr.msk.bf16.gmra.mrb[208].mxu1 %vm1839_vm9, %v2716_v51  ;;  %10362 = vmatmul.mubr.msk.bf16.vlgmr.msra.gmra.mrb[228].mxu0 %vm1839_vm9, %v2854_v23 }
 0x43e   :  { %10365 = vmatprep.mubr.msk.bf16.mxu0 %vm11471_vm4, %v11470_v7  ;;  %10383 = vmatprep.mubr.msk.bf16.mxu1 %vm11471_vm4, %v11470_v7 }
 0x43f   :  { %10404 = vmatpush3.bf16.msra.mxu0 %v11372_v31 }
 0x440   :  { %10447 = vmatprep.subr.bf16.mxu0 %v11470_v7 }
 0x445   :  { %10366 = vmatmul.mubr.msk.bf16.gmra.mrb[232].mxu0 %vm1839_vm9, %v2855_v60  ;;  %10384 = vmatmul.mubr.msk.bf16.vlgmr.msra.gmra.mrb[212].mxu1 %vm1839_vm9, %v2996_v40 }
 0x446   :  { %10369 = vmatprep.mubr.msk.bf16.mxu0 %vm11471_vm4, %v11470_v7  ;;  %10387 = vmatprep.mubr.msk.bf16.mxu1 %vm11471_vm4, %v11470_v7 }
 0x447   :  { %10426 = vmatpush3.bf16.msra.mxu1 %v11373_v36 }
 0x448   :  { %10469 = vmatprep.subr.bf16.mxu1 %v11470_v7 }
 0x44d   :  { %10370 = vmatmul.mubr.msk.bf16.gmra.mrb[236].mxu0 %vm1839_vm9, %v2856_v42  ;;  %10388 = vmatmul.mubr.msk.bf16.gmra.mrb[216].mxu1 %vm1839_vm9, %v2997_v45 }
 0x44e   :  { %10373 = vmatprep.mubr.msk.bf16.mxu0 %vm11471_vm4, %v11470_v7  ;;  %10391 = vmatprep.mubr.msk.bf16.mxu1 %vm11471_vm4, %v11470_v7 }
 0x455   :  { %10374 = vmatmul.mubr.msk.bf16.gmra.mrb[240].mxu0 %vm1839_vm9, %v2857_v26  ;;  %10392 = vmatmul.mubr.msk.bf16.gmra.mrb[220].mxu1 %vm1839_vm9, %v2998_v28 }
 0x456   :  { %10377 = vmatprep.mubr.msk.bf16.mxu0 %vm11471_vm4, %v11470_v7  ;;  %10395 = vmatprep.mubr.msk.bf16.mxu1 %vm11471_vm4, %v11470_v7 }
 0x45d   :  { %10378 = vmatmul.mubr.msk.bf16.gmra.mrb[244].mxu0 %vm1839_vm9, %v2858_v37  ;;  %10396 = vmatmul.mubr.msk.bf16.gmra.mrb[224].mxu1 %vm1839_vm9, %v2999_v2 }
 0x45e   :  { %10399 = vmatprep.mubr.msk.bf16.mxu1 %vm11471_vm4, %v11470_v7  ;;  %10405 = vmatprep.mubr.msk.bf16.mxu0 %vm11471_vm4, %v11470_v7 }
 0x465   :  { %10400 = vmatmul.mubr.msk.bf16.gmra.mrb[228].mxu1 %vm1839_vm9, %v3000_v59 }
 0x466   :  { %10427 = vmatprep.mubr.msk.bf16.mxu1 %vm11471_vm4, %v11470_v7 }
 0x478   :  { %v1933_v49 = vpop.f32.mrb[152].mxu0 }
 0x479   :  { %v1934_v61 = vadd.f32 %v8998_v20, %v1933_v49  ;;  %v10209_v6 = vpop.f32.mrb[153].mxu0 }
 0x47a   :  { %v1936_v27 = vpop.f32.mrb[154].mxu0 }
 0x47b   :  { %1972 = vst.msk [vmem:[#allocation3] sm:$0xff] %vm1839_vm9, %v1934_v61  ;;  %v1937_v0 = vadd.f32 %v8998_v20, %v1936_v27  ;;  %v10210_v10 = vpop.f32.mrb[155].mxu0 }
 0x47d   :  { %1973 = vst.msk [vmem:[#allocation3 + $0x8] sm:$0xff] %vm1839_vm9, %v1937_v0 }
 0x480   :  { %v1941_v12 = vpop.f32.mrb[156].mxu0 }
 0x481   :  { %v1942_v39 = vadd.f32 %v8998_v20, %v1941_v12  ;;  %v10213_v15 = vpop.f32.mrb[157].mxu0 }
 0x482   :  { %v1944_v63 = vpop.f32.mrb[158].mxu0  ;;  %v1982_v34 = vld [vmem:[#allocation3] sm:$0xff] }
 0x483   :  { %1974 = vst.msk [vmem:[#allocation3 + $0x10] sm:$0xff] %vm1839_vm9, %v1942_v39  ;;  %v1945_v58 = vadd.f32 %v8998_v20, %v1944_v63  ;;  %v10214_v9 = vpop.f32.mrb[159].mxu0 }
 0x484   :  { %v1983_v32 = vld [vmem:[#allocation3 + $0x8] sm:$0xff] }
 0x485   :  { %1975 = vst.msk [vmem:[#allocation3 + $0x18] sm:$0xff] %vm1839_vm9, %v1945_v58 }
 0x488   :  { %v1949_v43 = vpop.f32.mrb[160].mxu0 }
 0x489   :  { %v1950_v44 = vadd.f32 %v8998_v20, %v1949_v43  ;;  %v10217_v38 = vpop.f32.mrb[161].mxu0 }
 0x48a   :  { %v1952_v3 = vpop.f32.mrb[162].mxu0  ;;  %v1984_v56 = vld [vmem:[#allocation3 + $0x10] sm:$0xff] }
 0x48b   :  { %1976 = vst.msk [vmem:[#allocation3 + $0x20] sm:$0xff] %vm1839_vm9, %v1950_v44  ;;  %v1953_v5 = vadd.f32 %v8998_v20, %v1952_v3  ;;  %v10218_v41 = vpop.f32.mrb[163].mxu0 }
 0x48c   :  { %v1985_v52 = vld [vmem:[#allocation3 + $0x18] sm:$0xff] }
 0x48d   :  { %1977 = vst.msk [vmem:[#allocation3 + $0x28] sm:$0xff] %vm1839_vm9, %v1953_v5 }
 0x490   :  { %v1957_v48 = vpop.f32.mrb[164].mxu0 }
 0x491   :  { %v1958_v62 = vadd.f32 %v8998_v20, %v1957_v48  ;;  %v10221_v16 = vpop.f32.mrb[165].mxu0 }
 0x492   :  { %v1960_v18 = vpop.f32.mrb[166].mxu0  ;;  %v1986_v35 = vld [vmem:[#allocation3 + $0x20] sm:$0xff] }
 0x493   :  { %1978 = vst.msk [vmem:[#allocation3 + $0x30] sm:$0xff] %vm1839_vm9, %v1958_v62  ;;  %v1961_v53 = vadd.f32 %v8998_v20, %v1960_v18  ;;  %v10222_v24 = vpop.f32.mrb[167].mxu0 }
 0x494   :  { %v1987_v0 = vld [vmem:[#allocation3 + $0x28] sm:$0xff] }
 0x495   :  { %1979 = vst.msk [vmem:[#allocation3 + $0x38] sm:$0xff] %vm1839_vm9, %v1961_v53 }
 0x498   :  { %v1965_v25 = vpop.f32.mrb[148].mxu1  ;;  %v2065_v8 = vpop.f32.mrb[168].mxu0 }
 0x499   :  { %v1966_v29 = vadd.f32 %v8998_v20, %v1965_v25  ;;  %v2104_v46 = vadd.f32 %v2065_v8, %v1982_v34  ;;  %v10225_v51 = vpop.f32.mrb[149].mxu1  ;;  %v10231_v23 = vpop.f32.mrb[169].mxu0 }
 0x49a   :  { %v1968_v17 = vpop.f32.mrb[150].mxu1  ;;  %v2068_v33 = vpop.f32.mrb[170].mxu0  ;;  %v1988_v44 = vld [vmem:[#allocation3 + $0x30] sm:$0xff] }
 0x49b   :  { %1980 = vst.msk [vmem:[#allocation3 + $0x40] sm:$0xff] %vm1839_vm9, %v1966_v29  ;;  %2114 = vst.msk [vmem:[#allocation3] sm:$0xff] %vm1839_vm9, %v2104_v46  ;;  %v1969_v60 = vadd.f32 %v8998_v20, %v1968_v17  ;;  %v2105_v40 = vadd.f32 %v2068_v33, %v1983_v32  ;;  %v10226_v30 = vpop.f32.mrb[151].mxu1  ;;  %v10232_v13 = vpop.f32.mrb[171].mxu0 }
 0x49c   :  { %v1989_v16 = vld [vmem:[#allocation3 + $0x38] sm:$0xff] }
 0x49d   :  { %1981 = vst.msk [vmem:[#allocation3 + $0x48] sm:$0xff] %vm1839_vm9, %v1969_v60  ;;  %2115 = vst.msk [vmem:[#allocation3 + $0x8] sm:$0xff] %vm1839_vm9, %v2105_v40 }
 0x4a0   :  { %v2073_v22 = vpop.f32.mrb[172].mxu0  ;;  %v2207_v42 = vpop.f32.mrb[152].mxu1 }
 0x4a1   :  { %v2106_v45 = vadd.f32 %v2073_v22, %v1984_v56  ;;  %v10235_v11 = vpop.f32.mrb[173].mxu0  ;;  %v10253_v47 = vpop.f32.mrb[153].mxu1 }
 0x4a2   :  { %v2124_v50 = vld [vmem:[#allocation3] sm:$0xff]  ;;  %v2076_v26 = vpop.f32.mrb[174].mxu0  ;;  %v2210_v28 = vpop.f32.mrb[154].mxu1 }
 0x4a3   :  { %2116 = vst.msk [vmem:[#allocation3 + $0x10] sm:$0xff] %vm1839_vm9, %v2106_v45  ;;  %v2246_v57 = vadd.f32 %v2207_v42, %v2124_v50  ;;  %v2107_v54 = vadd.f32 %v2076_v26, %v1985_v52  ;;  %v10236_v19 = vpop.f32.mrb[175].mxu0  ;;  %v10254_v55 = vpop.f32.mrb[155].mxu1  ;;  %v1990_v51 = vld [vmem:[#allocation3 + $0x40] sm:$0xff] }
 0x4a4   :  { %v2125_v37 = vld [vmem:[#allocation3 + $0x8] sm:$0xff] }
 0x4a5   :  { %2256 = vst.msk [vmem:[#allocation3] sm:$0xff] %vm1839_vm9, %v2246_v57  ;;  %2117 = vst.msk [vmem:[#allocation3 + $0x18] sm:$0xff] %vm1839_vm9, %v2107_v54  ;;  %v2247_v2 = vadd.f32 %v2210_v28, %v2125_v37  ;;  %v1991_v40 = vld [vmem:[#allocation3 + $0x48] sm:$0xff] }
 0x4a7   :  { %2257 = vst.msk [vmem:[#allocation3 + $0x8] sm:$0xff] %vm1839_vm9, %v2247_v2 }
 0x4a8   :  { %v2081_v59 = vpop.f32.mrb[176].mxu0  ;;  %v2215_v20 = vpop.f32.mrb[156].mxu1 }
 0x4a9   :  { %v2108_v49 = vadd.f32 %v2081_v59, %v1986_v35  ;;  %v10239_v61 = vpop.f32.mrb[177].mxu0  ;;  %v10257_v6 = vpop.f32.mrb[157].mxu1 }
 0x4aa   :  { %v2126_v27 = vld [vmem:[#allocation3 + $0x10] sm:$0xff]  ;;  %v2084_v10 = vpop.f32.mrb[178].mxu0  ;;  %v2218_v12 = vpop.f32.mrb[158].mxu1 }
 0x4ab   :  { %2118 = vst.msk [vmem:[#allocation3 + $0x20] sm:$0xff] %vm1839_vm9, %v2108_v49  ;;  %v2248_v39 = vadd.f32 %v2215_v20, %v2126_v27  ;;  %v2109_v15 = vadd.f32 %v2084_v10, %v1987_v0  ;;  %v10240_v63 = vpop.f32.mrb[179].mxu0  ;;  %v10258_v58 = vpop.f32.mrb[159].mxu1 }
 0x4ac   :  { %v2127_v9 = vld [vmem:[#allocation3 + $0x18] sm:$0xff]  ;;  %v2266_v52 = vld [vmem:[#allocation3] sm:$0xff] }
 0x4ad   :  { %2258 = vst.msk [vmem:[#allocation3 + $0x10] sm:$0xff] %vm1839_vm9, %v2248_v39  ;;  %2119 = vst.msk [vmem:[#allocation3 + $0x28] sm:$0xff] %vm1839_vm9, %v2109_v15  ;;  %v2249_v43 = vadd.f32 %v2218_v12, %v2127_v9 }
 0x4ae   :  { %v2267_v37 = vld [vmem:[#allocation3 + $0x8] sm:$0xff] }
 0x4af   :  { %2259 = vst.msk [vmem:[#allocation3 + $0x18] sm:$0xff] %vm1839_vm9, %v2249_v43 }
 0x4b0   :  { %v2089_v38 = vpop.f32.mrb[180].mxu0  ;;  %v2223_v3 = vpop.f32.mrb[160].mxu1 }
 0x4b1   :  { %v2110_v5 = vadd.f32 %v2089_v38, %v1988_v44  ;;  %v10243_v41 = vpop.f32.mrb[181].mxu0  ;;  %v10261_v48 = vpop.f32.mrb[161].mxu1 }
 0x4b2   :  { %v2128_v62 = vld [vmem:[#allocation3 + $0x20] sm:$0xff]  ;;  %v2092_v18 = vpop.f32.mrb[182].mxu0  ;;  %v2226_v53 = vpop.f32.mrb[162].mxu1 }
 0x4b3   :  { %2120 = vst.msk [vmem:[#allocation3 + $0x30] sm:$0xff] %vm1839_vm9, %v2110_v5  ;;  %v2250_v24 = vadd.f32 %v2223_v3, %v2128_v62  ;;  %v2111_v34 = vadd.f32 %v2092_v18, %v1989_v16  ;;  %v10244_v25 = vpop.f32.mrb[183].mxu0  ;;  %v10262_v8 = vpop.f32.mrb[163].mxu1 }
 0x4b4   :  { %v2129_v29 = vld [vmem:[#allocation3 + $0x28] sm:$0xff]  ;;  %v2268_v6 = vld [vmem:[#allocation3 + $0x10] sm:$0xff] }
 0x4b5   :  { %2260 = vst.msk [vmem:[#allocation3 + $0x20] sm:$0xff] %vm1839_vm9, %v2250_v24  ;;  %2121 = vst.msk [vmem:[#allocation3 + $0x38] sm:$0xff] %vm1839_vm9, %v2111_v34  ;;  %v2251_v46 = vadd.f32 %v2226_v53, %v2129_v29 }
 0x4b6   :  { %v2269_v63 = vld [vmem:[#allocation3 + $0x18] sm:$0xff] }
 0x4b7   :  { %2261 = vst.msk [vmem:[#allocation3 + $0x28] sm:$0xff] %vm1839_vm9, %v2251_v46 }
 0x4b8   :  { %v2097_v23 = vpop.f32.mrb[184].mxu0  ;;  %v2231_v31 = vpop.f32.mrb[164].mxu1 }
 0x4b9   :  { %v2112_v17 = vadd.f32 %v2097_v23, %v1990_v51  ;;  %v10247_v32 = vpop.f32.mrb[185].mxu0  ;;  %v10265_v33 = vpop.f32.mrb[165].mxu1 }
 0x4ba   :  { %v2130_v60 = vld [vmem:[#allocation3 + $0x30] sm:$0xff]  ;;  %v2100_v30 = vpop.f32.mrb[186].mxu0  ;;  %v2234_v13 = vpop.f32.mrb[166].mxu1 }
 0x4bb   :  { %2122 = vst.msk [vmem:[#allocation3 + $0x40] sm:$0xff] %vm1839_vm9, %v2112_v17  ;;  %v2252_v56 = vadd.f32 %v2231_v31, %v2130_v60  ;;  %v2113_v22 = vadd.f32 %v2100_v30, %v1991_v40  ;;  %v10248_v42 = vpop.f32.mrb[187].mxu0  ;;  %v10266_v45 = vpop.f32.mrb[167].mxu1 }
 0x4bc   :  { %v2131_v11 = vld [vmem:[#allocation3 + $0x38] sm:$0xff]  ;;  %v2270_v48 = vld [vmem:[#allocation3 + $0x20] sm:$0xff] }
 0x4bd   :  { %2262 = vst.msk [vmem:[#allocation3 + $0x30] sm:$0xff] %vm1839_vm9, %v2252_v56  ;;  %2123 = vst.msk [vmem:[#allocation3 + $0x48] sm:$0xff] %vm1839_vm9, %v2113_v22  ;;  %v2253_v47 = vadd.f32 %v2234_v13, %v2131_v11 }
 0x4be   :  { %v2271_v25 = vld [vmem:[#allocation3 + $0x28] sm:$0xff] }
 0x4bf   :  { %2263 = vst.msk [vmem:[#allocation3 + $0x38] sm:$0xff] %vm1839_vm9, %v2253_v47 }
 0x4c0   :  { %v2239_v50 = vpop.f32.mrb[168].mxu1  ;;  %v2349_v26 = vpop.f32.mrb[188].mxu0 }
 0x4c1   :  { %v2388_v28 = vadd.f32 %v2349_v26, %v2266_v52  ;;  %v10269_v57 = vpop.f32.mrb[169].mxu1  ;;  %v10275_v54 = vpop.f32.mrb[189].mxu0 }
 0x4c2   :  { %v2132_v19 = vld [vmem:[#allocation3 + $0x40] sm:$0xff]  ;;  %v2242_v55 = vpop.f32.mrb[170].mxu1  ;;  %v2352_v2 = vpop.f32.mrb[190].mxu0 }
 0x4c3   :  { %v2254_v36 = vadd.f32 %v2239_v50, %v2132_v19  ;;  %2398 = vst.msk [vmem:[#allocation3] sm:$0xff] %vm1839_vm9, %v2388_v28  ;;  %v2389_v35 = vadd.f32 %v2352_v2, %v2267_v37  ;;  %v10270_v59 = vpop.f32.mrb[171].mxu1  ;;  %v10276_v20 = vpop.f32.mrb[191].mxu0 }
 0x4c4   :  { %v2133_v49 = vld [vmem:[#allocation3 + $0x48] sm:$0xff]  ;;  %v2272_v33 = vld [vmem:[#allocation3 + $0x30] sm:$0xff] }
 0x4c5   :  { %2264 = vst.msk [vmem:[#allocation3 + $0x40] sm:$0xff] %vm1839_vm9, %v2254_v36  ;;  %v2255_v61 = vadd.f32 %v2242_v55, %v2133_v49  ;;  %2399 = vst.msk [vmem:[#allocation3 + $0x8] sm:$0xff] %vm1839_vm9, %v2389_v35 }
 0x4c6   :  { %v2273_v42 = vld [vmem:[#allocation3 + $0x38] sm:$0xff] }
 0x4c7   :  { %2265 = vst.msk [vmem:[#allocation3 + $0x48] sm:$0xff] %vm1839_vm9, %v2255_v61 }
 0x4c8   :  { %v2357_v27 = vpop.f32.mrb[192].mxu0  ;;  %v2491_v0 = vpop.f32.mrb[172].mxu1 }
 0x4c9   :  { %v2390_v10 = vadd.f32 %v2357_v27, %v2268_v6  ;;  %v10279_v12 = vpop.f32.mrb[193].mxu0  ;;  %v10297_v39 = vpop.f32.mrb[173].mxu1 }
 0x4ca   :  { %v2408_v15 = vld [vmem:[#allocation3] sm:$0xff]  ;;  %v2360_v58 = vpop.f32.mrb[194].mxu0  ;;  %v2494_v9 = vpop.f32.mrb[174].mxu1 }
 0x4cb   :  { %2400 = vst.msk [vmem:[#allocation3 + $0x10] sm:$0xff] %vm1839_vm9, %v2390_v10  ;;  %v2530_v43 = vadd.f32 %v2491_v0, %v2408_v15  ;;  %v2391_v44 = vadd.f32 %v2360_v58, %v2269_v63  ;;  %v10280_v38 = vpop.f32.mrb[195].mxu0  ;;  %v10298_v3 = vpop.f32.mrb[175].mxu1 }
 0x4cc   :  { %v2409_v5 = vld [vmem:[#allocation3 + $0x8] sm:$0xff]  ;;  %v2274_v54 = vld [vmem:[#allocation3 + $0x40] sm:$0xff] }
 0x4cd   :  { %2540 = vst.msk [vmem:[#allocation3] sm:$0xff] %vm1839_vm9, %v2530_v43  ;;  %2401 = vst.msk [vmem:[#allocation3 + $0x18] sm:$0xff] %vm1839_vm9, %v2391_v44  ;;  %v2531_v41 = vadd.f32 %v2494_v9, %v2409_v5 }
 0x4ce   :  { %v2275_v59 = vld [vmem:[#allocation3 + $0x48] sm:$0xff] }
 0x4cf   :  { %2541 = vst.msk [vmem:[#allocation3 + $0x8] sm:$0xff] %vm1839_vm9, %v2531_v41 }
 0x4d0   :  { %v2365_v62 = vpop.f32.mrb[196].mxu0  ;;  %v2499_v16 = vpop.f32.mrb[176].mxu1 }
 0x4d1   :  { %v2392_v18 = vadd.f32 %v2365_v62, %v2270_v48  ;;  %v10283_v53 = vpop.f32.mrb[197].mxu0  ;;  %v10301_v24 = vpop.f32.mrb[177].mxu1 }
 0x4d2   :  { %v2410_v34 = vld [vmem:[#allocation3 + $0x10] sm:$0xff]  ;;  %v2368_v8 = vpop.f32.mrb[198].mxu0  ;;  %v2502_v29 = vpop.f32.mrb[178].mxu1 }
 0x4d3   :  { %2402 = vst.msk [vmem:[#allocation3 + $0x20] sm:$0xff] %vm1839_vm9, %v2392_v18  ;;  %v2532_v46 = vadd.f32 %v2499_v16, %v2410_v34  ;;  %v2393_v51 = vadd.f32 %v2368_v8, %v2271_v25  ;;  %v10284_v23 = vpop.f32.mrb[199].mxu0  ;;  %v10302_v31 = vpop.f32.mrb[179].mxu1 }
 0x4d4   :  { %v2411_v17 = vld [vmem:[#allocation3 + $0x18] sm:$0xff]  ;;  %v2550_v15 = vld [vmem:[#allocation3] sm:$0xff] }
 0x4d5   :  { %2542 = vst.msk [vmem:[#allocation3 + $0x10] sm:$0xff] %vm1839_vm9, %v2532_v46  ;;  %2403 = vst.msk [vmem:[#allocation3 + $0x28] sm:$0xff] %vm1839_vm9, %v2393_v51  ;;  %v2533_v32 = vadd.f32 %v2502_v29, %v2411_v17 }
 0x4d6   :  { %v2551_v3 = vld [vmem:[#allocation3 + $0x8] sm:$0xff] }
 0x4d7   :  { %2543 = vst.msk [vmem:[#allocation3 + $0x18] sm:$0xff] %vm1839_vm9, %v2533_v32 }
 0x4d8   :  { %v2373_v60 = vpop.f32.mrb[200].mxu0  ;;  %v2507_v40 = vpop.f32.mrb[180].mxu1 }
 0x4d9   :  { %v2394_v30 = vadd.f32 %v2373_v60, %v2272_v33  ;;  %v10287_v13 = vpop.f32.mrb[201].mxu0  ;;  %v10305_v56 = vpop.f32.mrb[181].mxu1 }
 0x4da   :  { %v2412_v22 = vld [vmem:[#allocation3 + $0x20] sm:$0xff]  ;;  %v2376_v45 = vpop.f32.mrb[202].mxu0  ;;  %v2510_v11 = vpop.f32.mrb[182].mxu1 }
 0x4db   :  { %2404 = vst.msk [vmem:[#allocation3 + $0x30] sm:$0xff] %vm1839_vm9, %v2394_v30  ;;  %v2534_v47 = vadd.f32 %v2507_v40, %v2412_v22  ;;  %v2395_v50 = vadd.f32 %v2376_v45, %v2273_v42  ;;  %v10288_v52 = vpop.f32.mrb[203].mxu0  ;;  %v10306_v26 = vpop.f32.mrb[183].mxu1 }
 0x4dc   :  { %v2413_v28 = vld [vmem:[#allocation3 + $0x28] sm:$0xff]  ;;  %v2552_v24 = vld [vmem:[#allocation3 + $0x10] sm:$0xff] }
 0x4dd   :  { %2544 = vst.msk [vmem:[#allocation3 + $0x20] sm:$0xff] %vm1839_vm9, %v2534_v47  ;;  %2405 = vst.msk [vmem:[#allocation3 + $0x38] sm:$0xff] %vm1839_vm9, %v2395_v50  ;;  %v2535_v57 = vadd.f32 %v2510_v11, %v2413_v28 }
 0x4de   :  { %v2553_v23 = vld [vmem:[#allocation3 + $0x18] sm:$0xff] }
 0x4df   :  { %2545 = vst.msk [vmem:[#allocation3 + $0x28] sm:$0xff] %vm1839_vm9, %v2535_v57 }
 0x4e0   :  { %v2381_v19 = vpop.f32.mrb[204].mxu0  ;;  %v2515_v55 = vpop.f32.mrb[184].mxu1 }
 0x4e1   :  { %v2396_v37 = vadd.f32 %v2381_v19, %v2274_v54  ;;  %v10291_v2 = vpop.f32.mrb[205].mxu0  ;;  %v10309_v36 = vpop.f32.mrb[185].mxu1 }
 0x4e2   :  { %v2414_v35 = vld [vmem:[#allocation3 + $0x30] sm:$0xff]  ;;  %v2384_v20 = vpop.f32.mrb[206].mxu0  ;;  %v2518_v49 = vpop.f32.mrb[186].mxu1 }
 0x4e3   :  { %2406 = vst.msk [vmem:[#allocation3 + $0x40] sm:$0xff] %vm1839_vm9, %v2396_v37  ;;  %v2536_v61 = vadd.f32 %v2515_v55, %v2414_v35  ;;  %v2397_v6 = vadd.f32 %v2384_v20, %v2275_v59  ;;  %v10292_v27 = vpop.f32.mrb[207].mxu0  ;;  %v10310_v0 = vpop.f32.mrb[187].mxu1 }
 0x4e4   :  { %v2415_v10 = vld [vmem:[#allocation3 + $0x38] sm:$0xff]  ;;  %v2554_v56 = vld [vmem:[#allocation3 + $0x20] sm:$0xff] }
 0x4e5   :  { %2546 = vst.msk [vmem:[#allocation3 + $0x30] sm:$0xff] %vm1839_vm9, %v2536_v61  ;;  %2407 = vst.msk [vmem:[#allocation3 + $0x48] sm:$0xff] %vm1839_vm9, %v2397_v6  ;;  %v2537_v12 = vadd.f32 %v2518_v49, %v2415_v10 }
 0x4e6   :  { %v2555_v52 = vld [vmem:[#allocation3 + $0x28] sm:$0xff] }
 0x4e7   :  { %2547 = vst.msk [vmem:[#allocation3 + $0x38] sm:$0xff] %vm1839_vm9, %v2537_v12 }
 0x4e8   :  { %v2523_v39 = vpop.f32.mrb[188].mxu1  ;;  %v2633_v63 = vpop.f32.mrb[208].mxu0 }
 0x4e9   :  { %v2672_v58 = vadd.f32 %v2633_v63, %v2550_v15  ;;  %v10313_v9 = vpop.f32.mrb[189].mxu1  ;;  %v10319_v43 = vpop.f32.mrb[209].mxu0 }
 0x4ea   :  { %v2416_v44 = vld [vmem:[#allocation3 + $0x40] sm:$0xff]  ;;  %v2526_v38 = vpop.f32.mrb[190].mxu1  ;;  %v2636_v5 = vpop.f32.mrb[210].mxu0 }
 0x4eb   :  { %v2538_v41 = vadd.f32 %v2523_v39, %v2416_v44  ;;  %2682 = vst.msk [vmem:[#allocation3] sm:$0xff] %vm1839_vm9, %v2672_v58  ;;  %v2673_v48 = vadd.f32 %v2636_v5, %v2551_v3  ;;  %v10314_v62 = vpop.f32.mrb[191].mxu1  ;;  %v10320_v16 = vpop.f32.mrb[211].mxu0 }
 0x4ec   :  { %v2417_v18 = vld [vmem:[#allocation3 + $0x48] sm:$0xff]  ;;  %v2556_v36 = vld [vmem:[#allocation3 + $0x30] sm:$0xff] }
 0x4ed   :  { %2548 = vst.msk [vmem:[#allocation3 + $0x40] sm:$0xff] %vm1839_vm9, %v2538_v41  ;;  %v2539_v53 = vadd.f32 %v2526_v38, %v2417_v18  ;;  %2683 = vst.msk [vmem:[#allocation3 + $0x8] sm:$0xff] %vm1839_vm9, %v2673_v48 }
 0x4ee   :  { %v2557_v27 = vld [vmem:[#allocation3 + $0x38] sm:$0xff] }
 0x4ef   :  { %2549 = vst.msk [vmem:[#allocation3 + $0x48] sm:$0xff] %vm1839_vm9, %v2539_v53 }
 0x4f0   :  { %v2641_v34 = vpop.f32.mrb[212].mxu0  ;;  %v2775_v25 = vpop.f32.mrb[192].mxu1 }
 0x4f1   :  { %v2674_v8 = vadd.f32 %v2641_v34, %v2552_v24  ;;  %v10323_v29 = vpop.f32.mrb[213].mxu0  ;;  %v10341_v46 = vpop.f32.mrb[193].mxu1 }
 0x4f2   :  { %v2692_v51 = vld [vmem:[#allocation3] sm:$0xff]  ;;  %v2644_v31 = vpop.f32.mrb[214].mxu0  ;;  %v2778_v17 = vpop.f32.mrb[194].mxu1 }
 0x4f3   :  { %2684 = vst.msk [vmem:[#allocation3 + $0x10] sm:$0xff] %vm1839_vm9, %v2674_v8  ;;  %v2814_v32 = vadd.f32 %v2775_v25, %v2692_v51  ;;  %v2675_v33 = vadd.f32 %v2644_v31, %v2553_v23  ;;  %v10324_v60 = vpop.f32.mrb[215].mxu0  ;;  %v10342_v40 = vpop.f32.mrb[195].mxu1 }
 0x4f4   :  { %v2693_v30 = vld [vmem:[#allocation3 + $0x8] sm:$0xff]  ;;  %v2558_v43 = vld [vmem:[#allocation3 + $0x40] sm:$0xff] }
 0x4f5   :  { %2824 = vst.msk [vmem:[#allocation3] sm:$0xff] %vm1839_vm9, %v2814_v32  ;;  %2685 = vst.msk [vmem:[#allocation3 + $0x18] sm:$0xff] %vm1839_vm9, %v2675_v33  ;;  %v2815_v13 = vadd.f32 %v2778_v17, %v2693_v30 }
 0x4f6   :  { %v2559_v62 = vld [vmem:[#allocation3 + $0x48] sm:$0xff] }
 0x4f7   :  { %2825 = vst.msk [vmem:[#allocation3 + $0x8] sm:$0xff] %vm1839_vm9, %v2815_v13 }
 0x4f8   :  { %v2649_v22 = vpop.f32.mrb[216].mxu0  ;;  %v2783_v42 = vpop.f32.mrb[196].mxu1 }
 0x4f9   :  { %v2676_v45 = vadd.f32 %v2649_v22, %v2554_v56  ;;  %v10327_v11 = vpop.f32.mrb[217].mxu0  ;;  %v10345_v47 = vpop.f32.mrb[197].mxu1 }
 0x4fa   :  { %v2694_v50 = vld [vmem:[#allocation3 + $0x10] sm:$0xff]  ;;  %v2652_v26 = vpop.f32.mrb[218].mxu0  ;;  %v2786_v28 = vpop.f32.mrb[198].mxu1 }
 0x4fb   :  { %2686 = vst.msk [vmem:[#allocation3 + $0x20] sm:$0xff] %vm1839_vm9, %v2676_v45  ;;  %v2816_v57 = vadd.f32 %v2783_v42, %v2694_v50  ;;  %v2677_v54 = vadd.f32 %v2652_v26, %v2555_v52  ;;  %v10328_v19 = vpop.f32.mrb[219].mxu0  ;;  %v10346_v55 = vpop.f32.mrb[199].mxu1 }
 0x4fc   :  { %v2695_v37 = vld [vmem:[#allocation3 + $0x18] sm:$0xff]  ;;  %v2834_v51 = vld [vmem:[#allocation3] sm:$0xff] }
 0x4fd   :  { %2826 = vst.msk [vmem:[#allocation3 + $0x10] sm:$0xff] %vm1839_vm9, %v2816_v57  ;;  %2687 = vst.msk [vmem:[#allocation3 + $0x28] sm:$0xff] %vm1839_vm9, %v2677_v54  ;;  %v2817_v2 = vadd.f32 %v2786_v28, %v2695_v37 }
 0x4fe   :  { %v2835_v40 = vld [vmem:[#allocation3 + $0x8] sm:$0xff] }
 0x4ff   :  { %2827 = vst.msk [vmem:[#allocation3 + $0x18] sm:$0xff] %vm1839_vm9, %v2817_v2 }
 0x500   :  { %v2657_v35 = vpop.f32.mrb[220].mxu0  ;;  %v2791_v59 = vpop.f32.mrb[200].mxu1 }
 0x501   :  { %v2678_v20 = vadd.f32 %v2657_v35, %v2556_v36  ;;  %v10331_v49 = vpop.f32.mrb[221].mxu0  ;;  %v10349_v61 = vpop.f32.mrb[201].mxu1 }
 0x502   :  { %v2696_v6 = vld [vmem:[#allocation3 + $0x20] sm:$0xff]  ;;  %v2660_v0 = vpop.f32.mrb[222].mxu0  ;;  %v2794_v10 = vpop.f32.mrb[202].mxu1 }
 0x503   :  { %2688 = vst.msk [vmem:[#allocation3 + $0x30] sm:$0xff] %vm1839_vm9, %v2678_v20  ;;  %v2818_v12 = vadd.f32 %v2791_v59, %v2696_v6  ;;  %v2679_v39 = vadd.f32 %v2660_v0, %v2557_v27  ;;  %v10332_v15 = vpop.f32.mrb[223].mxu0  ;;  %v10350_v63 = vpop.f32.mrb[203].mxu1 }
 0x504   :  { %v2697_v58 = vld [vmem:[#allocation3 + $0x28] sm:$0xff]  ;;  %v2836_v47 = vld [vmem:[#allocation3 + $0x10] sm:$0xff] }
 0x505   :  { %2828 = vst.msk [vmem:[#allocation3 + $0x20] sm:$0xff] %vm1839_vm9, %v2818_v12  ;;  %2689 = vst.msk [vmem:[#allocation3 + $0x38] sm:$0xff] %vm1839_vm9, %v2679_v39  ;;  %v2819_v9 = vadd.f32 %v2794_v10, %v2697_v58 }
 0x506   :  { %v2837_v19 = vld [vmem:[#allocation3 + $0x18] sm:$0xff] }
 0x507   :  { %2829 = vst.msk [vmem:[#allocation3 + $0x28] sm:$0xff] %vm1839_vm9, %v2819_v9 }
 0x508   :  { %v2665_v44 = vpop.f32.mrb[224].mxu0  ;;  %v2799_v38 = vpop.f32.mrb[204].mxu1 }
 0x509   :  { %v2680_v3 = vadd.f32 %v2665_v44, %v2558_v43  ;;  %v10335_v5 = vpop.f32.mrb[225].mxu0  ;;  %v10353_v41 = vpop.f32.mrb[205].mxu1 }
 0x50a   :  { %v2698_v48 = vld [vmem:[#allocation3 + $0x30] sm:$0xff]  ;;  %v2668_v16 = vpop.f32.mrb[226].mxu0  ;;  %v2802_v18 = vpop.f32.mrb[206].mxu1 }
 0x50b   :  { %2690 = vst.msk [vmem:[#allocation3 + $0x40] sm:$0xff] %vm1839_vm9, %v2680_v3  ;;  %v2820_v53 = vadd.f32 %v2799_v38, %v2698_v48  ;;  %v2681_v24 = vadd.f32 %v2668_v16, %v2559_v62  ;;  %v10336_v34 = vpop.f32.mrb[227].mxu0  ;;  %v10354_v25 = vpop.f32.mrb[207].mxu1 }
 0x50c   :  { %v2699_v8 = vld [vmem:[#allocation3 + $0x38] sm:$0xff]  ;;  %v2838_v61 = vld [vmem:[#allocation3 + $0x20] sm:$0xff] }
 0x50d   :  { %2830 = vst.msk [vmem:[#allocation3 + $0x30] sm:$0xff] %vm1839_vm9, %v2820_v53  ;;  %2691 = vst.msk [vmem:[#allocation3 + $0x48] sm:$0xff] %vm1839_vm9, %v2681_v24  ;;  %v2821_v29 = vadd.f32 %v2802_v18, %v2699_v8 }
 0x50e   :  { %v2839_v15 = vld [vmem:[#allocation3 + $0x28] sm:$0xff] }
 0x50f   :  { %2831 = vst.msk [vmem:[#allocation3 + $0x38] sm:$0xff] %vm1839_vm9, %v2821_v29 }
 0x510   :  { %v2807_v46 = vpop.f32.mrb[208].mxu1  ;;  %v2917_v23 = vpop.f32.mrb[228].mxu0 }
 0x511   :  { %v2956_v31 = vadd.f32 %v2917_v23, %v2834_v51  ;;  %v10357_v17 = vpop.f32.mrb[209].mxu1  ;;  %v10363_v32 = vpop.f32.mrb[229].mxu0 }
 0x512   :  { %v2700_v33 = vld [vmem:[#allocation3 + $0x40] sm:$0xff]  ;;  %v2810_v60 = vpop.f32.mrb[210].mxu1  ;;  %v2920_v30 = vpop.f32.mrb[230].mxu0 }
 0x513   :  { %v2822_v13 = vadd.f32 %v2807_v46, %v2700_v33  ;;  %2966 = vst.msk [vmem:[#allocation3] sm:$0xff] %vm1839_vm9, %v2956_v31  ;;  %v2957_v56 = vadd.f32 %v2920_v30, %v2835_v40  ;;  %v10358_v22 = vpop.f32.mrb[211].mxu1  ;;  %v10364_v42 = vpop.f32.mrb[231].mxu0 }
 0x514   :  { %v2701_v45 = vld [vmem:[#allocation3 + $0x48] sm:$0xff]  ;;  %v2840_v18 = vld [vmem:[#allocation3 + $0x30] sm:$0xff]  ;;  %v11375_v42 = vld [vmem:[%s14461_s10 + $0x18] sm:$0xff]  }
 0x515   :  { %2832 = vst.msk [vmem:[#allocation3 + $0x40] sm:$0xff] %vm1839_vm9, %v2822_v13  ;;  %v2823_v11 = vadd.f32 %v2810_v60, %v2701_v45  ;;  %2967 = vst.msk [vmem:[#allocation3 + $0x8] sm:$0xff] %vm1839_vm9, %v2957_v56 }
 0x516   :  { %v2841_v46 = vld [vmem:[#allocation3 + $0x38] sm:$0xff] }
 0x517   :  { %2833 = vst.msk [vmem:[#allocation3 + $0x48] sm:$0xff] %vm1839_vm9, %v2823_v11 }
 0x518   :  { %v2925_v50 = vpop.f32.mrb[232].mxu0  ;;  %v3059_v52 = vpop.f32.mrb[212].mxu1 }
 0x519   :  { %v2958_v26 = vadd.f32 %v2925_v50, %v2836_v47  ;;  %v10367_v28 = vpop.f32.mrb[233].mxu0  ;;  %v10385_v57 = vpop.f32.mrb[213].mxu1 }
 0x51a   :  { %v2976_v54 = vld [vmem:[#allocation3] sm:$0xff]  ;;  %v2928_v55 = vpop.f32.mrb[234].mxu0  ;;  %v3062_v37 = vpop.f32.mrb[214].mxu1 }
 0x51b   :  { %2968 = vst.msk [vmem:[#allocation3 + $0x10] sm:$0xff] %vm1839_vm9, %v2958_v26  ;;  %v3098_v2 = vadd.f32 %v3059_v52, %v2976_v54  ;;  %v2959_v36 = vadd.f32 %v2928_v55, %v2837_v19  ;;  %v10368_v35 = vpop.f32.mrb[235].mxu0  ;;  %v10386_v59 = vpop.f32.mrb[215].mxu1 }
 0x51c   :  { %v2977_v20 = vld [vmem:[#allocation3 + $0x8] sm:$0xff]  ;;  %v2842_v45 = vld [vmem:[#allocation3 + $0x40] sm:$0xff] }
 0x51d   :  { %3108 = vst.msk [vmem:[#allocation3] sm:$0xff] %vm1839_vm9, %v3098_v2  ;;  %2969 = vst.msk [vmem:[#allocation3 + $0x18] sm:$0xff] %vm1839_vm9, %v2959_v36  ;;  %v3099_v49 = vadd.f32 %v3062_v37, %v2977_v20 }
 0x51e   :  { %v2843_v55 = vld [vmem:[#allocation3 + $0x48] sm:$0xff] }
 0x51f   :  { %3109 = vst.msk [vmem:[#allocation3 + $0x8] sm:$0xff] %vm1839_vm9, %v3099_v49 }
 0x520   :  { %v2933_v6 = vpop.f32.mrb[236].mxu0  ;;  %v3067_v27 = vpop.f32.mrb[216].mxu1 }
 0x521   :  { %v2960_v0 = vadd.f32 %v2933_v6, %v2838_v61  ;;  %v10371_v10 = vpop.f32.mrb[237].mxu0  ;;  %v10389_v12 = vpop.f32.mrb[217].mxu1 }
 0x522   :  { %v2978_v39 = vld [vmem:[#allocation3 + $0x10] sm:$0xff]  ;;  %v2936_v63 = vpop.f32.mrb[238].mxu0  ;;  %v3070_v58 = vpop.f32.mrb[218].mxu1 }
 0x523   :  { %2970 = vst.msk [vmem:[#allocation3 + $0x20] sm:$0xff] %vm1839_vm9, %v2960_v0  ;;  %v3100_v9 = vadd.f32 %v3067_v27, %v2978_v39  ;;  %v2961_v43 = vadd.f32 %v2936_v63, %v2839_v15  ;;  %v10372_v44 = vpop.f32.mrb[239].mxu0  ;;  %v10390_v38 = vpop.f32.mrb[219].mxu1  ;;  %v11374_v12 = vld [vmem:[%s14461_s10 + $0x10] sm:$0xff]  }
 0x524   :  { %v3118_v3 = vld [vmem:[#allocation3] sm:$0xff]  ;;  %v2979_v5 = vld [vmem:[#allocation3 + $0x18] sm:$0xff] }
 0x525   :  { %v3128_v41 = vmax.f32 %v3118_v3, 0.0  ;;  %3110 = vst.msk [vmem:[#allocation3 + $0x10] sm:$0xff] %vm1839_vm9, %v3100_v9  ;;  %2971 = vst.msk [vmem:[#allocation3 + $0x28] sm:$0xff] %vm1839_vm9, %v2961_v43  ;;  %v3101_v48 = vadd.f32 %v3070_v58, %v2979_v5 }
 0x526   :  { %v3119_v62 = vld [vmem:[#allocation3 + $0x8] sm:$0xff] }
 0x527   :  { %3138 = vst.msk [vmem:[#allocation3] sm:$0xff] %vm1839_vm9, %v3128_v41  ;;  %v3129_v16 = vmax.f32 %v3119_v62, 0.0  ;;  %3111 = vst.msk [vmem:[#allocation3 + $0x18] sm:$0xff] %vm1839_vm9, %v3101_v48 }
 0x528   :  { %v2941_v53 = vpop.f32.mrb[240].mxu0  ;;  %v3075_v24 = vpop.f32.mrb[220].mxu1 }
 0x529   :  { %3139 = vst.msk [vmem:[#allocation3 + $0x8] sm:$0xff] %vm1839_vm9, %v3129_v16  ;;  %v2962_v34 = vadd.f32 %v2941_v53, %v2840_v18  ;;  %v10375_v25 = vpop.f32.mrb[241].mxu0  ;;  %v10393_v8 = vpop.f32.mrb[221].mxu1 }
 0x52a   :  { %v2980_v29 = vld [vmem:[#allocation3 + $0x20] sm:$0xff]  ;;  %v2944_v51 = vpop.f32.mrb[242].mxu0  ;;  %v3078_v23 = vpop.f32.mrb[222].mxu1 }
 0x52b   :  { %2972 = vst.msk [vmem:[#allocation3 + $0x30] sm:$0xff] %vm1839_vm9, %v2962_v34  ;;  %v3102_v31 = vadd.f32 %v3075_v24, %v2980_v29  ;;  %v2963_v17 = vadd.f32 %v2944_v51, %v2841_v46  ;;  %v10376_v32 = vpop.f32.mrb[243].mxu0  ;;  %v10394_v33 = vpop.f32.mrb[223].mxu1 }
 0x52c   :  { %v3120_v60 = vld [vmem:[#allocation3 + $0x10] sm:$0xff]  ;;  %v2981_v40 = vld [vmem:[#allocation3 + $0x28] sm:$0xff] }
 0x52d   :  { %v3130_v30 = vmax.f32 %v3120_v60, 0.0  ;;  %3112 = vst.msk [vmem:[#allocation3 + $0x20] sm:$0xff] %vm1839_vm9, %v3102_v31  ;;  %2973 = vst.msk [vmem:[#allocation3 + $0x38] sm:$0xff] %vm1839_vm9, %v2963_v17  ;;  %v3103_v13 = vadd.f32 %v3078_v23, %v2981_v40 }
 0x52e   :  { %v3121_v56 = vld [vmem:[#allocation3 + $0x18] sm:$0xff]  ;;  %v3148_v50 = vld [vmem:[#allocation3] sm:$0xff] }
 0x52f   :  { %3140 = vst.msk [vmem:[#allocation3 + $0x10] sm:$0xff] %vm1839_vm9, %v3130_v30  ;;  %v3131_v22 = vmax.f32 %v3121_v56, 0.0  ;;  %3113 = vst.msk [vmem:[#allocation3 + $0x28] sm:$0xff] %vm1839_vm9, %v3103_v13 }
 0x530   :  { %v2949_v11 = vpop.f32.mrb[244].mxu0  ;;  %v3083_v47 = vpop.f32.mrb[224].mxu1  ;;  %v3149_v52 = vld [vmem:[#allocation3 + $0x8] sm:$0xff] }
 0x531   :  { %3141 = vst.msk [vmem:[#allocation3 + $0x18] sm:$0xff] %vm1839_vm9, %v3131_v22  ;;  %v2964_v26 = vadd.f32 %v2949_v11, %v2842_v45  ;;  %v10379_v28 = vpop.f32.mrb[245].mxu0  ;;  %v10397_v57 = vpop.f32.mrb[225].mxu1  ;;  %v3157_v54 = vpack.c.bf16 %v3149_v52, %v3148_v50  ;;  %v3164_v0 = vld [vmem:[#allocation3 + $0x1] sm:$0xff] }
 0x532   :  { %v2982_v19 = vld [vmem:[#allocation3 + $0x30] sm:$0xff]  ;;  %v2952_v37 = vpop.f32.mrb[246].mxu0  ;;  %v3086_v2 = vpop.f32.mrb[226].mxu1 }
 0x533   :  { %2974 = vst.msk [vmem:[#allocation3 + $0x40] sm:$0xff] %vm1839_vm9, %v2964_v26  ;;  %v3104_v36 = vadd.f32 %v3083_v47, %v2982_v19  ;;  %v2965_v35 = vadd.f32 %v2952_v37, %v2843_v55  ;;  %v10380_v59 = vpop.f32.mrb[247].mxu0  ;;  %v10398_v20 = vpop.f32.mrb[227].mxu1  ;;  %10428 = vmatmul.mubr.msk.bf16.vlgmr.msra.gmra.mrb[232].mxu1 %vm1839_vm9, %v3157_v54 }
 0x534   :  { %v3122_v49 = vld [vmem:[#allocation3 + $0x20] sm:$0xff]  ;;  %v2983_v61 = vld [vmem:[#allocation3 + $0x38] sm:$0xff]  ;;  %10431 = vmatprep.mubr.msk.bf16.mxu1 %vm11471_vm4, %v11470_v7  ;;  %10470 = vmatpush3.bf16.msra.mxu1 %v11375_v42 }
 0x535   :  { %v3132_v6 = vmax.f32 %v3122_v49, 0.0  ;;  %3114 = vst.msk [vmem:[#allocation3 + $0x30] sm:$0xff] %vm1839_vm9, %v3104_v36  ;;  %2975 = vst.msk [vmem:[#allocation3 + $0x48] sm:$0xff] %vm1839_vm9, %v2965_v35  ;;  %v3105_v27 = vadd.f32 %v3086_v2, %v2983_v61 }
 0x536   :  { %v3165_v10 = vld [vmem:[#allocation3 + $0x9] sm:$0xff] }
 0x537   :  { %3142 = vst.msk [vmem:[#allocation3 + $0x20] sm:$0xff] %vm1839_vm9, %v3132_v6  ;;  %v3123_v39 = vld [vmem:[#allocation3 + $0x28] sm:$0xff]  ;;  %3115 = vst.msk [vmem:[#allocation3 + $0x38] sm:$0xff] %vm1839_vm9, %v3105_v27  ;;  %v3173_v15 = vpack.c.bf16 %v3165_v10, %v3164_v0  ;;  %v3150_v43 = vld [vmem:[#allocation3 + $0x10] sm:$0xff] }
 0x538   :  { %v3133_v63 = vmax.f32 %v3123_v39, 0.0  ;;  %v3091_v58 = vpop.f32.mrb[228].mxu1  ;;  %v3151_v44 = vld [vmem:[#allocation3 + $0x18] sm:$0xff]  ;;  %v3486_v57 = vld [vmem:[#allocation3 + $0xb] sm:$0xff] }
 0x539   :  { %v10401_v9 = vpop.f32.mrb[229].mxu1  ;;  %10406 = vmatmul.mubr.msk.bf16.vlgmr.msra.gmra.mrb[248].mxu0 %vm1839_vm9, %v3173_v15  ;;  %v3158_v5 = vpack.c.bf16 %v3151_v44, %v3150_v43  ;;  %v3166_v24 = vld [vmem:[#allocation3 + $0x11] sm:$0xff] }
 0x53a   :  { %3143 = vst.msk [vmem:[#allocation3 + $0x28] sm:$0xff] %vm1839_vm9, %v3133_v63  ;;  %v2984_v38 = vld [vmem:[#allocation3 + $0x40] sm:$0xff]  ;;  %v3094_v3 = vpop.f32.mrb[230].mxu1  ;;  %10448 = vmatpush3.bf16.msra.mxu0 %v11374_v12  ;;  %10409 = vmatprep.mubr.msk.bf16.mxu0 %vm11471_vm4, %v11470_v7  ;;  %v3487_v28 = vld [vmem:[#allocation3 + $0x13] sm:$0xff]  ;;  %v3367_v55 = vld [vmem:[#allocation3 + $0xa] sm:$0xff] }
 0x53b   :  { %v3106_v41 = vadd.f32 %v3091_v58, %v2984_v38  ;;  %v10402_v48 = vpop.f32.mrb[231].mxu1  ;;  %10491 = vmatprep.subr.bf16.mxu0 %v11470_v7  ;;  %10432 = vmatmul.mubr.msk.bf16.gmra.mrb[236].mxu1 %vm1839_vm9, %v3158_v5  ;;  %v3495_v54 = vpack.c.bf16 %v3487_v28, %v3486_v57  ;;  %v3368_v19 = vld [vmem:[#allocation3 + $0x12] sm:$0xff] }
 0x53c   :  { %v3124_v62 = vld [vmem:[#allocation3 + $0x30] sm:$0xff]  ;;  %v2985_v16 = vld [vmem:[#allocation3 + $0x48] sm:$0xff]  ;;  %10435 = vmatprep.mubr.msk.bf16.mxu1 %vm11471_vm4, %v11470_v7  ;;  %v3376_v37 = vpack.c.bf16 %v3368_v19, %v3367_v55 }
 0x53d   :  { %v3134_v18 = vmax.f32 %v3124_v62, 0.0  ;;  %3116 = vst.msk [vmem:[#allocation3 + $0x40] sm:$0xff] %vm1839_vm9, %v3106_v41  ;;  %v3107_v53 = vadd.f32 %v3094_v3, %v2985_v16  ;;  %v11376_v41 = vld [vmem:[%s14477_s26] sm:$0xff]   ;;  %v11377_v48 = vld [vmem:[%s14477_s26 + $0x8] sm:$0x3f]  }
 0x53e   :  { %v3167_v34 = vld [vmem:[#allocation3 + $0x19] sm:$0xff]  ;;  %10585 = vmatprep.subr.bf16.mxu1 %v11376_v41  ;;  %v4669_v62 = vand.u32 %v11377_v48, %v11570_v4  ;;  %v11380_v4 = vld [vmem:[%s14478_s30 + $0x90] sm:$0xff]  }
 0x53f   :  { %3144 = vst.msk [vmem:[#allocation3 + $0x30] sm:$0xff] %vm1839_vm9, %v3134_v18  ;;  %v3125_v25 = vld [vmem:[#allocation3 + $0x38] sm:$0xff]  ;;  %3117 = vst.msk [vmem:[#allocation3 + $0x48] sm:$0xff] %vm1839_vm9, %v3107_v53  ;;  %v3174_v8 = vpack.c.bf16 %v3167_v34, %v3166_v24  ;;  %v3152_v46 = vld [vmem:[#allocation3 + $0x20] sm:$0xff] }
 0x540   :  { %v3135_v29 = vmax.f32 %v3125_v25, 0.0  ;;  %v3488_v36 = vld [vmem:[#allocation3 + $0x1b] sm:$0xff]  ;;  %v11379_v18 = vld [vmem:[%s14478_s30 + $0x88] sm:$0xff]   ;;  %v11386_v25 = vld [vmem:[%s14478_s30 + $0xb0] sm:$0xff]  }
 0x541   :  { %10410 = vmatmul.mubr.msk.bf16.gmra.mrb[252].mxu0 %vm1839_vm9, %v3174_v8  ;;  %v3153_v51 = vld [vmem:[#allocation3 + $0x28] sm:$0xff]  ;;  %v3369_v20 = vld [vmem:[#allocation3 + $0x1a] sm:$0xff] }
 0x542   :  { %3145 = vst.msk [vmem:[#allocation3 + $0x38] sm:$0xff] %vm1839_vm9, %v3135_v29  ;;  %10413 = vmatprep.mubr.msk.bf16.mxu0 %vm11471_vm4, %v11470_v7  ;;  %v3159_v23 = vpack.c.bf16 %v3153_v51, %v3152_v46  ;;  %v3168_v32 = vld [vmem:[#allocation3 + $0x21] sm:$0xff]  ;;  %v11381_v53 = vld [vmem:[%s14478_s30 + $0x98] sm:$0xff]   ;;  %v11391_v51 = vld [vmem:[%s14478_s30 + $0xd0] sm:$0xff]  }
 0x543   :  { %v3489_v2 = vld [vmem:[#allocation3 + $0x23] sm:$0xff]  ;;  %v11387_v8 = vld [vmem:[%s14478_s30 + $0xb8] sm:$0xff]  }
 0x544   :  { %v3126_v31 = vld [vmem:[#allocation3 + $0x40] sm:$0xff]  ;;  %10436 = vmatmul.mubr.msk.bf16.gmra.mrb[240].mxu1 %vm1839_vm9, %v3159_v23  ;;  %v3496_v35 = vpack.c.bf16 %v3489_v2, %v3488_v36  ;;  %v11383_v34 = vld [vmem:[%s14478_s30 + $0xa8] sm:$0xff]   ;;  %v11392_v23 = vld [vmem:[%s14478_s30 + $0xd8] sm:$0xff]  }
 0x545   :  { %v3136_v17 = vmax.f32 %v3126_v31, 0.0  ;;  %10439 = vmatprep.mubr.msk.bf16.mxu1 %vm11471_vm4, %v11470_v7  ;;  %v3370_v59 = vld [vmem:[#allocation3 + $0x22] sm:$0xff] }
 0x546   :  { %v3169_v33 = vld [vmem:[#allocation3 + $0x29] sm:$0xff]  ;;  %v3377_v49 = vpack.c.bf16 %v3370_v59, %v3369_v20  ;;  %v11378_v16 = vld [vmem:[%s14478_s30 + $0x80] sm:$0xff]  }
 0x547   :  { %3146 = vst.msk [vmem:[#allocation3 + $0x40] sm:$0xff] %vm1839_vm9, %v3136_v17  ;;  %v3127_v60 = vld [vmem:[#allocation3 + $0x48] sm:$0xff]  ;;  %v3175_v40 = vpack.c.bf16 %v3169_v33, %v3168_v32  ;;  %v3154_v13 = vld [vmem:[#allocation3 + $0x30] sm:$0xff]  ;;  %v11382_v24 = vld [vmem:[%s14478_s30 + $0xa0] sm:$0xff]  }
 0x548   :  { %v3137_v30 = vmax.f32 %v3127_v60, 0.0  ;;  %v3490_v6 = vld [vmem:[#allocation3 + $0x2b] sm:$0xff]  ;;  %v11389_v29 = vld [vmem:[%s14478_s30 + $0xc0] sm:$0xff]  }
 0x549   :  { %10414 = vmatmul.mubr.msk.bf16.gmra.mrb[0].mxu0 %vm1839_vm9, %v3175_v40  ;;  %v3155_v56 = vld [vmem:[#allocation3 + $0x38] sm:$0xff]  ;;  %v3371_v10 = vld [vmem:[#allocation3 + $0x2a] sm:$0xff]  ;;  %v11393_v31 = vld [vmem:[%s14478_s30 + $0xe0] sm:$0xff]  }
 0x54a   :  { %3147 = vst.msk [vmem:[#allocation3 + $0x48] sm:$0xff] %vm1839_vm9, %v3137_v30  ;;  %10417 = vmatprep.mubr.msk.bf16.mxu0 %vm11471_vm4, %v11470_v7  ;;  %v3160_v22 = vpack.c.bf16 %v3155_v56, %v3154_v13  ;;  %v3170_v42 = vld [vmem:[#allocation3 + $0x31] sm:$0xff]  ;;  %v11390_v46 = vld [vmem:[%s14478_s30 + $0xc8] sm:$0xff]  }
 0x54b   :  { %v3491_v61 = vld [vmem:[#allocation3 + $0x33] sm:$0xff]  ;;  %v11394_v33 = vld [vmem:[%s14478_s30 + $0xe8] sm:$0xff]  }
 0x54c   :  { %10440 = vmatmul.mubr.msk.bf16.gmra.mrb[244].mxu1 %vm1839_vm9, %v3160_v22  ;;  %v3497_v27 = vpack.c.bf16 %v3491_v61, %v3490_v6  ;;  %v3372_v0 = vld [vmem:[#allocation3 + $0x32] sm:$0xff] }
 0x54d   :  { %10443 = vmatprep.mubr.msk.bf16.mxu1 %vm11471_vm4, %v11470_v7  ;;  %v3378_v12 = vpack.c.bf16 %v3372_v0, %v3371_v10  ;;  %v11395_v40 = vld [vmem:[%s14478_s30 + $0xf0] sm:$0xff]  }
 0x54e   :  { %v3171_v45 = vld [vmem:[#allocation3 + $0x39] sm:$0xff]  ;;  %v3172_v52 = vld [vmem:[#allocation3 + $0x41] sm:$0x7] }
 0x54f   :  { %v3176_v11 = vpack.c.bf16 %v3171_v45, %v3170_v42  ;;  %v3156_v47 = vld [vmem:[#allocation3 + $0x40] sm:$0x7]  ;;  %v3177_v26 = vpack.c.bf16 %v3172_v52, %v3172_v52 }
 0x550   :  { %v3161_v50 = vpack.c.bf16 %v3156_v47, %v3156_v47  ;;  %v3492_v15 = vld [vmem:[#allocation3 + $0x3b] sm:$0xff] }
 0x551   :  { %10418 = vmatmul.mubr.msk.bf16.gmra.mrb[4].mxu0 %vm1839_vm9, %v3176_v11  ;;  %v3493_v39 = vld [vmem:[#allocation3 + $0x43] sm:$0xff]  ;;  %v3373_v9 = vld [vmem:[#allocation3 + $0x3a] sm:$0xff]  ;;  %v3494_v44 = vld [vmem:[#allocation3 + $0x4b] sm:$0x7] }
 0x552   :  { %10421 = vmatprep.mubr.msk.bf16.mxu0 %vm11471_vm4, %v11470_v7  ;;  %v3498_v63 = vpack.c.bf16 %v3493_v39, %v3492_v15  ;;  %v3374_v58 = vld [vmem:[#allocation3 + $0x42] sm:$0xff]  ;;  %v3499_v38 = vpack.c.bf16 %v3494_v44, %v3494_v44  ;;  %v3375_v3 = vld [vmem:[#allocation3 + $0x4a] sm:$0x7] }
 0x553   :  { %v3379_v43 = vpack.c.bf16 %v3374_v58, %v3373_v9  ;;  %v3380_v5 = vpack.c.bf16 %v3375_v3, %v3375_v3 }
 0x554   :  { %10444 = vmatmul.mubr.msk.bf16.gmra.mrb[248].mxu1 %vm1839_vm9, %v3161_v50  ;;  %v11396_v50 = vld [vmem:[%s14478_s30 + $0xf8] sm:$0xff]  }
 0x555   :  { %10471 = vmatprep.mubr.msk.bf16.mxu1 %vm11471_vm4, %v11470_v7 }
 0x559   :  { %10422 = vmatmul.mubr.msk.bf16.gmra.mrb[8].mxu0 %vm1839_vm9, %v3177_v26 }
 0x55a   :  { %10449 = vmatprep.mubr.msk.bf16.mxu0 %vm11471_vm4, %v11470_v7 }
 0x55c   :  { %10472 = vmatmul.mubr.msk.bf16.vlgmr.msra.gmra.mrb[252].mxu1 %vm1839_vm9, %v3495_v54 }
 0x55d   :  { %10475 = vmatprep.mubr.msk.bf16.mxu1 %vm11471_vm4, %v11470_v7  ;;  %10586 = vmatpush3.bf16.msra.mxu1 %v11376_v41 }
 0x55e   :  { %10587 = vmatprep.subr.bf16.mxu1 %v4669_v62 }
 0x561   :  { %10450 = vmatmul.mubr.msk.bf16.vlgmr.msra.gmra.mrb[12].mxu0 %vm1839_vm9, %v3376_v37  ;;  %10588 = vmatpush3.bf16.msra.mxu1 %v4669_v62 }
 0x562   :  { %10453 = vmatprep.mubr.msk.bf16.mxu0 %vm11471_vm4, %v11470_v7  ;;  %10621 = vmatprep.subr.bf16.mxu1 %v11470_v7 }
 0x564   :  { %10476 = vmatmul.mubr.msk.bf16.gmra.mrb[0].mxu1 %vm1839_vm9, %v3496_v35 }
 0x565   :  { %10479 = vmatprep.mubr.msk.bf16.mxu1 %vm11471_vm4, %v11470_v7 }
 0x569   :  { %10454 = vmatmul.mubr.msk.bf16.gmra.mrb[16].mxu0 %vm1839_vm9, %v3377_v49 }
 0x56a   :  { %10457 = vmatprep.mubr.msk.bf16.mxu0 %vm11471_vm4, %v11470_v7 }
 0x56c   :  { %10480 = vmatmul.mubr.msk.bf16.gmra.mrb[4].mxu1 %vm1839_vm9, %v3497_v27 }
 0x56d   :  { %10483 = vmatprep.mubr.msk.bf16.mxu1 %vm11471_vm4, %v11470_v7 }
 0x571   :  { %10458 = vmatmul.mubr.msk.bf16.gmra.mrb[20].mxu0 %vm1839_vm9, %v3378_v12 }
 0x572   :  { %10461 = vmatprep.mubr.msk.bf16.mxu0 %vm11471_vm4, %v11470_v7 }
 0x574   :  { %10484 = vmatmul.mubr.msk.bf16.gmra.mrb[8].mxu1 %vm1839_vm9, %v3498_v63 }
 0x575   :  { %10487 = vmatprep.mubr.msk.bf16.mxu1 %vm11471_vm4, %v11470_v7 }
 0x579   :  { %10462 = vmatmul.mubr.msk.bf16.gmra.mrb[24].mxu0 %vm1839_vm9, %v3379_v43 }
 0x57a   :  { %10465 = vmatprep.mubr.msk.bf16.mxu0 %vm11471_vm4, %v11470_v7 }
 0x57c   :  { %10488 = vmatmul.mubr.msk.bf16.gmra.mrb[12].mxu1 %vm1839_vm9, %v3499_v38 }
 0x57d   :  { %10589 = vmatprep.mubr.msk.bf16.mxu1 %vm191_vm2, %v11378_v16 }
 0x581   :  { %10466 = vmatmul.mubr.msk.bf16.gmra.mrb[28].mxu0 %vm1839_vm9, %v3380_v5 }
 0x582   :  { %10501 = vmatprep.mubr.msk.bf16.mxu0 %vm11471_vm4, %v11470_v7 }
 0x584   :  { %10590 = vmatmul.mubr.msk.bf16.vlgmr.msra.gmra.mrb[16].mxu1 %vm191_vm2, %v11379_v18 }
 0x585   :  { %10593 = vmatprep.mubr.msk.bf16.mxu1 %vm191_vm2, %v11380_v4 }
 0x58c   :  { %10594 = vmatmul.mubr.msk.bf16.gmra.mrb[20].mxu1 %vm191_vm2, %v11381_v53 }
 0x58d   :  { %10597 = vmatprep.mubr.msk.bf16.mxu1 %vm191_vm2, %v11382_v24 }
 0x594   :  { %10598 = vmatmul.mubr.msk.bf16.gmra.mrb[24].mxu1 %vm191_vm2, %v11383_v34 }
 0x595   :  { %10601 = vmatprep.mubr.msk.bf16.mxu1 %vm191_vm2, %v11386_v25 }
 0x59c   :  { %10602 = vmatmul.mubr.msk.bf16.gmra.mrb[28].mxu1 %vm191_vm2, %v11387_v8 }
 0x59d   :  { %10605 = vmatprep.mubr.msk.bf16.mxu1 %vm191_vm2, %v11389_v29  ;;  %v9244_v29 = vld [vmem:[%s14453_s3 + $0x4] sm:$0xf] }
 0x5a4   :  { %10606 = vmatmul.mubr.msk.bf16.gmra.mrb[32].mxu1 %vm191_vm2, %v11390_v46 }
 0x5a5   :  { %10609 = vmatprep.mubr.msk.bf16.mxu1 %vm191_vm2, %v11391_v51  ;;  %v5002_v51 = vsel %vm579_vm3, %v9244_v29, 0 }
 0x5a6   :  { %10622 = vmatpush3.bf16.msra.mxu1 %v5002_v51 }
 0x5a7   :  { %10745 = vmatprep.subr.bf16.mxu1 %v11470_v7 }
 0x5ac   :  { %10610 = vmatmul.mubr.msk.bf16.gmra.mrb[36].mxu1 %vm191_vm2, %v11392_v23 }
 0x5ad   :  { %10613 = vmatprep.mubr.msk.bf16.mxu1 %vm191_vm2, %v11393_v31 }
 0x5b4   :  { %10614 = vmatmul.mubr.msk.bf16.gmra.mrb[40].mxu1 %vm191_vm2, %v11394_v33 }
 0x5b5   :  { %10617 = vmatprep.mubr.msk.bf16.mxu1 %vm191_vm2, %v11395_v40 }
 0x5bc   :  { %10618 = vmatmul.mubr.msk.bf16.gmra.mrb[44].mxu1 %vm191_vm2, %v11396_v50 }
 0x5bd   :  { %10623 = vmatprep.mubr.msk.bf16.mxu1 %vm11471_vm4, %v11470_v7 }
 0x606   :  { %v3329_v17 = vpop.f32.mrb[232].mxu1 }
 0x607   :  { %v10429_v32 = vpop.f32.mrb[233].mxu1 }
 0x608   :  { %v3332_v60 = vpop.f32.mrb[234].mxu1  ;;  %v12745_v32 = vld [vmem:[%s14463_s11] ss:$0 sm:$0xff] }
 0x609   :  { %v10430_v30 = vpop.f32.mrb[235].mxu1 }
 0x60c   :  { %v3236_v13 = vpop.f32.mrb[248].mxu0 }
 0x60d   :  { %v3330_v56 = vadd.f32 %v3329_v17, %v3236_v13  ;;  %v10407_v22 = vpop.f32.mrb[249].mxu0 }
 0x60e   :  { %v3239_v42 = vpop.f32.mrb[250].mxu0  ;;  %v3337_v11 = vpop.f32.mrb[236].mxu1 }
 0x60f   :  { %v3333_v45 = vadd.f32 %v3332_v60, %v3239_v42  ;;  %v10408_v47 = vpop.f32.mrb[251].mxu0  ;;  %v10433_v52 = vpop.f32.mrb[237].mxu1 }
 0x610   :  { %v3340_v26 = vpop.f32.mrb[238].mxu1 }
 0x611   :  { %v10434_v28 = vpop.f32.mrb[239].mxu1 }
 0x614   :  { %v3244_v57 = vpop.f32.mrb[252].mxu0 }
 0x615   :  { %v12723_v54 = vadd.f32 %v3337_v11, %v3244_v57  ;;  %v10411_v19 = vpop.f32.mrb[253].mxu0 }
 0x616   :  { %v3247_v55 = vpop.f32.mrb[254].mxu0 }
 0x617   :  { %v12725_v37 = vadd.f32 %v3340_v26, %v3247_v55  ;;  %v10412_v2 = vpop.f32.mrb[255].mxu0  ;;  %v3345_v36 = vpop.f32.mrb[240].mxu1 }
 0x618   :  { %v10437_v35 = vpop.f32.mrb[241].mxu1 }
 0x619   :  { %v3348_v59 = vpop.f32.mrb[242].mxu1 }
 0x61a   :  { %v10438_v20 = vpop.f32.mrb[243].mxu1 }
 0x61c   :  { %v3252_v49 = vpop.f32.mrb[0].mxu0 }
 0x61d   :  { %v12727_v61 = vadd.f32 %v3345_v36, %v3252_v49  ;;  %v10415_v6 = vpop.f32.mrb[1].mxu0 }
 0x61e   :  { %v3255_v27 = vpop.f32.mrb[2].mxu0 }
 0x61f   :  { %v12729_v0 = vadd.f32 %v3348_v59, %v3255_v27  ;;  %v10416_v10 = vpop.f32.mrb[3].mxu0  ;;  %v3353_v12 = vpop.f32.mrb[244].mxu1 }
 0x620   :  { %v10441_v39 = vpop.f32.mrb[245].mxu1 }
 0x621   :  { %v3356_v15 = vpop.f32.mrb[246].mxu1 }
 0x622   :  { %v10442_v63 = vpop.f32.mrb[247].mxu1 }
 0x624   :  { %v3260_v58 = vpop.f32.mrb[4].mxu0 }
 0x625   :  { %v12731_v9 = vadd.f32 %v3353_v12, %v3260_v58  ;;  %v10419_v43 = vpop.f32.mrb[5].mxu0 }
 0x626   :  { %v3263_v44 = vpop.f32.mrb[6].mxu0 }
 0x627   :  { %v12733_v38 = vadd.f32 %v3356_v15, %v3263_v44  ;;  %v10420_v3 = vpop.f32.mrb[7].mxu0  ;;  %v3361_v5 = vpop.f32.mrb[248].mxu1 }
 0x628   :  { %v10445_v41 = vpop.f32.mrb[249].mxu1 }
 0x629   :  { %v3364_v48 = vpop.f32.mrb[250].mxu1 }
 0x62a   :  { %v10446_v62 = vpop.f32.mrb[251].mxu1 }
 0x62c   :  { %v3268_v16 = vpop.f32.mrb[8].mxu0 }
 0x62d   :  { %v12735_v18 = vadd.f32 %v3361_v5, %v3268_v16  ;;  %v10423_v4 = vpop.f32.mrb[9].mxu0 }
 0x62e   :  { %v3271_v53 = vpop.f32.mrb[10].mxu0 }
 0x62f   :  { %v10424_v24 = vpop.f32.mrb[11].mxu0  ;;  %v3558_v34 = vpop.f32.mrb[252].mxu1 }
 0x630   :  { %v10473_v25 = vpop.f32.mrb[253].mxu1 }
 0x631   :  { %v3561_v8 = vpop.f32.mrb[254].mxu1 }
 0x632   :  { %v10474_v46 = vpop.f32.mrb[255].mxu1 }
 0x634   :  { %v3439_v23 = vpop.f32.mrb[12].mxu0 }
 0x635   :  { %v3477_v31 = vadd.f32 %v3439_v23, %v3330_v56  ;;  %v10451_v17 = vpop.f32.mrb[13].mxu0  ;;  %v12751_v56 = vld [vmem:[%s14464_s12] ss:$0 sm:$0xff] }
 0x636   :  { %v3442_v33 = vpop.f32.mrb[14].mxu0 }
 0x637   :  { %v3596_v60 = vadd.f32 %v3558_v34, %v3477_v31  ;;  %v3478_v40 = vadd.f32 %v3442_v33, %v3333_v45  ;;  %v10452_v30 = vpop.f32.mrb[15].mxu0  ;;  %v3566_v13 = vpop.f32.mrb[0].mxu1  ;;  %v12757_v45 = vld [vmem:[%s14465_s13] ss:$0 sm:$0xff] }
 0x638   :  { %v10477_v11 = vpop.f32.mrb[1].mxu1 }
 0x639   :  { %v3612_v22 = vadd.f32 %v12745_v32, %v3596_v60  ;;  %v3597_v42 = vadd.f32 %v3561_v8, %v3478_v40  ;;  %v3569_v47 = vpop.f32.mrb[2].mxu1 }
 0x63a   :  { %v10478_v26 = vpop.f32.mrb[3].mxu1 }
 0x63b   :  { %v3621_v50 = vmax.f32 %v3612_v22, 0.0  ;;  %v3613_v52 = vadd.f32 %v12745_v32, %v3597_v42 }
 0x63c   :  { %v3447_v28 = vpop.f32.mrb[16].mxu0 }
 0x63d   :  { %v3637_v57 = vmul.f32 %v12751_v56, %v3621_v50  ;;  %v3622_v19 = vmax.f32 %v3613_v52, 0.0  ;;  %v3479_v55 = vadd.f32 %v3447_v28, %v12723_v54  ;;  %v10455_v2 = vpop.f32.mrb[17].mxu0 }
 0x63e   :  { %v3450_v36 = vpop.f32.mrb[18].mxu0 }
 0x63f   :  { %v3638_v35 = vmul.f32 %v12751_v56, %v3622_v19  ;;  %v3598_v59 = vadd.f32 %v3566_v13, %v3479_v55  ;;  %v3480_v20 = vadd.f32 %v3450_v36, %v12725_v37  ;;  %v10456_v49 = vpop.f32.mrb[19].mxu0  ;;  %v3574_v6 = vpop.f32.mrb[4].mxu1  ;;  %v3653_v39 = vadd.f32 %v12757_v45, %v3637_v57 }
 0x640   :  { %v10481_v12 = vpop.f32.mrb[5].mxu1 }
 0x641   :  { %v3614_v27 = vadd.f32 %v12745_v32, %v3598_v59  ;;  %v3599_v10 = vadd.f32 %v3569_v47, %v3480_v20  ;;  %v3654_v15 = vadd.f32 %v12757_v45, %v3638_v35  ;;  %v3577_v63 = vpop.f32.mrb[6].mxu1 }
 0x642   :  { %v10482_v43 = vpop.f32.mrb[7].mxu1 }
 0x643   :  { %v3623_v58 = vmax.f32 %v3614_v27, 0.0  ;;  %v3615_v54 = vadd.f32 %v12745_v32, %v3599_v10  ;;  %v3667_v44 = vpack.c.bf16 %v3654_v15, %v3653_v39 }
 0x644   :  { %v3455_v3 = vpop.f32.mrb[20].mxu0 }
 0x645   :  { %v3639_v5 = vmul.f32 %v12751_v56, %v3623_v58  ;;  %v3624_v37 = vmax.f32 %v3615_v54, 0.0  ;;  %v3481_v41 = vadd.f32 %v3455_v3, %v12727_v61  ;;  %v10459_v48 = vpop.f32.mrb[21].mxu0  ;;  %10492 = vmatpush3.bf16.msra.mxu0 %v3667_v44 }
 0x646   :  { %v3458_v62 = vpop.f32.mrb[22].mxu0  ;;  %10493 = vmatprep.subr.bf16.mxu0 %v11470_v7 }
 0x647   :  { %v3640_v16 = vmul.f32 %v12751_v56, %v3624_v37  ;;  %v3600_v4 = vadd.f32 %v3574_v6, %v3481_v41  ;;  %v3482_v53 = vadd.f32 %v3458_v62, %v12729_v0  ;;  %v10460_v24 = vpop.f32.mrb[23].mxu0  ;;  %v3582_v34 = vpop.f32.mrb[8].mxu1  ;;  %v3655_v46 = vadd.f32 %v12757_v45, %v3639_v5  ;;  %v12821_v62 = vld [vmem:[%s14454_s2] ss:$0 sm:$0xff] }
 0x648   :  { %v10485_v29 = vpop.f32.mrb[9].mxu1 }
 0x649   :  { %v3616_v25 = vadd.f32 %v12745_v32, %v3600_v4  ;;  %v3601_v8 = vadd.f32 %v3577_v63, %v3482_v53  ;;  %v3656_v61 = vadd.f32 %v12757_v45, %v3640_v16  ;;  %v3585_v51 = vpop.f32.mrb[10].mxu1 }
 0x64a   :  { %v10486_v17 = vpop.f32.mrb[11].mxu1 }
 0x64b   :  { %v3625_v23 = vmax.f32 %v3616_v25, 0.0  ;;  %v3617_v31 = vadd.f32 %v12745_v32, %v3601_v8  ;;  %v3668_v33 = vpack.c.bf16 %v3656_v61, %v3655_v46 }
 0x64c   :  { %v3463_v60 = vpop.f32.mrb[24].mxu0 }
 0x64d   :  { %v3641_v40 = vmul.f32 %v12751_v56, %v3625_v23  ;;  %v3626_v0 = vmax.f32 %v3617_v31, 0.0  ;;  %v3483_v30 = vadd.f32 %v3463_v60, %v12731_v9  ;;  %v10463_v13 = vpop.f32.mrb[25].mxu0  ;;  %10494 = vmatpush3.bf16.msra.mxu0 %v3668_v33 }
 0x64e   :  { %v3466_v22 = vpop.f32.mrb[26].mxu0  ;;  %10495 = vmatprep.subr.bf16.mxu0 %v11470_v7 }
 0x64f   :  { %v3642_v42 = vmul.f32 %v12751_v56, %v3626_v0  ;;  %v3602_v11 = vadd.f32 %v3582_v34, %v3483_v30  ;;  %v3484_v47 = vadd.f32 %v3466_v22, %v12733_v38  ;;  %v10464_v50 = vpop.f32.mrb[27].mxu0  ;;  %v3590_v52 = vpop.f32.mrb[12].mxu1  ;;  %v3657_v19 = vadd.f32 %v12757_v45, %v3641_v40 }
 0x650   :  { %v10489_v57 = vpop.f32.mrb[13].mxu1 }
 0x651   :  { %v3618_v26 = vadd.f32 %v12745_v32, %v3602_v11  ;;  %v3603_v28 = vadd.f32 %v3585_v51, %v3484_v47  ;;  %v3658_v9 = vadd.f32 %v12757_v45, %v3642_v42  ;;  %v3593_v55 = vpop.f32.mrb[14].mxu1 }
 0x652   :  { %v10490_v35 = vpop.f32.mrb[15].mxu1 }
 0x653   :  { %v3627_v2 = vmax.f32 %v3618_v26, 0.0  ;;  %v3619_v36 = vadd.f32 %v12745_v32, %v3603_v28  ;;  %v3669_v59 = vpack.c.bf16 %v3658_v9, %v3657_v19 }
 0x654   :  { %v3471_v20 = vpop.f32.mrb[28].mxu0 }
 0x655   :  { %v3643_v49 = vmul.f32 %v12751_v56, %v3627_v2  ;;  %v3628_v38 = vmax.f32 %v3619_v36, 0.0  ;;  %v3485_v6 = vadd.f32 %v3471_v20, %v12735_v18  ;;  %v10467_v27 = vpop.f32.mrb[29].mxu0  ;;  %10496 = vmatpush3.bf16.msra.mxu0 %v3669_v59  ;;  %v3697_v18 = vsel %vm3695_vm11, 4294967295, %v11469_v1  ;;  %v11384_v1 = vld [vmem:[%s14462_s14] sm:$0xff]   ;;  %v11398_v20 = vld [vmem:[%s14466_s15 + $0x8] sm:$0xff]  }
 0x656   :  { %v3474_v10 = vpop.f32.mrb[30].mxu0  ;;  %10497 = vmatprep.subr.bf16.mxu0 %v11470_v7  ;;  %v12796_v37 = vsel %vm3696_vm12, %v3697_v18, 0 }
 0x657   :  { %v3644_v12 = vmul.f32 %v12751_v56, %v3628_v38  ;;  %v3604_v39 = vadd.f32 %v3590_v52, %v3485_v6  ;;  %v10468_v15 = vpop.f32.mrb[31].mxu0  ;;  %v3659_v58 = vadd.f32 %v12757_v45, %v3643_v49  ;;  %14480 = vst [vmem:[#allocation7_spill] sm:$0xff] %v12796_v37  ;;  %v10591_v16 = vpop.f32.mrb[16].mxu1 }
 0x658   :  { %v4714_v4 = vadd.f32 %v10591_v16, %v12821_v62  ;;  %v4705_v53 = vpop.f32.mrb[17].mxu1  ;;  %v12882_v15 = vld [vmem:[%s14466_s15 + $0x10] sm:$0xff]  }
 0x659   :  { %v3620_v63 = vadd.f32 %v12745_v32, %v3604_v39  ;;  %v3660_v54 = vadd.f32 %v12757_v45, %v3644_v12  ;;  %v11397_v32 = vld [vmem:[%s14466_s15] sm:$0xff]   ;;  %v4706_v24 = vadd.f32 %v12821_v62, %v4705_v53  ;;  %v10592_v34 = vpop.f32.mrb[18].mxu1 }
 0x65a   :  { %4834 = vst.msk [vmem:[#allocation2 + $0x10] sm:$0xff] %vm408_vm5, %v4714_v4  ;;  %v4717_v25 = vadd.f32 %v10592_v34, %v12821_v62  ;;  %v4708_v8 = vpop.f32.mrb[19].mxu1 }
 0x65b   :  { %v3629_v43 = vmax.f32 %v3620_v63, 0.0  ;;  %v3670_v44 = vpack.c.bf16 %v3660_v54, %v3659_v58  ;;  %4832 = vst.msk [vmem:[#allocation2] sm:$0xff] %vm408_vm5, %v4706_v24  ;;  %v4709_v29 = vadd.f32 %v12821_v62, %v4708_v8 }
 0x65c   :  { %4835 = vst.msk [vmem:[#allocation2 + $0x18] sm:$0xff] %vm408_vm5, %v4717_v25 }
 0x65d   :  { %v3645_v3 = vmul.f32 %v12751_v56, %v3629_v43  ;;  %10498 = vmatpush3.bf16.msra.mxu0 %v3670_v44  ;;  %v11385_v56 = vld [vmem:[%s14462_s14 + $0x8] sm:$0xff]   ;;  %4833 = vst.msk [vmem:[#allocation2 + $0x8] sm:$0xff] %vm408_vm5, %v4709_v29 }
 0x65e   :  { %10499 = vmatprep.subr.bf16.mxu0 %v11470_v7 }
 0x65f   :  { %v3661_v5 = vadd.f32 %v12757_v45, %v3645_v3  ;;  %v11388_v45 = vld [vmem:[%s14462_s14 + $0x10] ss:$0 sps:$4 sm:$0x77]   ;;  %v10595_v46 = vpop.f32.mrb[20].mxu1 }
 0x660   :  { %v4730_v61 = vadd.f32 %v10595_v46, %v12821_v62  ;;  %v4721_v51 = vpop.f32.mrb[21].mxu1 }
 0x661   :  { %v3671_v41 = vpack.c.bf16 %v3661_v5, %v3661_v5  ;;  %v4722_v23 = vadd.f32 %v12821_v62, %v4721_v51  ;;  %v10596_v31 = vpop.f32.mrb[22].mxu1 }
 0x662   :  { %4838 = vst.msk [vmem:[#allocation2 + $0x30] sm:$0xff] %vm408_vm5, %v4730_v61  ;;  %v4733_v60 = vadd.f32 %v10596_v31, %v12821_v62  ;;  %v4724_v40 = vpop.f32.mrb[23].mxu1 }
 0x663   :  { %v3700_v48 = vand.u32 %v12796_v37, %v3671_v41  ;;  %4836 = vst.msk [vmem:[#allocation2 + $0x20] sm:$0xff] %vm408_vm5, %v4722_v23  ;;  %v4725_v30 = vadd.f32 %v12821_v62, %v4724_v40  ;;  %v4912_v13 = vld [vmem:[#allocation2 + $0x11] sm:$0xff] }
 0x664   :  { %v4910_v17 = vld [vmem:[#allocation2 + $0x1] sm:$0xff]  ;;  %v4911_v33 = vld [vmem:[#allocation2 + $0x9] sm:$0xff]  ;;  %4839 = vst.msk [vmem:[#allocation2 + $0x38] sm:$0xff] %vm408_vm5, %v4733_v60 }
 0x665   :  { %10500 = vmatpush3.bf16.msra.mxu0 %v3700_v48  ;;  %v4940_v0 = vpack.c.bf16 %v4911_v33, %v4910_v17  ;;  %4837 = vst.msk [vmem:[#allocation2 + $0x28] sm:$0xff] %vm408_vm5, %v4725_v30 }
 0x666   :  { %10513 = vmatprep.subr.bf16.mxu0 %v11397_v32 }
 0x667   :  { %10624 = vmatmul.mubr.msk.bf16.vlgmr.msra.gmra.mrb[48].mxu1 %vm408_vm5, %v4940_v0  ;;  %v10599_v11 = vpop.f32.mrb[24].mxu1 }
 0x668   :  { %10502 = vmatmul.mubr.msk.bf16.vlgmr.msra.gmra.mrb[32].mxu0 %vm3685_vm13, %v11384_v1  ;;  %10627 = vmatprep.mubr.msk.bf16.mxu1 %vm11471_vm4, %v11470_v7  ;;  %v4746_v47 = vadd.f32 %v10599_v11, %v12821_v62  ;;  %v4737_v50 = vpop.f32.mrb[25].mxu1 }
 0x669   :  { %10505 = vmatprep.mubr.msk.bf16.mxu0 %vm11471_vm4, %v11470_v7  ;;  %10514 = vmatpush3.bf16.msra.mxu0 %v11397_v32  ;;  %v4738_v52 = vadd.f32 %v12821_v62, %v4737_v50  ;;  %v10600_v57 = vpop.f32.mrb[26].mxu1 }
 0x66a   :  { %v4913_v22 = vld [vmem:[#allocation2 + $0x19] sm:$0xff]  ;;  %4842 = vst.msk [vmem:[#allocation2 + $0x50] sm:$0xff] %vm408_vm5, %v4746_v47  ;;  %v4749_v19 = vadd.f32 %v10600_v57, %v12821_v62  ;;  %v4740_v55 = vpop.f32.mrb[27].mxu1  ;;  %10515 = vmatprep.subr.bf16.mxu0 %v11398_v20 }
 0x66b   :  { %v12842_v42 = vpack.c.bf16 %v4913_v22, %v4912_v13  ;;  %4840 = vst.msk [vmem:[#allocation2 + $0x40] sm:$0xff] %vm408_vm5, %v4738_v52  ;;  %v4741_v2 = vadd.f32 %v12821_v62, %v4740_v55  ;;  %v4916_v36 = vld [vmem:[#allocation2 + $0x31] sm:$0xff] }
 0x66c   :  { %v4914_v26 = vld [vmem:[#allocation2 + $0x21] sm:$0xff]  ;;  %v4915_v28 = vld [vmem:[#allocation2 + $0x29] sm:$0xff]  ;;  %4843 = vst.msk [vmem:[#allocation2 + $0x58] sm:$0xff] %vm408_vm5, %v4749_v19 }
 0x66d   :  { %v12853_v9 = vpack.c.bf16 %v4915_v28, %v4914_v26  ;;  %4841 = vst.msk [vmem:[#allocation2 + $0x48] sm:$0xff] %vm408_vm5, %v4741_v2  ;;  %10516 = vmatpush3.bf16.msra.mxu0 %v11398_v20 }
 0x66e   :  { %10521 = vmatprep.subr.bf16.mxu0 %v12882_v15 }
 0x66f   :  { %10628 = vmatmul.mubr.msk.bf16.gmra.mrb[52].mxu1 %vm408_vm5, %v12842_v42  ;;  %v10603_v49 = vpop.f32.mrb[28].mxu1 }
 0x670   :  { %10506 = vmatmul.mubr.msk.bf16.gmra.mrb[36].mxu0 %vm3685_vm13, %v11385_v56  ;;  %10631 = vmatprep.mubr.msk.bf16.mxu1 %vm11471_vm4, %v11470_v7  ;;  %v4762_v38 = vadd.f32 %v10603_v49, %v12821_v62  ;;  %v4753_v6 = vpop.f32.mrb[29].mxu1 }
 0x671   :  { %10509 = vmatprep.mubr.msk.bf16.mxu0 %vm11471_vm4, %v11470_v7  ;;  %v4754_v27 = vadd.f32 %v12821_v62, %v4753_v6  ;;  %v10604_v63 = vpop.f32.mrb[30].mxu1 }
 0x672   :  { %v4917_v35 = vld [vmem:[#allocation2 + $0x39] sm:$0xff]  ;;  %4846 = vst.msk [vmem:[#allocation2 + $0x70] sm:$0xff] %vm408_vm5, %v4762_v38  ;;  %v4765_v58 = vadd.f32 %v10604_v63, %v12821_v62  ;;  %v4756_v54 = vpop.f32.mrb[31].mxu1 }
 0x673   :  { %v12862_v59 = vpack.c.bf16 %v4917_v35, %v4916_v36  ;;  %4844 = vst.msk [vmem:[#allocation2 + $0x60] sm:$0xff] %vm408_vm5, %v4754_v27  ;;  %v4757_v43 = vadd.f32 %v12821_v62, %v4756_v54  ;;  %v4920_v44 = vld [vmem:[#allocation2 + $0x51] sm:$0xff] }
 0x674   :  { %v4918_v10 = vld [vmem:[#allocation2 + $0x41] sm:$0xff]  ;;  %v4919_v12 = vld [vmem:[#allocation2 + $0x49] sm:$0xff]  ;;  %4847 = vst.msk [vmem:[#allocation2 + $0x78] sm:$0xff] %vm408_vm5, %v4765_v58 }
 0x675   :  { %v12875_v39 = vpack.c.bf16 %v4919_v12, %v4918_v10  ;;  %4845 = vst.msk [vmem:[#allocation2 + $0x68] sm:$0xff] %vm408_vm5, %v4757_v43 }
 0x677   :  { %10632 = vmatmul.mubr.msk.bf16.gmra.mrb[56].mxu1 %vm408_vm5, %v12853_v9  ;;  %v10607_v5 = vpop.f32.mrb[32].mxu1 }
 0x678   :  { %10510 = vmatmul.mubr.msk.bf16.gmra.mrb[40].mxu0 %vm3685_vm13, %v11388_v45  ;;  %10635 = vmatprep.mubr.msk.bf16.mxu1 %vm11471_vm4, %v11470_v7  ;;  %v4778_v41 = vadd.f32 %v10607_v5, %v12821_v62  ;;  %v4769_v32 = vpop.f32.mrb[33].mxu1 }
 0x679   :  { %v4770_v48 = vadd.f32 %v12821_v62, %v4769_v32  ;;  %v10608_v1 = vpop.f32.mrb[34].mxu1 }
 0x67a   :  { %v4921_v18 = vld [vmem:[#allocation2 + $0x59] sm:$0xff]  ;;  %4850 = vst.msk [vmem:[#allocation2 + $0x90] sm:$0xff] %vm408_vm5, %v4778_v41  ;;  %v4781_v56 = vadd.f32 %v10608_v1, %v12821_v62  ;;  %v4772_v4 = vpop.f32.mrb[35].mxu1 }
 0x67b   :  { %v12891_v3 = vpack.c.bf16 %v4921_v18, %v4920_v44  ;;  %4848 = vst.msk [vmem:[#allocation2 + $0x80] sm:$0xff] %vm408_vm5, %v4770_v48  ;;  %v4773_v24 = vadd.f32 %v12821_v62, %v4772_v4  ;;  %v4924_v34 = vld [vmem:[#allocation2 + $0x71] sm:$0xff] }
 0x67c   :  { %v4922_v45 = vld [vmem:[#allocation2 + $0x61] sm:$0xff]  ;;  %v4923_v16 = vld [vmem:[#allocation2 + $0x69] sm:$0xff]  ;;  %4851 = vst.msk [vmem:[#allocation2 + $0x98] sm:$0xff] %vm408_vm5, %v4781_v56  ;;  %v5359_v4 = vld [vmem:[#allocation2 + $0x18] sm:$0xff] }
 0x67d   :  { %v12903_v53 = vpack.c.bf16 %v4923_v16, %v4922_v45  ;;  %4849 = vst.msk [vmem:[#allocation2 + $0x88] sm:$0xff] %vm408_vm5, %v4773_v24  ;;  %v9275_v56 = vld [vmem:[%s14453_s3 + $0x8] sm:$0xf]  ;;  %v5358_v16 = vld [vmem:[#allocation2 + $0x10] sm:$0xff] }
 0x67e   :  { %v5450_v45 = vsel %vm579_vm3, %v9275_v56, 0  ;;  %v12988_v24 = vpack.c.bf16 %v5359_v4, %v5358_v16  ;;  %v11402_v16 = vld [vmem:[%s14466_s15 + $0x28] sm:$0xff]  }
 0x67f   :  { %10636 = vmatmul.mubr.msk.bf16.gmra.mrb[60].mxu1 %vm408_vm5, %v12862_v59  ;;  %v10611_v8 = vpop.f32.mrb[36].mxu1 }
 0x680   :  { %10639 = vmatprep.mubr.msk.bf16.mxu1 %vm11471_vm4, %v11470_v7  ;;  %v4794_v46 = vadd.f32 %v10611_v8, %v12821_v62  ;;  %v4785_v61 = vpop.f32.mrb[37].mxu1  ;;  %10746 = vmatpush3.bf16.msra.mxu1 %v5450_v45 }
 0x681   :  { %v4786_v51 = vadd.f32 %v12821_v62, %v4785_v61  ;;  %v10612_v33 = vpop.f32.mrb[38].mxu1  ;;  %6165 = vmatprep.subr.bf16.mxu1 %v14471_v21  ;;  %v5363_v61 = vld [vmem:[#allocation2 + $0x38] sm:$0xff] }
 0x682   :  { %v4925_v25 = vld [vmem:[#allocation2 + $0x79] sm:$0xff]  ;;  %4854 = vst.msk [vmem:[#allocation2 + $0xb0] sm:$0xff] %vm408_vm5, %v4794_v46  ;;  %v4797_v60 = vadd.f32 %v10612_v33, %v12821_v62  ;;  %v4788_v40 = vpop.f32.mrb[39].mxu1  ;;  %v5362_v46 = vld [vmem:[#allocation2 + $0x30] sm:$0xff] }
 0x683   :  { %v12911_v29 = vpack.c.bf16 %v4925_v25, %v4924_v34  ;;  %4852 = vst.msk [vmem:[#allocation2 + $0xa0] sm:$0xff] %vm408_vm5, %v4786_v51  ;;  %v4789_v0 = vadd.f32 %v12821_v62, %v4788_v40  ;;  %v4928_v13 = vld [vmem:[#allocation2 + $0x91] sm:$0xff]  ;;  %v5360_v34 = vld [vmem:[#allocation2 + $0x20] sm:$0xff]  ;;  %v5361_v25 = vld [vmem:[#allocation2 + $0x28] sm:$0xff]  ;;  %v13000_v51 = vpack.c.bf16 %v5363_v61, %v5362_v46 }
 0x684   :  { %v4926_v23 = vld [vmem:[#allocation2 + $0x81] sm:$0xff]  ;;  %v4927_v31 = vld [vmem:[#allocation2 + $0x89] sm:$0xff]  ;;  %4855 = vst.msk [vmem:[#allocation2 + $0xb8] sm:$0xff] %vm408_vm5, %v4797_v60  ;;  %v12994_v8 = vpack.c.bf16 %v5361_v25, %v5360_v34 }
 0x685   :  { %v12921_v17 = vpack.c.bf16 %v4927_v31, %v4926_v23  ;;  %4853 = vst.msk [vmem:[#allocation2 + $0xa8] sm:$0xff] %vm408_vm5, %v4789_v0  ;;  %v5364_v40 = vld [vmem:[#allocation2 + $0x40] sm:$0xff]  ;;  %v5365_v0 = vld [vmem:[#allocation2 + $0x48] sm:$0xff]  ;;  %v11403_v25 = vld [vmem:[%s14466_s15 + $0x30] sm:$0xff]  }
 0x686   :  { %v5372_v46 = vld [vmem:[#allocation2 + $0x80] sm:$0xff]  ;;  %v5373_v61 = vld [vmem:[#allocation2 + $0x88] sm:$0xff] }
 0x687   :  { %10640 = vmatmul.mubr.msk.bf16.gmra.mrb[64].mxu1 %vm408_vm5, %v12875_v39  ;;  %v10615_v30 = vpop.f32.mrb[40].mxu1 }
 0x688   :  { %10643 = vmatprep.mubr.msk.bf16.mxu1 %vm11471_vm4, %v11470_v7  ;;  %v4810_v11 = vadd.f32 %v10615_v30, %v12821_v62  ;;  %v4801_v47 = vpop.f32.mrb[41].mxu1  ;;  %v13008_v30 = vpack.c.bf16 %v5365_v0, %v5364_v40  ;;  %v11404_v0 = vld [vmem:[%s14466_s15 + $0x38] sm:$0xff]  }
 0x689   :  { %v4802_v52 = vadd.f32 %v12821_v62, %v4801_v47  ;;  %v10616_v57 = vpop.f32.mrb[42].mxu1 }
 0x68a   :  { %v4929_v22 = vld [vmem:[#allocation2 + $0x99] sm:$0xff]  ;;  %4858 = vst.msk [vmem:[#allocation2 + $0xd0] sm:$0xff] %vm408_vm5, %v4810_v11  ;;  %v4813_v55 = vadd.f32 %v10616_v57, %v12821_v62  ;;  %v4804_v2 = vpop.f32.mrb[43].mxu1  ;;  %v5366_v57 = vld [vmem:[#allocation2 + $0x50] sm:$0xff] }
 0x68b   :  { %v12933_v50 = vpack.c.bf16 %v4929_v22, %v4928_v13  ;;  %4856 = vst.msk [vmem:[#allocation2 + $0xc0] sm:$0xff] %vm408_vm5, %v4802_v52  ;;  %v4805_v36 = vadd.f32 %v12821_v62, %v4804_v2  ;;  %v4932_v35 = vld [vmem:[#allocation2 + $0xb1] sm:$0xff] }
 0x68c   :  { %v4930_v26 = vld [vmem:[#allocation2 + $0xa1] sm:$0xff]  ;;  %v4931_v28 = vld [vmem:[#allocation2 + $0xa9] sm:$0xff]  ;;  %4859 = vst.msk [vmem:[#allocation2 + $0xd8] sm:$0xff] %vm408_vm5, %v4813_v55  ;;  %v5367_v55 = vld [vmem:[#allocation2 + $0x58] sm:$0xff] }
 0x68d   :  { %v12941_v19 = vpack.c.bf16 %v4931_v28, %v4930_v26  ;;  %4857 = vst.msk [vmem:[#allocation2 + $0xc8] sm:$0xff] %vm408_vm5, %v4805_v36  ;;  %v13020_v2 = vpack.c.bf16 %v5367_v55, %v5366_v57  ;;  %v5376_v55 = vld [vmem:[#allocation2 + $0xa0] sm:$0xff] }
 0x68f   :  { %10644 = vmatmul.mubr.msk.bf16.gmra.mrb[68].mxu1 %vm408_vm5, %v12891_v3  ;;  %v10619_v38 = vpop.f32.mrb[44].mxu1 }
 0x690   :  { %10647 = vmatprep.mubr.msk.bf16.mxu1 %vm11471_vm4, %v11470_v7  ;;  %v4826_v6 = vadd.f32 %v10619_v38, %v12821_v62  ;;  %v4817_v27 = vpop.f32.mrb[45].mxu1 }
 0x691   :  { %v4818_v10 = vadd.f32 %v12821_v62, %v4817_v27  ;;  %v10620_v12 = vpop.f32.mrb[46].mxu1 }
 0x692   :  { %v4933_v20 = vld [vmem:[#allocation2 + $0xb9] sm:$0xff]  ;;  %4862 = vst.msk [vmem:[#allocation2 + $0xf0] sm:$0xff] %vm408_vm5, %v4826_v6  ;;  %v4829_v54 = vadd.f32 %v10620_v12, %v12821_v62  ;;  %v4820_v43 = vpop.f32.mrb[47].mxu1 }
 0x693   :  { %v12951_v49 = vpack.c.bf16 %v4933_v20, %v4932_v35  ;;  %4860 = vst.msk [vmem:[#allocation2 + $0xe0] sm:$0xff] %vm408_vm5, %v4818_v10  ;;  %v4821_v18 = vadd.f32 %v12821_v62, %v4820_v43  ;;  %v4936_v5 = vld [vmem:[#allocation2 + $0xd1] sm:$0xff]  ;;  %v11401_v43 = vld [vmem:[%s14466_s15 + $0x20] sm:$0xff]  }
 0x694   :  { %v4934_v63 = vld [vmem:[#allocation2 + $0xc1] sm:$0xff]  ;;  %v4935_v58 = vld [vmem:[#allocation2 + $0xc9] sm:$0xff]  ;;  %4863 = vst.msk [vmem:[#allocation2 + $0xf8] sm:$0xff] %vm408_vm5, %v4829_v54  ;;  %v11400_v10 = vld [vmem:[%s14466_s15 + $0x18] sm:$0xff]  }
 0x695   :  { %v12963_v44 = vpack.c.bf16 %v4935_v58, %v4934_v63  ;;  %4861 = vst.msk [vmem:[#allocation2 + $0xe8] sm:$0xff] %vm408_vm5, %v4821_v18  ;;  %v5368_v54 = vld [vmem:[#allocation2 + $0x60] sm:$0xff]  ;;  %v5369_v18 = vld [vmem:[#allocation2 + $0x68] sm:$0xff] }
 0x697   :  { %10648 = vmatmul.mubr.msk.bf16.gmra.mrb[72].mxu1 %vm408_vm5, %v12903_v53 }
 0x698   :  { %10651 = vmatprep.mubr.msk.bf16.mxu1 %vm11471_vm4, %v11470_v7 }
 0x69a   :  { %v4937_v41 = vld [vmem:[#allocation2 + $0xd9] sm:$0xff] }
 0x69b   :  { %v12971_v32 = vpack.c.bf16 %v4937_v41, %v4936_v5  ;;  %v13040_v5 = vpack.c.bf16 %v5369_v18, %v5368_v54 }
 0x69c   :  { %v12977_v48 = vld [vmem:[#allocation2 + $0xe1] sm:$0xff]  ;;  %v4939_v62 = vld [vmem:[#allocation2 + $0xe9] sm:$0x7f] }
 0x69d   :  { %v4954_v1 = vpack.c.bf16 %v4939_v62, %v12977_v48 }
 0x69f   :  { %10652 = vmatmul.mubr.msk.bf16.gmra.mrb[76].mxu1 %vm408_vm5, %v12911_v29 }
 0x6a0   :  { %10655 = vmatprep.mubr.msk.bf16.mxu1 %vm11471_vm4, %v11470_v7 }
 0x6a7   :  { %10656 = vmatmul.mubr.msk.bf16.gmra.mrb[80].mxu1 %vm408_vm5, %v12921_v17 }
 0x6a8   :  { %10659 = vmatprep.mubr.msk.bf16.mxu1 %vm11471_vm4, %v11470_v7 }
 0x6af   :  { %10660 = vmatmul.mubr.msk.bf16.gmra.mrb[84].mxu1 %vm408_vm5, %v12933_v50 }
 0x6b0   :  { %10663 = vmatprep.mubr.msk.bf16.mxu1 %vm11471_vm4, %v11470_v7 }
 0x6b7   :  { %10664 = vmatmul.mubr.msk.bf16.gmra.mrb[88].mxu1 %vm408_vm5, %v12941_v19 }
 0x6b8   :  { %10667 = vmatprep.mubr.msk.bf16.mxu1 %vm11471_vm4, %v11470_v7 }
 0x6bf   :  { %10668 = vmatmul.mubr.msk.bf16.gmra.mrb[92].mxu1 %vm408_vm5, %v12951_v49 }
 0x6c0   :  { %10671 = vmatprep.mubr.msk.bf16.mxu1 %vm11471_vm4, %v11470_v7 }
 0x6c7   :  { %10672 = vmatmul.mubr.msk.bf16.gmra.mrb[96].mxu1 %vm408_vm5, %v12963_v44 }
 0x6c8   :  { %10675 = vmatprep.mubr.msk.bf16.mxu1 %vm11471_vm4, %v11470_v7 }
 0x6cf   :  { %10676 = vmatmul.mubr.msk.bf16.gmra.mrb[100].mxu1 %vm408_vm5, %v12971_v32 }
 0x6d0   :  { %10679 = vmatprep.mubr.msk.bf16.mxu1 %vm11471_vm4, %v11470_v7 }
 0x6d7   :  { %10680 = vmatmul.mubr.msk.bf16.gmra.mrb[104].mxu1 %vm408_vm5, %v4954_v1  ;;  %v5371_v1 = vld [vmem:[#allocation2 + $0x78] sm:$0xff] }
 0x6d8   :  { %10747 = vmatprep.mubr.msk.bf16.mxu1 %vm11471_vm4, %v11470_v7 }
 0x6df   :  { %10748 = vmatmul.mubr.msk.bf16.vlgmr.msra.gmra.mrb[108].mxu1 %vm408_vm5, %v12988_v24 }
 0x6e0   :  { %10751 = vmatprep.mubr.msk.bf16.mxu1 %vm11471_vm4, %v11470_v7 }
 0x6e7   :  { %10752 = vmatmul.mubr.msk.bf16.gmra.mrb[112].mxu1 %vm408_vm5, %v12994_v8 }
 0x6e8   :  { %10755 = vmatprep.mubr.msk.bf16.mxu1 %vm11471_vm4, %v11470_v7 }
 0x6ef   :  { %10756 = vmatmul.mubr.msk.bf16.gmra.mrb[116].mxu1 %vm408_vm5, %v13000_v51 }
 0x6f0   :  { %10759 = vmatprep.mubr.msk.bf16.mxu1 %vm11471_vm4, %v11470_v7 }
 0x6f7   :  { %10760 = vmatmul.mubr.msk.bf16.gmra.mrb[120].mxu1 %vm408_vm5, %v13008_v30 }
 0x6f8   :  { %10763 = vmatprep.mubr.msk.bf16.mxu1 %vm11471_vm4, %v11470_v7 }
 0x6ff   :  { %10764 = vmatmul.mubr.msk.bf16.gmra.mrb[124].mxu1 %vm408_vm5, %v13020_v2 }
 0x700   :  { %10767 = vmatprep.mubr.msk.bf16.mxu1 %vm11471_vm4, %v11470_v7 }
 0x707   :  { %10768 = vmatmul.mubr.msk.bf16.gmra.mrb[128].mxu1 %vm408_vm5, %v13040_v5 }
 0x708   :  { %10771 = vmatprep.mubr.msk.bf16.mxu1 %vm11471_vm4, %v11470_v7 }
 0x73b   :  { %v3736_v23 = vpop.f32.mrb[32].mxu0 }
 0x73c   :  { %3759 = vst.msk [vmem:[#allocation5] sm:$0xff] %vm3758_vm14, %v3736_v23  ;;  %v10503_v31 = vpop.f32.mrb[33].mxu0  ;;  %v13060_v23 = vpack.c.bf16 %v5373_v61, %v5372_v46  ;;  %v11410_v61 = vld [vmem:[%s14466_s15 + $0x68] sm:$0xff]  }
 0x73d   :  { %v3739_v33 = vpop.f32.mrb[34].mxu0 }
 0x73e   :  { %3760 = vst.msk [vmem:[#allocation5 + $0x8] sm:$0xff] %vm3758_vm14, %v3739_v33  ;;  %v10504_v60 = vpop.f32.mrb[35].mxu0 }
 0x743   :  { %v3744_v13 = vpop.f32.mrb[36].mxu0  ;;  %v3765_v47 = vld [vmem:[#allocation5] sm:$0xff] }
 0x744   :  { %3761 = vst.msk [vmem:[#allocation5 + $0x10] sm:$0xff] %vm3758_vm14, %v3744_v13  ;;  %v10507_v22 = vpop.f32.mrb[37].mxu0 }
 0x745   :  { %v3747_v11 = vpop.f32.mrb[38].mxu0  ;;  %v13013_v52 = vld [vmem:[#allocation5 + $0x8] sm:$0xff]  ;;  %v5374_v22 = vld [vmem:[#allocation2 + $0x90] sm:$0xff] }
 0x746   :  { %3762 = vst.msk [vmem:[#allocation5 + $0x18] sm:$0xff] %vm3758_vm14, %v3747_v11  ;;  %v10508_v26 = vpop.f32.mrb[39].mxu0  ;;  %v3768_v28 = vpack.c.bf16 %v13013_v52, %v3765_v47  ;;  %v3847_v20 = vld [vmem:[#allocation5 + $0x1] sm:$0xff] }
 0x747   :  { %v3926_v45 = vld [vmem:[#allocation5 + $0x2] sm:$0xff] }
 0x748   :  { %10517 = vmatprep.mubr.msk.bf16.mxu0 %vm3758_vm14, %v3768_v28  ;;  %v4005_v40 = vld [vmem:[#allocation5 + $0x6] sm:$0xff] }
 0x749   :  { %v5375_v11 = vld [vmem:[#allocation2 + $0x98] sm:$0xff]  ;;  %v11405_v47 = vld [vmem:[%s14466_s15 + $0x40] sm:$0xff]  }
 0x74a   :  { %v13077_v26 = vpack.c.bf16 %v5375_v11, %v5374_v22 }
 0x74b   :  { %v13022_v36 = vld [vmem:[#allocation5 + $0x10] sm:$0xff]  ;;  %v3752_v35 = vpop.f32.mrb[40].mxu0 }
 0x74c   :  { %v3848_v38 = vld [vmem:[#allocation5 + $0x9] sm:$0xff]  ;;  %v3769_v6 = vpack.c.bf16 %v13022_v36, %v13022_v36  ;;  %3764 = vst.msk [vmem:[#allocation5 + $0x20] sm:$0x3f] %vm3763_vm15, %v3752_v35  ;;  %v10511_v12 = vpop.f32.mrb[41].mxu0 }
 0x74d   :  { %v3850_v27 = vpack.c.bf16 %v3848_v38, %v3847_v20  ;;  %v3755_v63 = vpop.f32.mrb[42].mxu0  ;;  %v3849_v41 = vld [vmem:[#allocation5 + $0x11] sm:$0xff]  ;;  %v4084_v38 = vld [vmem:[#allocation5 + $0x7] sm:$0xff] }
 0x74e   :  { %10518 = vmatmul.mubr.msk.bf16.vlgmr.msra.gmra.mrb[44].mxu0 %vm3758_vm14, %v3769_v6  ;;  %v10512_v58 = vpop.f32.mrb[43].mxu0  ;;  %v3927_v62 = vld [vmem:[#allocation5 + $0xa] sm:$0xff]  ;;  %v3851_v56 = vpack.c.bf16 %v3849_v41, %v3849_v41  ;;  %v3928_v31 = vld [vmem:[#allocation5 + $0x12] sm:$0xff]  ;;  %v11408_v41 = vld [vmem:[%s14466_s15 + $0x58] sm:$0xff]  }
 0x74f   :  { %10525 = vmatprep.mubr.msk.bf16.mxu0 %vm3758_vm14, %v3850_v27  ;;  %10522 = vmatpush3.bf16.msra.mxu0 %v12882_v15  ;;  %v5370_v15 = vld [vmem:[#allocation2 + $0x70] sm:$0xff]  ;;  %v3929_v34 = vpack.c.bf16 %v3927_v62, %v3926_v45  ;;  %v13062_v33 = vld [vmem:[#allocation5 + $0xe] sm:$0xff]  ;;  %v3930_v60 = vpack.c.bf16 %v3928_v31, %v3928_v31  ;;  %v5379_v58 = vld [vmem:[#allocation2 + $0xb8] sm:$0xff]  ;;  %v4166_v62 = vpack.c.bf16 %v13022_v36, %v13013_v52 }
 0x750   :  { %10523 = vmatprep.subr.bf16.mxu0 %v11400_v10  ;;  %v13049_v4 = vpack.c.bf16 %v5371_v1, %v5370_v15  ;;  %v4008_v13 = vpack.c.bf16 %v13062_v33, %v4005_v40  ;;  %v13081_v28 = vld [vmem:[#allocation5 + $0x16] sm:$0xff]  ;;  %v5380_v15 = vld [vmem:[#allocation2 + $0xc0] sm:$0xff] }
 0x751   :  { %v4085_v57 = vld [vmem:[#allocation5 + $0xf] sm:$0xff]  ;;  %v4009_v20 = vpack.c.bf16 %v13081_v28, %v13081_v28  ;;  %v11407_v12 = vld [vmem:[%s14466_s15 + $0x50] sm:$0xff]  }
 0x752   :  { %10772 = vmatmul.mubr.msk.bf16.gmra.mrb[132].mxu1 %vm408_vm5, %v13049_v4  ;;  %v5377_v35 = vld [vmem:[#allocation2 + $0xa8] sm:$0xff]  ;;  %v5378_v63 = vld [vmem:[#allocation2 + $0xb0] sm:$0xff] }
 0x753   :  { %10524 = vmatpush3.bf16.msra.mxu0 %v11400_v10  ;;  %10775 = vmatprep.mubr.msk.bf16.mxu1 %vm11471_vm4, %v11470_v7  ;;  %v11406_v6 = vld [vmem:[%s14466_s15 + $0x48] sm:$0xff]   ;;  %v13090_v27 = vpack.c.bf16 %v5377_v35, %v5376_v55  ;;  %v4087_v10 = vpack.c.bf16 %v4085_v57, %v4084_v38  ;;  %v13101_v54 = vpack.c.bf16 %v5379_v58, %v5378_v63  ;;  %v4165_v52 = vld [vmem:[#allocation5 + $0x18] sm:$0xff]  ;;  %v11412_v35 = vld [vmem:[%s14466_s15 + $0x78] sm:$0xff]  }
 0x754   :  { %10529 = vmatprep.subr.bf16.mxu0 %v11401_v43  ;;  %v5381_v1 = vld [vmem:[#allocation2 + $0xc8] sm:$0xff]  ;;  %v11411_v40 = vld [vmem:[%s14466_s15 + $0x70] sm:$0xff]  }
 0x755   :  { %v13117_v45 = vpack.c.bf16 %v5381_v1, %v5380_v15  ;;  %v4243_v36 = vld [vmem:[#allocation5 + $0x14] sm:$0xff]  ;;  %v4242_v46 = vld [vmem:[#allocation5 + $0xc] sm:$0xff]  ;;  %v4244_v11 = vld [vmem:[#allocation5 + $0x1c] sm:$0xff] }
 0x756   :  { %v4246_v57 = vpack.c.bf16 %v4244_v11, %v4244_v11  ;;  %v4321_v55 = vld [vmem:[#allocation5 + $0xd] sm:$0xff]  ;;  %v5386_v38 = vld [vmem:[#allocation2 + $0xf0] sm:$0xff] }
 0x757   :  { %v4323_v63 = vld [vmem:[#allocation5 + $0x1d] sm:$0xff] }
 0x758   :  { %v4325_v58 = vpack.c.bf16 %v4323_v63, %v4323_v63 }
 0x75a   :  { %10526 = vmatmul.mubr.msk.bf16.vlgmr.msra.gmra.mrb[44].mxu0 %vm3758_vm14, %v3851_v56  ;;  %10776 = vmatmul.mubr.msk.bf16.gmra.mrb[136].mxu1 %vm408_vm5, %v13060_v23  ;;  %v11409_v56 = vld [vmem:[%s14466_s15 + $0x60] sm:$0xff]  }
 0x75b   :  { %10533 = vmatprep.mubr.msk.bf16.mxu0 %vm3758_vm14, %v3929_v34  ;;  %10530 = vmatpush3.bf16.msra.mxu0 %v11401_v43  ;;  %v4086_v43 = vld [vmem:[#allocation5 + $0x17] sm:$0xff]  ;;  %v5383_v34 = vld [vmem:[#allocation2 + $0xd8] sm:$0xff] }
 0x75c   :  { %10531 = vmatprep.subr.bf16.mxu0 %v11402_v16  ;;  %10779 = vmatprep.mubr.msk.bf16.mxu1 %vm11471_vm4, %v11470_v7  ;;  %v4088_v18 = vpack.c.bf16 %v4086_v43, %v4086_v43  ;;  %v11414_v43 = vld [vmem:[%s14466_s15 + $0x88] sm:$0xff]  }
 0x75f   :  { %10532 = vmatpush3.bf16.msra.mxu0 %v11402_v16  ;;  %v5382_v16 = vld [vmem:[#allocation2 + $0xd0] sm:$0xff] }
 0x760   :  { %10537 = vmatprep.subr.bf16.mxu0 %v11403_v25  ;;  %v13126_v31 = vpack.c.bf16 %v5383_v34, %v5382_v16  ;;  %v13178_v16 = vpop.f32.mrb[48].mxu1 }
 0x761   :  { %v10625_v34 = vpop.f32.mrb[49].mxu1 }
 0x762   :  { %10780 = vmatmul.mubr.msk.bf16.gmra.mrb[140].mxu1 %vm408_vm5, %v13077_v26 }
 0x763   :  { %10783 = vmatprep.mubr.msk.bf16.mxu1 %vm11471_vm4, %v11470_v7 }
 0x766   :  { %10534 = vmatmul.mubr.msk.bf16.vlgmr.msra.gmra.mrb[44].mxu0 %vm3758_vm14, %v3930_v60  ;;  %v4245_v60 = vpack.c.bf16 %v4243_v36, %v4242_v46 }
 0x767   :  { %10541 = vmatprep.mubr.msk.bf16.mxu0 %vm3758_vm14, %v4008_v13  ;;  %10538 = vmatpush3.bf16.msra.mxu0 %v11403_v25  ;;  %v4167_v25 = vpack.c.bf16 %v4165_v52, %v4165_v52  ;;  %v5385_v13 = vld [vmem:[#allocation2 + $0xe8] sm:$0xff] }
 0x768   :  { %10539 = vmatprep.subr.bf16.mxu0 %v11404_v0 }
 0x76a   :  { %10784 = vmatmul.mubr.msk.bf16.gmra.mrb[144].mxu1 %vm408_vm5, %v13090_v27 }
 0x76b   :  { %10540 = vmatpush3.bf16.msra.mxu0 %v11404_v0  ;;  %10787 = vmatprep.mubr.msk.bf16.mxu1 %vm11471_vm4, %v11470_v7  ;;  %v13137_v0 = vld [vmem:[#allocation2 + $0xe0] sm:$0xff] }
 0x76c   :  { %10545 = vmatprep.subr.bf16.mxu0 %v11405_v47  ;;  %v5401_v22 = vpack.c.bf16 %v5385_v13, %v13137_v0 }
 0x772   :  { %10542 = vmatmul.mubr.msk.bf16.vlgmr.msra.gmra.mrb[44].mxu0 %vm3758_vm14, %v4009_v20  ;;  %10788 = vmatmul.mubr.msk.bf16.gmra.mrb[148].mxu1 %vm408_vm5, %v13101_v54 }
 0x773   :  { %10549 = vmatprep.mubr.msk.bf16.mxu0 %vm3758_vm14, %v4087_v10  ;;  %10546 = vmatpush3.bf16.msra.mxu0 %v11405_v47  ;;  %v4322_v47 = vld [vmem:[#allocation5 + $0x15] sm:$0xff]  ;;  %v11413_v10 = vld [vmem:[%s14466_s15 + $0x80] sm:$0xff]  }
 0x774   :  { %10547 = vmatprep.subr.bf16.mxu0 %v11406_v6  ;;  %10791 = vmatprep.mubr.msk.bf16.mxu1 %vm11471_vm4, %v11470_v7  ;;  %v4324_v20 = vpack.c.bf16 %v4322_v47, %v4321_v55 }
 0x777   :  { %10548 = vmatpush3.bf16.msra.mxu0 %v11406_v6  ;;  %v5387_v6 = vld [vmem:[#allocation2 + $0xf8] sm:$0x7f] }
 0x778   :  { %10553 = vmatprep.subr.bf16.mxu0 %v11407_v12 }
 0x77a   :  { %10792 = vmatmul.mubr.msk.bf16.gmra.mrb[152].mxu1 %vm408_vm5, %v13117_v45 }
 0x77b   :  { %10795 = vmatprep.mubr.msk.bf16.mxu1 %vm11471_vm4, %v11470_v7 }
 0x77e   :  { %10550 = vmatmul.mubr.msk.bf16.vlgmr.msra.gmra.mrb[44].mxu0 %vm3758_vm14, %v4088_v18  ;;  %v4403_v18 = vpack.c.bf16 %v13081_v28, %v13062_v33  ;;  %v4864_v33 = vld [vmem:[#allocation2] sm:$0xff]  ;;  %v4865_v28 = vld [vmem:[#allocation2 + $0x8] sm:$0xff] }
 0x77f   :  { %10557 = vmatprep.mubr.msk.bf16.mxu0 %vm3758_vm14, %v4166_v62  ;;  %10554 = vmatpush3.bf16.msra.mxu0 %v11407_v12  ;;  %v5402_v12 = vpack.c.bf16 %v5387_v6, %v5386_v38  ;;  %v4909_v62 = vld [vmem:[%s14453_s3] sm:$0xf]  ;;  %v4894_v52 = vpack.c.bf16 %v4865_v28, %v4864_v33 }
 0x780   :  { %10555 = vmatprep.subr.bf16.mxu0 %v11408_v41  ;;  %v5203_v1 = vsel %vm579_vm3, %v4909_v62, 0 }
 0x782   :  { %10796 = vmatmul.mubr.msk.bf16.gmra.mrb[156].mxu1 %vm408_vm5, %v13126_v31 }
 0x783   :  { %10556 = vmatpush3.bf16.msra.mxu0 %v11408_v41  ;;  %10799 = vmatprep.mubr.msk.bf16.mxu1 %vm11471_vm4, %v11470_v7  ;;  %v4402_v41 = vld [vmem:[#allocation5 + $0x1e] sm:$0xff] }
 0x784   :  { %10561 = vmatprep.subr.bf16.mxu0 %v11409_v56  ;;  %v4404_v15 = vpack.c.bf16 %v4402_v41, %v4402_v41 }
 0x78a   :  { %10558 = vmatmul.mubr.msk.bf16.vlgmr.msra.gmra.mrb[44].mxu0 %vm3758_vm14, %v4167_v25  ;;  %10800 = vmatmul.mubr.msk.bf16.gmra.mrb[160].mxu1 %vm408_vm5, %v5401_v22  ;;  %v13184_v25 = vpop.f32.mrb[50].mxu1 }
 0x78b   :  { %10565 = vmatprep.mubr.msk.bf16.mxu0 %vm3758_vm14, %v4245_v60  ;;  %10562 = vmatpush3.bf16.msra.mxu0 %v11409_v56  ;;  %v9291_v56 = vld [vmem:[%s14453_s3 + $0xc] sm:$0xf]  ;;  %v10626_v46 = vpop.f32.mrb[51].mxu1 }
 0x78c   :  { %10563 = vmatprep.subr.bf16.mxu0 %v11410_v61  ;;  %10803 = vmatprep.mubr.msk.bf16.mxu1 %vm11471_vm4, %v11470_v7  ;;  %v5727_v36 = vsel %vm579_vm3, %v9291_v56, 0 }
 0x78f   :  { %10564 = vmatpush3.bf16.msra.mxu0 %v11410_v61  ;;  %v13188_v61 = vpop.f32.mrb[52].mxu1 }
 0x790   :  { %10569 = vmatprep.subr.bf16.mxu0 %v11411_v40  ;;  %v10629_v60 = vpop.f32.mrb[53].mxu1 }
 0x792   :  { %10804 = vmatmul.mubr.msk.bf16.gmra.mrb[164].mxu1 %vm408_vm5, %v5402_v12 }
 0x796   :  { %10566 = vmatmul.mubr.msk.bf16.vlgmr.msra.gmra.mrb[44].mxu0 %vm3758_vm14, %v4246_v57 }
 0x797   :  { %10573 = vmatprep.mubr.msk.bf16.mxu0 %vm3758_vm14, %v4324_v20  ;;  %10570 = vmatpush3.bf16.msra.mxu0 %v11411_v40  ;;  %v13190_v40 = vpop.f32.mrb[54].mxu1 }
 0x798   :  { %10571 = vmatprep.subr.bf16.mxu0 %v11412_v35 }
 0x79b   :  { %10572 = vmatpush3.bf16.msra.mxu0 %v11412_v35 }
 0x79c   :  { %10577 = vmatprep.subr.bf16.mxu0 %v11413_v10 }
 0x7a2   :  { %10574 = vmatmul.mubr.msk.bf16.vlgmr.msra.gmra.mrb[44].mxu0 %vm3758_vm14, %v4325_v58 }
 0x7a3   :  { %10581 = vmatprep.mubr.msk.bf16.mxu0 %vm3758_vm14, %v4403_v18  ;;  %10578 = vmatpush3.bf16.msra.mxu0 %v11413_v10 }
 0x7a4   :  { %10579 = vmatprep.subr.bf16.mxu0 %v11414_v43 }
 0x7a7   :  { %10580 = vmatpush3.bf16.msra.mxu0 %v11414_v43 }
 0x7a8   :  { %10683 = vmatprep.subr.bf16.mxu0 %v11470_v7 }
 0x7ae   :  { %10582 = vmatmul.mubr.msk.bf16.vlgmr.msra.gmra.mrb[44].mxu0 %vm3758_vm14, %v4404_v15 }
 0x7af   :  { %10684 = vmatpush3.bf16.msra.mxu0 %v5203_v1  ;;  %10685 = vmatprep.mubr.msk.bf16.mxu0 %vm11471_vm4, %v11470_v7 }
 0x7b0   :  { %10807 = vmatprep.subr.bf16.mxu0 %v11470_v7 }
 0x7b6   :  { %10686 = vmatmul.mubr.msk.bf16.vlgmr.msra.gmra.mrb[48].mxu0 %vm408_vm5, %v4894_v52 }
 0x7b7   :  { %10808 = vmatpush3.bf16.msra.mxu0 %v5727_v36  ;;  %10689 = vmatprep.mubr.msk.bf16.mxu0 %vm11471_vm4, %v11470_v7 }
 0x7b8   :  { %10869 = vmatprep.subr.bf16.mxu0 %v11470_v7 }
 0x7be   :  { %10690 = vmatmul.mubr.msk.bf16.gmra.mrb[52].mxu0 %vm408_vm5, %v12988_v24  ;;  %v10630_v24 = vpop.f32.mrb[55].mxu1 }
 0x7bf   :  { %10693 = vmatprep.mubr.msk.bf16.mxu0 %vm11471_vm4, %v11470_v7  ;;  %v13192_v13 = vpop.f32.mrb[56].mxu1 }
 0x7c0   :  { %v10633_v22 = vpop.f32.mrb[57].mxu1 }
 0x7c1   :  { %v13196_v11 = vpop.f32.mrb[58].mxu1 }
 0x7c6   :  { %10694 = vmatmul.mubr.msk.bf16.gmra.mrb[56].mxu0 %vm408_vm5, %v12994_v8  ;;  %v10634_v8 = vpop.f32.mrb[59].mxu1 }
 0x7c7   :  { %10697 = vmatprep.mubr.msk.bf16.mxu0 %vm11471_vm4, %v11470_v7  ;;  %v13200_v47 = vpop.f32.mrb[60].mxu1 }
 0x7c8   :  { %v10637_v57 = vpop.f32.mrb[61].mxu1 }
 0x7c9   :  { %v13202_v55 = vpop.f32.mrb[62].mxu1 }
 0x7ca   :  { %v10638_v35 = vpop.f32.mrb[63].mxu1 }
 0x7cb   :  { %v13204_v20 = vpop.f32.mrb[64].mxu1 }
 0x7cc   :  { %v10641_v38 = vpop.f32.mrb[65].mxu1 }
 0x7cd   :  { %v13208_v6 = vpop.f32.mrb[66].mxu1 }
 0x7ce   :  { %10698 = vmatmul.mubr.msk.bf16.gmra.mrb[60].mxu0 %vm408_vm5, %v13000_v51  ;;  %v10642_v51 = vpop.f32.mrb[67].mxu1 }
 0x7cf   :  { %10701 = vmatprep.mubr.msk.bf16.mxu0 %vm11471_vm4, %v11470_v7  ;;  %v13212_v10 = vpop.f32.mrb[68].mxu1 }
 0x7d0   :  { %v10645_v12 = vpop.f32.mrb[69].mxu1 }
 0x7d1   :  { %v13214_v63 = vpop.f32.mrb[70].mxu1 }
 0x7d2   :  { %v10646_v58 = vpop.f32.mrb[71].mxu1 }
 0x7d3   :  { %v13216_v43 = vpop.f32.mrb[72].mxu1 }
 0x7d4   :  { %v10649_v18 = vpop.f32.mrb[73].mxu1 }
 0x7d5   :  { %v13220_v41 = vpop.f32.mrb[74].mxu1 }
 0x7d6   :  { %10702 = vmatmul.mubr.msk.bf16.gmra.mrb[64].mxu0 %vm408_vm5, %v13008_v30  ;;  %v10650_v30 = vpop.f32.mrb[75].mxu1 }
 0x7d7   :  { %10705 = vmatprep.mubr.msk.bf16.mxu0 %vm11471_vm4, %v11470_v7  ;;  %v13224_v62 = vpop.f32.mrb[76].mxu1 }
 0x7d8   :  { %v10653_v15 = vpop.f32.mrb[77].mxu1 }
 0x7d9   :  { %v13226_v1 = vpop.f32.mrb[78].mxu1 }
 0x7da   :  { %v10654_v33 = vpop.f32.mrb[79].mxu1 }
 0x7db   :  { %v13228_v28 = vpop.f32.mrb[80].mxu1 }
 0x7dc   :  { %v10657_v56 = vpop.f32.mrb[81].mxu1 }
 0x7dd   :  { %v13232_v52 = vpop.f32.mrb[82].mxu1 }
 0x7de   :  { %10706 = vmatmul.mubr.msk.bf16.gmra.mrb[68].mxu0 %vm408_vm5, %v13020_v2  ;;  %v10658_v2 = vpop.f32.mrb[83].mxu1 }
 0x7df   :  { %10709 = vmatprep.mubr.msk.bf16.mxu0 %vm11471_vm4, %v11470_v7  ;;  %v13236_v36 = vpop.f32.mrb[84].mxu1 }
 0x7e0   :  { %v10661_v34 = vpop.f32.mrb[85].mxu1 }
 0x7e1   :  { %v13238_v46 = vpop.f32.mrb[86].mxu1 }
 0x7e2   :  { %v10662_v60 = vpop.f32.mrb[87].mxu1 }
 0x7e3   :  { %v13240_v24 = vpop.f32.mrb[88].mxu1 }
 0x7e4   :  { %v10665_v22 = vpop.f32.mrb[89].mxu1 }
 0x7e5   :  { %v13244_v8 = vpop.f32.mrb[90].mxu1 }
 0x7e6   :  { %10710 = vmatmul.mubr.msk.bf16.gmra.mrb[72].mxu0 %vm408_vm5, %v13040_v5  ;;  %v10666_v5 = vpop.f32.mrb[91].mxu1 }
 0x7e7   :  { %10713 = vmatprep.mubr.msk.bf16.mxu0 %vm11471_vm4, %v11470_v7  ;;  %v13248_v57 = vpop.f32.mrb[92].mxu1 }
 0x7e8   :  { %v10669_v35 = vpop.f32.mrb[93].mxu1 }
 0x7e9   :  { %v13250_v38 = vpop.f32.mrb[94].mxu1 }
 0x7ea   :  { %v10670_v51 = vpop.f32.mrb[95].mxu1 }
 0x7eb   :  { %v13252_v12 = vpop.f32.mrb[96].mxu1 }
 0x7ec   :  { %14481 = vst [vmem:[#allocation8_spill] sm:$0xff] %v13252_v12  ;;  %v10673_v58 = vpop.f32.mrb[97].mxu1 }
 0x7ed   :  { %v13256_v18 = vpop.f32.mrb[98].mxu1 }
 0x7ee   :  { %10714 = vmatmul.mubr.msk.bf16.gmra.mrb[76].mxu0 %vm408_vm5, %v13049_v4  ;;  %14482 = vst [vmem:[#allocation9_spill] sm:$0xff] %v13256_v18  ;;  %v10674_v4 = vpop.f32.mrb[99].mxu1 }
 0x7ef   :  { %10717 = vmatprep.mubr.msk.bf16.mxu0 %vm11471_vm4, %v11470_v7  ;;  %v13260_v30 = vpop.f32.mrb[100].mxu1 }
 0x7f0   :  { %14483 = vst [vmem:[#allocation10_spill] sm:$0xff] %v13260_v30  ;;  %v10677_v15 = vpop.f32.mrb[101].mxu1 }
 0x7f1   :  { %v13262_v33 = vpop.f32.mrb[102].mxu1 }
 0x7f2   :  { %14484 = vst [vmem:[#allocation11_spill] sm:$0xff] %v13262_v33  ;;  %v10678_v56 = vpop.f32.mrb[103].mxu1 }
 0x7f3   :  { %v13264_v2 = vpop.f32.mrb[104].mxu1 }
 0x7f4   :  { %14485 = vst [vmem:[#allocation12_spill] sm:$0xff] %v13264_v2  ;;  %v10681_v34 = vpop.f32.mrb[105].mxu1 }
 0x7f5   :  { %v13268_v60 = vpop.f32.mrb[106].mxu1 }
 0x7f6   :  { %10718 = vmatmul.mubr.msk.bf16.gmra.mrb[80].mxu0 %vm408_vm5, %v13060_v23  ;;  %14486 = vst [vmem:[#allocation13_spill] sm:$0xff] %v13268_v60  ;;  %v10682_v23 = vpop.f32.mrb[107].mxu1 }
 0x7f7   :  { %10721 = vmatprep.mubr.msk.bf16.mxu0 %vm11471_vm4, %v11470_v7  ;;  %v13272_v22 = vpop.f32.mrb[108].mxu1 }
 0x7f8   :  { %v10749_v5 = vpop.f32.mrb[109].mxu1 }
 0x7f9   :  { %v13278_v35 = vpop.f32.mrb[110].mxu1 }
 0x7fa   :  { %v10750_v51 = vpop.f32.mrb[111].mxu1 }
 0x7fb   :  { %v13280_v58 = vpop.f32.mrb[112].mxu1 }
 0x7fe   :  { %10722 = vmatmul.mubr.msk.bf16.gmra.mrb[84].mxu0 %vm408_vm5, %v13077_v26  ;;  %v10753_v26 = vpop.f32.mrb[113].mxu1 }
 0x7ff   :  { %10725 = vmatprep.mubr.msk.bf16.mxu0 %vm11471_vm4, %v11470_v7  ;;  %v13282_v4 = vpop.f32.mrb[114].mxu1 }
 0x800   :  { %v10754_v15 = vpop.f32.mrb[115].mxu1 }
 0x806   :  { %10726 = vmatmul.mubr.msk.bf16.gmra.mrb[88].mxu0 %vm408_vm5, %v13090_v27  ;;  %v13288_v27 = vpop.f32.mrb[116].mxu1 }
 0x807   :  { %10729 = vmatprep.mubr.msk.bf16.mxu0 %vm11471_vm4, %v11470_v7  ;;  %v10757_v56 = vpop.f32.mrb[117].mxu1 }
 0x808   :  { %v13290_v34 = vpop.f32.mrb[118].mxu1 }
 0x809   :  { %v10758_v23 = vpop.f32.mrb[119].mxu1 }
 0x80a   :  { %v13296_v5 = vpop.f32.mrb[120].mxu1  ;;  %v4893_v23 = vld [vmem:[#allocation2 + $0xe8] sm:$0x7f] }
 0x80b   :  { %v10761_v51 = vpop.f32.mrb[121].mxu1  ;;  %v4908_v37 = vpack.c.bf16 %v4893_v23, %v13137_v0 }
 0x80c   :  { %v13298_v26 = vpop.f32.mrb[122].mxu1 }
 0x80e   :  { %10730 = vmatmul.mubr.msk.bf16.gmra.mrb[92].mxu0 %vm408_vm5, %v13101_v54  ;;  %v10762_v54 = vpop.f32.mrb[123].mxu1 }
 0x80f   :  { %10733 = vmatprep.mubr.msk.bf16.mxu0 %vm11471_vm4, %v11470_v7  ;;  %v13304_v15 = vpop.f32.mrb[124].mxu1 }
 0x810   :  { %v10765_v56 = vpop.f32.mrb[125].mxu1 }
 0x816   :  { %10734 = vmatmul.mubr.msk.bf16.gmra.mrb[96].mxu0 %vm408_vm5, %v13117_v45  ;;  %v13306_v45 = vpop.f32.mrb[126].mxu1 }
 0x817   :  { %10737 = vmatprep.mubr.msk.bf16.mxu0 %vm11471_vm4, %v11470_v7  ;;  %v10766_v21 = vpop.f32.mrb[127].mxu1 }
 0x818   :  { %v13312_v51 = vpop.f32.mrb[128].mxu1 }
 0x81e   :  { %10738 = vmatmul.mubr.msk.bf16.gmra.mrb[100].mxu0 %vm408_vm5, %v13126_v31  ;;  %v10769_v31 = vpop.f32.mrb[129].mxu1 }
 0x81f   :  { %10741 = vmatprep.mubr.msk.bf16.mxu0 %vm11471_vm4, %v11470_v7  ;;  %v13314_v54 = vpop.f32.mrb[130].mxu1 }
 0x820   :  { %v10770_v14 = vpop.f32.mrb[131].mxu1 }
 0x825   :  { %v13320_v21 = vpop.f32.mrb[132].mxu1 }
 0x826   :  { %10742 = vmatmul.mubr.msk.bf16.gmra.mrb[104].mxu0 %vm408_vm5, %v4908_v37  ;;  %v10773_v0 = vpop.f32.mrb[133].mxu1 }
 0x827   :  { %10809 = vmatprep.mubr.msk.bf16.mxu0 %vm11471_vm4, %v11470_v7  ;;  %v13322_v56 = vpop.f32.mrb[134].mxu1 }
 0x828   :  { %v10774_v37 = vpop.f32.mrb[135].mxu1 }
 0x82d   :  { %v13328_v23 = vpop.f32.mrb[136].mxu1 }
 0x82e   :  { %10810 = vmatmul.mubr.msk.bf16.vlgmr.msra.gmra.mrb[108].mxu0 %vm408_vm5, %v12842_v42  ;;  %v10777_v14 = vpop.f32.mrb[137].mxu1 }
 0x82f   :  { %10813 = vmatprep.mubr.msk.bf16.mxu0 %vm11471_vm4, %v11470_v7  ;;  %v13330_v31 = vpop.f32.mrb[138].mxu1 }
 0x830   :  { %v10778_v42 = vpop.f32.mrb[139].mxu1 }
 0x835   :  { %v13336_v0 = vpop.f32.mrb[140].mxu1 }
 0x836   :  { %10814 = vmatmul.mubr.msk.bf16.gmra.mrb[112].mxu0 %vm408_vm5, %v12853_v9  ;;  %v10781_v37 = vpop.f32.mrb[141].mxu1 }
 0x837   :  { %10817 = vmatprep.mubr.msk.bf16.mxu0 %vm11471_vm4, %v11470_v7  ;;  %v13338_v60 = vpop.f32.mrb[142].mxu1 }
 0x838   :  { %v10782_v9 = vpop.f32.mrb[143].mxu1 }
 0x83d   :  { %v13344_v14 = vpop.f32.mrb[144].mxu1 }
 0x83e   :  { %10818 = vmatmul.mubr.msk.bf16.gmra.mrb[116].mxu0 %vm408_vm5, %v12862_v59  ;;  %v10785_v42 = vpop.f32.mrb[145].mxu1 }
 0x83f   :  { %10821 = vmatprep.mubr.msk.bf16.mxu0 %vm11471_vm4, %v11470_v7  ;;  %v13346_v2 = vpop.f32.mrb[146].mxu1 }
 0x840   :  { %v10786_v59 = vpop.f32.mrb[147].mxu1 }
 0x845   :  { %v13352_v37 = vpop.f32.mrb[148].mxu1 }
 0x846   :  { %10822 = vmatmul.mubr.msk.bf16.gmra.mrb[120].mxu0 %vm408_vm5, %v12875_v39  ;;  %v10789_v9 = vpop.f32.mrb[149].mxu1 }
 0x847   :  { %10825 = vmatprep.mubr.msk.bf16.mxu0 %vm11471_vm4, %v11470_v7  ;;  %v13354_v33 = vpop.f32.mrb[150].mxu1 }
 0x848   :  { %v10790_v39 = vpop.f32.mrb[151].mxu1 }
 0x84d   :  { %v13360_v42 = vpop.f32.mrb[152].mxu1 }
 0x84e   :  { %10826 = vmatmul.mubr.msk.bf16.gmra.mrb[124].mxu0 %vm408_vm5, %v12891_v3  ;;  %v10793_v59 = vpop.f32.mrb[153].mxu1 }
 0x84f   :  { %10829 = vmatprep.mubr.msk.bf16.mxu0 %vm11471_vm4, %v11470_v7  ;;  %v13362_v30 = vpop.f32.mrb[154].mxu1 }
 0x850   :  { %v10794_v3 = vpop.f32.mrb[155].mxu1 }
 0x855   :  { %v13368_v9 = vpop.f32.mrb[156].mxu1 }
 0x856   :  { %10830 = vmatmul.mubr.msk.bf16.gmra.mrb[128].mxu0 %vm408_vm5, %v12903_v53  ;;  %v10797_v39 = vpop.f32.mrb[157].mxu1 }
 0x857   :  { %10833 = vmatprep.mubr.msk.bf16.mxu0 %vm11471_vm4, %v11470_v7  ;;  %v13370_v18 = vpop.f32.mrb[158].mxu1 }
 0x858   :  { %14487 = vst [vmem:[#allocation14_spill] sm:$0xff] %v13370_v18  ;;  %v10798_v53 = vpop.f32.mrb[159].mxu1 }
 0x85d   :  { %v13376_v59 = vpop.f32.mrb[160].mxu1 }
 0x85e   :  { %10834 = vmatmul.mubr.msk.bf16.gmra.mrb[132].mxu0 %vm408_vm5, %v12911_v29  ;;  %14488 = vst [vmem:[#allocation15_spill] sm:$0xff] %v13376_v59  ;;  %v10801_v3 = vpop.f32.mrb[161].mxu1 }
 0x85f   :  { %10837 = vmatprep.mubr.msk.bf16.mxu0 %vm11471_vm4, %v11470_v7  ;;  %v13378_v12 = vpop.f32.mrb[162].mxu1 }
 0x860   :  { %14489 = vst [vmem:[#allocation16_spill] sm:$0xff] %v13378_v12  ;;  %v10802_v29 = vpop.f32.mrb[163].mxu1 }
 0x865   :  { %v13384_v39 = vpop.f32.mrb[164].mxu1 }
 0x866   :  { %10838 = vmatmul.mubr.msk.bf16.gmra.mrb[136].mxu0 %vm408_vm5, %v12921_v17  ;;  %14490 = vst [vmem:[#allocation17_spill] sm:$0xff] %v13384_v39  ;;  %v10805_v53 = vpop.f32.mrb[165].mxu1 }
 0x867   :  { %10841 = vmatprep.mubr.msk.bf16.mxu0 %vm11471_vm4, %v11470_v7  ;;  %v13386_v18 = vpop.f32.mrb[166].mxu1 }
 0x868   :  { %14491 = vst [vmem:[#allocation18_spill] sm:$0xff] %v13386_v18  ;;  %v10806_v17 = vpop.f32.mrb[167].mxu1 }
 0x86e   :  { %10842 = vmatmul.mubr.msk.bf16.gmra.mrb[140].mxu0 %vm408_vm5, %v12933_v50  ;;  %v9108_v50 = vld [vmem:[%s14467_s16] ss:$0 sm:$0xff] }
 0x86f   :  { %10845 = vmatprep.mubr.msk.bf16.mxu0 %vm11471_vm4, %v11470_v7 }
 0x876   :  { %10846 = vmatmul.mubr.msk.bf16.gmra.mrb[144].mxu0 %vm408_vm5, %v12941_v19 }
 0x877   :  { %10849 = vmatprep.mubr.msk.bf16.mxu0 %vm11471_vm4, %v11470_v7 }
 0x87e   :  { %10850 = vmatmul.mubr.msk.bf16.gmra.mrb[148].mxu0 %vm408_vm5, %v12951_v49 }
 0x87f   :  { %10853 = vmatprep.mubr.msk.bf16.mxu0 %vm11471_vm4, %v11470_v7 }
 0x881   :  { %v10583_v3 = vpop.f32.mrb[44].mxu0 }
 0x882   :  { %v11251_v29 = vadd.f32 %v10583_v3, %v9108_v50  ;;  %v4462_v53 = vpop.f32.mrb[45].mxu0 }
 0x883   :  { %v11252_v17 = vadd.f32 %v9108_v50, %v4462_v53  ;;  %v10584_v18 = vpop.f32.mrb[46].mxu0 }
 0x884   :  { %v4481_v39 = vmax.f32 %v11251_v29, 0.0  ;;  %v4465_v19 = vpop.f32.mrb[47].mxu0 }
 0x885   :  { %v4479_v12 = vmax.f32 %v11252_v17, 0.0  ;;  %v11253_v59 = vadd.f32 %v9108_v50, %v4465_v19  ;;  %v5662_v17 = vld [vmem:[#allocation2 + $0xe9] sm:$0xff] }
 0x886   :  { %4484 = vst.msk [vmem:[%s14468_s17 + $0x10] sm:$0xff] %vm3758_vm14, %v4481_v39  ;;  %10854 = vmatmul.mubr.msk.bf16.gmra.mrb[152].mxu0 %vm408_vm5, %v12963_v44 }
 0x887   :  { %4482 = vst.msk [vmem:[%s14468_s17] sm:$0xff] %vm3758_vm14, %v4479_v12  ;;  %v4480_v49 = vmax.f32 %v11253_v59, 0.0  ;;  %10857 = vmatprep.mubr.msk.bf16.mxu0 %vm11471_vm4, %v11470_v7 }
 0x889   :  { %4483 = vst.msk [vmem:[%s14468_s17 + $0x8] sm:$0xff] %vm3758_vm14, %v4480_v49  ;;  %v5239_v18 = vpop.f32.mrb[48].mxu0 }
 0x88a   :  { %v5240_v39 = vadd.f32 %v5239_v18, %v13178_v16  ;;  %v10687_v50 = vpop.f32.mrb[49].mxu0 }
 0x88b   :  { %v5242_v3 = vpop.f32.mrb[50].mxu0  ;;  %v5664_v50 = vld [vmem:[#allocation2 + $0xf9] sm:$0x7f] }
 0x88c   :  { %v5243_v44 = vadd.f32 %v5242_v3, %v13184_v25  ;;  %v10688_v29 = vpop.f32.mrb[51].mxu0  ;;  %v13418_v53 = vadd.f32 %v13272_v22, %v5240_v39  ;;  %v5678_v22 = vpack.c.bf16 %v5662_v17, %v12977_v48 }
 0x88e   :  { %10858 = vmatmul.mubr.msk.bf16.gmra.mrb[156].mxu0 %vm408_vm5, %v12971_v32  ;;  %v13423_v12 = vadd.f32 %v13278_v35, %v5243_v44 }
 0x88f   :  { %10861 = vmatprep.mubr.msk.bf16.mxu0 %vm11471_vm4, %v11470_v7 }
 0x891   :  { %v5247_v59 = vpop.f32.mrb[52].mxu0 }
 0x892   :  { %v5248_v16 = vadd.f32 %v5247_v59, %v13188_v61  ;;  %v10691_v19 = vpop.f32.mrb[53].mxu0  ;;  %v5663_v61 = vld [vmem:[#allocation2 + $0xf1] sm:$0xff] }
 0x893   :  { %v5250_v49 = vpop.f32.mrb[54].mxu0 }
 0x894   :  { %v5251_v25 = vadd.f32 %v5250_v49, %v13190_v40  ;;  %v10692_v18 = vpop.f32.mrb[55].mxu0  ;;  %v13431_v39 = vadd.f32 %v13280_v58, %v5248_v16  ;;  %v5679_v58 = vpack.c.bf16 %v5664_v50, %v5663_v61 }
 0x896   :  { %10862 = vmatmul.mubr.msk.bf16.gmra.mrb[160].mxu0 %vm408_vm5, %v5678_v22  ;;  %v13435_v32 = vadd.f32 %v13282_v4, %v5251_v25 }
 0x897   :  { %10865 = vmatprep.mubr.msk.bf16.mxu0 %vm11471_vm4, %v11470_v7 }
 0x899   :  { %v5255_v35 = vpop.f32.mrb[56].mxu0 }
 0x89a   :  { %v5256_v3 = vadd.f32 %v5255_v35, %v13192_v13  ;;  %v10695_v40 = vpop.f32.mrb[57].mxu0 }
 0x89b   :  { %v5258_v44 = vpop.f32.mrb[58].mxu0 }
 0x89c   :  { %v5259_v48 = vadd.f32 %v5258_v44, %v13196_v11  ;;  %v10696_v29 = vpop.f32.mrb[59].mxu0  ;;  %v13442_v59 = vadd.f32 %v13288_v27, %v5256_v3 }
 0x89e   :  { %10866 = vmatmul.mubr.msk.bf16.gmra.mrb[164].mxu0 %vm408_vm5, %v5679_v58  ;;  %v13446_v4 = vadd.f32 %v13290_v34, %v5259_v48 }
 0x89f   :  { %10871 = vmatprep.mubr.msk.bf16.mxu0 %vm11471_vm4, %v11470_v7 }
 0x8a1   :  { %v5263_v17 = vpop.f32.mrb[60].mxu0 }
 0x8a2   :  { %v5264_v13 = vadd.f32 %v5263_v17, %v13200_v47  ;;  %v10699_v16 = vpop.f32.mrb[61].mxu0 }
 0x8a3   :  { %v5266_v19 = vpop.f32.mrb[62].mxu0 }
 0x8a4   :  { %v5267_v11 = vadd.f32 %v5266_v19, %v13202_v55  ;;  %v10700_v49 = vpop.f32.mrb[63].mxu0  ;;  %v13453_v25 = vadd.f32 %v13296_v5, %v5264_v13 }
 0x8a6   :  { %v13456_v27 = vadd.f32 %v13298_v26, %v5267_v11 }
 0x8a9   :  { %v5271_v18 = vpop.f32.mrb[64].mxu0 }
 0x8aa   :  { %v5272_v34 = vadd.f32 %v5271_v18, %v13204_v20  ;;  %v10703_v22 = vpop.f32.mrb[65].mxu0 }
 0x8ab   :  { %v5274_v35 = vpop.f32.mrb[66].mxu0 }
 0x8ac   :  { %v5275_v61 = vadd.f32 %v5274_v35, %v13208_v6  ;;  %v10704_v50 = vpop.f32.mrb[67].mxu0  ;;  %v13461_v47 = vadd.f32 %v13304_v15, %v5272_v34 }
 0x8ae   :  { %v13464_v55 = vadd.f32 %v13306_v45, %v5275_v61 }
 0x8b1   :  { %v5279_v3 = vpop.f32.mrb[68].mxu0 }
 0x8b2   :  { %v5280_v5 = vadd.f32 %v5279_v3, %v13212_v10  ;;  %v10707_v40 = vpop.f32.mrb[69].mxu0 }
 0x8b3   :  { %v5282_v26 = vpop.f32.mrb[70].mxu0 }
 0x8b4   :  { %v5283_v44 = vadd.f32 %v5282_v26, %v13214_v63  ;;  %v10708_v48 = vpop.f32.mrb[71].mxu0  ;;  %v13469_v20 = vadd.f32 %v13312_v51, %v5280_v5 }
 0x8b6   :  { %v13472_v6 = vadd.f32 %v13314_v54, %v5283_v44 }
 0x8b9   :  { %v5287_v29 = vpop.f32.mrb[72].mxu0 }
 0x8ba   :  { %v5288_v15 = vadd.f32 %v5287_v29, %v13216_v43  ;;  %v10711_v58 = vpop.f32.mrb[73].mxu0 }
 0x8bb   :  { %v5290_v45 = vpop.f32.mrb[74].mxu0 }
 0x8bc   :  { %v5291_v17 = vadd.f32 %v5290_v45, %v13220_v41  ;;  %v10712_v13 = vpop.f32.mrb[75].mxu0  ;;  %v13477_v10 = vadd.f32 %v13320_v21, %v5288_v15 }
 0x8be   :  { %v13480_v63 = vadd.f32 %v13322_v56, %v5291_v17 }
 0x8c1   :  { %v5295_v16 = vpop.f32.mrb[76].mxu0 }
 0x8c2   :  { %v5296_v51 = vadd.f32 %v5295_v16, %v13224_v62  ;;  %v10715_v19 = vpop.f32.mrb[77].mxu0 }
 0x8c3   :  { %v5298_v54 = vpop.f32.mrb[78].mxu0 }
 0x8c4   :  { %v5299_v11 = vadd.f32 %v5298_v54, %v13226_v1  ;;  %v10716_v49 = vpop.f32.mrb[79].mxu0  ;;  %v13485_v43 = vadd.f32 %v13328_v23, %v5296_v51  ;;  %v14493_v51 = vld [vmem:[#allocation9_spill] sm:$0xff] }
 0x8c6   :  { %v13488_v41 = vadd.f32 %v13330_v31, %v5299_v11  ;;  %v14494_v11 = vld [vmem:[#allocation14_spill] sm:$0xff] }
 0x8c9   :  { %v5303_v18 = vpop.f32.mrb[80].mxu0 }
 0x8ca   :  { %v5304_v21 = vadd.f32 %v5303_v18, %v13228_v28  ;;  %v10719_v34 = vpop.f32.mrb[81].mxu0 }
 0x8cb   :  { %v5306_v56 = vpop.f32.mrb[82].mxu0  ;;  %v14496_v34 = vld [vmem:[#allocation11_spill] sm:$0xff] }
 0x8cc   :  { %v5307_v22 = vadd.f32 %v5306_v56, %v13232_v52  ;;  %v10720_v35 = vpop.f32.mrb[83].mxu0  ;;  %v13493_v62 = vadd.f32 %v13336_v0, %v5304_v21 }
 0x8cd   :  { %v14497_v35 = vld [vmem:[#allocation15_spill] sm:$0xff] }
 0x8ce   :  { %v13496_v1 = vadd.f32 %v13338_v60, %v5307_v22 }
 0x8d1   :  { %v5311_v61 = vpop.f32.mrb[84].mxu0 }
 0x8d2   :  { %v5312_v23 = vadd.f32 %v5311_v61, %v13236_v36  ;;  %v10723_v50 = vpop.f32.mrb[85].mxu0 }
 0x8d3   :  { %v5314_v31 = vpop.f32.mrb[86].mxu0 }
 0x8d4   :  { %v5315_v3 = vadd.f32 %v5314_v31, %v13238_v46  ;;  %v10724_v5 = vpop.f32.mrb[87].mxu0  ;;  %v13501_v28 = vadd.f32 %v13344_v14, %v5312_v23  ;;  %v14498_v23 = vld [vmem:[#allocation16_spill] sm:$0xff] }
 0x8d6   :  { %v13504_v52 = vadd.f32 %v13346_v2, %v5315_v3 }
 0x8d9   :  { %v5319_v40 = vpop.f32.mrb[88].mxu0 }
 0x8da   :  { %v5320_v0 = vadd.f32 %v5319_v40, %v13240_v24  ;;  %v10727_v26 = vpop.f32.mrb[89].mxu0 }
 0x8db   :  { %v5322_v60 = vpop.f32.mrb[90].mxu0 }
 0x8dc   :  { %v5323_v44 = vadd.f32 %v5322_v60, %v13244_v8  ;;  %v10728_v48 = vpop.f32.mrb[91].mxu0  ;;  %v13509_v36 = vadd.f32 %v13352_v37, %v5320_v0  ;;  %v14492_v37 = vld [vmem:[#allocation8_spill] sm:$0xff]  ;;  %v14500_v0 = vld [vmem:[#allocation13_spill] sm:$0xff] }
 0x8de   :  { %v13512_v46 = vadd.f32 %v13354_v33, %v5323_v44  ;;  %v14501_v44 = vld [vmem:[#allocation17_spill] sm:$0xff] }
 0x8e1   :  { %v5327_v29 = vpop.f32.mrb[92].mxu0 }
 0x8e2   :  { %v5328_v14 = vadd.f32 %v5327_v29, %v13248_v57  ;;  %v10731_v15 = vpop.f32.mrb[93].mxu0  ;;  %v14502_v29 = vld [vmem:[#allocation18_spill] sm:$0xff] }
 0x8e3   :  { %v5330_v2 = vpop.f32.mrb[94].mxu0 }
 0x8e4   :  { %v5331_v58 = vadd.f32 %v5330_v2, %v13250_v38  ;;  %v10732_v45 = vpop.f32.mrb[95].mxu0  ;;  %v13517_v24 = vadd.f32 %v13360_v42, %v5328_v14  ;;  %v14495_v42 = vld [vmem:[#allocation10_spill] sm:$0xff] }
 0x8e5   :  { %v13549_v2 = vld [vmem:[%s14455_s4] ss:$0 sm:$0xff] }
 0x8e6   :  { %v13520_v8 = vadd.f32 %v13362_v30, %v5331_v58 }
 0x8e9   :  { %v5335_v17 = vpop.f32.mrb[96].mxu0 }
 0x8ea   :  { %v5336_v13 = vadd.f32 %v5335_v17, %v14492_v37  ;;  %v10735_v16 = vpop.f32.mrb[97].mxu0  ;;  %v11417_v17 = vld [vmem:[%s14456_s7 + $0x4] ss:$8 sps:$4 sm:$0xff]  }
 0x8eb   :  { %v5338_v33 = vpop.f32.mrb[98].mxu0  ;;  %9324 = vmatprep.mubr.msk.bf16.mxu1 %vm1722_vm6, %v11417_v17 }
 0x8ec   :  { %v5339_v19 = vadd.f32 %v5338_v33, %v14493_v51  ;;  %v10736_v54 = vpop.f32.mrb[99].mxu0  ;;  %v13525_v57 = vadd.f32 %v13368_v9, %v5336_v13  ;;  %v14499_v9 = vld [vmem:[#allocation12_spill] sm:$0xff]  ;;  %v13561_v51 = vld [vmem:[%s14457_s5] ss:$0 sm:$0xff] }
 0x8ee   :  { %v13528_v38 = vadd.f32 %v14494_v11, %v5339_v19 }
 0x8f1   :  { %v5343_v49 = vpop.f32.mrb[100].mxu0 }
 0x8f2   :  { %v5344_v18 = vadd.f32 %v5343_v49, %v14495_v42  ;;  %v10739_v21 = vpop.f32.mrb[101].mxu0  ;;  %v13568_v49 = vld [vmem:[%s14458_s6] ss:$0 sm:$0xff] }
 0x8f3   :  { %v5346_v30 = vpop.f32.mrb[102].mxu0 }
 0x8f4   :  { %v5347_v56 = vadd.f32 %v5346_v30, %v14496_v34  ;;  %v10740_v22 = vpop.f32.mrb[103].mxu0  ;;  %v13533_v61 = vadd.f32 %v14497_v35, %v5344_v18 }
 0x8f6   :  { %v13536_v50 = vadd.f32 %v14498_v23, %v5347_v56 }
 0x8f9   :  { %v5351_v31 = vpop.f32.mrb[104].mxu0 }
 0x8fa   :  { %v5352_v3 = vadd.f32 %v5351_v31, %v14499_v9  ;;  %v10743_v5 = vpop.f32.mrb[105].mxu0 }
 0x8fb   :  { %v5354_v40 = vpop.f32.mrb[106].mxu0 }
 0x8fc   :  { %v5355_v26 = vadd.f32 %v5354_v40, %v14500_v0  ;;  %v10744_v60 = vpop.f32.mrb[107].mxu0  ;;  %v13541_v48 = vadd.f32 %v14501_v44, %v5352_v3  ;;  %v14503_v0 = vmov 0  }
 0x8fe   :  { %v13544_v14 = vadd.f32 %v14502_v29, %v5355_v26 }
 0x901   :  { %v5763_v15 = vpop.f32.mrb[108].mxu0 }
 0x902   :  { %v5882_v58 = vadd.f32 %v5763_v15, %v13418_v53  ;;  %v10811_v45 = vpop.f32.mrb[109].mxu0 }
 0x903   :  { %v5766_v37 = vpop.f32.mrb[110].mxu0 }
 0x904   :  { %v5919_v13 = vadd.f32 %v13549_v2, %v5882_v58  ;;  %v5883_v16 = vadd.f32 %v5766_v37, %v13423_v12  ;;  %v10812_v33 = vpop.f32.mrb[111].mxu0 }
 0x906   :  { %v5949_v19 = vmax.f32 %v5919_v13, 0.0  ;;  %v5920_v53 = vadd.f32 %v13549_v2, %v5883_v16 }
 0x908   :  { %v5986_v54 = vmul.f32 %v13561_v51, %v5949_v19  ;;  %v5950_v11 = vmax.f32 %v5920_v53, 0.0 }
 0x909   :  { %v5771_v12 = vpop.f32.mrb[112].mxu0 }
 0x90a   :  { %v5987_v42 = vmul.f32 %v13561_v51, %v5950_v11  ;;  %v5884_v18 = vadd.f32 %v5771_v12, %v13431_v39  ;;  %v10815_v21 = vpop.f32.mrb[113].mxu0  ;;  %v6023_v34 = vadd.f32 %v13568_v49, %v5986_v54 }
 0x90b   :  { %v5774_v30 = vpop.f32.mrb[114].mxu0 }
 0x90c   :  { %v6024_v56 = vadd.f32 %v13568_v49, %v5987_v42  ;;  %v5921_v22 = vadd.f32 %v13549_v2, %v5884_v18  ;;  %v5885_v35 = vadd.f32 %v5774_v30, %v13435_v32  ;;  %v10816_v23 = vpop.f32.mrb[115].mxu0 }
 0x90e   :  { %v5951_v31 = vmax.f32 %v5921_v22, 0.0  ;;  %v5922_v9 = vadd.f32 %v13549_v2, %v5885_v35  ;;  %v6066_v3 = vpack.c.bf16 %v6024_v56, %v6023_v34 }
 0x910   :  { %v5988_v5 = vmul.f32 %v13561_v51, %v5951_v31  ;;  %v5952_v40 = vmax.f32 %v5922_v9, 0.0  ;;  %6166 = vmatpush1.bf16.msra.mxu1 %v6066_v3 }
 0x911   :  { %v5779_v39 = vpop.f32.mrb[116].mxu0  ;;  %6167 = vmatprep.subr.bf16.mxu1 %v14503_v0 }
 0x912   :  { %v5989_v26 = vmul.f32 %v13561_v51, %v5952_v40  ;;  %v5886_v60 = vadd.f32 %v5779_v39, %v13442_v59  ;;  %v10819_v44 = vpop.f32.mrb[117].mxu0  ;;  %v6025_v32 = vadd.f32 %v13568_v49, %v5988_v5 }
 0x913   :  { %v5782_v29 = vpop.f32.mrb[118].mxu0 }
 0x914   :  { %v6026_v15 = vadd.f32 %v13568_v49, %v5989_v26  ;;  %v5923_v58 = vadd.f32 %v13549_v2, %v5886_v60  ;;  %v5887_v45 = vadd.f32 %v5782_v29, %v13446_v4  ;;  %v10820_v17 = vpop.f32.mrb[119].mxu0 }
 0x916   :  { %v5953_v37 = vmax.f32 %v5923_v58, 0.0  ;;  %v5924_v13 = vadd.f32 %v13549_v2, %v5887_v45  ;;  %v6067_v16 = vpack.c.bf16 %v6026_v15, %v6025_v32 }
 0x918   :  { %v5990_v33 = vmul.f32 %v13561_v51, %v5953_v37  ;;  %v5954_v19 = vmax.f32 %v5924_v13, 0.0  ;;  %6168 = vmatpush1.bf16.msra.mxu1 %v6067_v16 }
 0x919   :  { %v5787_v59 = vpop.f32.mrb[120].mxu0  ;;  %6169 = vmatprep.subr.bf16.mxu1 %v14503_v0 }
 0x91a   :  { %v5991_v53 = vmul.f32 %v13561_v51, %v5954_v19  ;;  %v5888_v54 = vadd.f32 %v5787_v59, %v13453_v25  ;;  %v10823_v11 = vpop.f32.mrb[121].mxu0  ;;  %v6027_v4 = vadd.f32 %v13568_v49, %v5990_v33 }
 0x91b   :  { %v5790_v12 = vpop.f32.mrb[122].mxu0 }
 0x91c   :  { %v6028_v42 = vadd.f32 %v13568_v49, %v5991_v53  ;;  %v5925_v18 = vadd.f32 %v13549_v2, %v5888_v54  ;;  %v5889_v21 = vadd.f32 %v5790_v12, %v13456_v27  ;;  %v10824_v30 = vpop.f32.mrb[123].mxu0 }
 0x91e   :  { %v5955_v34 = vmax.f32 %v5925_v18, 0.0  ;;  %v5926_v56 = vadd.f32 %v13549_v2, %v5889_v21  ;;  %v6068_v22 = vpack.c.bf16 %v6028_v42, %v6027_v4 }
 0x920   :  { %v5992_v35 = vmul.f32 %v13561_v51, %v5955_v34  ;;  %v5956_v23 = vmax.f32 %v5926_v56, 0.0  ;;  %6170 = vmatpush1.bf16.msra.mxu1 %v6068_v22 }
 0x921   :  { %v5795_v25 = vpop.f32.mrb[124].mxu0  ;;  %6171 = vmatprep.subr.bf16.mxu1 %v14503_v0 }
 0x922   :  { %v5993_v31 = vmul.f32 %v13561_v51, %v5956_v23  ;;  %v5890_v9 = vadd.f32 %v5795_v25, %v13461_v47  ;;  %v10827_v3 = vpop.f32.mrb[125].mxu0  ;;  %v6029_v27 = vadd.f32 %v13568_v49, %v5992_v35  ;;  %v11435_v23 = vld [vmem:[%s14459_s8] sm:$0xff]  }
 0x923   :  { %v5798_v5 = vpop.f32.mrb[126].mxu0  ;;  %10870 = vmatpush3.bf16.msra.mxu0 %v11435_v23 }
 0x924   :  { %v6030_v40 = vadd.f32 %v13568_v49, %v5993_v31  ;;  %v5927_v39 = vadd.f32 %v13549_v2, %v5890_v9  ;;  %v5891_v26 = vadd.f32 %v5798_v5, %v13464_v55  ;;  %v10828_v60 = vpop.f32.mrb[127].mxu0  ;;  %10891 = vmatprep.subr.bf16.mxu0 %v11470_v7 }
 0x926   :  { %v5957_v44 = vmax.f32 %v5927_v39, 0.0  ;;  %v5928_v29 = vadd.f32 %v13549_v2, %v5891_v26  ;;  %v6069_v32 = vpack.c.bf16 %v6030_v40, %v6029_v27 }
 0x928   :  { %v5994_v15 = vmul.f32 %v13561_v51, %v5957_v44  ;;  %v5958_v58 = vmax.f32 %v5928_v29, 0.0  ;;  %6172 = vmatpush1.bf16.msra.mxu1 %v6069_v32 }
 0x929   :  { %v5803_v47 = vpop.f32.mrb[128].mxu0  ;;  %6173 = vmatprep.subr.bf16.mxu1 %v14503_v0 }
 0x92a   :  { %v5995_v45 = vmul.f32 %v13561_v51, %v5958_v58  ;;  %v5892_v17 = vadd.f32 %v5803_v47, %v13469_v20  ;;  %v10831_v37 = vpop.f32.mrb[129].mxu0  ;;  %v6031_v55 = vadd.f32 %v13568_v49, %v5994_v15 }
 0x92b   :  { %v5806_v13 = vpop.f32.mrb[130].mxu0 }
 0x92c   :  { %v6032_v16 = vadd.f32 %v13568_v49, %v5995_v45  ;;  %v5929_v33 = vadd.f32 %v13549_v2, %v5892_v17  ;;  %v5893_v19 = vadd.f32 %v5806_v13, %v13472_v6  ;;  %v10832_v59 = vpop.f32.mrb[131].mxu0 }
 0x92e   :  { %v5959_v53 = vmax.f32 %v5929_v33, 0.0  ;;  %v5930_v54 = vadd.f32 %v13549_v2, %v5893_v19  ;;  %v6070_v11 = vpack.c.bf16 %v6032_v16, %v6031_v55 }
 0x930   :  { %v5996_v12 = vmul.f32 %v13561_v51, %v5959_v53  ;;  %v5960_v4 = vmax.f32 %v5930_v54, 0.0  ;;  %6174 = vmatpush1.bf16.msra.mxu1 %v6070_v11 }
 0x931   :  { %v5811_v20 = vpop.f32.mrb[132].mxu0  ;;  %6175 = vmatprep.subr.bf16.mxu1 %v14503_v0 }
 0x932   :  { %v5997_v42 = vmul.f32 %v13561_v51, %v5960_v4  ;;  %v5894_v18 = vadd.f32 %v5811_v20, %v13477_v10  ;;  %v10835_v21 = vpop.f32.mrb[133].mxu0  ;;  %v6033_v6 = vadd.f32 %v13568_v49, %v5996_v12 }
 0x933   :  { %v5814_v30 = vpop.f32.mrb[134].mxu0 }
 0x934   :  { %v6034_v34 = vadd.f32 %v13568_v49, %v5997_v42  ;;  %v5931_v56 = vadd.f32 %v13549_v2, %v5894_v18  ;;  %v5895_v22 = vadd.f32 %v5814_v30, %v13480_v63  ;;  %v10836_v35 = vpop.f32.mrb[135].mxu0 }
 0x936   :  { %v5961_v25 = vmax.f32 %v5931_v56, 0.0  ;;  %v5932_v31 = vadd.f32 %v13549_v2, %v5895_v22  ;;  %v6071_v9 = vpack.c.bf16 %v6034_v34, %v6033_v6 }
 0x938   :  { %v5998_v10 = vmul.f32 %v13561_v51, %v5961_v25  ;;  %v5962_v3 = vmax.f32 %v5932_v31, 0.0  ;;  %6176 = vmatpush1.bf16.msra.mxu1 %v6071_v9 }
 0x939   :  { %v5819_v5 = vpop.f32.mrb[136].mxu0  ;;  %6177 = vmatprep.subr.bf16.mxu1 %v14503_v0 }
 0x93a   :  { %v5999_v63 = vmul.f32 %v13561_v51, %v5962_v3  ;;  %v5896_v27 = vadd.f32 %v5819_v5, %v13485_v43  ;;  %v10839_v40 = vpop.f32.mrb[137].mxu0  ;;  %v6035_v26 = vadd.f32 %v13568_v49, %v5998_v10 }
 0x93b   :  { %v5822_v39 = vpop.f32.mrb[138].mxu0 }
 0x93c   :  { %v6036_v60 = vadd.f32 %v13568_v49, %v5999_v63  ;;  %v5933_v44 = vadd.f32 %v13549_v2, %v5896_v27  ;;  %v5897_v29 = vadd.f32 %v5822_v39, %v13488_v41  ;;  %v10840_v32 = vpop.f32.mrb[139].mxu0 }
 0x93e   :  { %v5963_v15 = vmax.f32 %v5933_v44, 0.0  ;;  %v5934_v58 = vadd.f32 %v13549_v2, %v5897_v29  ;;  %v6072_v47 = vpack.c.bf16 %v6036_v60, %v6035_v26 }
 0x940   :  { %v6000_v45 = vmul.f32 %v13561_v51, %v5963_v15  ;;  %v5964_v17 = vmax.f32 %v5934_v58, 0.0  ;;  %6178 = vmatpush1.bf16.msra.mxu1 %v6072_v47 }
 0x941   :  { %v5827_v43 = vpop.f32.mrb[140].mxu0  ;;  %6179 = vmatprep.subr.bf16.mxu1 %v14503_v0 }
 0x942   :  { %v6001_v37 = vmul.f32 %v13561_v51, %v5964_v17  ;;  %v5898_v13 = vadd.f32 %v5827_v43, %v13493_v62  ;;  %v10843_v55 = vpop.f32.mrb[141].mxu0  ;;  %v6037_v41 = vadd.f32 %v13568_v49, %v6000_v45 }
 0x943   :  { %v5830_v16 = vpop.f32.mrb[142].mxu0 }
 0x944   :  { %v6038_v33 = vadd.f32 %v13568_v49, %v6001_v37  ;;  %v5935_v19 = vadd.f32 %v13549_v2, %v5898_v13  ;;  %v5899_v59 = vadd.f32 %v5830_v16, %v13496_v1  ;;  %v10844_v53 = vpop.f32.mrb[143].mxu0 }
 0x946   :  { %v5965_v54 = vmax.f32 %v5935_v19, 0.0  ;;  %v5936_v11 = vadd.f32 %v13549_v2, %v5899_v59  ;;  %v6073_v12 = vpack.c.bf16 %v6038_v33, %v6037_v41 }
 0x948   :  { %v6002_v4 = vmul.f32 %v13561_v51, %v5965_v54  ;;  %v5966_v20 = vmax.f32 %v5936_v11, 0.0  ;;  %6180 = vmatpush1.bf16.msra.mxu1 %v6073_v12 }
 0x949   :  { %v5835_v62 = vpop.f32.mrb[144].mxu0  ;;  %6181 = vmatprep.subr.bf16.mxu1 %v14503_v0 }
 0x94a   :  { %v6003_v42 = vmul.f32 %v13561_v51, %v5966_v20  ;;  %v5900_v18 = vadd.f32 %v5835_v62, %v13501_v28  ;;  %v10847_v21 = vpop.f32.mrb[145].mxu0  ;;  %v6039_v1 = vadd.f32 %v13568_v49, %v6002_v4 }
 0x94b   :  { %v5838_v30 = vpop.f32.mrb[146].mxu0 }
 0x94c   :  { %v6040_v6 = vadd.f32 %v13568_v49, %v6003_v42  ;;  %v5937_v34 = vadd.f32 %v13549_v2, %v5900_v18  ;;  %v5901_v56 = vadd.f32 %v5838_v30, %v13504_v52  ;;  %v10848_v22 = vpop.f32.mrb[147].mxu0 }
 0x94e   :  { %v5967_v35 = vmax.f32 %v5937_v34, 0.0  ;;  %v5938_v23 = vadd.f32 %v13549_v2, %v5901_v56  ;;  %v6074_v25 = vpack.c.bf16 %v6040_v6, %v6039_v1 }
 0x950   :  { %v6004_v31 = vmul.f32 %v13561_v51, %v5967_v35  ;;  %v5968_v9 = vmax.f32 %v5938_v23, 0.0  ;;  %6182 = vmatpush1.bf16.msra.mxu1 %v6074_v25 }
 0x951   :  { %v5843_v28 = vpop.f32.mrb[148].mxu0  ;;  %6183 = vmatprep.subr.bf16.mxu1 %v14503_v0 }
 0x952   :  { %v6005_v10 = vmul.f32 %v13561_v51, %v5968_v9  ;;  %v5902_v3 = vadd.f32 %v5843_v28, %v13509_v36  ;;  %v10851_v5 = vpop.f32.mrb[149].mxu0  ;;  %v6041_v52 = vadd.f32 %v13568_v49, %v6004_v31 }
 0x953   :  { %v5846_v63 = vpop.f32.mrb[150].mxu0 }
 0x954   :  { %v6042_v27 = vadd.f32 %v13568_v49, %v6005_v10  ;;  %v5939_v40 = vadd.f32 %v13549_v2, %v5902_v3  ;;  %v5903_v39 = vadd.f32 %v5846_v63, %v13512_v46  ;;  %v10852_v26 = vpop.f32.mrb[151].mxu0 }
 0x956   :  { %v5969_v60 = vmax.f32 %v5939_v40, 0.0  ;;  %v5940_v44 = vadd.f32 %v13549_v2, %v5903_v39  ;;  %v6075_v29 = vpack.c.bf16 %v6042_v27, %v6041_v52 }
 0x958   :  { %v6006_v32 = vmul.f32 %v13561_v51, %v5969_v60  ;;  %v5970_v15 = vmax.f32 %v5940_v44, 0.0  ;;  %6184 = vmatpush1.bf16.msra.mxu1 %v6075_v29 }
 0x959   :  { %v5851_v36 = vpop.f32.mrb[152].mxu0  ;;  %6185 = vmatprep.subr.bf16.mxu1 %v14503_v0 }
 0x95a   :  { %v6007_v58 = vmul.f32 %v13561_v51, %v5970_v15  ;;  %v5904_v47 = vadd.f32 %v5851_v36, %v13517_v24  ;;  %v10855_v45 = vpop.f32.mrb[153].mxu0  ;;  %v6043_v46 = vadd.f32 %v13568_v49, %v6006_v32 }
 0x95b   :  { %v5854_v17 = vpop.f32.mrb[154].mxu0 }
 0x95c   :  { %v6044_v43 = vadd.f32 %v13568_v49, %v6007_v58  ;;  %v5941_v37 = vadd.f32 %v13549_v2, %v5904_v47  ;;  %v5905_v13 = vadd.f32 %v5854_v17, %v13520_v8  ;;  %v10856_v55 = vpop.f32.mrb[155].mxu0 }
 0x95d   :  { %v11424_v55 = vld [vmem:[%s14456_s7 + $0x30] ss:$8 sps:$4 sm:$0xff]  }
 0x95e   :  { %v5971_v16 = vmax.f32 %v5941_v37, 0.0  ;;  %v5942_v41 = vadd.f32 %v13549_v2, %v5905_v13  ;;  %v6076_v33 = vpack.c.bf16 %v6044_v43, %v6043_v46  ;;  %v14504_v43 = vld [vmem:[#allocation6_spill] sm:$0xff]  ;;  %v11420_v37 = vld [vmem:[%s14456_s7 + $0x14] ss:$8 sps:$4 sm:$0xff]  }
 0x95f   :  { %v11426_v13 = vld [vmem:[%s14456_s7 + $0x34] ss:$8 sps:$4 sm:$0xff]  }
 0x960   :  { %v6008_v19 = vmul.f32 %v13561_v51, %v5971_v16  ;;  %v5972_v59 = vmax.f32 %v5942_v41, 0.0  ;;  %6186 = vmatpush1.bf16.msra.mxu1 %v6076_v33  ;;  %v11429_v16 = vld [vmem:[%s14456_s7 + $0x44] ss:$8 sps:$4 sm:$0xff]   ;;  %v11427_v41 = vld [vmem:[%s14456_s7 + $0x40] ss:$8 sps:$4 sm:$0xff]  }
 0x961   :  { %v5859_v24 = vpop.f32.mrb[156].mxu0  ;;  %6187 = vmatprep.subr.bf16.mxu1 %v14503_v0  ;;  %v11432_v33 = vld [vmem:[%s14456_s7 + $0x54] ss:$8 sps:$4 sm:$0xff]  }
 0x962   :  { %v6009_v53 = vmul.f32 %v13561_v51, %v5972_v59  ;;  %v5906_v54 = vadd.f32 %v5859_v24, %v13525_v57  ;;  %v10859_v11 = vpop.f32.mrb[157].mxu0  ;;  %v6045_v8 = vadd.f32 %v13568_v49, %v6008_v19  ;;  %v6065_v19 = vld [vmem:[%s14456_s7 + $0x60] sm:$0x77]  ;;  %v11430_v59 = vld [vmem:[%s14456_s7 + $0x50] ss:$8 sps:$4 sm:$0xff]  }
 0x963   :  { %v5862_v12 = vpop.f32.mrb[158].mxu0  ;;  %v9323_v24 = vcombine.high %v6065_v19, %v6065_v19 }
 0x964   :  { %v6046_v4 = vadd.f32 %v13568_v49, %v6009_v53  ;;  %v5943_v20 = vadd.f32 %v13549_v2, %v5906_v54  ;;  %v5907_v62 = vadd.f32 %v5862_v12, %v13528_v38  ;;  %v10860_v42 = vpop.f32.mrb[159].mxu0  ;;  %v9322_v53 = vcombine.low %v6065_v19, %v6065_v19  ;;  %v11436_v54 = vld [vmem:[%s14459_s8 + $0x10] sm:$0xff]  }
 0x966   :  { %v5973_v18 = vmax.f32 %v5943_v20, 0.0  ;;  %v5944_v21 = vadd.f32 %v13549_v2, %v5907_v62  ;;  %v6077_v30 = vpack.c.bf16 %v6046_v4, %v6045_v8 }
 0x968   :  { %v6010_v1 = vmul.f32 %v13561_v51, %v5973_v18  ;;  %v5974_v6 = vmax.f32 %v5944_v21, 0.0  ;;  %6188 = vmatpush1.bf16.msra.mxu1 %v6077_v30  ;;  %v11437_v30 = vld [vmem:[%s14459_s8 + $0x8] sm:$0xff]  }
 0x969   :  { %v5867_v57 = vpop.f32.mrb[160].mxu0  ;;  %6189 = vmatprep.subr.bf16.mxu1 %v14503_v0 }
 0x96a   :  { %v6011_v34 = vmul.f32 %v13561_v51, %v5974_v6  ;;  %v5908_v56 = vadd.f32 %v5867_v57, %v13533_v61  ;;  %v10863_v22 = vpop.f32.mrb[161].mxu0  ;;  %v6047_v38 = vadd.f32 %v13568_v49, %v6010_v1 }
 0x96b   :  { %v5870_v35 = vpop.f32.mrb[162].mxu0  ;;  %v11438_v22 = vld [vmem:[%s14459_s8 + $0x20] sm:$0xff]  }
 0x96c   :  { %v6048_v23 = vadd.f32 %v13568_v49, %v6011_v34  ;;  %v5945_v25 = vadd.f32 %v13549_v2, %v5908_v56  ;;  %v5909_v31 = vadd.f32 %v5870_v35, %v13536_v50  ;;  %v10864_v9 = vpop.f32.mrb[163].mxu0 }
 0x96e   :  { %v5975_v28 = vmax.f32 %v5945_v25, 0.0  ;;  %v5946_v10 = vadd.f32 %v13549_v2, %v5909_v31  ;;  %v6078_v3 = vpack.c.bf16 %v6048_v23, %v6047_v38 }
 0x970   :  { %v6012_v5 = vmul.f32 %v13561_v51, %v5975_v28  ;;  %v5976_v63 = vmax.f32 %v5946_v10, 0.0  ;;  %6190 = vmatpush1.bf16.msra.mxu1 %v6078_v3 }
 0x971   :  { %v5875_v61 = vpop.f32.mrb[164].mxu0  ;;  %6191 = vmatprep.subr.bf16.mxu1 %v14503_v0 }
 0x972   :  { %v6013_v52 = vmul.f32 %v13561_v51, %v5976_v63  ;;  %v5910_v27 = vadd.f32 %v5875_v61, %v13541_v48  ;;  %v10867_v40 = vpop.f32.mrb[165].mxu0  ;;  %v6049_v50 = vadd.f32 %v13568_v49, %v6012_v5 }
 0x973   :  { %v5878_v39 = vpop.f32.mrb[166].mxu0 }
 0x974   :  { %v6050_v26 = vadd.f32 %v13568_v49, %v6013_v52  ;;  %v5947_v60 = vadd.f32 %v13549_v2, %v5910_v27  ;;  %v5911_v44 = vadd.f32 %v5878_v39, %v13544_v14  ;;  %v10868_v29 = vpop.f32.mrb[167].mxu0 }
 0x976   :  { %v5977_v32 = vmax.f32 %v5947_v60, 0.0  ;;  %v5948_v15 = vadd.f32 %v13549_v2, %v5911_v44  ;;  %v6079_v36 = vpack.c.bf16 %v6050_v26, %v6049_v50  ;;  %v11415_v2 = vld [vmem:[%s14456_s7] ss:$8 sps:$4 sm:$0xff]  }
 0x978   :  { %v6014_v58 = vmul.f32 %v13561_v51, %v5977_v32  ;;  %v5978_v47 = vmax.f32 %v5948_v15, 0.0  ;;  %6192 = vmatpush1.bf16.msra.mxu1 %v6079_v36 }
 0x979   :  { %6193 = vmatprep.subr.bf16.mxu1 %v14503_v0  ;;  %v11421_v0 = vld [vmem:[%s14456_s7 + $0x20] ss:$8 sps:$4 sm:$0xff]  }
 0x97a   :  { %v6015_v48 = vmul.f32 %v13561_v51, %v5978_v47  ;;  %v6051_v45 = vadd.f32 %v13568_v49, %v6014_v58  ;;  %v11418_v51 = vld [vmem:[%s14456_s7 + $0x10] ss:$8 sps:$4 sm:$0xff]  }
 0x97c   :  { %v6052_v17 = vadd.f32 %v13568_v49, %v6015_v48  ;;  %v11423_v49 = vld [vmem:[%s14456_s7 + $0x24] ss:$8 sps:$4 sm:$0xff]  }
 0x97e   :  { %v6080_v46 = vpack.c.bf16 %v6052_v17, %v6051_v45 }
 0x980   :  { %v6163_v14 = vand.u32 %v6080_v46, %v14504_v43 }
 0x982   :  { %6194 = vmatpush1.bf16.msra.mxu1 %v6163_v14 }
 0x983   :  { %10913 = vmatprep.subr.bf16.mxu1 %v11470_v7 }
 0x985   :  { %6198 = vmatmul.mubr.bf16.vlgmr.msra.gmra.mrb[168].mxu1 %v11415_v2 }
 0x986   :  { %9325 = vmatprep.mubr.msk.bf16.mxu1 %vm1722_vm6, %v11420_v37  ;;  %10914 = vmatpush3.bf16.msra.mxu1 %v11436_v54 }
 0x987   :  { %10957 = vmatprep.subr.bf16.mxu1 %v11470_v7 }
 0x98d   :  { %6206 = vmatmul.mubr.bf16.gmra.mrb[172].mxu1 %v11418_v51 }
 0x98e   :  { %9326 = vmatprep.mubr.msk.bf16.mxu1 %vm1722_vm6, %v11423_v49 }
 0x995   :  { %6214 = vmatmul.mubr.bf16.gmra.mrb[176].mxu1 %v11421_v0 }
 0x996   :  { %9327 = vmatprep.mubr.msk.bf16.mxu1 %vm1722_vm6, %v11426_v13 }
 0x99d   :  { %6222 = vmatmul.mubr.bf16.gmra.mrb[180].mxu1 %v11424_v55 }
 0x99e   :  { %9328 = vmatprep.mubr.msk.bf16.mxu1 %vm1722_vm6, %v11429_v16 }
 0x9a5   :  { %6230 = vmatmul.mubr.bf16.gmra.mrb[184].mxu1 %v11427_v41 }
 0x9a6   :  { %9329 = vmatprep.mubr.msk.bf16.mxu1 %vm1722_vm6, %v11432_v33 }
 0x9ad   :  { %6238 = vmatmul.mubr.bf16.gmra.mrb[188].mxu1 %v11430_v59 }
 0x9ae   :  { %9330 = vmatprep.mubr.msk.bf16.mxu1 %vm1722_vm6, %v9323_v24 }
 0x9b5   :  { %6246 = vmatmul.mubr.bf16.gmra.mrb[192].mxu1 %v9322_v53 }
 0x9b6   :  { %10915 = vmatprep.mubr.msk.bf16.mxu1 %vm11471_vm4, %v11470_v7 }
 0xa58   :  { %v6199_v11 = vpop.f32.mrb[168].mxu1 }
 0xa59   :  { %6253 = vst.msk [vmem:[#allocation4] sm:$0xff] %vm1839_vm9, %v6199_v11  ;;  %v6201_v12 = vpop.f32.mrb[169].mxu1 }
 0xa5a   :  { %v6202_v8 = vpop.f32.mrb[170].mxu1  ;;  %v11439_v12 = vld [vmem:[%s14459_s8 + $0x18] sm:$0xff]  }
 0xa5b   :  { %6254 = vst.msk [vmem:[#allocation4 + $0x8] sm:$0xff] %vm1839_vm9, %v6202_v8  ;;  %v6204_v4 = vpop.f32.mrb[171].mxu1 }
 0xa60   :  { %v6207_v20 = vpop.f32.mrb[172].mxu1  ;;  %v6266_v42 = vld [vmem:[#allocation4] sm:$0xff] }
 0xa61   :  { %6255 = vst.msk [vmem:[#allocation4 + $0x10] sm:$0xff] %vm1839_vm9, %v6207_v20  ;;  %v6209_v62 = vpop.f32.mrb[173].mxu1 }
 0xa62   :  { %v6210_v18 = vpop.f32.mrb[174].mxu1  ;;  %v6267_v21 = vld [vmem:[#allocation4 + $0x8] sm:$0xff] }
 0xa63   :  { %6256 = vst.msk [vmem:[#allocation4 + $0x18] sm:$0xff] %vm1839_vm9, %v6210_v18  ;;  %v6212_v1 = vpop.f32.mrb[175].mxu1  ;;  %v6276_v6 = vpack.c.bf16 %v6267_v21, %v6266_v42  ;;  %v6545_v34 = vld [vmem:[#allocation4 + $0x2] sm:$0xff] }
 0xa64   :  { %v6404_v11 = vld [vmem:[#allocation4 + $0x1] sm:$0xff] }
 0xa65   :  { %10872 = vmatmul.mubr.msk.bf16.vlgmr.msra.gmra.mrb[168].mxu0 %vm1839_vm9, %v6276_v6  ;;  %v11440_v21 = vld [vmem:[%s14459_s8 + $0x30] sm:$0xff]  }
 0xa66   :  { %10892 = vmatpush3.bf16.msra.mxu0 %v11437_v30  ;;  %10875 = vmatprep.mubr.msk.bf16.mxu0 %vm11471_vm4, %v11470_v7 }
 0xa67   :  { %10935 = vmatprep.subr.bf16.mxu0 %v11470_v7 }
 0xa68   :  { %v6215_v57 = vpop.f32.mrb[176].mxu1  ;;  %v13764_v56 = vld [vmem:[#allocation4 + $0xa] sm:$0xff] }
 0xa69   :  { %6257 = vst.msk [vmem:[#allocation4 + $0x20] sm:$0xff] %vm1839_vm9, %v6215_v57  ;;  %v6217_v35 = vpop.f32.mrb[177].mxu1  ;;  %v6555_v38 = vpack.c.bf16 %v13764_v56, %v6545_v34  ;;  %v6268_v25 = vld [vmem:[#allocation4 + $0x10] sm:$0xff] }
 0xa6a   :  { %v6218_v23 = vpop.f32.mrb[178].mxu1  ;;  %v6269_v31 = vld [vmem:[#allocation4 + $0x18] sm:$0xff]  ;;  %v6405_v59 = vld [vmem:[#allocation4 + $0x9] sm:$0xff] }
 0xa6b   :  { %v13771_v9 = vld [vmem:[#allocation4 + $0x12] sm:$0xff]  ;;  %6258 = vst.msk [vmem:[#allocation4 + $0x28] sm:$0xff] %vm1839_vm9, %v6218_v23  ;;  %v6220_v28 = vpop.f32.mrb[179].mxu1  ;;  %10916 = vmatmul.mubr.msk.bf16.vlgmr.msra.gmra.mrb[196].mxu1 %vm1839_vm9, %v6555_v38  ;;  %v6277_v10 = vpack.c.bf16 %v6269_v31, %v6268_v25  ;;  %v6414_v4 = vpack.c.bf16 %v6405_v59, %v6404_v11 }
 0xa6c   :  { %v6696_v3 = vpack.c.bf16 %v13771_v9, %v13764_v56  ;;  %10919 = vmatprep.mubr.msk.bf16.mxu1 %vm11471_vm4, %v11470_v7  ;;  %10958 = vmatpush3.bf16.msra.mxu1 %v11438_v22  ;;  %v6828_v62 = vld [vmem:[#allocation4 + $0x13] sm:$0xff]  ;;  %v6827_v42 = vld [vmem:[#allocation4 + $0xb] sm:$0xff] }
 0xa6d   :  { %10876 = vmatmul.mubr.msk.bf16.gmra.mrb[172].mxu0 %vm1839_vm9, %v6277_v10  ;;  %11001 = vmatprep.subr.bf16.mxu1 %v11470_v7  ;;  %v6837_v30 = vpack.c.bf16 %v6828_v62, %v6827_v42  ;;  %v6406_v1 = vld [vmem:[#allocation4 + $0x11] sm:$0xff] }
 0xa6e   :  { %10879 = vmatprep.mubr.msk.bf16.mxu0 %vm11471_vm4, %v11470_v7 }
 0xa70   :  { %v6223_v5 = vpop.f32.mrb[180].mxu1  ;;  %v13783_v63 = vld [vmem:[#allocation4 + $0x1a] sm:$0xff] }
 0xa71   :  { %6259 = vst.msk [vmem:[#allocation4 + $0x30] sm:$0xff] %vm1839_vm9, %v6223_v5  ;;  %v6225_v61 = vpop.f32.mrb[181].mxu1  ;;  %v6556_v52 = vpack.c.bf16 %v13783_v63, %v13771_v9  ;;  %v6270_v40 = vld [vmem:[#allocation4 + $0x20] sm:$0xff] }
 0xa72   :  { %v6226_v27 = vpop.f32.mrb[182].mxu1  ;;  %v6271_v39 = vld [vmem:[#allocation4 + $0x28] sm:$0xff]  ;;  %v6407_v18 = vld [vmem:[#allocation4 + $0x19] sm:$0xff] }
 0xa73   :  { %v13788_v50 = vld [vmem:[#allocation4 + $0x22] sm:$0xff]  ;;  %6260 = vst.msk [vmem:[#allocation4 + $0x38] sm:$0xff] %vm1839_vm9, %v6226_v27  ;;  %v6228_v26 = vpop.f32.mrb[183].mxu1  ;;  %10920 = vmatmul.mubr.msk.bf16.gmra.mrb[200].mxu1 %vm1839_vm9, %v6556_v52  ;;  %v6278_v60 = vpack.c.bf16 %v6271_v39, %v6270_v40  ;;  %v6415_v6 = vpack.c.bf16 %v6407_v18, %v6406_v1 }
 0xa74   :  { %v6697_v44 = vpack.c.bf16 %v13788_v50, %v13783_v63  ;;  %10923 = vmatprep.mubr.msk.bf16.mxu1 %vm11471_vm4, %v11470_v7  ;;  %v6830_v57 = vld [vmem:[#allocation4 + $0x23] sm:$0xff]  ;;  %v6829_v34 = vld [vmem:[#allocation4 + $0x1b] sm:$0xff] }
 0xa75   :  { %10880 = vmatmul.mubr.msk.bf16.gmra.mrb[176].mxu0 %vm1839_vm9, %v6278_v60  ;;  %v6838_v35 = vpack.c.bf16 %v6830_v57, %v6829_v34  ;;  %v6408_v38 = vld [vmem:[#allocation4 + $0x21] sm:$0xff]  ;;  %v7250_v57 = vld [vmem:[#allocation4 + $0x15] sm:$0xff] }
 0xa76   :  { %10883 = vmatprep.mubr.msk.bf16.mxu0 %vm11471_vm4, %v11470_v7  ;;  %v7111_v9 = vld [vmem:[#allocation4 + $0x24] sm:$0xff] }
 0xa77   :  { %v7251_v1 = vld [vmem:[#allocation4 + $0x1d] sm:$0xff] }
 0xa78   :  { %v6231_v29 = vpop.f32.mrb[184].mxu1  ;;  %v13799_v32 = vld [vmem:[#allocation4 + $0x2a] sm:$0xff]  ;;  %v7260_v34 = vpack.c.bf16 %v7251_v1, %v7250_v57 }
 0xa79   :  { %6261 = vst.msk [vmem:[#allocation4 + $0x40] sm:$0xff] %vm1839_vm9, %v6231_v29  ;;  %v6233_v15 = vpop.f32.mrb[185].mxu1  ;;  %v6557_v36 = vpack.c.bf16 %v13799_v32, %v13788_v50  ;;  %v6272_v47 = vld [vmem:[#allocation4 + $0x30] sm:$0xff] }
 0xa7a   :  { %v6234_v58 = vpop.f32.mrb[186].mxu1  ;;  %v6273_v48 = vld [vmem:[#allocation4 + $0x38] sm:$0xff]  ;;  %v6409_v22 = vld [vmem:[#allocation4 + $0x29] sm:$0xff] }
 0xa7b   :  { %v13804_v45 = vld [vmem:[#allocation4 + $0x32] sm:$0xff]  ;;  %6262 = vst.msk [vmem:[#allocation4 + $0x48] sm:$0xff] %vm1839_vm9, %v6234_v58  ;;  %v6236_v17 = vpop.f32.mrb[187].mxu1  ;;  %10924 = vmatmul.mubr.msk.bf16.gmra.mrb[204].mxu1 %vm1839_vm9, %v6557_v36  ;;  %v6279_v46 = vpack.c.bf16 %v6273_v48, %v6272_v47  ;;  %v6416_v23 = vpack.c.bf16 %v6409_v22, %v6408_v38  ;;  %v7110_v47 = vld [vmem:[#allocation4 + $0x1c] sm:$0xff] }
 0xa7c   :  { %v6698_v43 = vpack.c.bf16 %v13804_v45, %v13799_v32  ;;  %10927 = vmatprep.mubr.msk.bf16.mxu1 %vm11471_vm4, %v11470_v7  ;;  %v6832_v25 = vld [vmem:[#allocation4 + $0x33] sm:$0xff]  ;;  %v6831_v31 = vld [vmem:[#allocation4 + $0x2b] sm:$0xff] }
 0xa7d   :  { %10884 = vmatmul.mubr.msk.bf16.gmra.mrb[180].mxu0 %vm1839_vm9, %v6279_v46  ;;  %v6839_v10 = vpack.c.bf16 %v6832_v25, %v6831_v31  ;;  %v6410_v5 = vld [vmem:[#allocation4 + $0x31] sm:$0xff] }
 0xa7e   :  { %10887 = vmatprep.mubr.msk.bf16.mxu0 %vm11471_vm4, %v11470_v7  ;;  %v11441_v58 = vld [vmem:[%s14459_s8 + $0x28] sm:$0xff]   ;;  %v11442_v17 = vld [vmem:[%s14459_s8 + $0x40] sm:$0xff]  }
 0xa7f   :  { %v7109_v48 = vld [vmem:[#allocation4 + $0x14] sm:$0xff]  ;;  %v7112_v56 = vld [vmem:[#allocation4 + $0x2c] sm:$0xff] }
 0xa80   :  { %v6239_v14 = vpop.f32.mrb[188].mxu1  ;;  %v13815_v2 = vld [vmem:[#allocation4 + $0x3a] sm:$0xff]  ;;  %v7119_v46 = vpack.c.bf16 %v7110_v47, %v7109_v48  ;;  %v7394_v59 = vld [vmem:[#allocation4 + $0x2e] sm:$0xff] }
 0xa81   :  { %6263 = vst.msk [vmem:[#allocation4 + $0x50] sm:$0xff] %vm1839_vm9, %v6239_v14  ;;  %v6241_v37 = vpop.f32.mrb[189].mxu1  ;;  %v6558_v51 = vpack.c.bf16 %v13815_v2, %v13804_v45  ;;  %v6274_v0 = vld [vmem:[#allocation4 + $0x40] sm:$0xff]  ;;  %v7113_v50 = vld [vmem:[#allocation4 + $0x34] sm:$0xff] }
 0xa82   :  { %v6242_v49 = vpop.f32.mrb[190].mxu1  ;;  %v6275_v13 = vld [vmem:[#allocation4 + $0x48] sm:$0xff]  ;;  %v6411_v28 = vld [vmem:[#allocation4 + $0x39] sm:$0xff] }
 0xa83   :  { %v13820_v55 = vld [vmem:[#allocation4 + $0x42] sm:$0xff]  ;;  %6264 = vst.msk [vmem:[#allocation4 + $0x58] sm:$0xff] %vm1839_vm9, %v6242_v49  ;;  %10928 = vmatmul.mubr.msk.bf16.gmra.mrb[208].mxu1 %vm1839_vm9, %v6558_v51  ;;  %v6280_v16 = vpack.c.bf16 %v6275_v13, %v6274_v0  ;;  %v6244_v41 = vpop.f32.mrb[191].mxu1  ;;  %v6417_v61 = vpack.c.bf16 %v6411_v28, %v6410_v5  ;;  %v6968_v0 = vld [vmem:[#allocation4 + $0xc] sm:$0xff]  ;;  %v7254_v25 = vld [vmem:[#allocation4 + $0x35] sm:$0xff] }
 0xa84   :  { %v6699_v33 = vpack.c.bf16 %v13820_v55, %v13815_v2  ;;  %10931 = vmatprep.mubr.msk.bf16.mxu1 %vm11471_vm4, %v11470_v7  ;;  %v6834_v52 = vld [vmem:[#allocation4 + $0x43] sm:$0xff]  ;;  %v6833_v27 = vld [vmem:[#allocation4 + $0x3b] sm:$0xff]  ;;  %v7253_v22 = vld [vmem:[#allocation4 + $0x2d] sm:$0xff] }
 0xa85   :  { %10888 = vmatmul.mubr.msk.bf16.gmra.mrb[184].mxu0 %vm1839_vm9, %v6280_v16  ;;  %v6840_v39 = vpack.c.bf16 %v6834_v52, %v6833_v27  ;;  %v6412_v26 = vld [vmem:[#allocation4 + $0x41] sm:$0xff]  ;;  %v7391_v41 = vld [vmem:[#allocation4 + $0x16] sm:$0xff] }
 0xa86   :  { %10893 = vmatprep.mubr.msk.bf16.mxu0 %vm11471_vm4, %v11470_v7  ;;  %v7114_v63 = vld [vmem:[#allocation4 + $0x3c] sm:$0xff]  ;;  %v7115_v32 = vld [vmem:[#allocation4 + $0x44] sm:$0xff] }
 0xa87   :  { %v11443_v13 = vld [vmem:[%s14459_s8 + $0x38] sm:$0xff]   ;;  %v7392_v16 = vld [vmem:[#allocation4 + $0x1e] sm:$0xff] }
 0xa88   :  { %v13831_v19 = vld [vmem:[#allocation4 + $0x4a] sm:$0xff]  ;;  %v6247_v24 = vpop.f32.mrb[192].mxu1  ;;  %v7396_v11 = vld [vmem:[#allocation4 + $0x3e] sm:$0xff] }
 0xa89   :  { %v6559_v53 = vpack.c.bf16 %v13831_v19, %v13820_v55  ;;  %6265 = vst.msk [vmem:[#allocation4 + $0x60] sm:$0x3f] %vm1852_vm10, %v6247_v24  ;;  %v6249_v54 = vpop.f32.mrb[193].mxu1  ;;  %v6413_v40 = vld [vmem:[#allocation4 + $0x49] sm:$0xff]  ;;  %v6978_v55 = vpack.c.bf16 %v7109_v48, %v6968_v0 }
 0xa8a   :  { %v6250_v8 = vpop.f32.mrb[194].mxu1  ;;  %v6418_v60 = vpack.c.bf16 %v6413_v40, %v6412_v26  ;;  %v6836_v29 = vld [vmem:[#allocation4 + $0x53] sm:$0xff]  ;;  %v6835_v15 = vld [vmem:[#allocation4 + $0x4b] sm:$0xff]  ;;  %v6980_v54 = vpack.c.bf16 %v7113_v50, %v7112_v56 }
 0xa8b   :  { %10932 = vmatmul.mubr.msk.bf16.gmra.mrb[212].mxu1 %vm1839_vm9, %v6559_v53  ;;  %v6251_v20 = vpop.f32.mrb[195].mxu1  ;;  %v6841_v36 = vpack.c.bf16 %v6836_v29, %v6835_v15  ;;  %v7116_v14 = vld [vmem:[#allocation4 + $0x4c] sm:$0xff]  ;;  %v7117_v2 = vld [vmem:[#allocation4 + $0x54] sm:$0xff] }
 0xa8c   :  { %10959 = vmatprep.mubr.msk.bf16.mxu1 %vm11471_vm4, %v11470_v7  ;;  %v6695_v45 = vld [vmem:[#allocation4 + $0x52] sm:$0xff]  ;;  %v7393_v24 = vld [vmem:[#allocation4 + $0x26] sm:$0xff]  ;;  %v6982_v18 = vpack.c.bf16 %v7117_v2, %v7116_v14  ;;  %v9331_v40 = vld [vmem:[%s14460_s9] ss:$0 sm:$0xff] }
 0xa8d   :  { %10894 = vmatmul.mubr.msk.bf16.vlgmr.msra.gmra.mrb[188].mxu0 %vm1839_vm9, %v6414_v4  ;;  %v6700_v37 = vpack.c.bf16 %v6695_v45, %v13831_v19  ;;  %v6979_v19 = vpack.c.bf16 %v7111_v9, %v7110_v47  ;;  %v7402_v53 = vpack.c.bf16 %v7394_v59, %v7393_v24  ;;  %v6981_v4 = vpack.c.bf16 %v7115_v32, %v7114_v63  ;;  %v7398_v20 = vld [vmem:[#allocation4 + $0x4e] sm:$0xff]  ;;  %v7397_v62 = vld [vmem:[#allocation4 + $0x46] sm:$0xff] }
 0xa8e   :  { %10936 = vmatpush3.bf16.msra.mxu0 %v11439_v12  ;;  %10897 = vmatprep.mubr.msk.bf16.mxu0 %vm11471_vm4, %v11470_v7  ;;  %v7395_v12 = vld [vmem:[#allocation4 + $0x36] sm:$0xff]  ;;  %v7404_v42 = vpack.c.bf16 %v7398_v20, %v7397_v62  ;;  %v7257_v28 = vld [vmem:[#allocation4 + $0x4d] sm:$0xff] }
 0xa8f   :  { %10979 = vmatprep.subr.bf16.mxu0 %v11470_v7  ;;  %v7403_v8 = vpack.c.bf16 %v7396_v11, %v7395_v12 }
 0xa90   :  { %v7118_v51 = vld [vmem:[#allocation4 + $0x5c] sm:$0xff] }
 0xa91   :  { %v7123_v49 = vpack.c.bf16 %v7118_v51, %v7117_v2  ;;  %v7259_v52 = vld [vmem:[#allocation4 + $0x5d] sm:$0xff] }
 0xa93   :  { %10960 = vmatmul.mubr.msk.bf16.vlgmr.msra.gmra.mrb[216].mxu1 %vm1839_vm9, %v6837_v30  ;;  %v7400_v30 = vld [vmem:[#allocation4 + $0x5e] sm:$0xff] }
 0xa94   :  { %10963 = vmatprep.mubr.msk.bf16.mxu1 %vm11471_vm4, %v11470_v7  ;;  %11002 = vmatpush3.bf16.msra.mxu1 %v11440_v21  ;;  %v7399_v21 = vld [vmem:[#allocation4 + $0x56] sm:$0xff] }
 0xa95   :  { %10898 = vmatmul.mubr.msk.bf16.gmra.mrb[192].mxu0 %vm1839_vm9, %v6415_v6  ;;  %11045 = vmatprep.subr.bf16.mxu1 %v11470_v7  ;;  %v7405_v6 = vpack.c.bf16 %v7400_v30, %v7399_v21 }
 0xa96   :  { %10901 = vmatprep.mubr.msk.bf16.mxu0 %vm11471_vm4, %v11470_v7 }
 0xa9b   :  { %10964 = vmatmul.mubr.msk.bf16.gmra.mrb[220].mxu1 %vm1839_vm9, %v6838_v35  ;;  %v7252_v35 = vld [vmem:[#allocation4 + $0x25] sm:$0xff] }
 0xa9c   :  { %10967 = vmatprep.mubr.msk.bf16.mxu1 %vm11471_vm4, %v11470_v7  ;;  %v7261_v38 = vpack.c.bf16 %v7253_v22, %v7252_v35 }
 0xa9d   :  { %10902 = vmatmul.mubr.msk.bf16.gmra.mrb[196].mxu0 %vm1839_vm9, %v6416_v23  ;;  %v7255_v23 = vld [vmem:[#allocation4 + $0x3d] sm:$0xff] }
 0xa9e   :  { %10905 = vmatprep.mubr.msk.bf16.mxu0 %vm11471_vm4, %v11470_v7  ;;  %v7262_v31 = vpack.c.bf16 %v7255_v23, %v7254_v25 }
 0xaa3   :  { %10968 = vmatmul.mubr.msk.bf16.gmra.mrb[224].mxu1 %vm1839_vm9, %v6839_v10  ;;  %v7256_v10 = vld [vmem:[#allocation4 + $0x45] sm:$0xff] }
 0xaa4   :  { %10971 = vmatprep.mubr.msk.bf16.mxu1 %vm11471_vm4, %v11470_v7  ;;  %v7263_v5 = vpack.c.bf16 %v7257_v28, %v7256_v10 }
 0xaa5   :  { %10906 = vmatmul.mubr.msk.bf16.gmra.mrb[200].mxu0 %vm1839_vm9, %v6417_v61  ;;  %v7258_v61 = vld [vmem:[#allocation4 + $0x55] sm:$0xff] }
 0xaa6   :  { %10909 = vmatprep.mubr.msk.bf16.mxu0 %vm11471_vm4, %v11470_v7  ;;  %v7264_v27 = vpack.c.bf16 %v7259_v52, %v7258_v61 }
 0xaab   :  { %10972 = vmatmul.mubr.msk.bf16.gmra.mrb[228].mxu1 %vm1839_vm9, %v6840_v39 }
 0xaac   :  { %10975 = vmatprep.mubr.msk.bf16.mxu1 %vm11471_vm4, %v11470_v7 }
 0xaad   :  { %10910 = vmatmul.mubr.msk.bf16.gmra.mrb[204].mxu0 %vm1839_vm9, %v6418_v60 }
 0xaae   :  { %10937 = vmatprep.mubr.msk.bf16.mxu0 %vm11471_vm4, %v11470_v7 }
 0xab3   :  { %10976 = vmatmul.mubr.msk.bf16.gmra.mrb[232].mxu1 %vm1839_vm9, %v6841_v36 }
 0xab4   :  { %11003 = vmatprep.mubr.msk.bf16.mxu1 %vm11471_vm4, %v11470_v7 }
 0xab5   :  { %10938 = vmatmul.mubr.msk.bf16.vlgmr.msra.gmra.mrb[208].mxu0 %vm1839_vm9, %v6696_v3  ;;  %v7120_v3 = vpack.c.bf16 %v7112_v56, %v7111_v9 }
 0xab6   :  { %10980 = vmatpush3.bf16.msra.mxu0 %v11441_v58  ;;  %10941 = vmatprep.mubr.msk.bf16.mxu0 %vm11471_vm4, %v11470_v7 }
 0xab7   :  { %11023 = vmatprep.subr.bf16.mxu0 %v11470_v7 }
 0xabb   :  { %11004 = vmatmul.mubr.msk.bf16.vlgmr.msra.gmra.mrb[236].mxu1 %vm1839_vm9, %v7119_v46 }
 0xabc   :  { %11007 = vmatprep.mubr.msk.bf16.mxu1 %vm11471_vm4, %v11470_v7  ;;  %11046 = vmatpush3.bf16.msra.mxu1 %v11442_v17 }
 0xabd   :  { %10942 = vmatmul.mubr.msk.bf16.gmra.mrb[212].mxu0 %vm1839_vm9, %v6697_v44  ;;  %11089 = vmatprep.subr.bf16.mxu1 %v11470_v7  ;;  %v7121_v44 = vpack.c.bf16 %v7114_v63, %v7113_v50 }
 0xabe   :  { %10945 = vmatprep.mubr.msk.bf16.mxu0 %vm11471_vm4, %v11470_v7 }
 0xac3   :  { %11008 = vmatmul.mubr.msk.bf16.gmra.mrb[240].mxu1 %vm1839_vm9, %v7120_v3 }
 0xac4   :  { %11011 = vmatprep.mubr.msk.bf16.mxu1 %vm11471_vm4, %v11470_v7 }
 0xac5   :  { %10946 = vmatmul.mubr.msk.bf16.gmra.mrb[216].mxu0 %vm1839_vm9, %v6698_v43  ;;  %v7122_v43 = vpack.c.bf16 %v7116_v14, %v7115_v32 }
 0xac6   :  { %10949 = vmatprep.mubr.msk.bf16.mxu0 %vm11471_vm4, %v11470_v7 }
 0xacb   :  { %11012 = vmatmul.mubr.msk.bf16.gmra.mrb[244].mxu1 %vm1839_vm9, %v7121_v44 }
 0xacc   :  { %11015 = vmatprep.mubr.msk.bf16.mxu1 %vm11471_vm4, %v11470_v7 }
 0xacd   :  { %10950 = vmatmul.mubr.msk.bf16.gmra.mrb[220].mxu0 %vm1839_vm9, %v6699_v33  ;;  %v7401_v33 = vpack.c.bf16 %v7392_v16, %v7391_v41 }
 0xace   :  { %10953 = vmatprep.mubr.msk.bf16.mxu0 %vm11471_vm4, %v11470_v7 }
 0xad3   :  { %11016 = vmatmul.mubr.msk.bf16.gmra.mrb[248].mxu1 %vm1839_vm9, %v7122_v43 }
 0xad4   :  { %11019 = vmatprep.mubr.msk.bf16.mxu1 %vm11471_vm4, %v11470_v7 }
 0xad5   :  { %10954 = vmatmul.mubr.msk.bf16.gmra.mrb[224].mxu0 %vm1839_vm9, %v6700_v37 }
 0xad6   :  { %10981 = vmatprep.mubr.msk.bf16.mxu0 %vm11471_vm4, %v11470_v7 }
 0xadb   :  { %11020 = vmatmul.mubr.msk.bf16.gmra.mrb[252].mxu1 %vm1839_vm9, %v7123_v49 }
 0xadc   :  { %11047 = vmatprep.mubr.msk.bf16.mxu1 %vm11471_vm4, %v11470_v7 }
 0xadd   :  { %10982 = vmatmul.mubr.msk.bf16.vlgmr.msra.gmra.mrb[228].mxu0 %vm1839_vm9, %v6978_v55 }
 0xade   :  { %11024 = vmatpush3.bf16.msra.mxu0 %v11443_v13  ;;  %10985 = vmatprep.mubr.msk.bf16.mxu0 %vm11471_vm4, %v11470_v7 }
 0xadf   :  { %11067 = vmatprep.subr.bf16.mxu0 %v11470_v7 }
 0xae3   :  { %11048 = vmatmul.mubr.msk.bf16.vlgmr.msra.gmra.mrb[0].mxu1 %vm1839_vm9, %v7401_v33 }
 0xae4   :  { %11051 = vmatprep.mubr.msk.bf16.mxu1 %vm11471_vm4, %v11470_v7 }
 0xae5   :  { %10986 = vmatmul.mubr.msk.bf16.gmra.mrb[232].mxu0 %vm1839_vm9, %v6979_v19 }
 0xae6   :  { %10989 = vmatprep.mubr.msk.bf16.mxu0 %vm11471_vm4, %v11470_v7 }
 0xaeb   :  { %11052 = vmatmul.mubr.msk.bf16.gmra.mrb[4].mxu1 %vm1839_vm9, %v7402_v53 }
 0xaec   :  { %11055 = vmatprep.mubr.msk.bf16.mxu1 %vm11471_vm4, %v11470_v7 }
 0xaed   :  { %10990 = vmatmul.mubr.msk.bf16.gmra.mrb[236].mxu0 %vm1839_vm9, %v6980_v54 }
 0xaee   :  { %10993 = vmatprep.mubr.msk.bf16.mxu0 %vm11471_vm4, %v11470_v7 }
 0xaf3   :  { %11056 = vmatmul.mubr.msk.bf16.gmra.mrb[8].mxu1 %vm1839_vm9, %v7403_v8 }
 0xaf4   :  { %11059 = vmatprep.mubr.msk.bf16.mxu1 %vm11471_vm4, %v11470_v7 }
 0xaf5   :  { %10994 = vmatmul.mubr.msk.bf16.gmra.mrb[240].mxu0 %vm1839_vm9, %v6981_v4 }
 0xaf6   :  { %10997 = vmatprep.mubr.msk.bf16.mxu0 %vm11471_vm4, %v11470_v7 }
 0xafb   :  { %11060 = vmatmul.mubr.msk.bf16.gmra.mrb[12].mxu1 %vm1839_vm9, %v7404_v42 }
 0xafc   :  { %11063 = vmatprep.mubr.msk.bf16.mxu1 %vm11471_vm4, %v11470_v7 }
 0xafd   :  { %10998 = vmatmul.mubr.msk.bf16.gmra.mrb[244].mxu0 %vm1839_vm9, %v6982_v18 }
 0xafe   :  { %11025 = vmatprep.mubr.msk.bf16.mxu0 %vm11471_vm4, %v11470_v7 }
 0xb03   :  { %11064 = vmatmul.mubr.msk.bf16.gmra.mrb[16].mxu1 %vm1839_vm9, %v7405_v6 }
 0xb04   :  { %11091 = vmatprep.mubr.msk.bf16.mxu1 %vm11471_vm4, %v11470_v7 }
 0xb05   :  { %11026 = vmatmul.mubr.msk.bf16.vlgmr.msra.gmra.mrb[248].mxu0 %vm1839_vm9, %v7260_v34 }
 0xb06   :  { %11029 = vmatprep.mubr.msk.bf16.mxu0 %vm11471_vm4, %v11470_v7 }
 0xb0d   :  { %11030 = vmatmul.mubr.msk.bf16.gmra.mrb[252].mxu0 %vm1839_vm9, %v7261_v38 }
 0xb0e   :  { %11033 = vmatprep.mubr.msk.bf16.mxu0 %vm11471_vm4, %v11470_v7 }
 0xb15   :  { %11034 = vmatmul.mubr.msk.bf16.gmra.mrb[0].mxu0 %vm1839_vm9, %v7262_v31 }
 0xb16   :  { %11037 = vmatprep.mubr.msk.bf16.mxu0 %vm11471_vm4, %v11470_v7 }
 0xb1d   :  { %11038 = vmatmul.mubr.msk.bf16.gmra.mrb[4].mxu0 %vm1839_vm9, %v7263_v5 }
 0xb1e   :  { %11041 = vmatprep.mubr.msk.bf16.mxu0 %vm11471_vm4, %v11470_v7 }
 0xb25   :  { %11042 = vmatmul.mubr.msk.bf16.gmra.mrb[8].mxu0 %vm1839_vm9, %v7264_v27 }
 0xb26   :  { %11069 = vmatprep.mubr.msk.bf16.mxu0 %vm11471_vm4, %v11470_v7 }
 0xb38   :  { %v6345_v39 = vpop.f32.mrb[168].mxu0 }
 0xb39   :  { %v6346_v26 = vadd.f32 %v9331_v40, %v6345_v39  ;;  %v10873_v60 = vpop.f32.mrb[169].mxu0 }
 0xb3a   :  { %v6348_v29 = vpop.f32.mrb[170].mxu0 }
 0xb3b   :  { %6384 = vst.msk [vmem:[#allocation3] sm:$0xff] %vm1839_vm9, %v6346_v26  ;;  %v6349_v15 = vadd.f32 %v9331_v40, %v6348_v29  ;;  %v10874_v36 = vpop.f32.mrb[171].mxu0 }
 0xb3d   :  { %6385 = vst.msk [vmem:[#allocation3 + $0x8] sm:$0xff] %vm1839_vm9, %v6349_v15 }
 0xb3e   :  { %v13982_v58 = vpop.f32.mrb[196].mxu1 }
 0xb3f   :  { %v10917_v47 = vpop.f32.mrb[197].mxu1 }
 0xb40   :  { %v6353_v48 = vpop.f32.mrb[172].mxu0  ;;  %v13984_v17 = vpop.f32.mrb[198].mxu1 }
 0xb41   :  { %v6354_v46 = vadd.f32 %v9331_v40, %v6353_v48  ;;  %v10877_v56 = vpop.f32.mrb[173].mxu0  ;;  %v10918_v9 = vpop.f32.mrb[199].mxu1 }
 0xb42   :  { %v6356_v3 = vpop.f32.mrb[174].mxu0  ;;  %v6394_v57 = vld [vmem:[#allocation3] sm:$0xff] }
 0xb43   :  { %6386 = vst.msk [vmem:[#allocation3 + $0x10] sm:$0xff] %vm1839_vm9, %v6354_v46  ;;  %v6357_v63 = vadd.f32 %v9331_v40, %v6356_v3  ;;  %v10878_v50 = vpop.f32.mrb[175].mxu0 }
 0xb44   :  { %v6395_v25 = vld [vmem:[#allocation3 + $0x8] sm:$0xff] }
 0xb45   :  { %6387 = vst.msk [vmem:[#allocation3 + $0x18] sm:$0xff] %vm1839_vm9, %v6357_v63 }
 0xb46   :  { %v13988_v44 = vpop.f32.mrb[200].mxu1 }
 0xb47   :  { %v10921_v14 = vpop.f32.mrb[201].mxu1 }
 0xb48   :  { %v6361_v32 = vpop.f32.mrb[176].mxu0  ;;  %v13990_v45 = vpop.f32.mrb[202].mxu1 }
 0xb49   :  { %v6362_v43 = vadd.f32 %v9331_v40, %v6361_v32  ;;  %v10881_v37 = vpop.f32.mrb[177].mxu0  ;;  %v10922_v51 = vpop.f32.mrb[203].mxu1 }
 0xb4a   :  { %v6364_v2 = vpop.f32.mrb[178].mxu0  ;;  %v6396_v52 = vld [vmem:[#allocation3 + $0x10] sm:$0xff] }
 0xb4b   :  { %6388 = vst.msk [vmem:[#allocation3 + $0x20] sm:$0xff] %vm1839_vm9, %v6362_v43  ;;  %v6365_v49 = vadd.f32 %v9331_v40, %v6364_v2  ;;  %v10882_v0 = vpop.f32.mrb[179].mxu0 }
 0xb4c   :  { %v6397_v29 = vld [vmem:[#allocation3 + $0x18] sm:$0xff] }
 0xb4d   :  { %6389 = vst.msk [vmem:[#allocation3 + $0x28] sm:$0xff] %vm1839_vm9, %v6365_v49 }
 0xb4e   :  { %v13994_v13 = vpop.f32.mrb[204].mxu1 }
 0xb4f   :  { %v10925_v55 = vpop.f32.mrb[205].mxu1 }
 0xb50   :  { %v6369_v16 = vpop.f32.mrb[180].mxu0  ;;  %v13996_v41 = vpop.f32.mrb[206].mxu1 }
 0xb51   :  { %v6370_v33 = vadd.f32 %v9331_v40, %v6369_v16  ;;  %v10885_v19 = vpop.f32.mrb[181].mxu0  ;;  %v10926_v59 = vpop.f32.mrb[207].mxu1 }
 0xb52   :  { %v6372_v24 = vpop.f32.mrb[182].mxu0  ;;  %v6398_v50 = vld [vmem:[#allocation3 + $0x20] sm:$0xff] }
 0xb53   :  { %6390 = vst.msk [vmem:[#allocation3 + $0x30] sm:$0xff] %vm1839_vm9, %v6370_v33  ;;  %v6373_v53 = vadd.f32 %v9331_v40, %v6372_v24  ;;  %v10886_v54 = vpop.f32.mrb[183].mxu0 }
 0xb54   :  { %v6399_v2 = vld [vmem:[#allocation3 + $0x28] sm:$0xff] }
 0xb55   :  { %6391 = vst.msk [vmem:[#allocation3 + $0x38] sm:$0xff] %vm1839_vm9, %v6373_v53  ;;  %v11445_v53 = vld [vmem:[%s14461_s10] sm:$0xff]  }
 0xb56   :  { %v14000_v11 = vpop.f32.mrb[208].mxu1  ;;  %11090 = vmatpush3.bf16.msra.mxu1 %v11445_v53 }
 0xb57   :  { %v10929_v12 = vpop.f32.mrb[209].mxu1  ;;  %11133 = vmatprep.subr.bf16.mxu1 %v11470_v7 }
 0xb58   :  { %v6377_v8 = vpop.f32.mrb[184].mxu0  ;;  %v14002_v4 = vpop.f32.mrb[210].mxu1 }
 0xb59   :  { %v6378_v20 = vadd.f32 %v9331_v40, %v6377_v8  ;;  %v10889_v62 = vpop.f32.mrb[185].mxu0  ;;  %v10930_v42 = vpop.f32.mrb[211].mxu1 }
 0xb5a   :  { %v6380_v18 = vpop.f32.mrb[186].mxu0 }
 0xb5b   :  { %6392 = vst.msk [vmem:[#allocation3 + $0x40] sm:$0xff] %vm1839_vm9, %v6378_v20  ;;  %v6381_v21 = vadd.f32 %v9331_v40, %v6380_v18  ;;  %v10890_v30 = vpop.f32.mrb[187].mxu0 }
 0xb5c   :  { %v6401_v42 = vld [vmem:[#allocation3 + $0x38] sm:$0xff] }
 0xb5d   :  { %6393 = vst.msk [vmem:[#allocation3 + $0x48] sm:$0xff] %vm1839_vm9, %v6381_v21 }
 0xb5e   :  { %v14006_v1 = vpop.f32.mrb[212].mxu1 }
 0xb5f   :  { %v10933_v6 = vpop.f32.mrb[213].mxu1 }
 0xb60   :  { %v6476_v34 = vpop.f32.mrb[188].mxu0  ;;  %v14008_v22 = vpop.f32.mrb[214].mxu1 }
 0xb61   :  { %v6515_v35 = vadd.f32 %v6476_v34, %v6394_v57  ;;  %v10895_v38 = vpop.f32.mrb[189].mxu0  ;;  %v10934_v23 = vpop.f32.mrb[215].mxu1 }
 0xb62   :  { %v6479_v31 = vpop.f32.mrb[190].mxu0  ;;  %v6402_v23 = vld [vmem:[#allocation3 + $0x40] sm:$0xff] }
 0xb63   :  { %6525 = vst.msk [vmem:[#allocation3] sm:$0xff] %vm1839_vm9, %v6515_v35  ;;  %v6516_v28 = vadd.f32 %v6479_v31, %v6395_v25  ;;  %v10896_v10 = vpop.f32.mrb[191].mxu0 }
 0xb65   :  { %6526 = vst.msk [vmem:[#allocation3 + $0x8] sm:$0xff] %vm1839_vm9, %v6516_v28 }
 0xb66   :  { %v14012_v5 = vpop.f32.mrb[216].mxu1 }
 0xb67   :  { %v10961_v61 = vpop.f32.mrb[217].mxu1 }
 0xb68   :  { %v6484_v27 = vpop.f32.mrb[192].mxu0  ;;  %v14014_v40 = vpop.f32.mrb[218].mxu1 }
 0xb69   :  { %v6517_v39 = vadd.f32 %v6484_v27, %v6396_v52  ;;  %v10899_v26 = vpop.f32.mrb[193].mxu0  ;;  %v10962_v60 = vpop.f32.mrb[219].mxu1 }
 0xb6a   :  { %v6487_v15 = vpop.f32.mrb[194].mxu0  ;;  %v6535_v36 = vld [vmem:[#allocation3] sm:$0xff] }
 0xb6b   :  { %6527 = vst.msk [vmem:[#allocation3 + $0x10] sm:$0xff] %vm1839_vm9, %v6517_v39  ;;  %v6518_v47 = vadd.f32 %v6487_v15, %v6397_v29  ;;  %v10900_v48 = vpop.f32.mrb[195].mxu0  ;;  %v6656_v46 = vadd.f32 %v13982_v58, %v6535_v36  ;;  %v11444_v58 = vld [vmem:[%s14461_s10 + $0x8] sm:$0xff]  }
 0xb6c   :  { %v6536_v56 = vld [vmem:[#allocation3 + $0x8] sm:$0xff]  ;;  %11068 = vmatpush3.bf16.msra.mxu0 %v11444_v58 }
 0xb6d   :  { %6528 = vst.msk [vmem:[#allocation3 + $0x18] sm:$0xff] %vm1839_vm9, %v6518_v47  ;;  %6666 = vst.msk [vmem:[#allocation3] sm:$0xff] %vm1839_vm9, %v6656_v46  ;;  %v6657_v9 = vadd.f32 %v13984_v17, %v6536_v56  ;;  %11111 = vmatprep.subr.bf16.mxu0 %v11470_v7 }
 0xb6e   :  { %v14021_v3 = vpop.f32.mrb[220].mxu1 }
 0xb6f   :  { %v10965_v63 = vpop.f32.mrb[221].mxu1  ;;  %6667 = vst.msk [vmem:[#allocation3 + $0x8] sm:$0xff] %vm1839_vm9, %v6657_v9 }
 0xb70   :  { %v6492_v14 = vpop.f32.mrb[196].mxu0  ;;  %v14024_v32 = vpop.f32.mrb[222].mxu1 }
 0xb71   :  { %v6519_v43 = vadd.f32 %v6492_v14, %v6398_v50  ;;  %v10903_v37 = vpop.f32.mrb[197].mxu0  ;;  %v10966_v51 = vpop.f32.mrb[223].mxu1 }
 0xb72   :  { %v6495_v49 = vpop.f32.mrb[198].mxu0  ;;  %v6537_v0 = vld [vmem:[#allocation3 + $0x10] sm:$0xff] }
 0xb73   :  { %6529 = vst.msk [vmem:[#allocation3 + $0x20] sm:$0xff] %vm1839_vm9, %v6519_v43  ;;  %v6520_v17 = vadd.f32 %v6495_v49, %v6399_v2  ;;  %v10904_v55 = vpop.f32.mrb[199].mxu0  ;;  %v6658_v16 = vadd.f32 %v13988_v44, %v6537_v0  ;;  %v6400_v44 = vld [vmem:[#allocation3 + $0x30] sm:$0xff] }
 0xb74   :  { %v6538_v33 = vld [vmem:[#allocation3 + $0x18] sm:$0xff]  ;;  %v6676_v47 = vld [vmem:[#allocation3] sm:$0xff] }
 0xb75   :  { %6530 = vst.msk [vmem:[#allocation3 + $0x28] sm:$0xff] %vm1839_vm9, %v6520_v17  ;;  %6668 = vst.msk [vmem:[#allocation3 + $0x10] sm:$0xff] %vm1839_vm9, %v6658_v16  ;;  %v6659_v19 = vadd.f32 %v13990_v45, %v6538_v33 }
 0xb76   :  { %v14035_v59 = vpop.f32.mrb[224].mxu1 }
 0xb77   :  { %v10969_v24 = vpop.f32.mrb[225].mxu1  ;;  %6669 = vst.msk [vmem:[#allocation3 + $0x18] sm:$0xff] %vm1839_vm9, %v6659_v19 }
 0xb78   :  { %v6500_v54 = vpop.f32.mrb[200].mxu0  ;;  %v14041_v12 = vpop.f32.mrb[226].mxu1 }
 0xb79   :  { %v6521_v8 = vadd.f32 %v6500_v54, %v6400_v44  ;;  %v10907_v20 = vpop.f32.mrb[201].mxu0  ;;  %v10970_v62 = vpop.f32.mrb[227].mxu1 }
 0xb7a   :  { %v6503_v18 = vpop.f32.mrb[202].mxu0  ;;  %v6539_v45 = vld [vmem:[#allocation3 + $0x20] sm:$0xff] }
 0xb7b   :  { %6531 = vst.msk [vmem:[#allocation3 + $0x30] sm:$0xff] %vm1839_vm9, %v6521_v8  ;;  %v6522_v21 = vadd.f32 %v6503_v18, %v6401_v42  ;;  %v10908_v30 = vpop.f32.mrb[203].mxu0  ;;  %v6660_v6 = vadd.f32 %v13994_v13, %v6539_v45  ;;  %v6403_v13 = vld [vmem:[#allocation3 + $0x48] sm:$0xff] }
 0xb7c   :  { %v6540_v57 = vld [vmem:[#allocation3 + $0x28] sm:$0xff]  ;;  %v6678_v0 = vld [vmem:[#allocation3 + $0x10] sm:$0xff] }
 0xb7d   :  { %6532 = vst.msk [vmem:[#allocation3 + $0x38] sm:$0xff] %vm1839_vm9, %v6522_v21  ;;  %6670 = vst.msk [vmem:[#allocation3 + $0x20] sm:$0xff] %vm1839_vm9, %v6660_v6  ;;  %v6661_v34 = vadd.f32 %v13996_v41, %v6540_v57 }
 0xb7e   :  { %v14049_v35 = vpop.f32.mrb[228].mxu1 }
 0xb7f   :  { %v10973_v38 = vpop.f32.mrb[229].mxu1  ;;  %6671 = vst.msk [vmem:[#allocation3 + $0x28] sm:$0xff] %vm1839_vm9, %v6661_v34 }
 0xb80   :  { %v6508_v25 = vpop.f32.mrb[204].mxu0  ;;  %v14052_v31 = vpop.f32.mrb[230].mxu1 }
 0xb81   :  { %v6523_v28 = vadd.f32 %v6508_v25, %v6402_v23  ;;  %v10911_v10 = vpop.f32.mrb[205].mxu0  ;;  %v10974_v61 = vpop.f32.mrb[231].mxu1 }
 0xb82   :  { %v6511_v52 = vpop.f32.mrb[206].mxu0  ;;  %v6541_v27 = vld [vmem:[#allocation3 + $0x30] sm:$0xff] }
 0xb83   :  { %6533 = vst.msk [vmem:[#allocation3 + $0x40] sm:$0xff] %vm1839_vm9, %v6523_v28  ;;  %v6524_v39 = vadd.f32 %v6511_v52, %v6403_v13  ;;  %v10912_v26 = vpop.f32.mrb[207].mxu0  ;;  %v6662_v41 = vadd.f32 %v14000_v11, %v6541_v27  ;;  %v6677_v11 = vld [vmem:[#allocation3 + $0x8] sm:$0xff] }
 0xb84   :  { %v6542_v60 = vld [vmem:[#allocation3 + $0x38] sm:$0xff]  ;;  %v6680_v18 = vld [vmem:[#allocation3 + $0x20] sm:$0xff] }
 0xb85   :  { %6534 = vst.msk [vmem:[#allocation3 + $0x48] sm:$0xff] %vm1839_vm9, %v6524_v39  ;;  %6672 = vst.msk [vmem:[#allocation3 + $0x30] sm:$0xff] %vm1839_vm9, %v6662_v41  ;;  %v6663_v29 = vadd.f32 %v14002_v4, %v6542_v60 }
 0xb86   :  { %v14059_v15 = vpop.f32.mrb[232].mxu1 }
 0xb87   :  { %v10977_v36 = vpop.f32.mrb[233].mxu1  ;;  %6673 = vst.msk [vmem:[#allocation3 + $0x38] sm:$0xff] %vm1839_vm9, %v6663_v29 }
 0xb88   :  { %v6758_v48 = vpop.f32.mrb[208].mxu0  ;;  %v14062_v46 = vpop.f32.mrb[234].mxu1 }
 0xb89   :  { %v6797_v56 = vadd.f32 %v6758_v48, %v6676_v47  ;;  %v10939_v9 = vpop.f32.mrb[209].mxu0  ;;  %v10978_v63 = vpop.f32.mrb[235].mxu1 }
 0xb8a   :  { %v6761_v50 = vpop.f32.mrb[210].mxu0  ;;  %v6543_v14 = vld [vmem:[#allocation3 + $0x40] sm:$0xff] }
 0xb8b   :  { %6807 = vst.msk [vmem:[#allocation3] sm:$0xff] %vm1839_vm9, %v6797_v56  ;;  %v6798_v43 = vadd.f32 %v6761_v50, %v6677_v11  ;;  %v10940_v37 = vpop.f32.mrb[211].mxu0  ;;  %v6664_v4 = vadd.f32 %v14006_v1, %v6543_v14  ;;  %v6679_v1 = vld [vmem:[#allocation3 + $0x18] sm:$0xff] }
 0xb8c   :  { %v6544_v51 = vld [vmem:[#allocation3 + $0x48] sm:$0xff]  ;;  %v6682_v52 = vld [vmem:[#allocation3 + $0x30] sm:$0xff] }
 0xb8d   :  { %6808 = vst.msk [vmem:[#allocation3 + $0x8] sm:$0xff] %vm1839_vm9, %v6798_v43  ;;  %6674 = vst.msk [vmem:[#allocation3 + $0x40] sm:$0xff] %vm1839_vm9, %v6664_v4  ;;  %v6665_v58 = vadd.f32 %v14008_v22, %v6544_v51 }
 0xb8e   :  { %v14069_v2 = vpop.f32.mrb[236].mxu1 }
 0xb8f   :  { %v11005_v49 = vpop.f32.mrb[237].mxu1  ;;  %6675 = vst.msk [vmem:[#allocation3 + $0x48] sm:$0xff] %vm1839_vm9, %v6665_v58 }
 0xb90   :  { %v6766_v17 = vpop.f32.mrb[212].mxu0  ;;  %v14072_v55 = vpop.f32.mrb[238].mxu1 }
 0xb91   :  { %v6799_v16 = vadd.f32 %v6766_v17, %v6678_v0  ;;  %v10943_v33 = vpop.f32.mrb[213].mxu0  ;;  %v11006_v19 = vpop.f32.mrb[239].mxu1 }
 0xb92   :  { %v6769_v24 = vpop.f32.mrb[214].mxu0  ;;  %v6817_v53 = vld [vmem:[#allocation3] sm:$0xff] }
 0xb93   :  { %6809 = vst.msk [vmem:[#allocation3 + $0x10] sm:$0xff] %vm1839_vm9, %v6799_v16  ;;  %v6800_v44 = vadd.f32 %v6769_v24, %v6679_v1  ;;  %v10944_v54 = vpop.f32.mrb[215].mxu0  ;;  %v6938_v22 = vadd.f32 %v14012_v5, %v6817_v53  ;;  %v6681_v5 = vld [vmem:[#allocation3 + $0x28] sm:$0xff] }
 0xb94   :  { %v6818_v8 = vld [vmem:[#allocation3 + $0x8] sm:$0xff]  ;;  %v6684_v50 = vld [vmem:[#allocation3 + $0x40] sm:$0xff] }
 0xb95   :  { %6810 = vst.msk [vmem:[#allocation3 + $0x18] sm:$0xff] %vm1839_vm9, %v6800_v44  ;;  %6948 = vst.msk [vmem:[#allocation3] sm:$0xff] %vm1839_vm9, %v6938_v22  ;;  %v6939_v20 = vadd.f32 %v14014_v40, %v6818_v8 }
 0xb96   :  { %v14079_v62 = vpop.f32.mrb[240].mxu1 }
 0xb97   :  { %v11009_v42 = vpop.f32.mrb[241].mxu1  ;;  %6949 = vst.msk [vmem:[#allocation3 + $0x8] sm:$0xff] %vm1839_vm9, %v6939_v20 }
 0xb98   :  { %v6774_v45 = vpop.f32.mrb[216].mxu0  ;;  %v14082_v21 = vpop.f32.mrb[242].mxu1 }
 0xb99   :  { %v6801_v30 = vadd.f32 %v6774_v45, %v6680_v18  ;;  %v10947_v6 = vpop.f32.mrb[217].mxu0  ;;  %v11010_v57 = vpop.f32.mrb[243].mxu1 }
 0xb9a   :  { %v6777_v34 = vpop.f32.mrb[218].mxu0  ;;  %v6819_v38 = vld [vmem:[#allocation3 + $0x10] sm:$0xff] }
 0xb9b   :  { %6811 = vst.msk [vmem:[#allocation3 + $0x20] sm:$0xff] %vm1839_vm9, %v6801_v30  ;;  %v6802_v23 = vadd.f32 %v6777_v34, %v6681_v5  ;;  %v10948_v25 = vpop.f32.mrb[219].mxu0  ;;  %v6940_v40 = vadd.f32 %v14021_v3, %v6819_v38  ;;  %v6683_v3 = vld [vmem:[#allocation3 + $0x38] sm:$0xff] }
 0xb9c   :  { %v6820_v28 = vld [vmem:[#allocation3 + $0x18] sm:$0xff]  ;;  %v6958_v24 = vld [vmem:[#allocation3] sm:$0xff] }
 0xb9d   :  { %6812 = vst.msk [vmem:[#allocation3 + $0x28] sm:$0xff] %vm1839_vm9, %v6802_v23  ;;  %6950 = vst.msk [vmem:[#allocation3 + $0x10] sm:$0xff] %vm1839_vm9, %v6940_v40  ;;  %v6941_v10 = vadd.f32 %v14024_v32, %v6820_v28 }
 0xb9e   :  { %v14089_v61 = vpop.f32.mrb[244].mxu1 }
 0xb9f   :  { %v11013_v13 = vpop.f32.mrb[245].mxu1  ;;  %6951 = vst.msk [vmem:[#allocation3 + $0x18] sm:$0xff] %vm1839_vm9, %v6941_v10 }
 0xba0   :  { %v6782_v27 = vpop.f32.mrb[220].mxu0  ;;  %v14092_v39 = vpop.f32.mrb[246].mxu1 }
 0xba1   :  { %v6803_v26 = vadd.f32 %v6782_v27, %v6682_v52  ;;  %v10951_v41 = vpop.f32.mrb[221].mxu0  ;;  %v11014_v60 = vpop.f32.mrb[247].mxu1 }
 0xba2   :  { %v6785_v29 = vpop.f32.mrb[222].mxu0  ;;  %v6821_v36 = vld [vmem:[#allocation3 + $0x20] sm:$0xff] }
 0xba3   :  { %6813 = vst.msk [vmem:[#allocation3 + $0x30] sm:$0xff] %vm1839_vm9, %v6803_v26  ;;  %v6804_v47 = vadd.f32 %v6785_v29, %v6683_v3  ;;  %v10952_v48 = vpop.f32.mrb[223].mxu0  ;;  %v6942_v32 = vadd.f32 %v14035_v59, %v6821_v36  ;;  %v6685_v59 = vld [vmem:[#allocation3 + $0x48] sm:$0xff] }
 0xba4   :  { %v6822_v56 = vld [vmem:[#allocation3 + $0x28] sm:$0xff]  ;;  %v6960_v34 = vld [vmem:[#allocation3 + $0x10] sm:$0xff] }
 0xba5   :  { %6814 = vst.msk [vmem:[#allocation3 + $0x38] sm:$0xff] %vm1839_vm9, %v6804_v47  ;;  %6952 = vst.msk [vmem:[#allocation3 + $0x20] sm:$0xff] %vm1839_vm9, %v6942_v32  ;;  %v6943_v9 = vadd.f32 %v14041_v12, %v6822_v56 }
 0xba6   :  { %v14099_v63 = vpop.f32.mrb[248].mxu1 }
 0xba7   :  { %v11017_v11 = vpop.f32.mrb[249].mxu1  ;;  %6953 = vst.msk [vmem:[#allocation3 + $0x28] sm:$0xff] %vm1839_vm9, %v6943_v9 }
 0xba8   :  { %v6790_v14 = vpop.f32.mrb[224].mxu0  ;;  %v14102_v43 = vpop.f32.mrb[250].mxu1 }
 0xba9   :  { %v6805_v37 = vadd.f32 %v6790_v14, %v6684_v50  ;;  %v10955_v4 = vpop.f32.mrb[225].mxu0  ;;  %v11018_v51 = vpop.f32.mrb[251].mxu1 }
 0xbaa   :  { %v6793_v58 = vpop.f32.mrb[226].mxu0  ;;  %v6823_v49 = vld [vmem:[#allocation3 + $0x30] sm:$0xff] }
 0xbab   :  { %6815 = vst.msk [vmem:[#allocation3 + $0x40] sm:$0xff] %vm1839_vm9, %v6805_v37  ;;  %v6806_v0 = vadd.f32 %v6793_v58, %v6685_v59  ;;  %v10956_v17 = vpop.f32.mrb[227].mxu0  ;;  %v6944_v12 = vadd.f32 %v14049_v35, %v6823_v49  ;;  %v6959_v35 = vld [vmem:[#allocation3 + $0x8] sm:$0xff] }
 0xbac   :  { %v6824_v16 = vld [vmem:[#allocation3 + $0x38] sm:$0xff]  ;;  %v6962_v29 = vld [vmem:[#allocation3 + $0x20] sm:$0xff] }
 0xbad   :  { %6816 = vst.msk [vmem:[#allocation3 + $0x48] sm:$0xff] %vm1839_vm9, %v6806_v0  ;;  %6954 = vst.msk [vmem:[#allocation3 + $0x30] sm:$0xff] %vm1839_vm9, %v6944_v12  ;;  %v6945_v33 = vadd.f32 %v14052_v31, %v6824_v16 }
 0xbae   :  { %v14109_v19 = vpop.f32.mrb[252].mxu1 }
 0xbaf   :  { %v11021_v1 = vpop.f32.mrb[253].mxu1  ;;  %6955 = vst.msk [vmem:[#allocation3 + $0x38] sm:$0xff] %vm1839_vm9, %v6945_v33 }
 0xbb0   :  { %v7040_v53 = vpop.f32.mrb[228].mxu0  ;;  %v14112_v44 = vpop.f32.mrb[254].mxu1 }
 0xbb1   :  { %v7079_v54 = vadd.f32 %v7040_v53, %v6958_v24  ;;  %v10983_v22 = vpop.f32.mrb[229].mxu0  ;;  %v11022_v8 = vpop.f32.mrb[255].mxu1 }
 0xbb2   :  { %v7043_v20 = vpop.f32.mrb[230].mxu0  ;;  %v6825_v42 = vld [vmem:[#allocation3 + $0x40] sm:$0xff] }
 0xbb3   :  { %7089 = vst.msk [vmem:[#allocation3] sm:$0xff] %vm1839_vm9, %v7079_v54  ;;  %v7080_v18 = vadd.f32 %v7043_v20, %v6959_v35  ;;  %v10984_v45 = vpop.f32.mrb[231].mxu0  ;;  %v6946_v31 = vadd.f32 %v14059_v15, %v6825_v42  ;;  %v6961_v15 = vld [vmem:[#allocation3 + $0x18] sm:$0xff] }
 0xbb4   :  { %v6826_v30 = vld [vmem:[#allocation3 + $0x48] sm:$0xff]  ;;  %v6964_v58 = vld [vmem:[#allocation3 + $0x30] sm:$0xff] }
 0xbb5   :  { %7090 = vst.msk [vmem:[#allocation3 + $0x8] sm:$0xff] %vm1839_vm9, %v7080_v18  ;;  %6956 = vst.msk [vmem:[#allocation3 + $0x40] sm:$0xff] %vm1839_vm9, %v6946_v31  ;;  %v6947_v6 = vadd.f32 %v14062_v46, %v6826_v30 }
 0xbb6   :  { %v14119_v57 = vpop.f32.mrb[0].mxu1 }
 0xbb7   :  { %v11049_v5 = vpop.f32.mrb[1].mxu1  ;;  %6957 = vst.msk [vmem:[#allocation3 + $0x48] sm:$0xff] %vm1839_vm9, %v6947_v6 }
 0xbb8   :  { %v7048_v38 = vpop.f32.mrb[232].mxu0  ;;  %v14122_v23 = vpop.f32.mrb[2].mxu1 }
 0xbb9   :  { %v7081_v25 = vadd.f32 %v7048_v38, %v6960_v34  ;;  %v10987_v40 = vpop.f32.mrb[233].mxu0  ;;  %v11050_v28 = vpop.f32.mrb[3].mxu1 }
 0xbba   :  { %v7051_v10 = vpop.f32.mrb[234].mxu0  ;;  %v7099_v13 = vld [vmem:[#allocation3] sm:$0xff] }
 0xbbb   :  { %7091 = vst.msk [vmem:[#allocation3 + $0x10] sm:$0xff] %vm1839_vm9, %v7081_v25  ;;  %v7082_v52 = vadd.f32 %v7051_v10, %v6961_v15  ;;  %v10988_v27 = vpop.f32.mrb[235].mxu0  ;;  %v7220_v46 = vadd.f32 %v14069_v2, %v7099_v13  ;;  %v6963_v2 = vld [vmem:[#allocation3 + $0x28] sm:$0xff] }
 0xbbc   :  { %v7100_v26 = vld [vmem:[#allocation3 + $0x8] sm:$0xff]  ;;  %v6966_v20 = vld [vmem:[#allocation3 + $0x40] sm:$0xff] }
 0xbbd   :  { %7092 = vst.msk [vmem:[#allocation3 + $0x18] sm:$0xff] %vm1839_vm9, %v7082_v52  ;;  %7230 = vst.msk [vmem:[#allocation3] sm:$0xff] %vm1839_vm9, %v7220_v46  ;;  %v7221_v41 = vadd.f32 %v14072_v55, %v7100_v26 }
 0xbbe   :  { %v14129_v60 = vpop.f32.mrb[4].mxu1 }
 0xbbf   :  { %v11053_v3 = vpop.f32.mrb[5].mxu1  ;;  %7231 = vst.msk [vmem:[#allocation3 + $0x8] sm:$0xff] %vm1839_vm9, %v7221_v41 }
 0xbc0   :  { %v7056_v36 = vpop.f32.mrb[236].mxu0  ;;  %v14132_v47 = vpop.f32.mrb[6].mxu1 }
 0xbc1   :  { %v7083_v48 = vadd.f32 %v7056_v36, %v6962_v29  ;;  %v10991_v32 = vpop.f32.mrb[237].mxu0  ;;  %v11054_v56 = vpop.f32.mrb[7].mxu1 }
 0xbc2   :  { %v7059_v9 = vpop.f32.mrb[238].mxu0  ;;  %v7101_v11 = vld [vmem:[#allocation3 + $0x10] sm:$0xff] }
 0xbc3   :  { %7093 = vst.msk [vmem:[#allocation3 + $0x20] sm:$0xff] %vm1839_vm9, %v7083_v48  ;;  %v7084_v50 = vadd.f32 %v7059_v9, %v6963_v2  ;;  %v10992_v14 = vpop.f32.mrb[239].mxu0  ;;  %v7222_v55 = vadd.f32 %v14079_v62, %v7101_v11  ;;  %v6965_v62 = vld [vmem:[#allocation3 + $0x38] sm:$0xff] }
 0xbc4   :  { %v7102_v37 = vld [vmem:[#allocation3 + $0x18] sm:$0xff]  ;;  %v7240_v10 = vld [vmem:[#allocation3] sm:$0xff] }
 0xbc5   :  { %7094 = vst.msk [vmem:[#allocation3 + $0x28] sm:$0xff] %vm1839_vm9, %v7084_v50  ;;  %7232 = vst.msk [vmem:[#allocation3 + $0x10] sm:$0xff] %vm1839_vm9, %v7222_v55  ;;  %v7223_v4 = vadd.f32 %v14082_v21, %v7102_v37 }
 0xbc6   :  { %v14139_v51 = vpop.f32.mrb[8].mxu1 }
 0xbc7   :  { %v11057_v59 = vpop.f32.mrb[9].mxu1  ;;  %7233 = vst.msk [vmem:[#allocation3 + $0x18] sm:$0xff] %vm1839_vm9, %v7223_v4 }
 0xbc8   :  { %v7064_v49 = vpop.f32.mrb[240].mxu0  ;;  %v14142_v0 = vpop.f32.mrb[10].mxu1 }
 0xbc9   :  { %v7085_v17 = vadd.f32 %v7064_v49, %v6964_v58  ;;  %v10995_v12 = vpop.f32.mrb[241].mxu0  ;;  %v11058_v16 = vpop.f32.mrb[11].mxu1 }
 0xbca   :  { %v7067_v33 = vpop.f32.mrb[242].mxu0  ;;  %v7103_v1 = vld [vmem:[#allocation3 + $0x20] sm:$0xff] }
 0xbcb   :  { %7095 = vst.msk [vmem:[#allocation3 + $0x30] sm:$0xff] %vm1839_vm9, %v7085_v17  ;;  %v7086_v24 = vadd.f32 %v7067_v33, %v6965_v62  ;;  %v10996_v53 = vpop.f32.mrb[243].mxu0  ;;  %v7224_v21 = vadd.f32 %v14089_v61, %v7103_v1  ;;  %v6967_v61 = vld [vmem:[#allocation3 + $0x48] sm:$0xff] }
 0xbcc   :  { %v7104_v54 = vld [vmem:[#allocation3 + $0x28] sm:$0xff]  ;;  %v7242_v56 = vld [vmem:[#allocation3 + $0x10] sm:$0xff] }
 0xbcd   :  { %7096 = vst.msk [vmem:[#allocation3 + $0x38] sm:$0xff] %vm1839_vm9, %v7086_v24  ;;  %7234 = vst.msk [vmem:[#allocation3 + $0x20] sm:$0xff] %vm1839_vm9, %v7224_v21  ;;  %v7225_v22 = vadd.f32 %v14092_v39, %v7104_v54 }
 0xbce   :  { %v14149_v8 = vpop.f32.mrb[12].mxu1  ;;  %v7243_v14 = vld [vmem:[#allocation3 + $0x18] sm:$0xff] }
 0xbcf   :  { %v11061_v35 = vpop.f32.mrb[13].mxu1  ;;  %7235 = vst.msk [vmem:[#allocation3 + $0x28] sm:$0xff] %vm1839_vm9, %v7225_v22 }
 0xbd0   :  { %v7072_v42 = vpop.f32.mrb[244].mxu0  ;;  %v14152_v18 = vpop.f32.mrb[14].mxu1 }
 0xbd1   :  { %v7087_v45 = vadd.f32 %v7072_v42, %v6966_v20  ;;  %v10999_v31 = vpop.f32.mrb[245].mxu0  ;;  %v11062_v30 = vpop.f32.mrb[15].mxu1 }
 0xbd2   :  { %v7075_v6 = vpop.f32.mrb[246].mxu0  ;;  %v7105_v5 = vld [vmem:[#allocation3 + $0x30] sm:$0xff] }
 0xbd3   :  { %7097 = vst.msk [vmem:[#allocation3 + $0x40] sm:$0xff] %vm1839_vm9, %v7087_v45  ;;  %v7088_v34 = vadd.f32 %v7075_v6, %v6967_v61  ;;  %v11000_v38 = vpop.f32.mrb[247].mxu0  ;;  %v7226_v39 = vadd.f32 %v14099_v63, %v7105_v5  ;;  %v7241_v63 = vld [vmem:[#allocation3 + $0x8] sm:$0xff] }
 0xbd4   :  { %v7106_v25 = vld [vmem:[#allocation3 + $0x38] sm:$0xff]  ;;  %v7244_v58 = vld [vmem:[#allocation3 + $0x20] sm:$0xff] }
 0xbd5   :  { %7098 = vst.msk [vmem:[#allocation3 + $0x48] sm:$0xff] %vm1839_vm9, %v7088_v34  ;;  %7236 = vst.msk [vmem:[#allocation3 + $0x30] sm:$0xff] %vm1839_vm9, %v7226_v39  ;;  %v7227_v40 = vadd.f32 %v14102_v43, %v7106_v25 }
 0xbd6   :  { %v14159_v28 = vpop.f32.mrb[16].mxu1  ;;  %v7245_v62 = vld [vmem:[#allocation3 + $0x28] sm:$0xff] }
 0xbd7   :  { %v11065_v15 = vpop.f32.mrb[17].mxu1  ;;  %7237 = vst.msk [vmem:[#allocation3 + $0x38] sm:$0xff] %vm1839_vm9, %v7227_v40 }
 0xbd8   :  { %v7322_v13 = vpop.f32.mrb[248].mxu0  ;;  %v14162_v52 = vpop.f32.mrb[18].mxu1 }
 0xbd9   :  { %v7361_v27 = vadd.f32 %v7322_v13, %v7240_v10  ;;  %v11027_v46 = vpop.f32.mrb[249].mxu0  ;;  %v11066_v26 = vpop.f32.mrb[19].mxu1 }
 0xbda   :  { %v7325_v41 = vpop.f32.mrb[250].mxu0  ;;  %v7107_v3 = vld [vmem:[#allocation3 + $0x40] sm:$0xff] }
 0xbdb   :  { %7371 = vst.msk [vmem:[#allocation3] sm:$0xff] %vm1839_vm9, %v7361_v27  ;;  %v7362_v29 = vadd.f32 %v7325_v41, %v7241_v63  ;;  %v11028_v36 = vpop.f32.mrb[251].mxu0  ;;  %v7228_v43 = vadd.f32 %v14109_v19, %v7107_v3 }
 0xbdc   :  { %v7108_v48 = vld [vmem:[#allocation3 + $0x48] sm:$0xff] }
 0xbdd   :  { %7372 = vst.msk [vmem:[#allocation3 + $0x8] sm:$0xff] %vm1839_vm9, %v7362_v29  ;;  %7238 = vst.msk [vmem:[#allocation3 + $0x40] sm:$0xff] %vm1839_vm9, %v7228_v43  ;;  %v7229_v32 = vadd.f32 %v14112_v44, %v7108_v48 }
 0xbde   :  { %v7247_v30 = vld [vmem:[#allocation3 + $0x38] sm:$0xff] }
 0xbdf   :  { %7239 = vst.msk [vmem:[#allocation3 + $0x48] sm:$0xff] %vm1839_vm9, %v7229_v32 }
 0xbe0   :  { %v7330_v2 = vpop.f32.mrb[252].mxu0 }
 0xbe1   :  { %v7363_v9 = vadd.f32 %v7330_v2, %v7242_v56  ;;  %v11031_v11 = vpop.f32.mrb[253].mxu0 }
 0xbe2   :  { %v7381_v50 = vld [vmem:[#allocation3] sm:$0xff]  ;;  %v7333_v55 = vpop.f32.mrb[254].mxu0 }
 0xbe3   :  { %v7502_v37 = vadd.f32 %v14119_v57, %v7381_v50  ;;  %7373 = vst.msk [vmem:[#allocation3 + $0x10] sm:$0xff] %vm1839_vm9, %v7363_v9  ;;  %v7364_v19 = vadd.f32 %v7333_v55, %v7243_v14  ;;  %v11032_v4 = vpop.f32.mrb[255].mxu0 }
 0xbe4   :  { %v7382_v59 = vld [vmem:[#allocation3 + $0x8] sm:$0xff]  ;;  %v7248_v10 = vld [vmem:[#allocation3 + $0x40] sm:$0xff] }
 0xbe5   :  { %7512 = vst.msk [vmem:[#allocation3] sm:$0xff] %vm1839_vm9, %v7502_v37  ;;  %v7503_v44 = vadd.f32 %v14122_v23, %v7382_v59  ;;  %7374 = vst.msk [vmem:[#allocation3 + $0x18] sm:$0xff] %vm1839_vm9, %v7364_v19 }
 0xbe6   :  { %v7249_v3 = vld [vmem:[#allocation3 + $0x48] sm:$0xff] }
 0xbe7   :  { %7513 = vst.msk [vmem:[#allocation3 + $0x8] sm:$0xff] %vm1839_vm9, %v7503_v44 }
 0xbe8   :  { %v7338_v49 = vpop.f32.mrb[0].mxu0 }
 0xbe9   :  { %v7365_v17 = vadd.f32 %v7338_v49, %v7244_v58  ;;  %v11035_v12 = vpop.f32.mrb[1].mxu0 }
 0xbea   :  { %v7383_v16 = vld [vmem:[#allocation3 + $0x10] sm:$0xff]  ;;  %v7341_v57 = vpop.f32.mrb[2].mxu0 }
 0xbeb   :  { %v7504_v33 = vadd.f32 %v14129_v60, %v7383_v16  ;;  %7375 = vst.msk [vmem:[#allocation3 + $0x20] sm:$0xff] %vm1839_vm9, %v7365_v17  ;;  %v7366_v1 = vadd.f32 %v7341_v57, %v7245_v62  ;;  %v11036_v24 = vpop.f32.mrb[3].mxu0  ;;  %v7246_v60 = vld [vmem:[#allocation3 + $0x30] sm:$0xff] }
 0xbec   :  { %v7522_v53 = vld [vmem:[#allocation3] sm:$0xff]  ;;  %v7384_v21 = vld [vmem:[#allocation3 + $0x18] sm:$0xff] }
 0xbed   :  { %v7532_v23 = vmax.f32 %v7522_v53, 0.0  ;;  %7514 = vst.msk [vmem:[#allocation3 + $0x10] sm:$0xff] %vm1839_vm9, %v7504_v33  ;;  %v7505_v54 = vadd.f32 %v14132_v47, %v7384_v21  ;;  %7376 = vst.msk [vmem:[#allocation3 + $0x28] sm:$0xff] %vm1839_vm9, %v7366_v1 }
 0xbee   :  { %v7523_v22 = vld [vmem:[#allocation3 + $0x8] sm:$0xff] }
 0xbef   :  { %7542 = vst.msk [vmem:[#allocation3] sm:$0xff] %vm1839_vm9, %v7532_v23  ;;  %v7533_v35 = vmax.f32 %v7523_v22, 0.0  ;;  %7515 = vst.msk [vmem:[#allocation3 + $0x18] sm:$0xff] %vm1839_vm9, %v7505_v54 }
 0xbf0   :  { %v7346_v20 = vpop.f32.mrb[4].mxu0 }
 0xbf1   :  { %7543 = vst.msk [vmem:[#allocation3 + $0x8] sm:$0xff] %vm1839_vm9, %v7533_v35  ;;  %v7367_v42 = vadd.f32 %v7346_v20, %v7246_v60  ;;  %v11039_v45 = vpop.f32.mrb[5].mxu0 }
 0xbf2   :  { %v7385_v31 = vld [vmem:[#allocation3 + $0x20] sm:$0xff]  ;;  %v7349_v61 = vpop.f32.mrb[6].mxu0 }
 0xbf3   :  { %v7506_v6 = vadd.f32 %v14139_v51, %v7385_v31  ;;  %7377 = vst.msk [vmem:[#allocation3 + $0x30] sm:$0xff] %vm1839_vm9, %v7367_v42  ;;  %v7368_v47 = vadd.f32 %v7349_v61, %v7247_v30  ;;  %v11040_v5 = vpop.f32.mrb[7].mxu0  ;;  %v11447_v51 = vld [vmem:[%s14461_s10 + $0x18] sm:$0xff]  }
 0xbf4   :  { %v7524_v34 = vld [vmem:[#allocation3 + $0x10] sm:$0xff]  ;;  %v7386_v38 = vld [vmem:[#allocation3 + $0x28] sm:$0xff] }
 0xbf5   :  { %v7534_v39 = vmax.f32 %v7524_v34, 0.0  ;;  %7516 = vst.msk [vmem:[#allocation3 + $0x20] sm:$0xff] %vm1839_vm9, %v7506_v6  ;;  %v7507_v25 = vadd.f32 %v14142_v0, %v7386_v38  ;;  %7378 = vst.msk [vmem:[#allocation3 + $0x38] sm:$0xff] %vm1839_vm9, %v7368_v47 }
 0xbf6   :  { %v7525_v40 = vld [vmem:[#allocation3 + $0x18] sm:$0xff]  ;;  %v7552_v27 = vld [vmem:[#allocation3] sm:$0xff] }
 0xbf7   :  { %7544 = vst.msk [vmem:[#allocation3 + $0x10] sm:$0xff] %vm1839_vm9, %v7534_v39  ;;  %v7535_v15 = vmax.f32 %v7525_v40, 0.0  ;;  %7517 = vst.msk [vmem:[#allocation3 + $0x28] sm:$0xff] %vm1839_vm9, %v7507_v25 }
 0xbf8   :  { %v7354_v13 = vpop.f32.mrb[8].mxu0  ;;  %v7553_v46 = vld [vmem:[#allocation3 + $0x8] sm:$0xff] }
 0xbf9   :  { %7545 = vst.msk [vmem:[#allocation3 + $0x18] sm:$0xff] %vm1839_vm9, %v7535_v15  ;;  %v7369_v26 = vadd.f32 %v7354_v13, %v7248_v10  ;;  %v11043_v0 = vpop.f32.mrb[9].mxu0  ;;  %v7561_v63 = vpack.c.bf16 %v7553_v46, %v7552_v27  ;;  %v7568_v50 = vld [vmem:[#allocation3 + $0x1] sm:$0xff] }
 0xbfa   :  { %v7387_v41 = vld [vmem:[#allocation3 + $0x30] sm:$0xff]  ;;  %v7357_v29 = vpop.f32.mrb[10].mxu0 }
 0xbfb   :  { %v7508_v36 = vadd.f32 %v14149_v8, %v7387_v41  ;;  %7379 = vst.msk [vmem:[#allocation3 + $0x40] sm:$0xff] %vm1839_vm9, %v7369_v26  ;;  %v7370_v43 = vadd.f32 %v7357_v29, %v7249_v3  ;;  %v11044_v48 = vpop.f32.mrb[11].mxu0  ;;  %11092 = vmatmul.mubr.msk.bf16.vlgmr.msra.gmra.mrb[20].mxu1 %vm1839_vm9, %v7561_v63  ;;  %v11446_v8 = vld [vmem:[%s14461_s10 + $0x10] sm:$0xff]  }
 0xbfc   :  { %v7526_v32 = vld [vmem:[#allocation3 + $0x20] sm:$0xff]  ;;  %v7388_v56 = vld [vmem:[#allocation3 + $0x38] sm:$0xff]  ;;  %11095 = vmatprep.mubr.msk.bf16.mxu1 %vm11471_vm4, %v11470_v7  ;;  %11134 = vmatpush3.bf16.msra.mxu1 %v11447_v51 }
 0xbfd   :  { %v7536_v2 = vmax.f32 %v7526_v32, 0.0  ;;  %7518 = vst.msk [vmem:[#allocation3 + $0x30] sm:$0xff] %vm1839_vm9, %v7508_v36  ;;  %v7509_v9 = vadd.f32 %v14152_v18, %v7388_v56  ;;  %7380 = vst.msk [vmem:[#allocation3 + $0x48] sm:$0xff] %vm1839_vm9, %v7370_v43 }
 0xbfe   :  { %v7527_v11 = vld [vmem:[#allocation3 + $0x28] sm:$0xff]  ;;  %v7554_v19 = vld [vmem:[#allocation3 + $0x10] sm:$0xff] }
 0xbff   :  { %v7569_v14 = vld [vmem:[#allocation3 + $0x9] sm:$0xff]  ;;  %7546 = vst.msk [vmem:[#allocation3 + $0x20] sm:$0xff] %vm1839_vm9, %v7536_v2  ;;  %v7537_v55 = vmax.f32 %v7527_v11, 0.0  ;;  %7519 = vst.msk [vmem:[#allocation3 + $0x38] sm:$0xff] %vm1839_vm9, %v7509_v9 }
 0xc00   :  { %v7577_v37 = vpack.c.bf16 %v7569_v14, %v7568_v50  ;;  %v7555_v4 = vld [vmem:[#allocation3 + $0x18] sm:$0xff]  ;;  %v7888_v39 = vld [vmem:[#allocation3 + $0xb] sm:$0xff] }
 0xc01   :  { %7547 = vst.msk [vmem:[#allocation3 + $0x28] sm:$0xff] %vm1839_vm9, %v7537_v55  ;;  %v7562_v18 = vpack.c.bf16 %v7555_v4, %v7554_v19  ;;  %v7570_v62 = vld [vmem:[#allocation3 + $0x11] sm:$0xff] }
 0xc02   :  { %11070 = vmatmul.mubr.msk.bf16.vlgmr.msra.gmra.mrb[12].mxu0 %vm1839_vm9, %v7577_v37  ;;  %v7389_v59 = vld [vmem:[#allocation3 + $0x40] sm:$0xff]  ;;  %v7889_v34 = vld [vmem:[#allocation3 + $0x13] sm:$0xff]  ;;  %v7770_v15 = vld [vmem:[#allocation3 + $0xa] sm:$0xff] }
 0xc03   :  { %11112 = vmatpush3.bf16.msra.mxu0 %v11446_v8  ;;  %11073 = vmatprep.mubr.msk.bf16.mxu0 %vm11471_vm4, %v11470_v7  ;;  %v7510_v44 = vadd.f32 %v14159_v28, %v7389_v59  ;;  %v7897_v25 = vpack.c.bf16 %v7889_v34, %v7888_v39  ;;  %v7771_v40 = vld [vmem:[#allocation3 + $0x12] sm:$0xff]  ;;  %v11451_v37 = vld [vmem:[%s14466_s15] sm:$0xff]  }
 0xc04   :  { %11096 = vmatmul.mubr.msk.bf16.gmra.mrb[24].mxu1 %vm1839_vm9, %v7562_v18  ;;  %11155 = vmatprep.subr.bf16.mxu0 %v11470_v7  ;;  %v7528_v58 = vld [vmem:[#allocation3 + $0x30] sm:$0xff]  ;;  %v7390_v49 = vld [vmem:[#allocation3 + $0x48] sm:$0xff]  ;;  %v7779_v10 = vpack.c.bf16 %v7771_v40, %v7770_v15 }
 0xc05   :  { %11099 = vmatprep.mubr.msk.bf16.mxu1 %vm11471_vm4, %v11470_v7  ;;  %v7538_v17 = vmax.f32 %v7528_v58, 0.0  ;;  %7520 = vst.msk [vmem:[#allocation3 + $0x40] sm:$0xff] %vm1839_vm9, %v7510_v44  ;;  %v7511_v12 = vadd.f32 %v14162_v52, %v7390_v49  ;;  %11177 = vmatprep.subr.bf16.mxu1 %v11451_v37 }
 0xc06   :  { %v7529_v16 = vld [vmem:[#allocation3 + $0x38] sm:$0xff]  ;;  %v7556_v1 = vld [vmem:[#allocation3 + $0x20] sm:$0xff] }
 0xc07   :  { %v7571_v57 = vld [vmem:[#allocation3 + $0x19] sm:$0xff]  ;;  %7548 = vst.msk [vmem:[#allocation3 + $0x30] sm:$0xff] %vm1839_vm9, %v7538_v17  ;;  %v7539_v28 = vmax.f32 %v7529_v16, 0.0  ;;  %7521 = vst.msk [vmem:[#allocation3 + $0x48] sm:$0xff] %vm1839_vm9, %v7511_v12 }
 0xc08   :  { %v7578_v33 = vpack.c.bf16 %v7571_v57, %v7570_v62  ;;  %v7557_v24 = vld [vmem:[#allocation3 + $0x28] sm:$0xff]  ;;  %v7890_v13 = vld [vmem:[#allocation3 + $0x1b] sm:$0xff] }
 0xc09   :  { %7549 = vst.msk [vmem:[#allocation3 + $0x38] sm:$0xff] %vm1839_vm9, %v7539_v28  ;;  %v7563_v53 = vpack.c.bf16 %v7557_v24, %v7556_v1  ;;  %v7572_v54 = vld [vmem:[#allocation3 + $0x21] sm:$0xff] }
 0xc0a   :  { %11074 = vmatmul.mubr.msk.bf16.gmra.mrb[16].mxu0 %vm1839_vm9, %v7578_v33  ;;  %v7891_v51 = vld [vmem:[#allocation3 + $0x23] sm:$0xff]  ;;  %v7772_v26 = vld [vmem:[#allocation3 + $0x1a] sm:$0xff] }
 0xc0b   :  { %11077 = vmatprep.mubr.msk.bf16.mxu0 %vm11471_vm4, %v11470_v7  ;;  %v7898_v27 = vpack.c.bf16 %v7891_v51, %v7890_v13  ;;  %v7773_v46 = vld [vmem:[#allocation3 + $0x22] sm:$0xff] }
 0xc0c   :  { %11100 = vmatmul.mubr.msk.bf16.gmra.mrb[28].mxu1 %vm1839_vm9, %v7563_v53  ;;  %v7530_v52 = vld [vmem:[#allocation3 + $0x40] sm:$0xff]  ;;  %v7780_v63 = vpack.c.bf16 %v7773_v46, %v7772_v26 }
 0xc0d   :  { %11103 = vmatprep.mubr.msk.bf16.mxu1 %vm11471_vm4, %v11470_v7  ;;  %v7540_v21 = vmax.f32 %v7530_v52, 0.0 }
 0xc0e   :  { %v7531_v23 = vld [vmem:[#allocation3 + $0x48] sm:$0xff]  ;;  %v7558_v20 = vld [vmem:[#allocation3 + $0x30] sm:$0xff] }
 0xc0f   :  { %v7573_v22 = vld [vmem:[#allocation3 + $0x29] sm:$0xff]  ;;  %7550 = vst.msk [vmem:[#allocation3 + $0x40] sm:$0xff] %vm1839_vm9, %v7540_v21  ;;  %v7541_v35 = vmax.f32 %v7531_v23, 0.0 }
 0xc10   :  { %v7579_v60 = vpack.c.bf16 %v7573_v22, %v7572_v54  ;;  %v7559_v42 = vld [vmem:[#allocation3 + $0x38] sm:$0xff]  ;;  %v7892_v41 = vld [vmem:[#allocation3 + $0x2b] sm:$0xff] }
 0xc11   :  { %7551 = vst.msk [vmem:[#allocation3 + $0x48] sm:$0xff] %vm1839_vm9, %v7541_v35  ;;  %v7564_v45 = vpack.c.bf16 %v7559_v42, %v7558_v20  ;;  %v7574_v31 = vld [vmem:[#allocation3 + $0x31] sm:$0xff] }
 0xc12   :  { %11078 = vmatmul.mubr.msk.bf16.gmra.mrb[20].mxu0 %vm1839_vm9, %v7579_v60  ;;  %v7893_v0 = vld [vmem:[#allocation3 + $0x33] sm:$0xff]  ;;  %v7774_v36 = vld [vmem:[#allocation3 + $0x2a] sm:$0xff] }
 0xc13   :  { %11081 = vmatprep.mubr.msk.bf16.mxu0 %vm11471_vm4, %v11470_v7  ;;  %v7899_v3 = vpack.c.bf16 %v7893_v0, %v7892_v41  ;;  %v7775_v29 = vld [vmem:[#allocation3 + $0x32] sm:$0xff] }
 0xc14   :  { %11104 = vmatmul.mubr.msk.bf16.gmra.mrb[32].mxu1 %vm1839_vm9, %v7564_v45  ;;  %v7781_v48 = vpack.c.bf16 %v7775_v29, %v7774_v36 }
 0xc15   :  { %11107 = vmatprep.mubr.msk.bf16.mxu1 %vm11471_vm4, %v11470_v7 }
 0xc16   :  { %v7575_v30 = vld [vmem:[#allocation3 + $0x39] sm:$0xff]  ;;  %v7576_v5 = vld [vmem:[#allocation3 + $0x41] sm:$0x7] }
 0xc17   :  { %v7560_v61 = vld [vmem:[#allocation3 + $0x40] sm:$0x7]  ;;  %v7580_v6 = vpack.c.bf16 %v7575_v30, %v7574_v31  ;;  %v7581_v38 = vpack.c.bf16 %v7576_v5, %v7576_v5 }
 0xc18   :  { %v7565_v47 = vpack.c.bf16 %v7560_v61, %v7560_v61  ;;  %v7895_v43 = vld [vmem:[#allocation3 + $0x43] sm:$0xff]  ;;  %v7894_v32 = vld [vmem:[#allocation3 + $0x3b] sm:$0xff]  ;;  %v7896_v8 = vld [vmem:[#allocation3 + $0x4b] sm:$0x7] }
 0xc19   :  { %v7900_v56 = vpack.c.bf16 %v7895_v43, %v7894_v32  ;;  %v7777_v2 = vld [vmem:[#allocation3 + $0x42] sm:$0xff]  ;;  %v7776_v9 = vld [vmem:[#allocation3 + $0x3a] sm:$0xff]  ;;  %v7901_v50 = vpack.c.bf16 %v7896_v8, %v7896_v8  ;;  %v7778_v14 = vld [vmem:[#allocation3 + $0x4a] sm:$0x7] }
 0xc1a   :  { %11082 = vmatmul.mubr.msk.bf16.gmra.mrb[24].mxu0 %vm1839_vm9, %v7580_v6  ;;  %v7782_v11 = vpack.c.bf16 %v7777_v2, %v7776_v9  ;;  %v7783_v55 = vpack.c.bf16 %v7778_v14, %v7778_v14  ;;  %v14289_v9 = vld [vmem:[%s14463_s11] ss:$0 sm:$0xff] }
 0xc1b   :  { %11085 = vmatprep.mubr.msk.bf16.mxu0 %vm11471_vm4, %v11470_v7 }
 0xc1c   :  { %11108 = vmatmul.mubr.msk.bf16.gmra.mrb[36].mxu1 %vm1839_vm9, %v7565_v47 }
 0xc1d   :  { %11135 = vmatprep.mubr.msk.bf16.mxu1 %vm11471_vm4, %v11470_v7 }
 0xc22   :  { %11086 = vmatmul.mubr.msk.bf16.gmra.mrb[28].mxu0 %vm1839_vm9, %v7581_v38 }
 0xc23   :  { %11113 = vmatprep.mubr.msk.bf16.mxu0 %vm11471_vm4, %v11470_v7 }
 0xc24   :  { %11136 = vmatmul.mubr.msk.bf16.vlgmr.msra.gmra.mrb[40].mxu1 %vm1839_vm9, %v7897_v25 }
 0xc25   :  { %11139 = vmatprep.mubr.msk.bf16.mxu1 %vm11471_vm4, %v11470_v7  ;;  %11178 = vmatpush3.bf16.msra.mxu1 %v11451_v37 }
 0xc2a   :  { %11114 = vmatmul.mubr.msk.bf16.vlgmr.msra.gmra.mrb[32].mxu0 %vm1839_vm9, %v7779_v10 }
 0xc2b   :  { %11117 = vmatprep.mubr.msk.bf16.mxu0 %vm11471_vm4, %v11470_v7 }
 0xc2c   :  { %11140 = vmatmul.mubr.msk.bf16.gmra.mrb[44].mxu1 %vm1839_vm9, %v7898_v27 }
 0xc2d   :  { %11143 = vmatprep.mubr.msk.bf16.mxu1 %vm11471_vm4, %v11470_v7 }
 0xc32   :  { %11118 = vmatmul.mubr.msk.bf16.gmra.mrb[36].mxu0 %vm1839_vm9, %v7780_v63 }
 0xc33   :  { %11121 = vmatprep.mubr.msk.bf16.mxu0 %vm11471_vm4, %v11470_v7 }
 0xc34   :  { %11144 = vmatmul.mubr.msk.bf16.gmra.mrb[48].mxu1 %vm1839_vm9, %v7899_v3 }
 0xc35   :  { %11147 = vmatprep.mubr.msk.bf16.mxu1 %vm11471_vm4, %v11470_v7 }
 0xc3a   :  { %11122 = vmatmul.mubr.msk.bf16.gmra.mrb[40].mxu0 %vm1839_vm9, %v7781_v48 }
 0xc3b   :  { %11125 = vmatprep.mubr.msk.bf16.mxu0 %vm11471_vm4, %v11470_v7 }
 0xc3c   :  { %11148 = vmatmul.mubr.msk.bf16.gmra.mrb[52].mxu1 %vm1839_vm9, %v7900_v56 }
 0xc3d   :  { %11151 = vmatprep.mubr.msk.bf16.mxu1 %vm11471_vm4, %v11470_v7 }
 0xc42   :  { %11126 = vmatmul.mubr.msk.bf16.gmra.mrb[44].mxu0 %vm1839_vm9, %v7782_v11 }
 0xc43   :  { %11129 = vmatprep.mubr.msk.bf16.mxu0 %vm11471_vm4, %v11470_v7 }
 0xc44   :  { %11152 = vmatmul.mubr.msk.bf16.gmra.mrb[56].mxu1 %vm1839_vm9, %v7901_v50 }
 0xc4a   :  { %11130 = vmatmul.mubr.msk.bf16.gmra.mrb[48].mxu0 %vm1839_vm9, %v7783_v55 }
 0xc4b   :  { %11165 = vmatprep.mubr.msk.bf16.mxu0 %vm11471_vm4, %v11470_v7 }
 0xcce   :  { %v7732_v19 = vpop.f32.mrb[20].mxu1 }
 0xccf   :  { %v11093_v4 = vpop.f32.mrb[21].mxu1 }
 0xcd0   :  { %v7735_v18 = vpop.f32.mrb[22].mxu1 }
 0xcd1   :  { %v11094_v59 = vpop.f32.mrb[23].mxu1 }
 0xcd5   :  { %v7639_v44 = vpop.f32.mrb[12].mxu0 }
 0xcd6   :  { %v7733_v58 = vadd.f32 %v7732_v19, %v7639_v44  ;;  %v11071_v49 = vpop.f32.mrb[13].mxu0  ;;  %v14295_v44 = vld [vmem:[%s14464_s12] ss:$0 sm:$0xff] }
 0xcd7   :  { %v7642_v17 = vpop.f32.mrb[14].mxu0  ;;  %v7740_v12 = vpop.f32.mrb[24].mxu1 }
 0xcd8   :  { %v7736_v16 = vadd.f32 %v7735_v18, %v7642_v17  ;;  %v11072_v62 = vpop.f32.mrb[15].mxu0  ;;  %v11097_v57 = vpop.f32.mrb[25].mxu1 }
 0xcd9   :  { %v7743_v28 = vpop.f32.mrb[26].mxu1 }
 0xcda   :  { %v11098_v33 = vpop.f32.mrb[27].mxu1 }
 0xcdd   :  { %v7647_v1 = vpop.f32.mrb[16].mxu0 }
 0xcde   :  { %v7741_v24 = vadd.f32 %v7740_v12, %v7647_v1  ;;  %v11075_v53 = vpop.f32.mrb[17].mxu0 }
 0xcdf   :  { %v7650_v52 = vpop.f32.mrb[18].mxu0  ;;  %v7748_v21 = vpop.f32.mrb[28].mxu1 }
 0xce0   :  { %v7744_v23 = vadd.f32 %v7743_v28, %v7650_v52  ;;  %v11076_v54 = vpop.f32.mrb[19].mxu0  ;;  %v11101_v22 = vpop.f32.mrb[29].mxu1  ;;  %v14302_v28 = vld [vmem:[%s14465_s13] ss:$0 sm:$0xff] }
 0xce1   :  { %v7751_v35 = vpop.f32.mrb[30].mxu1 }
 0xce2   :  { %v11102_v60 = vpop.f32.mrb[31].mxu1 }
 0xce5   :  { %v7655_v20 = vpop.f32.mrb[20].mxu0 }
 0xce6   :  { %v14276_v42 = vadd.f32 %v7748_v21, %v7655_v20  ;;  %v11079_v45 = vpop.f32.mrb[21].mxu0 }
 0xce7   :  { %v7658_v31 = vpop.f32.mrb[22].mxu0  ;;  %v7756_v30 = vpop.f32.mrb[32].mxu1 }
 0xce8   :  { %v14278_v61 = vadd.f32 %v7751_v35, %v7658_v31  ;;  %v11080_v6 = vpop.f32.mrb[23].mxu0  ;;  %v11105_v47 = vpop.f32.mrb[33].mxu1 }
 0xce9   :  { %v7759_v5 = vpop.f32.mrb[34].mxu1 }
 0xcea   :  { %v11106_v34 = vpop.f32.mrb[35].mxu1 }
 0xced   :  { %v7663_v38 = vpop.f32.mrb[24].mxu0 }
 0xcee   :  { %v14280_v39 = vadd.f32 %v7756_v30, %v7663_v38  ;;  %v11083_v25 = vpop.f32.mrb[25].mxu0 }
 0xcef   :  { %v7666_v40 = vpop.f32.mrb[26].mxu0  ;;  %v7764_v15 = vpop.f32.mrb[36].mxu1 }
 0xcf0   :  { %v14282_v51 = vadd.f32 %v7759_v5, %v7666_v40  ;;  %v11084_v10 = vpop.f32.mrb[27].mxu0  ;;  %v11109_v13 = vpop.f32.mrb[37].mxu1 }
 0xcf1   :  { %v7767_v27 = vpop.f32.mrb[38].mxu1 }
 0xcf2   :  { %v11110_v46 = vpop.f32.mrb[39].mxu1 }
 0xcf5   :  { %v7671_v26 = vpop.f32.mrb[28].mxu0 }
 0xcf6   :  { %v14284_v0 = vadd.f32 %v7764_v15, %v7671_v26  ;;  %v11087_v63 = vpop.f32.mrb[29].mxu0 }
 0xcf7   :  { %v7674_v41 = vpop.f32.mrb[30].mxu0  ;;  %v7959_v3 = vpop.f32.mrb[40].mxu1 }
 0xcf8   :  { %v11088_v29 = vpop.f32.mrb[31].mxu0  ;;  %v11137_v36 = vpop.f32.mrb[41].mxu1 }
 0xcf9   :  { %v7962_v43 = vpop.f32.mrb[42].mxu1 }
 0xcfa   :  { %v11138_v48 = vpop.f32.mrb[43].mxu1 }
 0xcfd   :  { %v7841_v32 = vpop.f32.mrb[32].mxu0 }
 0xcfe   :  { %v7879_v56 = vadd.f32 %v7841_v32, %v7733_v58  ;;  %v11115_v2 = vpop.f32.mrb[33].mxu0 }
 0xcff   :  { %v7844_v8 = vpop.f32.mrb[34].mxu0  ;;  %v7967_v11 = vpop.f32.mrb[44].mxu1 }
 0xd00   :  { %v7997_v50 = vadd.f32 %v7959_v3, %v7879_v56  ;;  %v7880_v14 = vadd.f32 %v7844_v8, %v7736_v16  ;;  %v11116_v55 = vpop.f32.mrb[35].mxu0  ;;  %v11141_v37 = vpop.f32.mrb[45].mxu1 }
 0xd01   :  { %v7970_v19 = vpop.f32.mrb[46].mxu1 }
 0xd02   :  { %v8013_v4 = vadd.f32 %v14289_v9, %v7997_v50  ;;  %v7998_v18 = vadd.f32 %v7962_v43, %v7880_v14  ;;  %v11142_v59 = vpop.f32.mrb[47].mxu1 }
 0xd04   :  { %v8022_v58 = vmax.f32 %v8013_v4, 0.0  ;;  %v8014_v49 = vadd.f32 %v14289_v9, %v7998_v18 }
 0xd05   :  { %v7849_v17 = vpop.f32.mrb[36].mxu0 }
 0xd06   :  { %v8038_v12 = vmul.f32 %v14295_v44, %v8022_v58  ;;  %v8023_v62 = vmax.f32 %v8014_v49, 0.0  ;;  %v7881_v16 = vadd.f32 %v7849_v17, %v7741_v24  ;;  %v11119_v57 = vpop.f32.mrb[37].mxu0 }
 0xd07   :  { %v7852_v33 = vpop.f32.mrb[38].mxu0  ;;  %v7975_v1 = vpop.f32.mrb[48].mxu1 }
 0xd08   :  { %v8039_v53 = vmul.f32 %v14295_v44, %v8023_v62  ;;  %v7999_v52 = vadd.f32 %v7967_v11, %v7881_v16  ;;  %v7882_v21 = vadd.f32 %v7852_v33, %v7744_v23  ;;  %v11120_v54 = vpop.f32.mrb[39].mxu0  ;;  %v11145_v22 = vpop.f32.mrb[49].mxu1  ;;  %v8054_v60 = vadd.f32 %v14302_v28, %v8038_v12 }
 0xd09   :  { %v7978_v35 = vpop.f32.mrb[50].mxu1 }
 0xd0a   :  { %v8055_v20 = vadd.f32 %v14302_v28, %v8039_v53  ;;  %v8015_v24 = vadd.f32 %v14289_v9, %v7999_v52  ;;  %v8000_v45 = vadd.f32 %v7970_v19, %v7882_v21  ;;  %v11146_v31 = vpop.f32.mrb[51].mxu1 }
 0xd0c   :  { %v8024_v30 = vmax.f32 %v8015_v24, 0.0  ;;  %v8016_v6 = vadd.f32 %v14289_v9, %v8000_v45  ;;  %v8068_v47 = vpack.c.bf16 %v8055_v20, %v8054_v60 }
 0xd0d   :  { %v7857_v5 = vpop.f32.mrb[40].mxu0 }
 0xd0e   :  { %v8040_v34 = vmul.f32 %v14295_v44, %v8024_v30  ;;  %v8025_v38 = vmax.f32 %v8016_v6, 0.0  ;;  %v7883_v23 = vadd.f32 %v7857_v5, %v14276_v42  ;;  %v11123_v25 = vpop.f32.mrb[41].mxu0  ;;  %11156 = vmatpush3.bf16.msra.mxu0 %v8068_v47  ;;  %v14505_v47 = vld [vmem:[#allocation7_spill] sm:$0xff] }
 0xd0f   :  { %v7860_v40 = vpop.f32.mrb[42].mxu0  ;;  %v7983_v15 = vpop.f32.mrb[52].mxu1  ;;  %11157 = vmatprep.subr.bf16.mxu0 %v11470_v7 }
 0xd10   :  { %v8041_v10 = vmul.f32 %v14295_v44, %v8025_v38  ;;  %v8001_v13 = vadd.f32 %v7975_v1, %v7883_v23  ;;  %v7884_v27 = vadd.f32 %v7860_v40, %v14278_v61  ;;  %v11124_v46 = vpop.f32.mrb[43].mxu0  ;;  %v11149_v26 = vpop.f32.mrb[53].mxu1  ;;  %v8056_v41 = vadd.f32 %v14302_v28, %v8040_v34  ;;  %v11448_v34 = vld [vmem:[%s14462_s14] sm:$0xff]   ;;  %v11453_v38 = vld [vmem:[%s14466_s15 + $0x10] sm:$0xff]  }
 0xd11   :  { %v7986_v63 = vpop.f32.mrb[54].mxu1 }
 0xd12   :  { %v8057_v3 = vadd.f32 %v14302_v28, %v8041_v10  ;;  %v8017_v42 = vadd.f32 %v14289_v9, %v8001_v13  ;;  %v8002_v29 = vadd.f32 %v7978_v35, %v7884_v27  ;;  %v11150_v36 = vpop.f32.mrb[55].mxu1 }
 0xd14   :  { %v8026_v43 = vmax.f32 %v8017_v42, 0.0  ;;  %v8018_v48 = vadd.f32 %v14289_v9, %v8002_v29  ;;  %v8069_v32 = vpack.c.bf16 %v8057_v3, %v8056_v41 }
 0xd15   :  { %v7865_v56 = vpop.f32.mrb[44].mxu0 }
 0xd16   :  { %v8042_v2 = vmul.f32 %v14295_v44, %v8026_v43  ;;  %v8027_v8 = vmax.f32 %v8018_v48, 0.0  ;;  %v7885_v61 = vadd.f32 %v7865_v56, %v14280_v39  ;;  %v11127_v11 = vpop.f32.mrb[45].mxu0  ;;  %11158 = vmatpush3.bf16.msra.mxu0 %v8069_v32  ;;  %v11454_v48 = vld [vmem:[%s14466_s15 + $0x18] sm:$0xff]  }
 0xd17   :  { %v7868_v50 = vpop.f32.mrb[46].mxu0  ;;  %v7991_v14 = vpop.f32.mrb[56].mxu1  ;;  %11159 = vmatprep.subr.bf16.mxu0 %v11470_v7 }
 0xd18   :  { %v8043_v55 = vmul.f32 %v14295_v44, %v8027_v8  ;;  %v8003_v37 = vadd.f32 %v7983_v15, %v7885_v61  ;;  %v7886_v19 = vadd.f32 %v7868_v50, %v14282_v51  ;;  %v11128_v4 = vpop.f32.mrb[47].mxu0  ;;  %v11153_v18 = vpop.f32.mrb[57].mxu1  ;;  %v8058_v58 = vadd.f32 %v14302_v28, %v8042_v2  ;;  %v11455_v8 = vld [vmem:[%s14466_s15 + $0x20] sm:$0xff]  }
 0xd19   :  { %v7994_v59 = vpop.f32.mrb[58].mxu1 }
 0xd1a   :  { %v8059_v49 = vadd.f32 %v14302_v28, %v8043_v55  ;;  %v8019_v39 = vadd.f32 %v14289_v9, %v8003_v37  ;;  %v8004_v17 = vadd.f32 %v7986_v63, %v7886_v19  ;;  %v11154_v12 = vpop.f32.mrb[59].mxu1  ;;  %v11456_v55 = vld [vmem:[%s14466_s15 + $0x28] sm:$0xff]   ;;  %v11457_v19 = vld [vmem:[%s14466_s15 + $0x30] sm:$0xff]  }
 0xd1c   :  { %v8028_v62 = vmax.f32 %v8019_v39, 0.0  ;;  %v8020_v16 = vadd.f32 %v14289_v9, %v8004_v17  ;;  %v8070_v57 = vpack.c.bf16 %v8059_v49, %v8058_v58  ;;  %v11458_v49 = vld [vmem:[%s14466_s15 + $0x38] sm:$0xff]   ;;  %v11459_v17 = vld [vmem:[%s14466_s15 + $0x40] sm:$0xff]  }
 0xd1d   :  { %v7873_v33 = vpop.f32.mrb[48].mxu0 }
 0xd1e   :  { %v8044_v1 = vmul.f32 %v14295_v44, %v8028_v62  ;;  %v8029_v53 = vmax.f32 %v8020_v16, 0.0  ;;  %v7887_v51 = vadd.f32 %v7873_v33, %v14284_v0  ;;  %v11131_v52 = vpop.f32.mrb[49].mxu0  ;;  %11160 = vmatpush3.bf16.msra.mxu0 %v8070_v57  ;;  %v11460_v33 = vld [vmem:[%s14466_s15 + $0x48] sm:$0xff]  }
 0xd1f   :  { %v7876_v21 = vpop.f32.mrb[50].mxu0  ;;  %11161 = vmatprep.subr.bf16.mxu0 %v11470_v7 }
 0xd20   :  { %v8045_v54 = vmul.f32 %v14295_v44, %v8029_v53  ;;  %v8005_v22 = vadd.f32 %v7991_v14, %v7887_v51  ;;  %v11132_v35 = vpop.f32.mrb[51].mxu0  ;;  %v8060_v60 = vadd.f32 %v14302_v28, %v8044_v1  ;;  %v11461_v53 = vld [vmem:[%s14466_s15 + $0x50] sm:$0xff]   ;;  %v11462_v21 = vld [vmem:[%s14466_s15 + $0x58] sm:$0xff]  }
 0xd22   :  { %v8061_v20 = vadd.f32 %v14302_v28, %v8045_v54  ;;  %v8021_v24 = vadd.f32 %v14289_v9, %v8005_v22  ;;  %v11449_v9 = vld [vmem:[%s14462_s14 + $0x8] sm:$0xff]   ;;  %v11463_v22 = vld [vmem:[%s14466_s15 + $0x60] sm:$0xff]  }
 0xd24   :  { %v8030_v45 = vmax.f32 %v8021_v24, 0.0  ;;  %v8071_v31 = vpack.c.bf16 %v8061_v20, %v8060_v60 }
 0xd26   :  { %v8046_v30 = vmul.f32 %v14295_v44, %v8030_v45  ;;  %11162 = vmatpush3.bf16.msra.mxu0 %v8071_v31  ;;  %v11450_v44 = vld [vmem:[%s14462_s14 + $0x10] ss:$0 sps:$4 sm:$0x77]   ;;  %v11464_v45 = vld [vmem:[%s14466_s15 + $0x68] sm:$0xff]  }
 0xd27   :  { %11163 = vmatprep.subr.bf16.mxu0 %v11470_v7 }
 0xd28   :  { %v8062_v0 = vadd.f32 %v14302_v28, %v8046_v30  ;;  %v11452_v28 = vld [vmem:[%s14466_s15 + $0x8] sm:$0xff]   ;;  %v11465_v30 = vld [vmem:[%s14466_s15 + $0x70] sm:$0xff]  }
 0xd29   :  { %11179 = vmatprep.subr.bf16.mxu1 %v11452_v28 }
 0xd2a   :  { %v8072_v6 = vpack.c.bf16 %v8062_v0, %v8062_v0  ;;  %11180 = vmatpush3.bf16.msra.mxu1 %v11452_v28 }
 0xd2b   :  { %11185 = vmatprep.subr.bf16.mxu1 %v11453_v38 }
 0xd2c   :  { %v8096_v5 = vand.u32 %v8072_v6, %v14505_v47 }
 0xd2e   :  { %11164 = vmatpush3.bf16.msra.mxu0 %v8096_v5 }
 0xd31   :  { %11166 = vmatmul.mubr.msk.bf16.vlgmr.msra.gmra.mrb[52].mxu0 %vm3685_vm13, %v11448_v34  ;;  %v11466_v34 = vld [vmem:[%s14466_s15 + $0x78] sm:$0xff]  }
 0xd32   :  { %11169 = vmatprep.mubr.msk.bf16.mxu0 %vm11471_vm4, %v11470_v7 }
 0xd39   :  { %11170 = vmatmul.mubr.msk.bf16.gmra.mrb[56].mxu0 %vm3685_vm13, %v11449_v9 }
 0xd3a   :  { %11173 = vmatprep.mubr.msk.bf16.mxu0 %vm11471_vm4, %v11470_v7 }
 0xd41   :  { %11174 = vmatmul.mubr.msk.bf16.gmra.mrb[60].mxu0 %vm3685_vm13, %v11450_v44  ;;  %v11467_v44 = vld [vmem:[%s14466_s15 + $0x80] sm:$0xff]  }
 0xe04   :  { %v8132_v23 = vpop.f32.mrb[52].mxu0 }
 0xe05   :  { %8154 = vst.msk [vmem:[#allocation5] sm:$0xff] %vm3758_vm14, %v8132_v23  ;;  %v11167_v7 = vpop.f32.mrb[53].mxu0  ;;  %v11468_v23 = vld [vmem:[%s14466_s15 + $0x88] sm:$0xff]  }
 0xe06   :  { %v8135_v25 = vpop.f32.mrb[54].mxu0 }
 0xe07   :  { %8155 = vst.msk [vmem:[#allocation5 + $0x8] sm:$0xff] %vm3758_vm14, %v8135_v25  ;;  %v11168_v40 = vpop.f32.mrb[55].mxu0 }
 0xe0c   :  { %v8140_v15 = vpop.f32.mrb[56].mxu0  ;;  %v8159_v27 = vld [vmem:[#allocation5] sm:$0xff] }
 0xe0d   :  { %8156 = vst.msk [vmem:[#allocation5 + $0x10] sm:$0xff] %vm3758_vm14, %v8140_v15  ;;  %v11171_v10 = vpop.f32.mrb[57].mxu0  ;;  %v9441_v15 = vld [vmem:[%s14467_s16] ss:$0 sm:$0xff] }
 0xe0e   :  { %v8143_v13 = vpop.f32.mrb[58].mxu0  ;;  %v14363_v46 = vld [vmem:[#allocation5 + $0x8] sm:$0xff] }
 0xe0f   :  { %8157 = vst.msk [vmem:[#allocation5 + $0x18] sm:$0xff] %vm3758_vm14, %v8143_v13  ;;  %v11172_v26 = vpop.f32.mrb[59].mxu0  ;;  %v8162_v63 = vpack.c.bf16 %v14363_v46, %v8159_v27  ;;  %v8241_v42 = vld [vmem:[#allocation5 + $0x1] sm:$0xff] }
 0xe10   :  { %v8319_v14 = vld [vmem:[#allocation5 + $0x2] sm:$0xff] }
 0xe11   :  { %11181 = vmatprep.mubr.msk.bf16.mxu1 %vm3758_vm14, %v8162_v63  ;;  %v8397_v58 = vld [vmem:[#allocation5 + $0x6] sm:$0xff] }
 0xe12   :  { %v8475_v57 = vld [vmem:[#allocation5 + $0x7] sm:$0xff] }
 0xe14   :  { %v8148_v41 = vpop.f32.mrb[60].mxu0  ;;  %v8161_v3 = vld [vmem:[#allocation5 + $0x10] sm:$0xff] }
 0xe15   :  { %v8242_v29 = vld [vmem:[#allocation5 + $0x9] sm:$0xff]  ;;  %8158 = vst.msk [vmem:[#allocation5 + $0x20] sm:$0x3f] %vm3763_vm15, %v8148_v41  ;;  %v8163_v36 = vpack.c.bf16 %v8161_v3, %v8161_v3  ;;  %v11175_v32 = vpop.f32.mrb[61].mxu0  ;;  %v8556_v54 = vpack.c.bf16 %v8161_v3, %v14363_v46 }
 0xe16   :  { %v8244_v43 = vpack.c.bf16 %v8242_v29, %v8241_v42  ;;  %v8151_v56 = vpop.f32.mrb[62].mxu0  ;;  %v8243_v61 = vld [vmem:[#allocation5 + $0x11] sm:$0xff] }
 0xe17   :  { %11182 = vmatmul.mubr.msk.bf16.vlgmr.msra.gmra.mrb[60].mxu1 %vm3758_vm14, %v8163_v36  ;;  %v11176_v2 = vpop.f32.mrb[63].mxu0  ;;  %v8320_v11 = vld [vmem:[#allocation5 + $0xa] sm:$0xff]  ;;  %v8245_v50 = vpack.c.bf16 %v8243_v61, %v8243_v61  ;;  %v8321_v4 = vld [vmem:[#allocation5 + $0x12] sm:$0xff] }
 0xe18   :  { %11189 = vmatprep.mubr.msk.bf16.mxu1 %vm3758_vm14, %v8244_v43  ;;  %11186 = vmatpush3.bf16.msra.mxu1 %v11453_v38  ;;  %v8322_v37 = vpack.c.bf16 %v8320_v11, %v8319_v14  ;;  %v14385_v18 = vld [vmem:[#allocation5 + $0xe] sm:$0xff]  ;;  %v8323_v59 = vpack.c.bf16 %v8321_v4, %v8321_v4  ;;  %v8399_v12 = vld [vmem:[#allocation5 + $0x16] sm:$0xff] }
 0xe19   :  { %11187 = vmatprep.subr.bf16.mxu1 %v11454_v48  ;;  %v8400_v39 = vpack.c.bf16 %v14385_v18, %v8397_v58  ;;  %v8476_v62 = vld [vmem:[#allocation5 + $0xf] sm:$0xff]  ;;  %v8401_v16 = vpack.c.bf16 %v8399_v12, %v8399_v12  ;;  %v8477_v51 = vld [vmem:[#allocation5 + $0x17] sm:$0xff]  ;;  %v8790_v7 = vpack.c.bf16 %v8399_v12, %v14385_v18 }
 0xe1a   :  { %v8478_v1 = vpack.c.bf16 %v8476_v62, %v8475_v57  ;;  %v8479_v52 = vpack.c.bf16 %v8477_v51, %v8477_v51  ;;  %v8555_v35 = vld [vmem:[#allocation5 + $0x18] sm:$0xff]  ;;  %v8631_v24 = vld [vmem:[#allocation5 + $0xc] sm:$0xff] }
 0xe1b   :  { %v8632_v60 = vld [vmem:[#allocation5 + $0x14] sm:$0xff]  ;;  %v8557_v20 = vpack.c.bf16 %v8555_v35, %v8555_v35 }
 0xe1c   :  { %11188 = vmatpush3.bf16.msra.mxu1 %v11454_v48  ;;  %v8634_v31 = vpack.c.bf16 %v8632_v60, %v8631_v24  ;;  %v8633_v0 = vld [vmem:[#allocation5 + $0x1c] sm:$0xff]  ;;  %v8709_v5 = vld [vmem:[#allocation5 + $0xd] sm:$0xff] }
 0xe1d   :  { %11193 = vmatprep.subr.bf16.mxu1 %v11455_v8  ;;  %v8710_v6 = vld [vmem:[#allocation5 + $0x15] sm:$0xff]  ;;  %v8635_v47 = vpack.c.bf16 %v8633_v0, %v8633_v0  ;;  %v8711_v28 = vld [vmem:[#allocation5 + $0x1d] sm:$0xff] }
 0xe1e   :  { %v8712_v9 = vpack.c.bf16 %v8710_v6, %v8709_v5  ;;  %v8713_v38 = vpack.c.bf16 %v8711_v28, %v8711_v28  ;;  %v8789_v25 = vld [vmem:[#allocation5 + $0x1e] sm:$0xff] }
 0xe1f   :  { %v8791_v40 = vpack.c.bf16 %v8789_v25, %v8789_v25 }
 0xe23   :  { %11190 = vmatmul.mubr.msk.bf16.vlgmr.msra.gmra.mrb[60].mxu1 %vm3758_vm14, %v8245_v50 }
 0xe24   :  { %11197 = vmatprep.mubr.msk.bf16.mxu1 %vm3758_vm14, %v8322_v37  ;;  %11194 = vmatpush3.bf16.msra.mxu1 %v11455_v8 }
 0xe25   :  { %11195 = vmatprep.subr.bf16.mxu1 %v11456_v55 }
 0xe28   :  { %11196 = vmatpush3.bf16.msra.mxu1 %v11456_v55 }
 0xe29   :  { %11201 = vmatprep.subr.bf16.mxu1 %v11457_v19 }
 0xe2f   :  { %11198 = vmatmul.mubr.msk.bf16.vlgmr.msra.gmra.mrb[60].mxu1 %vm3758_vm14, %v8323_v59 }
 0xe30   :  { %11205 = vmatprep.mubr.msk.bf16.mxu1 %vm3758_vm14, %v8400_v39  ;;  %11202 = vmatpush3.bf16.msra.mxu1 %v11457_v19 }
 0xe31   :  { %11203 = vmatprep.subr.bf16.mxu1 %v11458_v49 }
 0xe34   :  { %11204 = vmatpush3.bf16.msra.mxu1 %v11458_v49 }
 0xe35   :  { %11209 = vmatprep.subr.bf16.mxu1 %v11459_v17 }
 0xe3b   :  { %11206 = vmatmul.mubr.msk.bf16.vlgmr.msra.gmra.mrb[60].mxu1 %vm3758_vm14, %v8401_v16 }
 0xe3c   :  { %11213 = vmatprep.mubr.msk.bf16.mxu1 %vm3758_vm14, %v8478_v1  ;;  %11210 = vmatpush3.bf16.msra.mxu1 %v11459_v17 }
 0xe3d   :  { %11211 = vmatprep.subr.bf16.mxu1 %v11460_v33 }
 0xe40   :  { %11212 = vmatpush3.bf16.msra.mxu1 %v11460_v33 }
 0xe41   :  { %11217 = vmatprep.subr.bf16.mxu1 %v11461_v53 }
 0xe47   :  { %11214 = vmatmul.mubr.msk.bf16.vlgmr.msra.gmra.mrb[60].mxu1 %vm3758_vm14, %v8479_v52 }
 0xe48   :  { %11221 = vmatprep.mubr.msk.bf16.mxu1 %vm3758_vm14, %v8556_v54  ;;  %11218 = vmatpush3.bf16.msra.mxu1 %v11461_v53 }
 0xe49   :  { %11219 = vmatprep.subr.bf16.mxu1 %v11462_v21 }
 0xe4c   :  { %11220 = vmatpush3.bf16.msra.mxu1 %v11462_v21 }
 0xe4d   :  { %11225 = vmatprep.subr.bf16.mxu1 %v11463_v22 }
 0xe53   :  { %11222 = vmatmul.mubr.msk.bf16.vlgmr.msra.gmra.mrb[60].mxu1 %vm3758_vm14, %v8557_v20 }
 0xe54   :  { %11229 = vmatprep.mubr.msk.bf16.mxu1 %vm3758_vm14, %v8634_v31  ;;  %11226 = vmatpush3.bf16.msra.mxu1 %v11463_v22 }
 0xe55   :  { %11227 = vmatprep.subr.bf16.mxu1 %v11464_v45 }
 0xe58   :  { %11228 = vmatpush3.bf16.msra.mxu1 %v11464_v45 }
 0xe59   :  { %11233 = vmatprep.subr.bf16.mxu1 %v11465_v30 }
 0xe5f   :  { %11230 = vmatmul.mubr.msk.bf16.vlgmr.msra.gmra.mrb[60].mxu1 %vm3758_vm14, %v8635_v47 }
 0xe60   :  { %11237 = vmatprep.mubr.msk.bf16.mxu1 %vm3758_vm14, %v8712_v9  ;;  %11234 = vmatpush3.bf16.msra.mxu1 %v11465_v30 }
 0xe61   :  { %11235 = vmatprep.subr.bf16.mxu1 %v11466_v34 }
 0xe64   :  { %11236 = vmatpush3.bf16.msra.mxu1 %v11466_v34 }
 0xe65   :  { %11241 = vmatprep.subr.bf16.mxu1 %v11467_v44 }
 0xe6b   :  { %11238 = vmatmul.mubr.msk.bf16.vlgmr.msra.gmra.mrb[60].mxu1 %vm3758_vm14, %v8713_v38 }
 0xe6c   :  { %11245 = vmatprep.mubr.msk.bf16.mxu1 %vm3758_vm14, %v8790_v7  ;;  %11242 = vmatpush3.bf16.msra.mxu1 %v11467_v44 }
 0xe6d   :  { %11243 = vmatprep.subr.bf16.mxu1 %v11468_v23 }
 0xe70   :  { %11244 = vmatpush3.bf16.msra.mxu1 %v11468_v23 }
 0xe77   :  { %11246 = vmatmul.mubr.msk.bf16.vlgmr.msra.gmra.mrb[60].mxu1 %vm3758_vm14, %v8791_v40 }
 0xf4a   :  { %v11247_v10 = vpop.f32.mrb[60].mxu1 }
 0xf4b   :  { %v11254_v13 = vadd.f32 %v11247_v10, %v9441_v15  ;;  %v8848_v27 = vpop.f32.mrb[61].mxu1 }
 0xf4c   :  { %v11255_v46 = vadd.f32 %v9441_v15, %v8848_v27  ;;  %v11248_v26 = vpop.f32.mrb[62].mxu1 }
 0xf4d   :  { %v8867_v63 = vmax.f32 %v11254_v13, 0.0  ;;  %v8851_v41 = vpop.f32.mrb[63].mxu1 }
 0xf4e   :  { %v8865_v3 = vmax.f32 %v11255_v46, 0.0  ;;  %v11256_v42 = vadd.f32 %v9441_v15, %v8851_v41 }
 0xf4f   :  { %9512 = vst.msk [vmem:[%s14468_s17 + $0x28] sm:$0xff] %vm3758_vm14, %v8867_v63 }
 0xf50   :  { %9510 = vst.msk [vmem:[%s14468_s17 + $0x18] sm:$0xff] %vm3758_vm14, %v8865_v3  ;;  %v8866_v29 = vmax.f32 %v11256_v42, 0.0 }
 0xf52   :  { %9511 = vst.msk [vmem:[%s14468_s17 + $0x20] sm:$0xff] %vm3758_vm14, %v8866_v29 }

</bundles_post_ra>
